<compile_context>
chip_gen: v6e
topology: v6e:2x2x1
jax: 0.10.0
libtpu: 0.0.40
codegen_flags: <defaults>
</compile_context>

<pallas_src>
from typing import NamedTuple, Tuple

import jax
import jax.numpy as jnp
from jax import lax
from jax.experimental import pallas as pl
from jax.experimental.pallas import tpu as pltpu

_LANE = 128
_SUBLANE = 8


def _round_up(n, m):
    return ((n + m - 1) // m) * m


def _pad_dim(d):
    # Pad large (hidden) dims to a lane multiple; leave narrow dims (<128)
    # unpadded -- full-array BlockSpecs don't require 128-multiple last dims
    # and the MXU masks small M/N/K internally.
    return d if d < _LANE else _round_up(d, _LANE)


# ---------------------------------------------------------------------------
# One-time parameter layout (cached across forward calls)
# ---------------------------------------------------------------------------
class PreparedParams(NamedTuple):
    weights: Tuple[jax.Array, ...]   # 18 arrays: (W^T zero-padded, bias) x 9 layers
    centroids: jax.Array             # (K, F) f32, unpadded
    centroid_sq: jax.Array           # (1, K) f32, precomputed ||c_k||^2


def prepare_params(params, weights_dtype=jnp.float32):
    """Transpose / pad / cast parameters ONCE; reuse the result every call."""
    enc_p, dec_p, feat_p, centroids = params

    def prep(w, b):
        w = jnp.asarray(w, jnp.float32).T                     # (in, out)
        i, o = w.shape
        ip, op = _pad_dim(i), _pad_dim(o)
        w = jnp.pad(w, ((0, ip - i), (0, op - o)))            # zero-pad: exact
        b = jnp.pad(jnp.asarray(b, jnp.float32).reshape(1, -1),
                    ((0, 0), (0, op - o)))
        return w.astype(weights_dtype), b                     # biases stay f32

    flat = []
    for w, b in list(enc_p) + list(dec_p) + [tuple(feat_p)]:
        flat += list(prep(w, b))
    c = jnp.asarray(centroids, jnp.float32)
    c2 = jnp.sum(c * c, axis=1).reshape(1, -1)                # (1, K)
    return PreparedParams(tuple(flat), c, c2)


# ---------------------------------------------------------------------------
# Fused kernel: encoder -> decoder -> contrastive head -> clustering q
# ---------------------------------------------------------------------------
def _fused_forward_kernel(x_ref,
                          we1, be1, we2, be2, we3, be3, we4, be4,
                          wd1, bd1, wd2, bd2, wd3, bd3, wd4, bd4,
                          wh, bh, c_ref, c2_ref,
                          z_ref, xr_ref, h_ref, q_ref):
    def linear(h, w_ref, b_ref, relu):
        w = w_ref[...]                       # (in, out): last-dim contraction -> MXU
        y = jnp.dot(h.astype(w.dtype), w, preferred_element_type=jnp.float32)
        y = y + b_ref[...]                   # bias (1, out) broadcasts
        return jnp.maximum(y, 0.0) if relu else y

    def pad_lanes(a, ref):
        # Keep output slabs 128-lane wide for unmasked stores.
        pad = ref.shape[-1] - a.shape[-1]
        if pad:
            a = jnp.pad(a, ((0, 0), (0, pad)))
        return a.astype(ref.dtype)

    # ---- encoder ----
    h = x_ref[...]
    h = linear(h, we1, be1, True)
    h = linear(h, we2, be2, True)
    h = linear(h, we3, be3, True)
    z = linear(h, we4, be4, False)
    z_ref[...] = pad_lanes(z, z_ref)

    # ---- decoder ----
    h = linear(z, wd1, bd1, True)
    h = linear(h, wd2, bd2, True)
    h = linear(h, wd3, bd3, True)
    xr_ref[...] = pad_lanes(linear(h, wd4, bd4, False), xr_ref)

    # ---- feature head + L2 normalize along features (dim=1, eps=1e-12) ----
    hf = linear(z, wh, bh, False)
    norm = jnp.sqrt(jnp.sum(hf * hf, axis=1, keepdims=True))
    h_ref[...] = pad_lanes(hf / jnp.maximum(norm, 1e-12), h_ref)

    # ---- student-t clustering: ||z - c||^2 = ||z||^2 + ||c||^2 - 2 z.c^T ----
    dn = (((1,), (1,)), ((), ()))
    z2 = jnp.sum(z * z, axis=1, keepdims=True)                        # (TB, 1)
    zc = lax.dot_general(z, c_ref[...], dn,
                         preferred_element_type=jnp.float32)           # (TB, K)
    dist = jnp.maximum(z2 + c2_ref[...] - 2.0 * zc, 0.0)
    q = 1.0 / (1.0 + dist)
    q_ref[...] = pad_lanes(q / jnp.sum(q, axis=1, keepdims=True), q_ref)


# ---------------------------------------------------------------------------
# Wrapper: single pallas_call over pre-laid-out params, slice outputs back
# ---------------------------------------------------------------------------
def _weight_spec(shape):
    idx = lambda *_: (0,) * len(shape)
    # Grid-invariant operand: single-buffer it (halves weight VMEM footprint).
    try:
        return pl.BlockSpec(shape, idx, pipeline_mode=pl.Buffered(1))
    except (AttributeError, TypeError):
        return pl.BlockSpec(shape, idx)


def _default_tb_cap():
    try:
        kind = jax.devices()[0].device_kind.lower()
    except Exception:
        return 256
    if "v5e" in kind or "v5 lite" in kind or "v5lite" in kind:
        return 128          # v5e MXU is 4x128x128 -> M=128 is the natural tile
    return 256              # v6e / v7x MXU is 2x256x256


def test_linear_forward(x, prep, *, tb_cap=None):
    """Mirror of test_linear.forward(x) -> (zs, xrs, hs, q)."""
    weights, centroids, c2 = prep
    batch, input_dim = x.shape
    class_num, feature_dim = centroids.shape
    # Head width (exact while high_feature_dim < 128 or a multiple of 128).
    high_dim = weights[17].shape[1]

    # ---- batch tiling ----
    tb_cap = tb_cap or _default_tb_cap()
    b_p = _round_up(batch, _SUBLANE)
    tb = min(b_p, tb_cap)
    b_p = _round_up(b_p, tb)
    grid = (b_p // tb,)

    in_p = _pad_dim(input_dim)
    x_pad = jnp.pad(x.astype(jnp.float32),
                    ((0, b_p - batch), (0, in_p - input_dim)))

    # Output slabs stay lane-dense (>= 128 wide), sliced back below.
    z_w = _round_up(feature_dim, _LANE)
    xr_w = _round_up(input_dim, _LANE)
    h_w = _round_up(high_dim, _LANE)
    q_w = _round_up(class_num, _LANE)

    batched = lambda cols: pl.BlockSpec((tb, cols), lambda i: (i, 0))
    in_specs = ([pl.BlockSpec((tb, in_p), lambda i: (i, 0))]
                + [_weight_spec(a.shape) for a in weights]
                + [_weight_spec(centroids.shape), _weight_spec(c2.shape)])
    out_specs = (batched(z_w), batched(xr_w), batched(h_w), batched(q_w))
    out_shape = tuple(jax.ShapeDtypeStruct((b_p, w), jnp.float32)
                      for w in (z_w, xr_w, h_w, q_w))

    # VMEM budget from the actual footprint. Weights x2 covers the
    # double-buffered fallback; with Buffered(1) real usage is ~half of that.
    weight_bytes = sum(int(a.size) * a.dtype.itemsize for a in weights)
    weight_bytes += int(centroids.size) * 4 + int(c2.size) * 4
    io_bytes = 2 * tb * (in_p + z_w + xr_w + h_w + q_w) * 4
    act_bytes = 8 * tb * 2048 * 4          # live activations + scratch slack
    vmem_limit = 2 * weight_bytes + io_bytes + act_bytes + (8 << 20)
    vmem_limit = int(max(32 << 20, min(vmem_limit, 64 << 20)))

    # Only shard the batch across TensorCores once the problem leaves the
    # memory-bound regime; earlier it just doubles the weight DMA traffic.
    semantics = ("parallel",) if b_p >= 2048 else ("arbitrary",)

    z_p, xr_p, hs_p, q_p = pl.pallas_call(
        _fused_forward_kernel,
        grid=grid,
        in_specs=in_specs,
        out_specs=out_specs,
        out_shape=out_shape,
        compiler_params=pltpu.CompilerParams(
            dimension_semantics=semantics,
            vmem_limit_bytes=vmem_limit),
    )(x_pad, *weights, centroids, c2)

    return (z_p[:batch, :feature_dim],
            xr_p[:batch, :input_dim],
            hs_p[:batch, :high_dim],
            q_p[:batch, :class_num])


# ---------------------------------------------------------------------------
# Deterministic parameter construction (PyTorch-style inits) + JAX reference
# ---------------------------------------------------------------------------
def _linear_params(key, in_dim, out_dim):
    k_w, k_b = jax.random.split(key)
    bound = 1.0 / (in_dim ** 0.5)
    w = jax.random.uniform(k_w, (out_dim, in_dim), jnp.float32, -bound, bound)
    b = jax.random.uniform(k_b, (out_dim,), jnp.float32, -bound, bound)
    return w, b


def make_params(key, input_dim, feature_dim, high_feature_dim, class_num):
    keys = jax.random.split(key, 10)
    enc_dims = [(input_dim, 500), (500, 500), (500, 2000), (2000, feature_dim)]
    dec_dims = [(feature_dim, 2000), (2000, 500), (500, 500), (500, input_dim)]
    enc_p = [_linear_params(keys[i], di, do) for i, (di, do) in enumerate(enc_dims)]
    dec_p = [_linear_params(keys[4 + i], di, do) for i, (di, do) in enumerate(dec_dims)]
    feat_p = _linear_params(keys[8], feature_dim, high_feature_dim)
    std = (2.0 / (class_num + feature_dim)) ** 0.5            # xavier_normal_
    centroids = std * jax.random.normal(keys[9], (class_num, feature_dim), jnp.float32)
    return enc_p, dec_p, feat_p, centroids


def _reference_forward(x, params):
    enc_p, dec_p, feat_p, centroids = params
    h = x
    for i, (w, b) in enumerate(enc_p):
        h = h @ w.T + b
        if i < len(enc_p) - 1:
            h = jnp.maximum(h, 0.0)
    z = h
    h = z
    for i, (w, b) in enumerate(dec_p):
        h = h @ w.T + b
        if i < len(dec_p) - 1:
            h = jnp.maximum(h, 0.0)
    xr = h
    hf = z @ feat_p[0].T + feat_p[1]
    hs = hf / jnp.maximum(jnp.linalg.norm(hf, axis=1, keepdims=True), 1e-12)
    d = jnp.sum((z[:, None, :] - centroids[None, :, :]) ** 2, axis=2)
    q = 1.0 / (1.0 + d)
    q = q / jnp.sum(q, axis=1, keepdims=True)
    return z, xr, hs, q


# TODO(synk): forward_feature / forward_label / mask_correlated_samples are
# training-loss helpers (not part of forward) and are not implemented here.

if __name__ == "__main__":
    key = jax.random.PRNGKey(0)
    input_dim, feature_dim, high_feature_dim, class_num, batch = 64, 32, 16, 4, 8

    k_params, k_data = jax.random.split(key)
    params = make_params(k_params, input_dim, feature_dim, high_feature_dim, class_num)
    x = jax.random.normal(k_data, (batch, input_dim), jnp.float32)

    # Weight re-layout happens ONCE here (not inside the jitted forward).
    # For ~2x less weight DMA (non-bit-exact), pass weights_dtype=jnp.bfloat16.
    prep = prepare_params(params, weights_dtype=jnp.float32)
    prep = jax.tree_util.tree_map(jax.block_until_ready, prep)

    fwd = jax.jit(test_linear_forward)
    zs, xrs, hs, q = fwd(x, prep)
    for a in (zs, xrs, hs, q):
        jax.block_until_ready(a)

    # structural checks
    assert zs.shape == (batch, feature_dim)
    assert xrs.shape == (batch, input_dim)
    assert hs.shape == (batch, high_feature_dim)
    assert q.shape == (batch, class_num)
    assert bool(jnp.all(jnp.isfinite(q)))
    assert bool(jnp.allclose(jnp.sum(q, axis=1), 1.0, atol=1e-5))
    assert bool(jnp.allclose(jnp.linalg.norm(hs, axis=1), 1.0, atol=1e-5))

    # numerical parity against a plain-JAX mirror of the PyTorch forward
    z_r, xr_r, hs_r, q_r = _reference_forward(x, params)
    assert bool(jnp.allclose(zs, z_r, atol=2e-3, rtol=2e-3))
    assert bool(jnp.allclose(xrs, xr_r, atol=2e-3, rtol=2e-3))
    assert bool(jnp.allclose(hs, hs_r, atol=2e-3, rtol=2e-3))
    assert bool(jnp.allclose(q, q_r, atol=2e-3, rtol=2e-3))

    print("KERNEL_OK")
</pallas_src>

<mosaic_0001>
module attributes {stable_mosaic.version = 11 : i64} {
  func.func @_fused_forward_kernel(%arg0: i32, %arg1: memref<8x64xf32, #tpu.memory_space<vmem>>, %arg2: memref<64x512xf32, #tpu.memory_space<vmem>>, %arg3: memref<1x512xf32, #tpu.memory_space<vmem>>, %arg4: memref<512x512xf32, #tpu.memory_space<vmem>>, %arg5: memref<1x512xf32, #tpu.memory_space<vmem>>, %arg6: memref<512x2048xf32, #tpu.memory_space<vmem>>, %arg7: memref<1x2048xf32, #tpu.memory_space<vmem>>, %arg8: memref<2048x32xf32, #tpu.memory_space<vmem>>, %arg9: memref<1x32xf32, #tpu.memory_space<vmem>>, %arg10: memref<32x2048xf32, #tpu.memory_space<vmem>>, %arg11: memref<1x2048xf32, #tpu.memory_space<vmem>>, %arg12: memref<2048x512xf32, #tpu.memory_space<vmem>>, %arg13: memref<1x512xf32, #tpu.memory_space<vmem>>, %arg14: memref<512x512xf32, #tpu.memory_space<vmem>>, %arg15: memref<1x512xf32, #tpu.memory_space<vmem>>, %arg16: memref<512x64xf32, #tpu.memory_space<vmem>>, %arg17: memref<1x64xf32, #tpu.memory_space<vmem>>, %arg18: memref<32x16xf32, #tpu.memory_space<vmem>>, %arg19: memref<1x16xf32, #tpu.memory_space<vmem>>, %arg20: memref<4x32xf32, #tpu.memory_space<vmem>>, %arg21: memref<1x4xf32, #tpu.memory_space<vmem>>, %arg22: memref<8x128xf32, #tpu.memory_space<vmem>>, %arg23: memref<8x128xf32, #tpu.memory_space<vmem>>, %arg24: memref<8x128xf32, #tpu.memory_space<vmem>>, %arg25: memref<8x128xf32, #tpu.memory_space<vmem>>) attributes {dimension_semantics = [#tpu.dimension_semantics<arbitrary>], iteration_bounds = array<i64: 1>, scalar_prefetch = 0 : i64, scratch_operands = 0 : i64, tpu.core_type = #tpu.core_type<tc>, window_params = [{transform_indices = @transform_0, window_bounds = array<i64: 8, 64>}, {pipeline_mode = #tpu.pipeline_mode<synchronous>, transform_indices = @transform_1, window_bounds = array<i64: 64, 512>}, {pipeline_mode = #tpu.pipeline_mode<synchronous>, transform_indices = @transform_2, window_bounds = array<i64: 1, 512>}, {pipeline_mode = #tpu.pipeline_mode<synchronous>, transform_indices = @transform_3, window_bounds = array<i64: 512, 512>}, {pipeline_mode = #tpu.pipeline_mode<synchronous>, transform_indices = @transform_4, window_bounds = array<i64: 1, 512>}, {pipeline_mode = #tpu.pipeline_mode<synchronous>, transform_indices = @transform_5, window_bounds = array<i64: 512, 2048>}, {pipeline_mode = #tpu.pipeline_mode<synchronous>, transform_indices = @transform_6, window_bounds = array<i64: 1, 2048>}, {pipeline_mode = #tpu.pipeline_mode<synchronous>, transform_indices = @transform_7, window_bounds = array<i64: 2048, 32>}, {pipeline_mode = #tpu.pipeline_mode<synchronous>, transform_indices = @transform_8, window_bounds = array<i64: 1, 32>}, {pipeline_mode = #tpu.pipeline_mode<synchronous>, transform_indices = @transform_9, window_bounds = array<i64: 32, 2048>}, {pipeline_mode = #tpu.pipeline_mode<synchronous>, transform_indices = @transform_10, window_bounds = array<i64: 1, 2048>}, {pipeline_mode = #tpu.pipeline_mode<synchronous>, transform_indices = @transform_11, window_bounds = array<i64: 2048, 512>}, {pipeline_mode = #tpu.pipeline_mode<synchronous>, transform_indices = @transform_12, window_bounds = array<i64: 1, 512>}, {pipeline_mode = #tpu.pipeline_mode<synchronous>, transform_indices = @transform_13, window_bounds = array<i64: 512, 512>}, {pipeline_mode = #tpu.pipeline_mode<synchronous>, transform_indices = @transform_14, window_bounds = array<i64: 1, 512>}, {pipeline_mode = #tpu.pipeline_mode<synchronous>, transform_indices = @transform_15, window_bounds = array<i64: 512, 64>}, {pipeline_mode = #tpu.pipeline_mode<synchronous>, transform_indices = @transform_16, window_bounds = array<i64: 1, 64>}, {pipeline_mode = #tpu.pipeline_mode<synchronous>, transform_indices = @transform_17, window_bounds = array<i64: 32, 16>}, {pipeline_mode = #tpu.pipeline_mode<synchronous>, transform_indices = @transform_18, window_bounds = array<i64: 1, 16>}, {pipeline_mode = #tpu.pipeline_mode<synchronous>, transform_indices = @transform_19, window_bounds = array<i64: 4, 32>}, {pipeline_mode = #tpu.pipeline_mode<synchronous>, transform_indices = @transform_20, window_bounds = array<i64: 1, 4>}, {transform_indices = @transform_21, window_bounds = array<i64: 8, 128>}, {transform_indices = @transform_22, window_bounds = array<i64: 8, 128>}, {transform_indices = @transform_23, window_bounds = array<i64: 8, 128>}, {transform_indices = @transform_24, window_bounds = array<i64: 8, 128>}]} {
    %c0 = arith.constant 0 : index
    %c0_0 = arith.constant 0 : index
    %0 = vector.load %arg1[%c0, %c0_0] : memref<8x64xf32, #tpu.memory_space<vmem>>, vector<8x64xf32>
    %c0_1 = arith.constant 0 : index
    %c0_2 = arith.constant 0 : index
    %1 = vector.load %arg2[%c0_1, %c0_2] : memref<64x512xf32, #tpu.memory_space<vmem>>, vector<64x512xf32>
    %cst = arith.constant dense<0.000000e+00> : vector<8x512xf32>
    %2 = tpu.matmul %0, %1, %cst {dimension_numbers = #tpu.dot_dimension_numbers<[1], [0], [0], [1], [0, 0, 1, 1], [], []>} : vector<8x64xf32>, vector<64x512xf32>, vector<8x512xf32> -> vector<8x512xf32>
    %c0_3 = arith.constant 0 : index
    %c0_4 = arith.constant 0 : index
    %3 = vector.load %arg3[%c0_3, %c0_4] : memref<1x512xf32, #tpu.memory_space<vmem>>, vector<1x512xf32>
    %4 = vector.broadcast %3 : vector<1x512xf32> to vector<8x512xf32>
    %5 = arith.addf %2, %4 : vector<8x512xf32>
    %cst_5 = arith.constant 0.000000e+00 : f32
    %6 = vector.broadcast %cst_5 : f32 to vector<8x512xf32>
    %7 = arith.maximumf %5, %6 : vector<8x512xf32>
    %c0_6 = arith.constant 0 : index
    %c0_7 = arith.constant 0 : index
    %8 = vector.load %arg4[%c0_6, %c0_7] : memref<512x512xf32, #tpu.memory_space<vmem>>, vector<512x512xf32>
    %cst_8 = arith.constant dense<0.000000e+00> : vector<8x512xf32>
    %9 = tpu.matmul %7, %8, %cst_8 {dimension_numbers = #tpu.dot_dimension_numbers<[1], [0], [0], [1], [0, 0, 1, 1], [], []>} : vector<8x512xf32>, vector<512x512xf32>, vector<8x512xf32> -> vector<8x512xf32>
    %c0_9 = arith.constant 0 : index
    %c0_10 = arith.constant 0 : index
    %10 = vector.load %arg5[%c0_9, %c0_10] : memref<1x512xf32, #tpu.memory_space<vmem>>, vector<1x512xf32>
    %11 = vector.broadcast %10 : vector<1x512xf32> to vector<8x512xf32>
    %12 = arith.addf %9, %11 : vector<8x512xf32>
    %cst_11 = arith.constant 0.000000e+00 : f32
    %13 = vector.broadcast %cst_11 : f32 to vector<8x512xf32>
    %14 = arith.maximumf %12, %13 : vector<8x512xf32>
    %c0_12 = arith.constant 0 : index
    %c0_13 = arith.constant 0 : index
    %15 = vector.load %arg6[%c0_12, %c0_13] : memref<512x2048xf32, #tpu.memory_space<vmem>>, vector<512x2048xf32>
    %cst_14 = arith.constant dense<0.000000e+00> : vector<8x2048xf32>
    %16 = tpu.matmul %14, %15, %cst_14 {dimension_numbers = #tpu.dot_dimension_numbers<[1], [0], [0], [1], [0, 0, 1, 1], [], []>} : vector<8x512xf32>, vector<512x2048xf32>, vector<8x2048xf32> -> vector<8x2048xf32>
    %c0_15 = arith.constant 0 : index
    %c0_16 = arith.constant 0 : index
    %17 = vector.load %arg7[%c0_15, %c0_16] : memref<1x2048xf32, #tpu.memory_space<vmem>>, vector<1x2048xf32>
    %18 = vector.broadcast %17 : vector<1x2048xf32> to vector<8x2048xf32>
    %19 = arith.addf %16, %18 : vector<8x2048xf32>
    %cst_17 = arith.constant 0.000000e+00 : f32
    %20 = vector.broadcast %cst_17 : f32 to vector<8x2048xf32>
    %21 = arith.maximumf %19, %20 : vector<8x2048xf32>
    %c0_18 = arith.constant 0 : index
    %c0_19 = arith.constant 0 : index
    %22 = vector.load %arg8[%c0_18, %c0_19] : memref<2048x32xf32, #tpu.memory_space<vmem>>, vector<2048x32xf32>
    %cst_20 = arith.constant dense<0.000000e+00> : vector<8x32xf32>
    %23 = tpu.matmul %21, %22, %cst_20 {dimension_numbers = #tpu.dot_dimension_numbers<[1], [0], [0], [1], [0, 0, 1, 1], [], []>} : vector<8x2048xf32>, vector<2048x32xf32>, vector<8x32xf32> -> vector<8x32xf32>
    %c0_21 = arith.constant 0 : index
    %c0_22 = arith.constant 0 : index
    %24 = vector.load %arg9[%c0_21, %c0_22] : memref<1x32xf32, #tpu.memory_space<vmem>>, vector<1x32xf32>
    %25 = vector.broadcast %24 : vector<1x32xf32> to vector<8x32xf32>
    %26 = arith.addf %23, %25 : vector<8x32xf32>
    %c0_i32 = arith.constant 0 : i32
    %27 = arith.sitofp %c0_i32 : i32 to f32
    %28 = vector.broadcast %27 : f32 to vector<8x96xf32>
    %29 = tpu.concatenate %26, %28 in 1 : vector<8x32xf32>, vector<8x96xf32> -> vector<8x128xf32>
    %c0_23 = arith.constant 0 : index
    %c0_24 = arith.constant 0 : index
    %30 = vector.load %arg22[%c0_23, %c0_24] : memref<8x128xf32, #tpu.memory_space<vmem>>, vector<8x128xf32>
    tpu.vector_store %arg22[%c0_23, %c0_24], %29 {strides = array<i32>} : memref<8x128xf32, #tpu.memory_space<vmem>>, vector<8x128xf32>,
    %c0_25 = arith.constant 0 : index
    %c0_26 = arith.constant 0 : index
    %31 = vector.load %arg10[%c0_25, %c0_26] : memref<32x2048xf32, #tpu.memory_space<vmem>>, vector<32x2048xf32>
    %cst_27 = arith.constant dense<0.000000e+00> : vector<8x2048xf32>
    %32 = tpu.matmul %26, %31, %cst_27 {dimension_numbers = #tpu.dot_dimension_numbers<[1], [0], [0], [1], [0, 0, 1, 1], [], []>} : vector<8x32xf32>, vector<32x2048xf32>, vector<8x2048xf32> -> vector<8x2048xf32>
    %c0_28 = arith.constant 0 : index
    %c0_29 = arith.constant 0 : index
    %33 = vector.load %arg11[%c0_28, %c0_29] : memref<1x2048xf32, #tpu.memory_space<vmem>>, vector<1x2048xf32>
    %34 = vector.broadcast %33 : vector<1x2048xf32> to vector<8x2048xf32>
    %35 = arith.addf %32, %34 : vector<8x2048xf32>
    %cst_30 = arith.constant 0.000000e+00 : f32
    %36 = vector.broadcast %cst_30 : f32 to vector<8x2048xf32>
    %37 = arith.maximumf %35, %36 : vector<8x2048xf32>
    %c0_31 = arith.constant 0 : index
    %c0_32 = arith.constant 0 : index
    %38 = vector.load %arg12[%c0_31, %c0_32] : memref<2048x512xf32, #tpu.memory_space<vmem>>, vector<2048x512xf32>
    %cst_33 = arith.constant dense<0.000000e+00> : vector<8x512xf32>
    %39 = tpu.matmul %37, %38, %cst_33 {dimension_numbers = #tpu.dot_dimension_numbers<[1], [0], [0], [1], [0, 0, 1, 1], [], []>} : vector<8x2048xf32>, vector<2048x512xf32>, vector<8x512xf32> -> vector<8x512xf32>
    %c0_34 = arith.constant 0 : index
    %c0_35 = arith.constant 0 : index
    %40 = vector.load %arg13[%c0_34, %c0_35] : memref<1x512xf32, #tpu.memory_space<vmem>>, vector<1x512xf32>
    %41 = vector.broadcast %40 : vector<1x512xf32> to vector<8x512xf32>
    %42 = arith.addf %39, %41 : vector<8x512xf32>
    %cst_36 = arith.constant 0.000000e+00 : f32
    %43 = vector.broadcast %cst_36 : f32 to vector<8x512xf32>
    %44 = arith.maximumf %42, %43 : vector<8x512xf32>
    %c0_37 = arith.constant 0 : index
    %c0_38 = arith.constant 0 : index
    %45 = vector.load %arg14[%c0_37, %c0_38] : memref<512x512xf32, #tpu.memory_space<vmem>>, vector<512x512xf32>
    %cst_39 = arith.constant dense<0.000000e+00> : vector<8x512xf32>
    %46 = tpu.matmul %44, %45, %cst_39 {dimension_numbers = #tpu.dot_dimension_numbers<[1], [0], [0], [1], [0, 0, 1, 1], [], []>} : vector<8x512xf32>, vector<512x512xf32>, vector<8x512xf32> -> vector<8x512xf32>
    %c0_40 = arith.constant 0 : index
    %c0_41 = arith.constant 0 : index
    %47 = vector.load %arg15[%c0_40, %c0_41] : memref<1x512xf32, #tpu.memory_space<vmem>>, vector<1x512xf32>
    %48 = vector.broadcast %47 : vector<1x512xf32> to vector<8x512xf32>
    %49 = arith.addf %46, %48 : vector<8x512xf32>
    %cst_42 = arith.constant 0.000000e+00 : f32
    %50 = vector.broadcast %cst_42 : f32 to vector<8x512xf32>
    %51 = arith.maximumf %49, %50 : vector<8x512xf32>
    %c0_43 = arith.constant 0 : index
    %c0_44 = arith.constant 0 : index
    %52 = vector.load %arg16[%c0_43, %c0_44] : memref<512x64xf32, #tpu.memory_space<vmem>>, vector<512x64xf32>
    %cst_45 = arith.constant dense<0.000000e+00> : vector<8x64xf32>
    %53 = tpu.matmul %51, %52, %cst_45 {dimension_numbers = #tpu.dot_dimension_numbers<[1], [0], [0], [1], [0, 0, 1, 1], [], []>} : vector<8x512xf32>, vector<512x64xf32>, vector<8x64xf32> -> vector<8x64xf32>
    %c0_46 = arith.constant 0 : index
    %c0_47 = arith.constant 0 : index
    %54 = vector.load %arg17[%c0_46, %c0_47] : memref<1x64xf32, #tpu.memory_space<vmem>>, vector<1x64xf32>
    %55 = vector.broadcast %54 : vector<1x64xf32> to vector<8x64xf32>
    %56 = arith.addf %53, %55 : vector<8x64xf32>
    %c0_i32_48 = arith.constant 0 : i32
    %57 = arith.sitofp %c0_i32_48 : i32 to f32
    %58 = vector.broadcast %57 : f32 to vector<8x64xf32>
    %59 = tpu.concatenate %56, %58 in 1 : vector<8x64xf32>, vector<8x64xf32> -> vector<8x128xf32>
    %c0_49 = arith.constant 0 : index
    %c0_50 = arith.constant 0 : index
    %60 = vector.load %arg23[%c0_49, %c0_50] : memref<8x128xf32, #tpu.memory_space<vmem>>, vector<8x128xf32>
    tpu.vector_store %arg23[%c0_49, %c0_50], %59 {strides = array<i32>} : memref<8x128xf32, #tpu.memory_space<vmem>>, vector<8x128xf32>,
    %c0_51 = arith.constant 0 : index
    %c0_52 = arith.constant 0 : index
    %61 = vector.load %arg18[%c0_51, %c0_52] : memref<32x16xf32, #tpu.memory_space<vmem>>, vector<32x16xf32>
    %cst_53 = arith.constant dense<0.000000e+00> : vector<8x16xf32>
    %62 = tpu.matmul %26, %61, %cst_53 {dimension_numbers = #tpu.dot_dimension_numbers<[1], [0], [0], [1], [0, 0, 1, 1], [], []>} : vector<8x32xf32>, vector<32x16xf32>, vector<8x16xf32> -> vector<8x16xf32>
    %c0_54 = arith.constant 0 : index
    %c0_55 = arith.constant 0 : index
    %63 = vector.load %arg19[%c0_54, %c0_55] : memref<1x16xf32, #tpu.memory_space<vmem>>, vector<1x16xf32>
    %64 = vector.broadcast %63 : vector<1x16xf32> to vector<8x16xf32>
    %65 = arith.addf %62, %64 : vector<8x16xf32>
    %66 = arith.mulf %65, %65 : vector<8x16xf32>
    %cst_56 = arith.constant dense<0.000000e+00> : vector<8xf32>
    %67 = vector.multi_reduction <add>, %66, %cst_56 [1] : vector<8x16xf32> to vector<8xf32>
    %68 = vector.shape_cast %67 : vector<8xf32> to vector<8x1xf32>
    %69 = math.sqrt %68 : vector<8x1xf32>
    %cst_57 = arith.constant 9.99999996E-13 : f32
    %70 = vector.broadcast %cst_57 : f32 to vector<8x1xf32>
    %71 = arith.maximumf %69, %70 : vector<8x1xf32>
    %72 = vector.broadcast %71 : vector<8x1xf32> to vector<8x16xf32>
    %73 = arith.divf %65, %72 : vector<8x16xf32>
    %c0_i32_58 = arith.constant 0 : i32
    %74 = arith.sitofp %c0_i32_58 : i32 to f32
    %75 = vector.broadcast %74 : f32 to vector<8x112xf32>
    %76 = tpu.concatenate %73, %75 in 1 : vector<8x16xf32>, vector<8x112xf32> -> vector<8x128xf32>
    %c0_59 = arith.constant 0 : index
    %c0_60 = arith.constant 0 : index
    %77 = vector.load %arg24[%c0_59, %c0_60] : memref<8x128xf32, #tpu.memory_space<vmem>>, vector<8x128xf32>
    tpu.vector_store %arg24[%c0_59, %c0_60], %76 {strides = array<i32>} : memref<8x128xf32, #tpu.memory_space<vmem>>, vector<8x128xf32>,
    %78 = arith.mulf %26, %26 : vector<8x32xf32>
    %cst_61 = arith.constant dense<0.000000e+00> : vector<8xf32>
    %79 = vector.multi_reduction <add>, %78, %cst_61 [1] : vector<8x32xf32> to vector<8xf32>
    %80 = vector.shape_cast %79 : vector<8xf32> to vector<8x1xf32>
    %c0_62 = arith.constant 0 : index
    %c0_63 = arith.constant 0 : index
    %81 = vector.load %arg20[%c0_62, %c0_63] : memref<4x32xf32, #tpu.memory_space<vmem>>, vector<4x32xf32>
    %cst_64 = arith.constant dense<0.000000e+00> : vector<8x4xf32>
    %82 = tpu.matmul %26, %81, %cst_64 {dimension_numbers = #tpu.dot_dimension_numbers<[1], [1], [0], [0], [0, 0, 1, 0], [], []>} : vector<8x32xf32>, vector<4x32xf32>, vector<8x4xf32> -> vector<8x4xf32>
    %c0_65 = arith.constant 0 : index
    %c0_66 = arith.constant 0 : index
    %83 = vector.load %arg21[%c0_65, %c0_66] : memref<1x4xf32, #tpu.memory_space<vmem>>, vector<1x4xf32>
    %84 = vector.broadcast %80 : vector<8x1xf32> to vector<8x4xf32>
    %85 = vector.broadcast %83 : vector<1x4xf32> to vector<8x4xf32>
    %86 = arith.addf %84, %85 : vector<8x4xf32>
    %cst_67 = arith.constant 2.000000e+00 : f32
    %87 = vector.broadcast %cst_67 : f32 to vector<8x4xf32>
    %88 = arith.mulf %87, %82 : vector<8x4xf32>
    %89 = arith.subf %86, %88 : vector<8x4xf32>
    %cst_68 = arith.constant 0.000000e+00 : f32
    %90 = vector.broadcast %cst_68 : f32 to vector<8x4xf32>
    %91 = arith.maximumf %89, %90 : vector<8x4xf32>
    %cst_69 = arith.constant 1.000000e+00 : f32
    %92 = vector.broadcast %cst_69 : f32 to vector<8x4xf32>
    %93 = arith.addf %92, %91 : vector<8x4xf32>
    %cst_70 = arith.constant 1.000000e+00 : f32
    %94 = vector.broadcast %cst_70 : f32 to vector<8x4xf32>
    %95 = arith.divf %94, %93 : vector<8x4xf32>
    %cst_71 = arith.constant dense<0.000000e+00> : vector<8xf32>
    %96 = vector.multi_reduction <add>, %95, %cst_71 [1] : vector<8x4xf32> to vector<8xf32>
    %97 = vector.shape_cast %96 : vector<8xf32> to vector<8x1xf32>
    %98 = vector.broadcast %97 : vector<8x1xf32> to vector<8x4xf32>
    %99 = arith.divf %95, %98 : vector<8x4xf32>
    %c0_i32_72 = arith.constant 0 : i32
    %100 = arith.sitofp %c0_i32_72 : i32 to f32
    %101 = vector.broadcast %100 : f32 to vector<8x124xf32>
    %102 = tpu.concatenate %99, %101 in 1 : vector<8x4xf32>, vector<8x124xf32> -> vector<8x128xf32>
    %c0_73 = arith.constant 0 : index
    %c0_74 = arith.constant 0 : index
    %103 = vector.load %arg25[%c0_73, %c0_74] : memref<8x128xf32, #tpu.memory_space<vmem>>, vector<8x128xf32>
    tpu.vector_store %arg25[%c0_73, %c0_74], %102 {strides = array<i32>} : memref<8x128xf32, #tpu.memory_space<vmem>>, vector<8x128xf32>,
    return
  }
  func.func @transform_0(%arg0: i32) -> (i32, i32) {
    %c0_i32 = arith.constant 0 : i32
    %c0_i32_0 = arith.constant 0 : i32
    return %arg0, %c0_i32 : i32, i32
  }
  func.func @transform_1(%arg0: i32) -> (i32, i32) {
    %c0_i32 = arith.constant 0 : i32
    %c0_i32_0 = arith.constant 0 : i32
    %c0_i32_1 = arith.constant 0 : i32
    return %c0_i32, %c0_i32_0 : i32, i32
  }
  func.func @transform_2(%arg0: i32) -> (i32, i32) {
    %c0_i32 = arith.constant 0 : i32
    %c0_i32_0 = arith.constant 0 : i32
    %c0_i32_1 = arith.constant 0 : i32
    return %c0_i32, %c0_i32_0 : i32, i32
  }
  func.func @transform_3(%arg0: i32) -> (i32, i32) {
    %c0_i32 = arith.constant 0 : i32
    %c0_i32_0 = arith.constant 0 : i32
    %c0_i32_1 = arith.constant 0 : i32
    return %c0_i32, %c0_i32_0 : i32, i32
  }
  func.func @transform_4(%arg0: i32) -> (i32, i32) {
    %c0_i32 = arith.constant 0 : i32
    %c0_i32_0 = arith.constant 0 : i32
    %c0_i32_1 = arith.constant 0 : i32
    return %c0_i32, %c0_i32_0 : i32, i32
  }
  func.func @transform_5(%arg0: i32) -> (i32, i32) {
    %c0_i32 = arith.constant 0 : i32
    %c0_i32_0 = arith.constant 0 : i32
    %c0_i32_1 = arith.constant 0 : i32
    return %c0_i32, %c0_i32_0 : i32, i32
  }
  func.func @transform_6(%arg0: i32) -> (i32, i32) {
    %c0_i32 = arith.constant 0 : i32
    %c0_i32_0 = arith.constant 0 : i32
    %c0_i32_1 = arith.constant 0 : i32
    return %c0_i32, %c0_i32_0 : i32, i32
  }
  func.func @transform_7(%arg0: i32) -> (i32, i32) {
    %c0_i32 = arith.constant 0 : i32
    %c0_i32_0 = arith.constant 0 : i32
    %c0_i32_1 = arith.constant 0 : i32
    return %c0_i32, %c0_i32_0 : i32, i32
  }
  func.func @transform_8(%arg0: i32) -> (i32, i32) {
    %c0_i32 = arith.constant 0 : i32
    %c0_i32_0 = arith.constant 0 : i32
    %c0_i32_1 = arith.constant 0 : i32
    return %c0_i32, %c0_i32_0 : i32, i32
  }
  func.func @transform_9(%arg0: i32) -> (i32, i32) {
    %c0_i32 = arith.constant 0 : i32
    %c0_i32_0 = arith.constant 0 : i32
    %c0_i32_1 = arith.constant 0 : i32
    return %c0_i32, %c0_i32_0 : i32, i32
  }
  func.func @transform_10(%arg0: i32) -> (i32, i32) {
    %c0_i32 = arith.constant 0 : i32
    %c0_i32_0 = arith.constant 0 : i32
    %c0_i32_1 = arith.constant 0 : i32
    return %c0_i32, %c0_i32_0 : i32, i32
  }
  func.func @transform_11(%arg0: i32) -> (i32, i32) {
    %c0_i32 = arith.constant 0 : i32
    %c0_i32_0 = arith.constant 0 : i32
    %c0_i32_1 = arith.constant 0 : i32
    return %c0_i32, %c0_i32_0 : i32, i32
  }
  func.func @transform_12(%arg0: i32) -> (i32, i32) {
    %c0_i32 = arith.constant 0 : i32
    %c0_i32_0 = arith.constant 0 : i32
    %c0_i32_1 = arith.constant 0 : i32
    return %c0_i32, %c0_i32_0 : i32, i32
  }
  func.func @transform_13(%arg0: i32) -> (i32, i32) {
    %c0_i32 = arith.constant 0 : i32
    %c0_i32_0 = arith.constant 0 : i32
    %c0_i32_1 = arith.constant 0 : i32
    return %c0_i32, %c0_i32_0 : i32, i32
  }
  func.func @transform_14(%arg0: i32) -> (i32, i32) {
    %c0_i32 = arith.constant 0 : i32
    %c0_i32_0 = arith.constant 0 : i32
    %c0_i32_1 = arith.constant 0 : i32
    return %c0_i32, %c0_i32_0 : i32, i32
  }
  func.func @transform_15(%arg0: i32) -> (i32, i32) {
    %c0_i32 = arith.constant 0 : i32
    %c0_i32_0 = arith.constant 0 : i32
    %c0_i32_1 = arith.constant 0 : i32
    return %c0_i32, %c0_i32_0 : i32, i32
  }
  func.func @transform_16(%arg0: i32) -> (i32, i32) {
    %c0_i32 = arith.constant 0 : i32
    %c0_i32_0 = arith.constant 0 : i32
    %c0_i32_1 = arith.constant 0 : i32
    return %c0_i32, %c0_i32_0 : i32, i32
  }
  func.func @transform_17(%arg0: i32) -> (i32, i32) {
    %c0_i32 = arith.constant 0 : i32
    %c0_i32_0 = arith.constant 0 : i32
    %c0_i32_1 = arith.constant 0 : i32
    return %c0_i32, %c0_i32_0 : i32, i32
  }
  func.func @transform_18(%arg0: i32) -> (i32, i32) {
    %c0_i32 = arith.constant 0 : i32
    %c0_i32_0 = arith.constant 0 : i32
    %c0_i32_1 = arith.constant 0 : i32
    return %c0_i32, %c0_i32_0 : i32, i32
  }
  func.func @transform_19(%arg0: i32) -> (i32, i32) {
    %c0_i32 = arith.constant 0 : i32
    %c0_i32_0 = arith.constant 0 : i32
    %c0_i32_1 = arith.constant 0 : i32
    return %c0_i32, %c0_i32_0 : i32, i32
  }
  func.func @transform_20(%arg0: i32) -> (i32, i32) {
    %c0_i32 = arith.constant 0 : i32
    %c0_i32_0 = arith.constant 0 : i32
    %c0_i32_1 = arith.constant 0 : i32
    return %c0_i32, %c0_i32_0 : i32, i32
  }
  func.func @transform_21(%arg0: i32) -> (i32, i32) {
    %c0_i32 = arith.constant 0 : i32
    %c0_i32_0 = arith.constant 0 : i32
    return %arg0, %c0_i32 : i32, i32
  }
  func.func @transform_22(%arg0: i32) -> (i32, i32) {
    %c0_i32 = arith.constant 0 : i32
    %c0_i32_0 = arith.constant 0 : i32
    return %arg0, %c0_i32 : i32, i32
  }
  func.func @transform_23(%arg0: i32) -> (i32, i32) {
    %c0_i32 = arith.constant 0 : i32
    %c0_i32_0 = arith.constant 0 : i32
    return %arg0, %c0_i32 : i32, i32
  }
  func.func @transform_24(%arg0: i32) -> (i32, i32) {
    %c0_i32 = arith.constant 0 : i32
    %c0_i32_0 = arith.constant 0 : i32
    return %arg0, %c0_i32 : i32, i32
  }
}

</mosaic_0001>

<bundles_post_ra>
// kernel: test_linear_forward.1
= control target key start
LH: loop header
LB: loop body
LE: loop exit
PB: predicated region body
PF: predicated region fallthrough
CT: control target
= control target key end

     0   :  { %s10639_s0 = inlined_call_operand.hbm [shape: f32[8,64], index: 0, kind: input, shape index: {}]   ;;  %s10640_s1 = inlined_call_operand.hbm [shape: f32[64,512], index: 1, kind: input, shape index: {}]   ;;  %s10641_s2 = inlined_call_operand.hbm [shape: f32[1,512], index: 2, kind: input, shape index: {}]   ;;  %s10642_s3 = inlined_call_operand.hbm [shape: f32[512,512], index: 3, kind: input, shape index: {}]   ;;  %s10643_s4 = inlined_call_operand.hbm [shape: f32[1,512], index: 4, kind: input, shape index: {}]   ;;  %s10644_s5 = inlined_call_operand.hbm [shape: f32[512,2048], index: 5, kind: input, shape index: {}]   ;;  %s10645_s6 = inlined_call_operand.hbm [shape: f32[1,2048], index: 6, kind: input, shape index: {}]   ;;  %s10646_s7 = inlined_call_operand.vmem [shape: f32[2048,32], index: 7, kind: input, shape index: {}]   ;;  %s10647_s8 = inlined_call_operand.hbm [shape: f32[1,32], index: 8, kind: input, shape index: {}]   ;;  %s10648_s9 = inlined_call_operand.hbm [shape: f32[32,2048], index: 9, kind: input, shape index: {}]   ;;  %s10649_s10 = inlined_call_operand.hbm [shape: f32[1,2048], index: 10, kind: input, shape index: {}]   ;;  %s10650_s11 = inlined_call_operand.hbm [shape: f32[2048,512], index: 11, kind: input, shape index: {}]   ;;  %s10651_s12 = inlined_call_operand.hbm [shape: f32[1,512], index: 12, kind: input, shape index: {}]   ;;  %s10652_s13 = inlined_call_operand.hbm [shape: f32[512,512], index: 13, kind: input, shape index: {}]   ;;  %s10653_s14 = inlined_call_operand.hbm [shape: f32[1,512], index: 14, kind: input, shape index: {}]   ;;  %s10654_s15 = inlined_call_operand.vmem [shape: f32[512,64], index: 15, kind: input, shape index: {}]   ;;  %s10655_s16 = inlined_call_operand.hbm [shape: f32[1,64], index: 16, kind: input, shape index: {}]   ;;  %s10656_s17 = inlined_call_operand.vmem [shape: f32[32,16], index: 17, kind: input, shape index: {}]   ;;  %s10657_s18 = inlined_call_operand.hbm [shape: f32[1,16], index: 18, kind: input, shape index: {}]   ;;  %s10658_s19 = inlined_call_operand.hbm [shape: f32[4,32], index: 19, kind: input, shape index: {}]   ;;  %s10659_s20 = inlined_call_operand.hbm [shape: f32[1,4], index: 20, kind: input, shape index: {}]   ;;  %s10660_s21 = inlined_call_operand.hbm [shape: f32[8,128], index: 21, kind: output, shape index: {0}]   ;;  %s10661_s22 = inlined_call_operand.hbm [shape: f32[8,128], index: 22, kind: output, shape index: {1}]   ;;  %s10662_s23 = inlined_call_operand.hbm [shape: f32[8,128], index: 23, kind: output, shape index: {2}]   ;;  %s10663_s24 = inlined_call_operand.vmem [shape: f32[8,128], index: 24, kind: output, shape index: {3}]  }
   0x1   :  { %10669 = sst [smem:[#allocation47_spill]] %s10639_s0 }
   0x2   :  { %10670 = sst [smem:[#allocation48_spill]] %s10640_s1 }
   0x3   :  { %10671 = sst [smem:[#allocation49_spill]] %s10641_s2 }
   0x4   :  { %10672 = sst [smem:[#allocation50_spill]] %s10642_s3 }
   0x5   :  { %10673 = sst [smem:[#allocation51_spill]] %s10643_s4 }
   0x6   :  { %10674 = sst [smem:[#allocation52_spill]] %s10644_s5 }
   0x7   :  { %10675 = sst [smem:[#allocation53_spill]] %s10645_s6 }
   0x8   :  { %10676 = sst [smem:[#allocation54_spill]] %s10646_s7 }
   0x9   :  { %10677 = sst [smem:[#allocation55_spill]] %s10647_s8 }
   0xa   :  { %30 = vsyncpa [#allocation3], 0 }
   0xb   :  { %31 = vsyncpa [#allocation6], 0 }
   0xc   :  { %32 = vsyncpa [#allocation9], 0 }
   0xd   :  { %33 = vsyncpa [#allocation12], 0 }
   0xe   :  { %34 = vsyncpa [#allocation15], 0 }
   0xf   :  { %35 = vsyncpa [#allocation18], 0 }
  0x10   :  { %36 = vsyncpa [#allocation21], 0 }
  0x11   :  { %37 = vsyncpa [#allocation24], 0 }
  0x12   :  { %38 = vsyncpa [#allocation27], 0 }
  0x13   :  { %39 = vsyncpa [#allocation30], 0 }
  0x14   :  { %40 = vsyncpa [#allocation4], 0 }
  0x15   :  { %41 = vsyncpa [#allocation33], 0  ;;  %s8977_s5 = smov [#allocation5]  }
  0x16   :  { %s57_s26 = sshll.u32 %s8977_s5, 4  ;;  %s58_s26 = int_to_ptr.vmem [resolvable:$true] %s57_s26 }
  0x17   :  { %s8541_s27 = scalar_lea.vmem %s58_s26, 4096  ;;  %p8546_p1 = scmp.lt.s32.totalorder %s58_s26, %s58_s26 }
  0x18   :  { %p8542_p0 = scmp.ne.s32.totalorder %s58_s26, %s8541_s27  ;;  %p8547_p2 = scmp.lt.s32.totalorder %s8541_s27, %s8541_s27 }
  0x1a   :  { %p8548_p3 = por %p8547_p2, %p8546_p1 }
  0x1c   :  { %p8549_p4 = pnand %p8548_p3, %p8542_p0 }
  0x1e   :  { %8552 = shalt.err (!%p8549_p4)
}
  0x1f   :  { %s10665_s28 = smov 512   ;;  %s10667_s6 = smov 32  }
  0x20   :  { %s10678_s0 = sld [smem:[#allocation48_spill]]  ;;  %s8980_s7 = smov [#allocation8]  }
  0x21   :  { %s79_s30 = sshll.u32 %s8980_s7, 4  ;;  %s8981_s3 = smov [#allocation11]   ;;  %s80_s30 = int_to_ptr.vmem [resolvable:$true] %s79_s30 }
  0x22   :  { %s101_s25 = sshll.u32 %s8981_s3, 4  ;;  %s8561_s8 = scalar_lea.vmem %s80_s30, 32768  ;;  %s102_s25 = int_to_ptr.vmem [resolvable:$true] %s101_s25 }
  0x23   :  { %p8562_p5 = scmp.ne.s32.totalorder %s80_s30, %s8561_s8  ;;  %p8566_p6 = scmp.lt.s32.totalorder %s80_s30, %s80_s30 }
  0x24   :  { %p8567_p7 = scmp.lt.s32.totalorder %s8561_s8, %s8561_s8 }
  0x26   :  { %63 = dma.hbm_to_vmem [thread:$0]  %s10678_s0, 4096, %s58_s26, [#allocation6], %s10665_s28, %s10665_s28, %s10667_s6  }
  0x27   :  { %p8568_p8 = por %p8567_p7, %p8566_p6 }
  0x29   :  { %p8569_p9 = pnand %p8568_p8, %p8562_p5 }
  0x2b   :  { %8572 = shalt.err (!%p8569_p9)
}
  0x2c   :  { %s10679_s5 = sld [smem:[#allocation50_spill]]  ;;  %s8581_s26 = scalar_lea.vmem %s102_s25, 131072 }
  0x2d   :  { %p8582_p10 = scmp.ne.s32.totalorder %s102_s25, %s8581_s26  ;;  %p8586_p11 = scmp.lt.s32.totalorder %s102_s25, %s102_s25 }
  0x2e   :  { %p8587_p12 = scmp.lt.s32.totalorder %s8581_s26, %s8581_s26 }
  0x30   :  { %p8588_p13 = por %p8587_p12, %p8586_p11 }
  0x32   :  { %85 = dma.hbm_to_vmem [thread:$0]  %s10679_s5, 32768, %s80_s30, [#allocation9], %s10665_s28, %s10665_s28, %s10667_s6  }
  0x33   :  { %p8589_p0 = pnand %p8588_p13, %p8582_p10 }
  0x35   :  { %8592 = shalt.err (!%p8589_p0)
}
  0x36   :  { %s8982_s27 = smov 2048   ;;  %s8983_s2 = smov 128  }
  0x37   :  { %s10680_s7 = sld [smem:[#allocation52_spill]]  ;;  %s8984_s3 = smov [#allocation14]  }
  0x38   :  { %s126_s8 = sshll.u32 %s8984_s3, 4  ;;  %s8985_s30 = smov [#allocation17]   ;;  %s127_s8 = int_to_ptr.vmem [resolvable:$true] %s126_s8 }
  0x39   :  { %s148_s4 = sshll.u32 %s8985_s30, 4  ;;  %s8601_s1 = scalar_lea.vmem %s127_s8, 16  ;;  %s149_s4 = int_to_ptr.vmem [resolvable:$true] %s148_s4 }
  0x3a   :  { %p8602_p1 = scmp.ne.s32.totalorder %s127_s8, %s8601_s1  ;;  %s8605_s5 = scalar_lea.vmem %s127_s8, 32 }
  0x3b   :  { %p8606_p2 = scmp.lt.s32.totalorder %s127_s8, %s127_s8  ;;  %p8607_p3 = scmp.lt.s32.totalorder %s8605_s5, %s8601_s1 }
  0x3d   :  { %107 = dma.hbm_to_vmem [thread:$0]  %s10680_s7, 131072, %s102_s25, [#allocation12], %s8982_s27, %s8982_s27, %s8983_s2  }
  0x3e   :  { %p8608_p4 = por %p8607_p3, %p8606_p2 }
  0x40   :  { %p8609_p5 = pnand %p8608_p4, %p8602_p1 }
  0x42   :  { %8612 = shalt.err (!%p8609_p5)
}
  0x43   :  { %s10681_s6 = sld [smem:[#allocation55_spill]]  ;;  %s8621_s29 = scalar_lea.vmem %s149_s4, 256 }
  0x44   :  { %p8622_p6 = scmp.ne.s32.totalorder %s149_s4, %s8621_s29  ;;  %p8626_p7 = scmp.lt.s32.totalorder %s149_s4, %s149_s4 }
  0x45   :  { %p8627_p8 = scmp.lt.s32.totalorder %s8621_s29, %s8621_s29 }
  0x47   :  { %p8628_p9 = por %p8627_p8, %p8626_p7 }
  0x49   :  { %129 = dma.hbm_to_vmem [thread:$0]  %s10681_s6, 16, %s127_s8, [#allocation15]  }
  0x4a   :  { %p8629_p10 = pnand %p8628_p9, %p8622_p6 }
  0x4c   :  { %8632 = shalt.err (!%p8629_p10)
}
  0x4d   :  { %151 = dma.hbm_to_vmem [thread:$0]  %s10649_s10, 256, %s149_s4, [#allocation18]  }
  0x4e   :  { %s8986_s7 = smov [#allocation20]   ;;  %s8987_s30 = smov [#allocation23]  }
  0x4f   :  { %s170_s3 = sshll.u32 %s8986_s7, 4  ;;  %s192_s1 = sshll.u32 %s8987_s30, 4  ;;  %s171_s3 = int_to_ptr.vmem [resolvable:$true] %s170_s3  ;;  %s193_s1 = int_to_ptr.vmem [resolvable:$true] %s192_s1 }
  0x50   :  { %s8641_s5 = scalar_lea.vmem %s171_s3, 64  ;;  %p8646_p12 = scmp.lt.s32.totalorder %s171_s3, %s171_s3 }
  0x51   :  { %p8642_p11 = scmp.ne.s32.totalorder %s171_s3, %s8641_s5  ;;  %p8647_p13 = scmp.lt.s32.totalorder %s8641_s5, %s8641_s5 }
  0x53   :  { %p8648_p0 = por %p8647_p13, %p8646_p12 }
  0x55   :  { %p8649_p1 = pnand %p8648_p0, %p8642_p11 }
  0x57   :  { %8652 = shalt.err (!%p8649_p1)
}
  0x58   :  { %173 = dma.hbm_to_vmem [thread:$0]  %s10651_s12, 64, %s171_s3, [#allocation21]  }
  0x59   :  { %s8661_s8 = scalar_lea.vmem %s193_s1, 64  ;;  %p8666_p3 = scmp.lt.s32.totalorder %s193_s1, %s193_s1 }
  0x5a   :  { %p8662_p2 = scmp.ne.s32.totalorder %s193_s1, %s8661_s8  ;;  %p8667_p4 = scmp.lt.s32.totalorder %s8661_s8, %s8661_s8 }
  0x5c   :  { %p8668_p5 = por %p8667_p4, %p8666_p3 }
  0x5e   :  { %p8669_p6 = pnand %p8668_p5, %p8662_p2 }
  0x60   :  { %8672 = shalt.err (!%p8669_p6)
}
  0x61   :  { %195 = dma.hbm_to_vmem [thread:$0]  %s10653_s14, 64, %s193_s1, [#allocation24]  }
  0x62   :  { %s8988_s26 = smov [#allocation26]   ;;  %s8989_s25 = smov [#allocation2]  }
  0x63   :  { %s216_s29 = sshll.u32 %s8988_s26, 4  ;;  %s48_s0 = sshll.u32 %s8989_s25, 4  ;;  %s217_s29 = int_to_ptr.vmem [resolvable:$true] %s216_s29  ;;  %s49_s0 = int_to_ptr.vmem [resolvable:$true] %s48_s0 }
  0x64   :  { %s8681_s7 = scalar_lea.vmem %s217_s29, 16  ;;  %s8685_s12 = scalar_lea.vmem %s217_s29, 32 }
  0x65   :  { %p8682_p7 = scmp.ne.s32.totalorder %s217_s29, %s8681_s7  ;;  %p8686_p8 = scmp.lt.s32.totalorder %s217_s29, %s217_s29 }
  0x66   :  { %p8687_p9 = scmp.lt.s32.totalorder %s8685_s12, %s8681_s7 }
  0x68   :  { %p8688_p10 = por %p8687_p9, %p8686_p8 }
  0x6a   :  { %p8689_p11 = pnand %p8688_p10, %p8682_p7 }
  0x6c   :  { %8692 = shalt.err (!%p8689_p11)
}
  0x6d   :  { %219 = dma.hbm_to_vmem [thread:$0]  %s10657_s18, 16, %s217_s29, [#allocation27]  }
  0x6e   :  { %s8701_s5 = scalar_lea.vmem %s49_s0, 128  ;;  %p8706_p13 = scmp.lt.s32.totalorder %s49_s0, %s49_s0 }
  0x6f   :  { %p8702_p12 = scmp.ne.s32.totalorder %s49_s0, %s8701_s5  ;;  %p8707_p0 = scmp.lt.s32.totalorder %s8701_s5, %s8701_s5 }
  0x71   :  { %p8708_p1 = por %p8707_p0, %p8706_p13 }
  0x73   :  { %p8709_p2 = pnand %p8708_p1, %p8702_p12 }
  0x75   :  { %8712 = shalt.err (!%p8709_p2)
}
  0x76   :  { %s10682_s28 = sld [smem:[#allocation47_spill]]  ;;  %s8990_s6 = smov [#allocation7]  }
  0x77   :  { %s70_s8 = sshll.u32 %s8990_s6, 4  ;;  %s8991_s10 = smov [#allocation10]   ;;  %s71_s8 = int_to_ptr.vmem [resolvable:$true] %s70_s8 }
  0x78   :  { %s92_s4 = sshll.u32 %s8991_s10, 4  ;;  %s8721_s26 = scalar_lea.vmem %s71_s8, 64  ;;  %s93_s4 = int_to_ptr.vmem [resolvable:$true] %s92_s4 }
  0x79   :  { %p8722_p3 = scmp.ne.s32.totalorder %s71_s8, %s8721_s26  ;;  %p8726_p4 = scmp.lt.s32.totalorder %s71_s8, %s71_s8 }
  0x7a   :  { %p8727_p5 = scmp.lt.s32.totalorder %s8721_s26, %s8721_s26 }
  0x7c   :  { %51 = dma.hbm_to_vmem [thread:$0]  %s10682_s28, 128, %s49_s0, [#allocation3]  }
  0x7d   :  { %p8728_p6 = por %p8727_p5, %p8726_p4 }
  0x7f   :  { %p8729_p7 = pnand %p8728_p6, %p8722_p3 }
  0x81   :  { %8732 = shalt.err (!%p8729_p7)
}
  0x82   :  { %s10683_s25 = sld [smem:[#allocation49_spill]]  ;;  %s8741_s7 = scalar_lea.vmem %s93_s4, 64 }
  0x83   :  { %p8742_p8 = scmp.ne.s32.totalorder %s93_s4, %s8741_s7  ;;  %p8746_p9 = scmp.lt.s32.totalorder %s93_s4, %s93_s4 }
  0x84   :  { %p8747_p10 = scmp.lt.s32.totalorder %s8741_s7, %s8741_s7 }
  0x86   :  { %p8748_p11 = por %p8747_p10, %p8746_p9 }
  0x88   :  { %73 = dma.hbm_to_vmem [thread:$0]  %s10683_s25, 64, %s71_s8, [#allocation6]  }
  0x89   :  { %p8749_p12 = pnand %p8748_p11, %p8742_p8 }
  0x8b   :  { %8752 = shalt.err (!%p8749_p12)
}
  0x8c   :  { %s10684_s3 = sld [smem:[#allocation51_spill]]  ;;  %s8992_s30 = smov [#allocation13]  }
  0x8d   :  { %s114_s5 = sshll.u32 %s8992_s30, 4  ;;  %s8993_s14 = smov [#allocation16]   ;;  %s115_s5 = int_to_ptr.vmem [resolvable:$true] %s114_s5 }
  0x8e   :  { %s135_s1 = sshll.u32 %s8993_s14, 4  ;;  %s8761_s28 = scalar_lea.vmem %s115_s5, 256  ;;  %s136_s1 = int_to_ptr.vmem [resolvable:$true] %s135_s1 }
  0x8f   :  { %p8762_p13 = scmp.ne.s32.totalorder %s115_s5, %s8761_s28  ;;  %p8766_p0 = scmp.lt.s32.totalorder %s115_s5, %s115_s5 }
  0x90   :  { %p8767_p1 = scmp.lt.s32.totalorder %s8761_s28, %s8761_s28 }
  0x92   :  { %95 = dma.hbm_to_vmem [thread:$0]  %s10684_s3, 64, %s93_s4, [#allocation9]  }
  0x93   :  { %p8768_p2 = por %p8767_p1, %p8766_p0 }
  0x95   :  { %p8769_p3 = pnand %p8768_p2, %p8762_p13 }
  0x97   :  { %8772 = shalt.err (!%p8769_p3)
}
  0x98   :  { %s10685_s10 = sld [smem:[#allocation53_spill]]  ;;  %s8781_s26 = scalar_lea.vmem %s136_s1, 8192 }
  0x99   :  { %p8782_p4 = scmp.ne.s32.totalorder %s136_s1, %s8781_s26  ;;  %p8786_p5 = scmp.lt.s32.totalorder %s136_s1, %s136_s1 }
  0x9a   :  { %p8787_p6 = scmp.lt.s32.totalorder %s8781_s26, %s8781_s26 }
  0x9c   :  { %p8788_p7 = por %p8787_p6, %p8786_p5 }
  0x9e   :  { %117 = dma.hbm_to_vmem [thread:$0]  %s10685_s10, 256, %s115_s5, [#allocation12]  }
  0x9f   :  { %p8789_p8 = pnand %p8788_p7, %p8782_p4 }
  0xa1   :  { %8792 = shalt.err (!%p8789_p8)
}
  0xa2   :  { %141 = dma.hbm_to_vmem [thread:$0]  %s10648_s9, 8192, %s136_s1, [#allocation15], %s8982_s27, %s8982_s27, %s8983_s2  }
  0xa3   :  { %s8994_s29 = smov [#allocation19]   ;;  %s8995_s7 = smov [#allocation22]  }
  0xa4   :  { %s157_s25 = sshll.u32 %s8994_s29, 4  ;;  %s179_s0 = sshll.u32 %s8995_s7, 4  ;;  %s158_s25 = int_to_ptr.vmem [resolvable:$true] %s157_s25  ;;  %s180_s0 = int_to_ptr.vmem [resolvable:$true] %s179_s0 }
  0xa5   :  { %s8801_s12 = scalar_lea.vmem %s158_s25, 131072  ;;  %p8806_p10 = scmp.lt.s32.totalorder %s158_s25, %s158_s25 }
  0xa6   :  { %p8802_p9 = scmp.ne.s32.totalorder %s158_s25, %s8801_s12  ;;  %p8807_p11 = scmp.lt.s32.totalorder %s8801_s12, %s8801_s12 }
  0xa8   :  { %p8808_p12 = por %p8807_p11, %p8806_p10 }
  0xaa   :  { %p8809_p13 = pnand %p8808_p12, %p8802_p9 }
  0xac   :  { %8812 = shalt.err (!%p8809_p13)
}
  0xad   :  { %s10686_s3 = smov 32   ;;  %s10687_s30 = smov 512  }
  0xae   :  { %163 = dma.hbm_to_vmem [thread:$0]  %s10650_s11, 131072, %s158_s25, [#allocation18], %s10687_s30, %s10687_s30, %s10686_s3  }
  0xaf   :  { %s8821_s9 = scalar_lea.vmem %s180_s0, 32768  ;;  %p8826_p1 = scmp.lt.s32.totalorder %s180_s0, %s180_s0 }
  0xb0   :  { %p8822_p0 = scmp.ne.s32.totalorder %s180_s0, %s8821_s9  ;;  %p8827_p2 = scmp.lt.s32.totalorder %s8821_s9, %s8821_s9 }
  0xb2   :  { %p8828_p3 = por %p8827_p2, %p8826_p1 }
  0xb4   :  { %p8829_p4 = pnand %p8828_p3, %p8822_p0 }
  0xb6   :  { %8832 = shalt.err (!%p8829_p4)
}
  0xb7   :  { %185 = dma.hbm_to_vmem [thread:$0]  %s10652_s13, 32768, %s180_s0, [#allocation21], %s10687_s30, %s10687_s30, %s10686_s3  }
  0xb8   :  { %s8996_s1 = smov [#allocation25]   ;;  %s8997_s6 = smov [#allocation28]  }
  0xb9   :  { %s204_s28 = sshll.u32 %s8996_s1, 4  ;;  %s226_s11 = sshll.u32 %s8997_s6, 4  ;;  %s205_s28 = int_to_ptr.vmem [resolvable:$true] %s204_s28  ;;  %s227_s11 = int_to_ptr.vmem [resolvable:$true] %s226_s11 }
  0xba   :  { %s8841_s8 = scalar_lea.vmem %s205_s28, 16  ;;  %s8845_s10 = scalar_lea.vmem %s205_s28, 32 }
  0xbb   :  { %p8842_p5 = scmp.ne.s32.totalorder %s205_s28, %s8841_s8  ;;  %p8846_p6 = scmp.lt.s32.totalorder %s205_s28, %s205_s28 }
  0xbc   :  { %p8847_p7 = scmp.lt.s32.totalorder %s8845_s10, %s8841_s8 }
  0xbe   :  { %p8848_p8 = por %p8847_p7, %p8846_p6 }
  0xc0   :  { %p8849_p9 = pnand %p8848_p8, %p8842_p5 }
  0xc2   :  { %8852 = shalt.err (!%p8849_p9)
}
  0xc3   :  { %207 = dma.hbm_to_vmem [thread:$0]  %s10655_s16, 16, %s205_s28, [#allocation24]  }
  0xc4   :  { %s8861_s18 = scalar_lea.vmem %s227_s11, 64  ;;  %p8866_p11 = scmp.lt.s32.totalorder %s227_s11, %s227_s11 }
  0xc5   :  { %p8862_p10 = scmp.ne.s32.totalorder %s227_s11, %s8861_s18  ;;  %p8867_p12 = scmp.lt.s32.totalorder %s8861_s18, %s8861_s18 }
  0xc7   :  { %p8868_p13 = por %p8867_p12, %p8866_p11 }
  0xc9   :  { %p8869_p0 = pnand %p8868_p13, %p8862_p10 }
  0xcb   :  { %8872 = shalt.err (!%p8869_p0)
}
  0xcc   :  { %229 = dma.hbm_to_vmem [thread:$0]  %s10658_s19, 64, %s227_s11, [#allocation27]  }
  0xcd   :  { %s8998_s25 = smov [#allocation29]  }
  0xce   :  { %s236_s7 = sshll.u32 %s8998_s25, 4  ;;  %s237_s7 = int_to_ptr.vmem [resolvable:$true] %s236_s7 }
  0xcf   :  { %s8881_s0 = scalar_lea.vmem %s237_s7, 16  ;;  %s8885_s12 = scalar_lea.vmem %s237_s7, 32 }
  0xd0   :  { %p8882_p1 = scmp.ne.s32.totalorder %s237_s7, %s8881_s0  ;;  %p8886_p2 = scmp.lt.s32.totalorder %s237_s7, %s237_s7 }
  0xd1   :  { %p8887_p3 = scmp.lt.s32.totalorder %s8885_s12, %s8881_s0 }
  0xd3   :  { %p8888_p4 = por %p8887_p3, %p8886_p2 }
  0xd5   :  { %p8889_p5 = pnand %p8888_p4, %p8882_p1 }
  0xd7   :  { %8892 = shalt.err (!%p8889_p5)
}
  0xd8   :  { %239 = dma.hbm_to_vmem [thread:$0]  %s10659_s20, 16, %s237_s7, [#allocation30]  }
  0xd9   :  { %8953 = dma.done.wait [#allocation3], 128  }
  0xda   :  { %8954 = vsyncadd [#allocation3], 4294967168 }
  0xdb   :  { %8955 = dma.done.wait [#allocation6], 4160  }
  0xdc   :  { %8956 = vsyncadd [#allocation6], 4294963136 }
  0xdd   :  { %8957 = dma.done.wait [#allocation9], 32832  }
  0xde   :  { %8958 = vsyncadd [#allocation9], 4294934464 }
  0xdf   :  { %8959 = dma.done.wait [#allocation12], 131328  }
  0xe0   :  { %8960 = vsyncadd [#allocation12], 4294835968 }
  0xe1   :  { %8961 = dma.done.wait [#allocation15], 8208  }
  0xe2   :  { %8962 = vsyncadd [#allocation15], 4294959088 }
  0xe3   :  { %8963 = dma.done.wait [#allocation18], 131328  }
  0xe4   :  { %8964 = vsyncadd [#allocation18], 4294835968 }
  0xe5   :  { %8965 = dma.done.wait [#allocation21], 32832  }
  0xe6   :  { %8966 = vsyncadd [#allocation21], 4294934464 }
  0xe7   :  { %8967 = dma.done.wait [#allocation24], 80  }
  0xe8   :  { %8968 = vsyncadd [#allocation24], 4294967216 }
  0xe9   :  { %8969 = dma.done.wait [#allocation27], 80  }
  0xea   :  { %8970 = vsyncadd [#allocation27], 4294967216 }
  0xeb   :  { %8971 = dma.done.wait [#allocation30], 16  }
  0xec   :  { %8972 = vsyncadd [#allocation30], 4294967280  ;;  %v8999_v0 = vmov 0.0   ;;  %v324_v1 = vld [vmem:[#allocation5 + $0xe8] sm:$0xff]  ;;  %v326_v2 = vld [vmem:[#allocation5 + $0xf8] sm:$0xff]  ;;  %vm349_vm0 = vcmask 523264  }
  0xed   :  { %417 = vmatprep.mubr.f32.mxu0 %v8999_v0  ;;  %488 = vmatprep.mubr.f32.mxu1 %v8999_v0  ;;  %v323_v3 = vld [vmem:[#allocation5 + $0xe0] sm:$0xff]  ;;  %v325_v4 = vld [vmem:[#allocation5 + $0xf0] sm:$0xff]  ;;  %v320_v5 = vld [vmem:[#allocation5 + $0xc8] sm:$0xff]  ;;  %s10688_s30 = sld [smem:[#allocation54_spill]]  ;;  %vm4148_vm1 = vcmask 261120   ;;  %vm9000_vm2 = vmmov 0  }
  0xee   :  { %369 = vmatprep.subr.mxu0 %v324_v1  ;;  %440 = vmatprep.subr.mxu1 %v326_v2  ;;  %v322_v6 = vld [vmem:[#allocation5 + $0xd8] sm:$0xff]  ;;  %v319_v7 = vld [vmem:[#allocation5 + $0xc0] sm:$0xff]  ;;  %v321_v8 = vld [vmem:[#allocation5 + $0xd0] sm:$0xff]  ;;  %vm7933_vm3 = vcmask 130048   ;;  %vm8041_vm4 = vcmask 31744   ;;  %s9002_s25 = smov [#allocation31]  }
  0xef   :  { %370 = vmatpush1.msra.mxu0 %v323_v3  ;;  %441 = vmatpush1.msra.mxu1 %v325_v4  ;;  %v316_v9 = vld [vmem:[#allocation5 + $0xa8] sm:$0xff]  ;;  %v318_v10 = vld [vmem:[#allocation5 + $0xb8] sm:$0xff]  ;;  %v315_v11 = vld [vmem:[#allocation5 + $0xa0] sm:$0xff]  ;;  %s8055_s7 = sshll.u32 %s9002_s25, 4  ;;  %s8056_s7 = int_to_ptr.vmem [resolvable:$true] %s8055_s7 }
  0xf0   :  { %371 = vmatprep.subr.mxu0 %v320_v5  ;;  %442 = vmatprep.subr.mxu1 %v322_v6  ;;  %v317_v12 = vld [vmem:[#allocation5 + $0xb0] sm:$0xff]  ;;  %v312_v13 = vld [vmem:[#allocation5 + $0x88] sm:$0xff]  ;;  %v314_v14 = vld [vmem:[#allocation5 + $0x98] sm:$0xff] }
  0xf1   :  { %372 = vmatpush1.msra.mxu0 %v319_v7  ;;  %443 = vmatpush1.msra.mxu1 %v321_v8  ;;  %v311_v15 = vld [vmem:[#allocation5 + $0x80] sm:$0xff]  ;;  %v313_v16 = vld [vmem:[#allocation5 + $0x90] sm:$0xff]  ;;  %v308_v17 = vld [vmem:[#allocation5 + $0x68] sm:$0xff] }
  0xf2   :  { %373 = vmatprep.subr.mxu0 %v316_v9  ;;  %444 = vmatprep.subr.mxu1 %v318_v10  ;;  %v310_v18 = vld [vmem:[#allocation5 + $0x78] sm:$0xff]  ;;  %v307_v19 = vld [vmem:[#allocation5 + $0x60] sm:$0xff]  ;;  %v309_v20 = vld [vmem:[#allocation5 + $0x70] sm:$0xff] }
  0xf3   :  { %374 = vmatpush1.msra.mxu0 %v315_v11  ;;  %445 = vmatpush1.msra.mxu1 %v317_v12  ;;  %v304_v21 = vld [vmem:[#allocation5 + $0x48] sm:$0xff]  ;;  %v306_v22 = vld [vmem:[#allocation5 + $0x58] sm:$0xff]  ;;  %v303_v23 = vld [vmem:[#allocation5 + $0x40] sm:$0xff] }
  0xf4   :  { %375 = vmatprep.subr.mxu0 %v312_v13  ;;  %446 = vmatprep.subr.mxu1 %v314_v14  ;;  %v305_v24 = vld [vmem:[#allocation5 + $0x50] sm:$0xff]  ;;  %v300_v25 = vld [vmem:[#allocation5 + $0x28] sm:$0xff]  ;;  %v302_v26 = vld [vmem:[#allocation5 + $0x38] sm:$0xff] }
  0xf5   :  { %376 = vmatpush1.msra.mxu0 %v311_v15  ;;  %447 = vmatpush1.msra.mxu1 %v313_v16  ;;  %v299_v27 = vld [vmem:[#allocation5 + $0x20] sm:$0xff]  ;;  %v301_v28 = vld [vmem:[#allocation5 + $0x30] sm:$0xff]  ;;  %v296_v29 = vld [vmem:[#allocation5 + $0x8] sm:$0xff] }
  0xf6   :  { %377 = vmatprep.subr.mxu0 %v308_v17  ;;  %448 = vmatprep.subr.mxu1 %v310_v18  ;;  %v298_v30 = vld [vmem:[#allocation5 + $0x18] sm:$0xff]  ;;  %v295_v31 = vld [vmem:[#allocation5] sm:$0xff]  ;;  %v297_v32 = vld [vmem:[#allocation5 + $0x10] sm:$0xff] }
  0xf7   :  { %378 = vmatpush1.msra.mxu0 %v307_v19  ;;  %449 = vmatpush1.msra.mxu1 %v309_v20  ;;  %v294_v33 = vld [vmem:[#allocation2] sm:$0xff]  ;;  %v560_v34 = vld [vmem:[#allocation8 + $0x1e8] sm:$0xff]  ;;  %v559_v36 = vld [vmem:[#allocation8 + $0x1e0] sm:$0xff] }
  0xf8   :  { %379 = vmatprep.subr.mxu0 %v304_v21  ;;  %450 = vmatprep.subr.mxu1 %v306_v22  ;;  %v688_v35 = vld [vmem:[#allocation8 + $0x5e8] sm:$0xff]  ;;  %v687_v37 = vld [vmem:[#allocation8 + $0x5e0] sm:$0xff] }
  0xf9   :  { %380 = vmatpush1.msra.mxu0 %v303_v23  ;;  %451 = vmatpush1.msra.mxu1 %v305_v24  ;;  %v556_v38 = vld [vmem:[#allocation8 + $0x1c8] sm:$0xff]  ;;  %v555_v40 = vld [vmem:[#allocation8 + $0x1c0] sm:$0xff] }
  0xfa   :  { %381 = vmatprep.subr.mxu0 %v300_v25  ;;  %452 = vmatprep.subr.mxu1 %v302_v26  ;;  %v684_v39 = vld [vmem:[#allocation8 + $0x5c8] sm:$0xff]  ;;  %v683_v41 = vld [vmem:[#allocation8 + $0x5c0] sm:$0xff] }
  0xfb   :  { %382 = vmatpush1.msra.mxu0 %v299_v27  ;;  %453 = vmatpush1.msra.mxu1 %v301_v28  ;;  %v552_v42 = vld [vmem:[#allocation8 + $0x1a8] sm:$0xff]  ;;  %v551_v44 = vld [vmem:[#allocation8 + $0x1a0] sm:$0xff] }
  0xfc   :  { %383 = vmatprep.subr.mxu0 %v296_v29  ;;  %454 = vmatprep.subr.mxu1 %v298_v30  ;;  %v680_v43 = vld [vmem:[#allocation8 + $0x5a8] sm:$0xff]  ;;  %v679_v45 = vld [vmem:[#allocation8 + $0x5a0] sm:$0xff] }
  0xfd   :  { %384 = vmatpush1.msra.mxu0 %v295_v31  ;;  %455 = vmatpush1.msra.mxu1 %v297_v32  ;;  %v548_v46 = vld [vmem:[#allocation8 + $0x188] sm:$0xff]  ;;  %v547_v48 = vld [vmem:[#allocation8 + $0x180] sm:$0xff] }
  0xfe   :  { %8104 = vmatmul.mubr.msk.f32.vlgmr.msra.gmra.mxu0 %vm349_vm0, %v294_v33  ;;  %8105 = vmatmul.mubr.msk.f32.vlgmr.msra.gmra.mxu1 %vm349_vm0, %v294_v33  ;;  %v676_v47 = vld [vmem:[#allocation8 + $0x588] sm:$0xff]  ;;  %v675_v49 = vld [vmem:[#allocation8 + $0x580] sm:$0xff] }
  0xff   :  { %777 = vmatprep.subr.mxu0 %v560_v34  ;;  %848 = vmatprep.subr.mxu1 %v688_v35  ;;  %v544_v50 = vld [vmem:[#allocation8 + $0x168] sm:$0xff]  ;;  %v543_v52 = vld [vmem:[#allocation8 + $0x160] sm:$0xff] }
 0x100   :  { %778 = vmatpush1.msra.mxu0 %v559_v36  ;;  %849 = vmatpush1.msra.mxu1 %v687_v37  ;;  %v672_v51 = vld [vmem:[#allocation8 + $0x568] sm:$0xff]  ;;  %v671_v53 = vld [vmem:[#allocation8 + $0x560] sm:$0xff] }
 0x101   :  { %779 = vmatprep.subr.mxu0 %v556_v38  ;;  %850 = vmatprep.subr.mxu1 %v684_v39  ;;  %v540_v54 = vld [vmem:[#allocation8 + $0x148] sm:$0xff]  ;;  %v539_v56 = vld [vmem:[#allocation8 + $0x140] sm:$0xff] }
 0x102   :  { %780 = vmatpush1.msra.mxu0 %v555_v40  ;;  %851 = vmatpush1.msra.mxu1 %v683_v41  ;;  %v668_v55 = vld [vmem:[#allocation8 + $0x548] sm:$0xff]  ;;  %v667_v57 = vld [vmem:[#allocation8 + $0x540] sm:$0xff] }
 0x103   :  { %781 = vmatprep.subr.mxu0 %v552_v42  ;;  %852 = vmatprep.subr.mxu1 %v680_v43  ;;  %v536_v58 = vld [vmem:[#allocation8 + $0x128] sm:$0xff]  ;;  %v535_v60 = vld [vmem:[#allocation8 + $0x120] sm:$0xff] }
 0x104   :  { %782 = vmatpush1.msra.mxu0 %v551_v44  ;;  %853 = vmatpush1.msra.mxu1 %v679_v45  ;;  %v664_v59 = vld [vmem:[#allocation8 + $0x528] sm:$0xff]  ;;  %v663_v61 = vld [vmem:[#allocation8 + $0x520] sm:$0xff] }
 0x105   :  { %783 = vmatprep.subr.mxu0 %v548_v46  ;;  %854 = vmatprep.subr.mxu1 %v676_v47  ;;  %v532_v62 = vld [vmem:[#allocation8 + $0x108] sm:$0xff]  ;;  %v531_v1 = vld [vmem:[#allocation8 + $0x100] sm:$0xff] }
 0x106   :  { %784 = vmatpush1.msra.mxu0 %v547_v48  ;;  %855 = vmatpush1.msra.mxu1 %v675_v49  ;;  %v660_v63 = vld [vmem:[#allocation8 + $0x508] sm:$0xff]  ;;  %v659_v2 = vld [vmem:[#allocation8 + $0x500] sm:$0xff] }
 0x107   :  { %785 = vmatprep.subr.mxu0 %v544_v50  ;;  %856 = vmatprep.subr.mxu1 %v672_v51  ;;  %v528_v3 = vld [vmem:[#allocation8 + $0xe8] sm:$0xff]  ;;  %v527_v5 = vld [vmem:[#allocation8 + $0xe0] sm:$0xff] }
 0x108   :  { %786 = vmatpush1.msra.mxu0 %v543_v52  ;;  %857 = vmatpush1.msra.mxu1 %v671_v53  ;;  %v656_v4 = vld [vmem:[#allocation8 + $0x4e8] sm:$0xff]  ;;  %v655_v6 = vld [vmem:[#allocation8 + $0x4e0] sm:$0xff] }
 0x109   :  { %787 = vmatprep.subr.mxu0 %v540_v54  ;;  %858 = vmatprep.subr.mxu1 %v668_v55  ;;  %v524_v7 = vld [vmem:[#allocation8 + $0xc8] sm:$0xff]  ;;  %v523_v9 = vld [vmem:[#allocation8 + $0xc0] sm:$0xff] }
 0x10a   :  { %788 = vmatpush1.msra.mxu0 %v539_v56  ;;  %859 = vmatpush1.msra.mxu1 %v667_v57  ;;  %v652_v8 = vld [vmem:[#allocation8 + $0x4c8] sm:$0xff]  ;;  %v651_v10 = vld [vmem:[#allocation8 + $0x4c0] sm:$0xff] }
 0x10b   :  { %789 = vmatprep.subr.mxu0 %v536_v58  ;;  %860 = vmatprep.subr.mxu1 %v664_v59  ;;  %v520_v11 = vld [vmem:[#allocation8 + $0xa8] sm:$0xff]  ;;  %v519_v13 = vld [vmem:[#allocation8 + $0xa0] sm:$0xff] }
 0x10c   :  { %790 = vmatpush1.msra.mxu0 %v535_v60  ;;  %861 = vmatpush1.msra.mxu1 %v663_v61  ;;  %v648_v12 = vld [vmem:[#allocation8 + $0x4a8] sm:$0xff]  ;;  %v647_v14 = vld [vmem:[#allocation8 + $0x4a0] sm:$0xff] }
 0x10d   :  { %791 = vmatprep.subr.mxu0 %v532_v62  ;;  %862 = vmatprep.subr.mxu1 %v660_v63  ;;  %v516_v15 = vld [vmem:[#allocation8 + $0x88] sm:$0xff]  ;;  %v515_v17 = vld [vmem:[#allocation8 + $0x80] sm:$0xff] }
 0x10e   :  { %792 = vmatpush1.msra.mxu0 %v531_v1  ;;  %863 = vmatpush1.msra.mxu1 %v659_v2  ;;  %v644_v16 = vld [vmem:[#allocation8 + $0x488] sm:$0xff]  ;;  %v643_v18 = vld [vmem:[#allocation8 + $0x480] sm:$0xff] }
 0x10f   :  { %793 = vmatprep.subr.mxu0 %v528_v3  ;;  %864 = vmatprep.subr.mxu1 %v656_v4  ;;  %v512_v19 = vld [vmem:[#allocation8 + $0x68] sm:$0xff]  ;;  %v511_v21 = vld [vmem:[#allocation8 + $0x60] sm:$0xff] }
 0x110   :  { %794 = vmatpush1.msra.mxu0 %v527_v5  ;;  %865 = vmatpush1.msra.mxu1 %v655_v6  ;;  %v640_v20 = vld [vmem:[#allocation8 + $0x468] sm:$0xff]  ;;  %v639_v22 = vld [vmem:[#allocation8 + $0x460] sm:$0xff] }
 0x111   :  { %795 = vmatprep.subr.mxu0 %v524_v7  ;;  %866 = vmatprep.subr.mxu1 %v652_v8  ;;  %v508_v23 = vld [vmem:[#allocation8 + $0x48] sm:$0xff]  ;;  %v507_v25 = vld [vmem:[#allocation8 + $0x40] sm:$0xff] }
 0x112   :  { %796 = vmatpush1.msra.mxu0 %v523_v9  ;;  %867 = vmatpush1.msra.mxu1 %v651_v10  ;;  %v636_v24 = vld [vmem:[#allocation8 + $0x448] sm:$0xff]  ;;  %v635_v26 = vld [vmem:[#allocation8 + $0x440] sm:$0xff] }
 0x113   :  { %797 = vmatprep.subr.mxu0 %v520_v11  ;;  %868 = vmatprep.subr.mxu1 %v648_v12  ;;  %v504_v27 = vld [vmem:[#allocation8 + $0x28] sm:$0xff]  ;;  %v503_v29 = vld [vmem:[#allocation8 + $0x20] sm:$0xff] }
 0x114   :  { %798 = vmatpush1.msra.mxu0 %v519_v13  ;;  %869 = vmatpush1.msra.mxu1 %v647_v14  ;;  %v632_v28 = vld [vmem:[#allocation8 + $0x428] sm:$0xff]  ;;  %v631_v30 = vld [vmem:[#allocation8 + $0x420] sm:$0xff] }
 0x115   :  { %799 = vmatprep.subr.mxu0 %v516_v15  ;;  %870 = vmatprep.subr.mxu1 %v644_v16  ;;  %v500_v31 = vld [vmem:[#allocation8 + $0x8] sm:$0xff]  ;;  %v499_v33 = vld [vmem:[#allocation8] sm:$0xff] }
 0x116   :  { %800 = vmatpush1.msra.mxu0 %v515_v17  ;;  %871 = vmatpush1.msra.mxu1 %v643_v18  ;;  %v628_v32 = vld [vmem:[#allocation8 + $0x408] sm:$0xff]  ;;  %v627_v34 = vld [vmem:[#allocation8 + $0x400] sm:$0xff] }
 0x117   :  { %801 = vmatprep.subr.mxu0 %v512_v19  ;;  %872 = vmatprep.subr.mxu1 %v640_v20  ;;  %v624_v35 = vld [vmem:[#allocation8 + $0x3e8] sm:$0xff]  ;;  %v623_v37 = vld [vmem:[#allocation8 + $0x3e0] sm:$0xff] }
 0x118   :  { %802 = vmatpush1.msra.mxu0 %v511_v21  ;;  %873 = vmatpush1.msra.mxu1 %v639_v22  ;;  %v752_v36 = vld [vmem:[#allocation8 + $0x7e8] sm:$0xff]  ;;  %v751_v38 = vld [vmem:[#allocation8 + $0x7e0] sm:$0xff] }
 0x119   :  { %803 = vmatprep.subr.mxu0 %v508_v23  ;;  %874 = vmatprep.subr.mxu1 %v636_v24  ;;  %v620_v39 = vld [vmem:[#allocation8 + $0x3c8] sm:$0xff]  ;;  %v619_v41 = vld [vmem:[#allocation8 + $0x3c0] sm:$0xff] }
 0x11a   :  { %804 = vmatpush1.msra.mxu0 %v507_v25  ;;  %875 = vmatpush1.msra.mxu1 %v635_v26  ;;  %v748_v40 = vld [vmem:[#allocation8 + $0x7c8] sm:$0xff]  ;;  %v747_v42 = vld [vmem:[#allocation8 + $0x7c0] sm:$0xff] }
 0x11b   :  { %805 = vmatprep.subr.mxu0 %v504_v27  ;;  %876 = vmatprep.subr.mxu1 %v632_v28  ;;  %v616_v43 = vld [vmem:[#allocation8 + $0x3a8] sm:$0xff]  ;;  %v615_v45 = vld [vmem:[#allocation8 + $0x3a0] sm:$0xff] }
 0x11c   :  { %806 = vmatpush1.msra.mxu0 %v503_v29  ;;  %877 = vmatpush1.msra.mxu1 %v631_v30  ;;  %v744_v44 = vld [vmem:[#allocation8 + $0x7a8] sm:$0xff]  ;;  %v743_v46 = vld [vmem:[#allocation8 + $0x7a0] sm:$0xff] }
 0x11d   :  { %807 = vmatprep.subr.mxu0 %v500_v31  ;;  %878 = vmatprep.subr.mxu1 %v628_v32  ;;  %v612_v47 = vld [vmem:[#allocation8 + $0x388] sm:$0xff]  ;;  %v611_v49 = vld [vmem:[#allocation8 + $0x380] sm:$0xff] }
 0x11e   :  { %808 = vmatpush1.msra.mxu0 %v499_v33  ;;  %879 = vmatpush1.msra.mxu1 %v627_v34  ;;  %v740_v48 = vld [vmem:[#allocation8 + $0x788] sm:$0xff]  ;;  %v739_v50 = vld [vmem:[#allocation8 + $0x780] sm:$0xff] }
 0x11f   :  { %809 = vmatprep.subr.mxu0 %v624_v35  ;;  %880 = vmatprep.subr.mxu1 %v752_v36  ;;  %v608_v51 = vld [vmem:[#allocation8 + $0x368] sm:$0xff]  ;;  %v607_v53 = vld [vmem:[#allocation8 + $0x360] sm:$0xff]  ;;  %v562_v36 = vld [vmem:[#allocation8 + $0x1f8] sm:$0xff] }
 0x120   :  { %810 = vmatpush2.msra.mxu0 %v623_v37  ;;  %881 = vmatpush2.msra.mxu1 %v751_v38  ;;  %v736_v52 = vld [vmem:[#allocation8 + $0x768] sm:$0xff]  ;;  %v735_v54 = vld [vmem:[#allocation8 + $0x760] sm:$0xff]  ;;  %v690_v37 = vld [vmem:[#allocation8 + $0x5f8] sm:$0xff]  ;;  %v329_v38 = vlaneseq }
 0x121   :  { %811 = vmatprep.subr.mxu0 %v620_v39  ;;  %882 = vmatprep.subr.mxu1 %v748_v40  ;;  %v604_v55 = vld [vmem:[#allocation8 + $0x348] sm:$0xff]  ;;  %v603_v57 = vld [vmem:[#allocation8 + $0x340] sm:$0xff] }
 0x122   :  { %812 = vmatpush2.msra.mxu0 %v619_v41  ;;  %883 = vmatpush2.msra.mxu1 %v747_v42  ;;  %v732_v56 = vld [vmem:[#allocation8 + $0x748] sm:$0xff]  ;;  %v731_v58 = vld [vmem:[#allocation8 + $0x740] sm:$0xff]  ;;  %v9205_v39 = vshrl.u32 %v329_v38, 7  ;;  %v327_v42 = vld [vmem:[#allocation7] sm:$0xf] }
 0x123   :  { %813 = vmatprep.subr.mxu0 %v616_v43  ;;  %884 = vmatprep.subr.mxu1 %v744_v44  ;;  %v600_v59 = vld [vmem:[#allocation8 + $0x328] sm:$0xff]  ;;  %v599_v61 = vld [vmem:[#allocation8 + $0x320] sm:$0xff]  ;;  %v521_v38 = vld [vmem:[#allocation8 + $0xb0] sm:$0xff] }
 0x124   :  { %814 = vmatpush2.msra.mxu0 %v615_v45  ;;  %885 = vmatpush2.msra.mxu1 %v743_v46  ;;  %v728_v60 = vld [vmem:[#allocation8 + $0x728] sm:$0xff]  ;;  %v727_v62 = vld [vmem:[#allocation8 + $0x720] sm:$0xff]  ;;  %v9208_v40 = vsub.s32 2, %v9205_v39  ;;  %v9211_v41 = vsub.s32 0, %v9205_v39  ;;  %v9214_v43 = vsub.s32 1, %v9205_v39  ;;  %v9217_v44 = vsub.s32 3, %v9205_v39 }
 0x125   :  { %815 = vmatprep.subr.mxu0 %v612_v47  ;;  %886 = vmatprep.subr.mxu1 %v740_v48  ;;  %v596_v63 = vld [vmem:[#allocation8 + $0x308] sm:$0xff]  ;;  %v595_v2 = vld [vmem:[#allocation8 + $0x300] sm:$0xff] }
 0x126   :  { %816 = vmatpush2.msra.mxu0 %v611_v49  ;;  %887 = vmatpush2.msra.mxu1 %v739_v50  ;;  %v724_v1 = vld [vmem:[#allocation8 + $0x708] sm:$0xff]  ;;  %v723_v3 = vld [vmem:[#allocation8 + $0x700] sm:$0xff]  ;;  %v340_v45 = vrot.slane %v327_v42, %v9208_v40  ;;  %v332_v46 = vrot.slane %v327_v42, %v9211_v41  ;;  %v336_v47 = vrot.slane %v327_v42, %v9214_v43 }
 0x127   :  { %817 = vmatprep.subr.mxu0 %v608_v51  ;;  %888 = vmatprep.subr.mxu1 %v736_v52  ;;  %v592_v4 = vld [vmem:[#allocation8 + $0x2e8] sm:$0xff]  ;;  %v591_v6 = vld [vmem:[#allocation8 + $0x2e0] sm:$0xff]  ;;  %v344_v48 = vrot.slane %v327_v42, %v9217_v44  ;;  %v649_v42 = vld [vmem:[#allocation8 + $0x4b0] sm:$0xff] }
 0x128   :  { %818 = vmatpush2.msra.mxu0 %v607_v53  ;;  %889 = vmatpush2.msra.mxu1 %v735_v54  ;;  %v720_v5 = vld [vmem:[#allocation8 + $0x6e8] sm:$0xff]  ;;  %v719_v7 = vld [vmem:[#allocation8 + $0x6e0] sm:$0xff] }
 0x129   :  { %819 = vmatprep.subr.mxu0 %v604_v55  ;;  %890 = vmatprep.subr.mxu1 %v732_v56  ;;  %v588_v8 = vld [vmem:[#allocation8 + $0x2c8] sm:$0xff]  ;;  %v587_v10 = vld [vmem:[#allocation8 + $0x2c0] sm:$0xff] }
 0x12a   :  { %820 = vmatpush2.msra.mxu0 %v603_v57  ;;  %891 = vmatpush2.msra.mxu1 %v731_v58  ;;  %v716_v9 = vld [vmem:[#allocation8 + $0x6c8] sm:$0xff]  ;;  %v715_v11 = vld [vmem:[#allocation8 + $0x6c0] sm:$0xff] }
 0x12b   :  { %821 = vmatprep.subr.mxu0 %v600_v59  ;;  %892 = vmatprep.subr.mxu1 %v728_v60  ;;  %v584_v12 = vld [vmem:[#allocation8 + $0x2a8] sm:$0xff]  ;;  %v583_v14 = vld [vmem:[#allocation8 + $0x2a0] sm:$0xff] }
 0x12c   :  { %822 = vmatpush2.msra.mxu0 %v599_v61  ;;  %893 = vmatpush2.msra.mxu1 %v727_v62  ;;  %v712_v13 = vld [vmem:[#allocation8 + $0x6a8] sm:$0xff]  ;;  %v711_v15 = vld [vmem:[#allocation8 + $0x6a0] sm:$0xff]  ;;  %v561_v61 = vld [vmem:[#allocation8 + $0x1f0] sm:$0xff] }
 0x12d   :  { %823 = vmatprep.subr.mxu0 %v596_v63  ;;  %894 = vmatprep.subr.mxu1 %v724_v1  ;;  %v580_v16 = vld [vmem:[#allocation8 + $0x288] sm:$0xff]  ;;  %v579_v18 = vld [vmem:[#allocation8 + $0x280] sm:$0xff]  ;;  %v689_v62 = vld [vmem:[#allocation8 + $0x5f0] sm:$0xff] }
 0x12e   :  { %824 = vmatpush2.msra.mxu0 %v595_v2  ;;  %895 = vmatpush2.msra.mxu1 %v723_v3  ;;  %v708_v17 = vld [vmem:[#allocation8 + $0x688] sm:$0xff]  ;;  %v707_v19 = vld [vmem:[#allocation8 + $0x680] sm:$0xff]  ;;  %v558_v63 = vld [vmem:[#allocation8 + $0x1d8] sm:$0xff] }
 0x12f   :  { %825 = vmatprep.subr.mxu0 %v592_v4  ;;  %896 = vmatprep.subr.mxu1 %v720_v5  ;;  %v576_v20 = vld [vmem:[#allocation8 + $0x268] sm:$0xff]  ;;  %v575_v22 = vld [vmem:[#allocation8 + $0x260] sm:$0xff]  ;;  %v686_v1 = vld [vmem:[#allocation8 + $0x5d8] sm:$0xff] }
 0x130   :  { %826 = vmatpush2.msra.mxu0 %v591_v6  ;;  %897 = vmatpush2.msra.mxu1 %v719_v7  ;;  %v704_v21 = vld [vmem:[#allocation8 + $0x668] sm:$0xff]  ;;  %v703_v23 = vld [vmem:[#allocation8 + $0x660] sm:$0xff]  ;;  %v557_v2 = vld [vmem:[#allocation8 + $0x1d0] sm:$0xff] }
 0x131   :  { %827 = vmatprep.subr.mxu0 %v588_v8  ;;  %898 = vmatprep.subr.mxu1 %v716_v9  ;;  %v572_v24 = vld [vmem:[#allocation8 + $0x248] sm:$0xff]  ;;  %v571_v26 = vld [vmem:[#allocation8 + $0x240] sm:$0xff]  ;;  %v685_v3 = vld [vmem:[#allocation8 + $0x5d0] sm:$0xff] }
 0x132   :  { %828 = vmatpush2.msra.mxu0 %v587_v10  ;;  %899 = vmatpush2.msra.mxu1 %v715_v11  ;;  %v700_v25 = vld [vmem:[#allocation8 + $0x648] sm:$0xff]  ;;  %v699_v27 = vld [vmem:[#allocation8 + $0x640] sm:$0xff]  ;;  %v554_v4 = vld [vmem:[#allocation8 + $0x1b8] sm:$0xff] }
 0x133   :  { %829 = vmatprep.subr.mxu0 %v584_v12  ;;  %900 = vmatprep.subr.mxu1 %v712_v13  ;;  %v568_v28 = vld [vmem:[#allocation8 + $0x228] sm:$0xff]  ;;  %v567_v30 = vld [vmem:[#allocation8 + $0x220] sm:$0xff]  ;;  %v682_v5 = vld [vmem:[#allocation8 + $0x5b8] sm:$0xff] }
 0x134   :  { %830 = vmatpush2.msra.mxu0 %v583_v14  ;;  %901 = vmatpush2.msra.mxu1 %v711_v15  ;;  %v696_v29 = vld [vmem:[#allocation8 + $0x628] sm:$0xff]  ;;  %v695_v31 = vld [vmem:[#allocation8 + $0x620] sm:$0xff]  ;;  %v553_v6 = vld [vmem:[#allocation8 + $0x1b0] sm:$0xff] }
 0x135   :  { %831 = vmatprep.subr.mxu0 %v580_v16  ;;  %902 = vmatprep.subr.mxu1 %v708_v17  ;;  %v564_v32 = vld [vmem:[#allocation8 + $0x208] sm:$0xff]  ;;  %v563_v34 = vld [vmem:[#allocation8 + $0x200] sm:$0xff]  ;;  %v681_v7 = vld [vmem:[#allocation8 + $0x5b0] sm:$0xff] }
 0x136   :  { %832 = vmatpush2.msra.mxu0 %v579_v18  ;;  %903 = vmatpush2.msra.mxu1 %v707_v19  ;;  %v692_v33 = vld [vmem:[#allocation8 + $0x608] sm:$0xff]  ;;  %v691_v35 = vld [vmem:[#allocation8 + $0x600] sm:$0xff]  ;;  %v550_v8 = vld [vmem:[#allocation8 + $0x198] sm:$0xff] }
 0x137   :  { %833 = vmatprep.subr.mxu0 %v576_v20  ;;  %904 = vmatprep.subr.mxu1 %v704_v21  ;;  %v678_v9 = vld [vmem:[#allocation8 + $0x598] sm:$0xff]  ;;  %v549_v10 = vld [vmem:[#allocation8 + $0x190] sm:$0xff] }
 0x138   :  { %834 = vmatpush2.msra.mxu0 %v575_v22  ;;  %905 = vmatpush2.msra.mxu1 %v703_v23  ;;  %v677_v11 = vld [vmem:[#allocation8 + $0x590] sm:$0xff]  ;;  %v546_v12 = vld [vmem:[#allocation8 + $0x178] sm:$0xff] }
 0x139   :  { %835 = vmatprep.subr.mxu0 %v572_v24  ;;  %906 = vmatprep.subr.mxu1 %v700_v25  ;;  %v674_v13 = vld [vmem:[#allocation8 + $0x578] sm:$0xff]  ;;  %v545_v14 = vld [vmem:[#allocation8 + $0x170] sm:$0xff] }
 0x13a   :  { %836 = vmatpush2.msra.mxu0 %v571_v26  ;;  %907 = vmatpush2.msra.mxu1 %v699_v27  ;;  %v673_v15 = vld [vmem:[#allocation8 + $0x570] sm:$0xff]  ;;  %v542_v16 = vld [vmem:[#allocation8 + $0x158] sm:$0xff] }
 0x13b   :  { %837 = vmatprep.subr.mxu0 %v568_v28  ;;  %908 = vmatprep.subr.mxu1 %v696_v29  ;;  %v670_v17 = vld [vmem:[#allocation8 + $0x558] sm:$0xff]  ;;  %v541_v18 = vld [vmem:[#allocation8 + $0x150] sm:$0xff] }
 0x13c   :  { %838 = vmatpush2.msra.mxu0 %v567_v30  ;;  %909 = vmatpush2.msra.mxu1 %v695_v31  ;;  %v669_v19 = vld [vmem:[#allocation8 + $0x550] sm:$0xff]  ;;  %v538_v20 = vld [vmem:[#allocation8 + $0x138] sm:$0xff] }
 0x13d   :  { %839 = vmatprep.subr.mxu0 %v564_v32  ;;  %910 = vmatprep.subr.mxu1 %v692_v33  ;;  %v666_v21 = vld [vmem:[#allocation8 + $0x538] sm:$0xff]  ;;  %v537_v22 = vld [vmem:[#allocation8 + $0x130] sm:$0xff] }
 0x13e   :  { %840 = vmatpush2.msra.mxu0 %v563_v34  ;;  %911 = vmatpush2.msra.mxu1 %v691_v35  ;;  %v665_v23 = vld [vmem:[#allocation8 + $0x530] sm:$0xff]  ;;  %v534_v24 = vld [vmem:[#allocation8 + $0x118] sm:$0xff] }
 0x13f   :  { %919 = vmatprep.subr.mxu0 %v562_v36  ;;  %990 = vmatprep.subr.mxu1 %v690_v37  ;;  %v662_v25 = vld [vmem:[#allocation8 + $0x518] sm:$0xff]  ;;  %v533_v26 = vld [vmem:[#allocation8 + $0x110] sm:$0xff] }
 0x140   :  { %v661_v27 = vld [vmem:[#allocation8 + $0x510] sm:$0xff]  ;;  %v530_v28 = vld [vmem:[#allocation8 + $0xf8] sm:$0xff] }
 0x141   :  { %v658_v29 = vld [vmem:[#allocation8 + $0x4f8] sm:$0xff]  ;;  %v529_v30 = vld [vmem:[#allocation8 + $0xf0] sm:$0xff] }
 0x142   :  { %v657_v31 = vld [vmem:[#allocation8 + $0x4f0] sm:$0xff]  ;;  %v526_v32 = vld [vmem:[#allocation8 + $0xd8] sm:$0xff] }
 0x143   :  { %v654_v33 = vld [vmem:[#allocation8 + $0x4d8] sm:$0xff]  ;;  %v525_v34 = vld [vmem:[#allocation8 + $0xd0] sm:$0xff] }
 0x144   :  { %v653_v35 = vld [vmem:[#allocation8 + $0x4d0] sm:$0xff]  ;;  %v522_v36 = vld [vmem:[#allocation8 + $0xb8] sm:$0xff] }
 0x145   :  { %v650_v37 = vld [vmem:[#allocation8 + $0x4b8] sm:$0xff] }
 0x1be   :  { %v419_v49 = vpop.f32.mrf.mxu0  ;;  %v490_v50 = vpop.f32.mrf.mxu1 }
 0x1bf   :  { %v9223_v51 = vadd.f32 %v490_v50, %v340_v45  ;;  %v9225_v52 = vadd.f32 %v419_v49, %v332_v46  ;;  %v518_v45 = vld [vmem:[#allocation8 + $0x98] sm:$0xff] }
 0x1c0   :  { %v421_v53 = vpop.f32.mrf.mxu0  ;;  %v492_v54 = vpop.f32.mrf.mxu1  ;;  %v646_v46 = vld [vmem:[#allocation8 + $0x498] sm:$0xff] }
 0x1c1   :  { %v422_v55 = vadd.f32 %v421_v53, %v336_v47  ;;  %v493_v56 = vadd.f32 %v492_v54, %v344_v48  ;;  %v497_v57 = vmax.f32 %v9223_v51, 0.0  ;;  %v495_v60 = vmax.f32 %v9225_v52, 0.0  ;;  %v517_v47 = vld [vmem:[#allocation8 + $0x90] sm:$0xff]  ;;  %v514_v49 = vld [vmem:[#allocation8 + $0x78] sm:$0xff]  ;;  %v1817_v51 = vld [vmem:[#allocation11 + $0x1780] sm:$0xff] }
 0x1c2   :  { %v645_v48 = vld [vmem:[#allocation8 + $0x490] sm:$0xff]  ;;  %v642_v50 = vld [vmem:[#allocation8 + $0x478] sm:$0xff] }
 0x1c3   :  { %v496_v58 = vmax.f32 %v422_v55, 0.0  ;;  %v498_v59 = vmax.f32 %v493_v56, 0.0  ;;  %v513_v53 = vld [vmem:[#allocation8 + $0x70] sm:$0xff]  ;;  %v510_v55 = vld [vmem:[#allocation8 + $0x58] sm:$0xff] }
 0x1c4   :  { %v641_v54 = vld [vmem:[#allocation8 + $0x470] sm:$0xff]  ;;  %v638_v56 = vld [vmem:[#allocation8 + $0x458] sm:$0xff] }
 0x1c5   :  { %841 = vmatprep.mubr.f32.mxu0 %v496_v58  ;;  %912 = vmatprep.mubr.f32.mxu1 %v498_v59  ;;  %v1818_v52 = vld [vmem:[#allocation11 + $0x1788] sm:$0xff] }
 0x1c6   :  { %842 = vmatmul.mubr.f32.vlgmr.msra.gmra.mxu0 %v495_v60  ;;  %913 = vmatmul.mubr.f32.vlgmr.msra.gmra.mxu1 %v497_v57 }
 0x1c7   :  { %920 = vmatpush1.msra.mxu0 %v561_v61  ;;  %991 = vmatpush1.msra.mxu1 %v689_v62  ;;  %v506_v61 = vld [vmem:[#allocation8 + $0x38] sm:$0xff] }
 0x1c8   :  { %921 = vmatprep.subr.mxu0 %v558_v63  ;;  %983 = vmatprep.mubr.f32.mxu0 %v496_v58  ;;  %v509_v58 = vld [vmem:[#allocation8 + $0x50] sm:$0xff]  ;;  %v634_v62 = vld [vmem:[#allocation8 + $0x438] sm:$0xff] }
 0x1c9   :  { %992 = vmatprep.subr.mxu1 %v686_v1  ;;  %1054 = vmatprep.mubr.f32.mxu1 %v498_v59  ;;  %v637_v59 = vld [vmem:[#allocation8 + $0x450] sm:$0xff] }
 0x1ca   :  { %922 = vmatpush1.msra.mxu0 %v557_v2  ;;  %993 = vmatpush1.msra.mxu1 %v685_v3  ;;  %v505_v63 = vld [vmem:[#allocation8 + $0x30] sm:$0xff]  ;;  %v502_v2 = vld [vmem:[#allocation8 + $0x18] sm:$0xff] }
 0x1cb   :  { %923 = vmatprep.subr.mxu0 %v554_v4  ;;  %994 = vmatprep.subr.mxu1 %v682_v5  ;;  %v633_v1 = vld [vmem:[#allocation8 + $0x430] sm:$0xff]  ;;  %v630_v3 = vld [vmem:[#allocation8 + $0x418] sm:$0xff] }
 0x1cc   :  { %924 = vmatpush1.msra.mxu0 %v553_v6  ;;  %995 = vmatpush1.msra.mxu1 %v681_v7  ;;  %v501_v4 = vld [vmem:[#allocation8 + $0x10] sm:$0xff]  ;;  %v626_v6 = vld [vmem:[#allocation8 + $0x3f8] sm:$0xff] }
 0x1cd   :  { %925 = vmatprep.subr.mxu0 %v550_v8  ;;  %996 = vmatprep.subr.mxu1 %v678_v9  ;;  %v629_v5 = vld [vmem:[#allocation8 + $0x410] sm:$0xff]  ;;  %v754_v7 = vld [vmem:[#allocation8 + $0x7f8] sm:$0xff] }
 0x1ce   :  { %926 = vmatpush1.msra.mxu0 %v549_v10  ;;  %997 = vmatpush1.msra.mxu1 %v677_v11  ;;  %v625_v8 = vld [vmem:[#allocation8 + $0x3f0] sm:$0xff]  ;;  %v622_v10 = vld [vmem:[#allocation8 + $0x3d8] sm:$0xff] }
 0x1cf   :  { %927 = vmatprep.subr.mxu0 %v546_v12  ;;  %998 = vmatprep.subr.mxu1 %v674_v13  ;;  %v753_v9 = vld [vmem:[#allocation8 + $0x7f0] sm:$0xff]  ;;  %v750_v11 = vld [vmem:[#allocation8 + $0x7d8] sm:$0xff] }
 0x1d0   :  { %928 = vmatpush1.msra.mxu0 %v545_v14  ;;  %999 = vmatpush1.msra.mxu1 %v673_v15  ;;  %v621_v12 = vld [vmem:[#allocation8 + $0x3d0] sm:$0xff]  ;;  %v618_v14 = vld [vmem:[#allocation8 + $0x3b8] sm:$0xff] }
 0x1d1   :  { %929 = vmatprep.subr.mxu0 %v542_v16  ;;  %1000 = vmatprep.subr.mxu1 %v670_v17  ;;  %v749_v13 = vld [vmem:[#allocation8 + $0x7d0] sm:$0xff]  ;;  %v746_v15 = vld [vmem:[#allocation8 + $0x7b8] sm:$0xff] }
 0x1d2   :  { %930 = vmatpush1.msra.mxu0 %v541_v18  ;;  %1001 = vmatpush1.msra.mxu1 %v669_v19  ;;  %v617_v16 = vld [vmem:[#allocation8 + $0x3b0] sm:$0xff]  ;;  %v614_v18 = vld [vmem:[#allocation8 + $0x398] sm:$0xff] }
 0x1d3   :  { %931 = vmatprep.subr.mxu0 %v538_v20  ;;  %1002 = vmatprep.subr.mxu1 %v666_v21  ;;  %v745_v17 = vld [vmem:[#allocation8 + $0x7b0] sm:$0xff]  ;;  %v742_v19 = vld [vmem:[#allocation8 + $0x798] sm:$0xff] }
 0x1d4   :  { %932 = vmatpush1.msra.mxu0 %v537_v22  ;;  %1003 = vmatpush1.msra.mxu1 %v665_v23  ;;  %v613_v20 = vld [vmem:[#allocation8 + $0x390] sm:$0xff]  ;;  %v610_v22 = vld [vmem:[#allocation8 + $0x378] sm:$0xff] }
 0x1d5   :  { %933 = vmatprep.subr.mxu0 %v534_v24  ;;  %1004 = vmatprep.subr.mxu1 %v662_v25  ;;  %v741_v21 = vld [vmem:[#allocation8 + $0x790] sm:$0xff]  ;;  %v738_v23 = vld [vmem:[#allocation8 + $0x778] sm:$0xff] }
 0x1d6   :  { %934 = vmatpush1.msra.mxu0 %v533_v26  ;;  %1005 = vmatpush1.msra.mxu1 %v661_v27  ;;  %v609_v24 = vld [vmem:[#allocation8 + $0x370] sm:$0xff]  ;;  %v606_v26 = vld [vmem:[#allocation8 + $0x358] sm:$0xff] }
 0x1d7   :  { %935 = vmatprep.subr.mxu0 %v530_v28  ;;  %1006 = vmatprep.subr.mxu1 %v658_v29  ;;  %v737_v25 = vld [vmem:[#allocation8 + $0x770] sm:$0xff]  ;;  %v734_v27 = vld [vmem:[#allocation8 + $0x758] sm:$0xff] }
 0x1d8   :  { %936 = vmatpush1.msra.mxu0 %v529_v30  ;;  %1007 = vmatpush1.msra.mxu1 %v657_v31  ;;  %v605_v28 = vld [vmem:[#allocation8 + $0x350] sm:$0xff]  ;;  %v602_v30 = vld [vmem:[#allocation8 + $0x338] sm:$0xff] }
 0x1d9   :  { %937 = vmatprep.subr.mxu0 %v526_v32  ;;  %1008 = vmatprep.subr.mxu1 %v654_v33  ;;  %v733_v29 = vld [vmem:[#allocation8 + $0x750] sm:$0xff]  ;;  %v730_v31 = vld [vmem:[#allocation8 + $0x738] sm:$0xff] }
 0x1da   :  { %938 = vmatpush1.msra.mxu0 %v525_v34  ;;  %1009 = vmatpush1.msra.mxu1 %v653_v35  ;;  %v601_v32 = vld [vmem:[#allocation8 + $0x330] sm:$0xff]  ;;  %v598_v34 = vld [vmem:[#allocation8 + $0x318] sm:$0xff] }
 0x1db   :  { %939 = vmatprep.subr.mxu0 %v522_v36  ;;  %1010 = vmatprep.subr.mxu1 %v650_v37  ;;  %v729_v33 = vld [vmem:[#allocation8 + $0x730] sm:$0xff]  ;;  %v726_v35 = vld [vmem:[#allocation8 + $0x718] sm:$0xff] }
 0x1dc   :  { %940 = vmatpush1.msra.mxu0 %v521_v38  ;;  %1011 = vmatpush1.msra.mxu1 %v649_v42  ;;  %v597_v36 = vld [vmem:[#allocation8 + $0x310] sm:$0xff]  ;;  %v594_v38 = vld [vmem:[#allocation8 + $0x2f8] sm:$0xff] }
 0x1dd   :  { %941 = vmatprep.subr.mxu0 %v518_v45  ;;  %1012 = vmatprep.subr.mxu1 %v646_v46  ;;  %v725_v37 = vld [vmem:[#allocation8 + $0x710] sm:$0xff]  ;;  %v722_v42 = vld [vmem:[#allocation8 + $0x6f8] sm:$0xff] }
 0x1de   :  { %942 = vmatpush1.msra.mxu0 %v517_v47  ;;  %1013 = vmatpush1.msra.mxu1 %v645_v48  ;;  %v593_v45 = vld [vmem:[#allocation8 + $0x2f0] sm:$0xff]  ;;  %v590_v47 = vld [vmem:[#allocation8 + $0x2d8] sm:$0xff] }
 0x1df   :  { %943 = vmatprep.subr.mxu0 %v514_v49  ;;  %1014 = vmatprep.subr.mxu1 %v642_v50  ;;  %v721_v46 = vld [vmem:[#allocation8 + $0x6f0] sm:$0xff]  ;;  %v718_v48 = vld [vmem:[#allocation8 + $0x6d8] sm:$0xff] }
 0x1e0   :  { %944 = vmatpush1.msra.mxu0 %v513_v53  ;;  %1015 = vmatpush1.msra.mxu1 %v641_v54  ;;  %v589_v49 = vld [vmem:[#allocation8 + $0x2d0] sm:$0xff]  ;;  %v586_v53 = vld [vmem:[#allocation8 + $0x2b8] sm:$0xff] }
 0x1e1   :  { %945 = vmatprep.subr.mxu0 %v510_v55  ;;  %1016 = vmatprep.subr.mxu1 %v638_v56  ;;  %v717_v50 = vld [vmem:[#allocation8 + $0x6d0] sm:$0xff]  ;;  %v714_v54 = vld [vmem:[#allocation8 + $0x6b8] sm:$0xff] }
 0x1e2   :  { %946 = vmatpush1.msra.mxu0 %v509_v58  ;;  %1017 = vmatpush1.msra.mxu1 %v637_v59  ;;  %v585_v55 = vld [vmem:[#allocation8 + $0x2b0] sm:$0xff]  ;;  %v582_v58 = vld [vmem:[#allocation8 + $0x298] sm:$0xff] }
 0x1e3   :  { %947 = vmatprep.subr.mxu0 %v506_v61  ;;  %1018 = vmatprep.subr.mxu1 %v634_v62  ;;  %v713_v56 = vld [vmem:[#allocation8 + $0x6b0] sm:$0xff]  ;;  %v710_v59 = vld [vmem:[#allocation8 + $0x698] sm:$0xff] }
 0x1e4   :  { %948 = vmatpush1.msra.mxu0 %v505_v63  ;;  %1019 = vmatpush1.msra.mxu1 %v633_v1  ;;  %v581_v61 = vld [vmem:[#allocation8 + $0x290] sm:$0xff]  ;;  %v578_v63 = vld [vmem:[#allocation8 + $0x278] sm:$0xff] }
 0x1e5   :  { %949 = vmatprep.subr.mxu0 %v502_v2  ;;  %1020 = vmatprep.subr.mxu1 %v630_v3  ;;  %v709_v62 = vld [vmem:[#allocation8 + $0x690] sm:$0xff]  ;;  %v706_v1 = vld [vmem:[#allocation8 + $0x678] sm:$0xff] }
 0x1e6   :  { %950 = vmatpush1.msra.mxu0 %v501_v4  ;;  %1021 = vmatpush1.msra.mxu1 %v629_v5  ;;  %v577_v2 = vld [vmem:[#allocation8 + $0x270] sm:$0xff]  ;;  %v574_v4 = vld [vmem:[#allocation8 + $0x258] sm:$0xff] }
 0x1e7   :  { %951 = vmatprep.subr.mxu0 %v626_v6  ;;  %1022 = vmatprep.subr.mxu1 %v754_v7  ;;  %v705_v3 = vld [vmem:[#allocation8 + $0x670] sm:$0xff]  ;;  %v702_v5 = vld [vmem:[#allocation8 + $0x658] sm:$0xff] }
 0x1e8   :  { %952 = vmatpush2.msra.mxu0 %v625_v8  ;;  %1023 = vmatpush2.msra.mxu1 %v753_v9  ;;  %v573_v6 = vld [vmem:[#allocation8 + $0x250] sm:$0xff]  ;;  %v570_v8 = vld [vmem:[#allocation8 + $0x238] sm:$0xff] }
 0x1e9   :  { %953 = vmatprep.subr.mxu0 %v622_v10  ;;  %1024 = vmatprep.subr.mxu1 %v750_v11  ;;  %v701_v7 = vld [vmem:[#allocation8 + $0x650] sm:$0xff]  ;;  %v698_v9 = vld [vmem:[#allocation8 + $0x638] sm:$0xff] }
 0x1ea   :  { %954 = vmatpush2.msra.mxu0 %v621_v12  ;;  %1025 = vmatpush2.msra.mxu1 %v749_v13  ;;  %v569_v10 = vld [vmem:[#allocation8 + $0x230] sm:$0xff]  ;;  %v566_v12 = vld [vmem:[#allocation8 + $0x218] sm:$0xff] }
 0x1eb   :  { %955 = vmatprep.subr.mxu0 %v618_v14  ;;  %1026 = vmatprep.subr.mxu1 %v746_v15  ;;  %v697_v11 = vld [vmem:[#allocation8 + $0x630] sm:$0xff]  ;;  %v694_v13 = vld [vmem:[#allocation8 + $0x618] sm:$0xff] }
 0x1ec   :  { %956 = vmatpush2.msra.mxu0 %v617_v16  ;;  %1027 = vmatpush2.msra.mxu1 %v745_v17  ;;  %v565_v14 = vld [vmem:[#allocation8 + $0x210] sm:$0xff]  ;;  %v1305_v17 = vld [vmem:[#allocation11 + $0x780] sm:$0xff] }
 0x1ed   :  { %957 = vmatprep.subr.mxu0 %v614_v18  ;;  %1028 = vmatprep.subr.mxu1 %v742_v19  ;;  %v693_v15 = vld [vmem:[#allocation8 + $0x610] sm:$0xff]  ;;  %v1289_v19 = vld [vmem:[#allocation11 + $0x700] sm:$0xff] }
 0x1ee   :  { %958 = vmatpush2.msra.mxu0 %v613_v20  ;;  %1029 = vmatpush2.msra.mxu1 %v741_v21  ;;  %v1306_v16 = vld [vmem:[#allocation11 + $0x788] sm:$0xff]  ;;  %v1273_v21 = vld [vmem:[#allocation11 + $0x680] sm:$0xff] }
 0x1ef   :  { %959 = vmatprep.subr.mxu0 %v610_v22  ;;  %1030 = vmatprep.subr.mxu1 %v738_v23  ;;  %v1290_v18 = vld [vmem:[#allocation11 + $0x708] sm:$0xff]  ;;  %v1257_v23 = vld [vmem:[#allocation11 + $0x600] sm:$0xff] }
 0x1f0   :  { %960 = vmatpush2.msra.mxu0 %v609_v24  ;;  %1031 = vmatpush2.msra.mxu1 %v737_v25  ;;  %v1274_v20 = vld [vmem:[#allocation11 + $0x688] sm:$0xff]  ;;  %v1241_v25 = vld [vmem:[#allocation11 + $0x580] sm:$0xff] }
 0x1f1   :  { %961 = vmatprep.subr.mxu0 %v606_v26  ;;  %1032 = vmatprep.subr.mxu1 %v734_v27  ;;  %v1258_v22 = vld [vmem:[#allocation11 + $0x608] sm:$0xff] }
 0x1f2   :  { %962 = vmatpush2.msra.mxu0 %v605_v28  ;;  %1033 = vmatpush2.msra.mxu1 %v733_v29  ;;  %v1242_v24 = vld [vmem:[#allocation11 + $0x588] sm:$0xff]  ;;  %v1801_v28 = vld [vmem:[#allocation11 + $0x1700] sm:$0xff] }
 0x1f3   :  { %963 = vmatprep.subr.mxu0 %v602_v30  ;;  %1034 = vmatprep.subr.mxu1 %v730_v31  ;;  %v1802_v26 = vld [vmem:[#allocation11 + $0x1708] sm:$0xff]  ;;  %v1209_v29 = vld [vmem:[#allocation11 + $0x480] sm:$0xff] }
 0x1f4   :  { %964 = vmatpush2.msra.mxu0 %v601_v32  ;;  %1035 = vmatpush2.msra.mxu1 %v729_v33  ;;  %v1210_v27 = vld [vmem:[#allocation11 + $0x488] sm:$0xff]  ;;  %v1785_v32 = vld [vmem:[#allocation11 + $0x1680] sm:$0xff] }
 0x1f5   :  { %965 = vmatprep.subr.mxu0 %v598_v34  ;;  %1036 = vmatprep.subr.mxu1 %v726_v35  ;;  %v1786_v30 = vld [vmem:[#allocation11 + $0x1688] sm:$0xff]  ;;  %v1193_v33 = vld [vmem:[#allocation11 + $0x400] sm:$0xff] }
 0x1f6   :  { %966 = vmatpush2.msra.mxu0 %v597_v36  ;;  %1037 = vmatpush2.msra.mxu1 %v725_v37  ;;  %v1194_v31 = vld [vmem:[#allocation11 + $0x408] sm:$0xff]  ;;  %v1769_v36 = vld [vmem:[#allocation11 + $0x1600] sm:$0xff] }
 0x1f7   :  { %967 = vmatprep.subr.mxu0 %v594_v38  ;;  %1038 = vmatprep.subr.mxu1 %v722_v42  ;;  %v1770_v34 = vld [vmem:[#allocation11 + $0x1608] sm:$0xff]  ;;  %v1177_v37 = vld [vmem:[#allocation11 + $0x380] sm:$0xff] }
 0x1f8   :  { %968 = vmatpush2.msra.mxu0 %v593_v45  ;;  %1039 = vmatpush2.msra.mxu1 %v721_v46  ;;  %v1178_v35 = vld [vmem:[#allocation11 + $0x388] sm:$0xff]  ;;  %v1753_v45 = vld [vmem:[#allocation11 + $0x1580] sm:$0xff] }
 0x1f9   :  { %969 = vmatprep.subr.mxu0 %v590_v47  ;;  %1040 = vmatprep.subr.mxu1 %v718_v48  ;;  %v1754_v38 = vld [vmem:[#allocation11 + $0x1588] sm:$0xff]  ;;  %v1161_v46 = vld [vmem:[#allocation11 + $0x300] sm:$0xff] }
 0x1fa   :  { %970 = vmatpush2.msra.mxu0 %v589_v49  ;;  %1041 = vmatpush2.msra.mxu1 %v717_v50  ;;  %v1162_v42 = vld [vmem:[#allocation11 + $0x308] sm:$0xff]  ;;  %v1737_v49 = vld [vmem:[#allocation11 + $0x1500] sm:$0xff] }
 0x1fb   :  { %971 = vmatprep.subr.mxu0 %v586_v53  ;;  %1042 = vmatprep.subr.mxu1 %v714_v54  ;;  %v1738_v47 = vld [vmem:[#allocation11 + $0x1508] sm:$0xff]  ;;  %v1145_v50 = vld [vmem:[#allocation11 + $0x280] sm:$0xff] }
 0x1fc   :  { %972 = vmatpush2.msra.mxu0 %v585_v55  ;;  %1043 = vmatpush2.msra.mxu1 %v713_v56  ;;  %v1146_v48 = vld [vmem:[#allocation11 + $0x288] sm:$0xff]  ;;  %v1721_v55 = vld [vmem:[#allocation11 + $0x1480] sm:$0xff] }
 0x1fd   :  { %973 = vmatprep.subr.mxu0 %v582_v58  ;;  %1044 = vmatprep.subr.mxu1 %v710_v59  ;;  %v1722_v53 = vld [vmem:[#allocation11 + $0x1488] sm:$0xff]  ;;  %v1129_v56 = vld [vmem:[#allocation11 + $0x200] sm:$0xff] }
 0x1fe   :  { %974 = vmatpush2.msra.mxu0 %v581_v61  ;;  %1045 = vmatpush2.msra.mxu1 %v709_v62  ;;  %v1130_v54 = vld [vmem:[#allocation11 + $0x208] sm:$0xff]  ;;  %v1705_v61 = vld [vmem:[#allocation11 + $0x1400] sm:$0xff] }
 0x1ff   :  { %975 = vmatprep.subr.mxu0 %v578_v63  ;;  %1046 = vmatprep.subr.mxu1 %v706_v1  ;;  %v1706_v58 = vld [vmem:[#allocation11 + $0x1408] sm:$0xff]  ;;  %v1113_v62 = vld [vmem:[#allocation11 + $0x180] sm:$0xff] }
 0x200   :  { %976 = vmatpush2.msra.mxu0 %v577_v2  ;;  %1047 = vmatpush2.msra.mxu1 %v705_v3  ;;  %v1114_v59 = vld [vmem:[#allocation11 + $0x188] sm:$0xff]  ;;  %v1689_v2 = vld [vmem:[#allocation11 + $0x1380] sm:$0xff] }
 0x201   :  { %977 = vmatprep.subr.mxu0 %v574_v4  ;;  %1048 = vmatprep.subr.mxu1 %v702_v5  ;;  %v1690_v63 = vld [vmem:[#allocation11 + $0x1388] sm:$0xff]  ;;  %v1097_v3 = vld [vmem:[#allocation11 + $0x100] sm:$0xff] }
 0x202   :  { %978 = vmatpush2.msra.mxu0 %v573_v6  ;;  %1049 = vmatpush2.msra.mxu1 %v701_v7  ;;  %v1098_v1 = vld [vmem:[#allocation11 + $0x108] sm:$0xff]  ;;  %v1673_v6 = vld [vmem:[#allocation11 + $0x1300] sm:$0xff] }
 0x203   :  { %979 = vmatprep.subr.mxu0 %v570_v8  ;;  %1050 = vmatprep.subr.mxu1 %v698_v9  ;;  %v1674_v4 = vld [vmem:[#allocation11 + $0x1308] sm:$0xff]  ;;  %v1081_v7 = vld [vmem:[#allocation11 + $0x80] sm:$0xff] }
 0x204   :  { %980 = vmatpush2.msra.mxu0 %v569_v10  ;;  %1051 = vmatpush2.msra.mxu1 %v697_v11  ;;  %v1082_v5 = vld [vmem:[#allocation11 + $0x88] sm:$0xff]  ;;  %v1657_v10 = vld [vmem:[#allocation11 + $0x1280] sm:$0xff] }
 0x205   :  { %981 = vmatprep.subr.mxu0 %v566_v12  ;;  %1052 = vmatprep.subr.mxu1 %v694_v13  ;;  %v1658_v8 = vld [vmem:[#allocation11 + $0x1288] sm:$0xff]  ;;  %v1065_v11 = vld [vmem:[#allocation11] sm:$0xff] }
 0x206   :  { %982 = vmatpush2.msra.mxu0 %v565_v14  ;;  %1053 = vmatpush2.msra.mxu1 %v693_v15  ;;  %v1066_v9 = vld [vmem:[#allocation11 + $0x8] sm:$0xff]  ;;  %v1641_v14 = vld [vmem:[#allocation11 + $0x1200] sm:$0xff] }
 0x207   :  { %984 = vmatmul.mubr.f32.vlgmr.msra.gmra.mxu0 %v495_v60  ;;  %1055 = vmatmul.mubr.f32.vlgmr.msra.gmra.mxu1 %v497_v57  ;;  %v1226_v60 = vld [vmem:[#allocation11 + $0x508] sm:$0xff]  ;;  %v1225_v57 = vld [vmem:[#allocation11 + $0x500] sm:$0xff] }
 0x208   :  { %2173 = vmatprep.subr.mxu0 %v1306_v16  ;;  %2244 = vmatprep.subr.mxu1 %v1818_v52  ;;  %v1642_v12 = vld [vmem:[#allocation11 + $0x1208] sm:$0xff]  ;;  %v1561_v15 = vld [vmem:[#allocation11 + $0xf80] sm:$0xff] }
 0x209   :  { %2174 = vmatpush1.msra.mxu0 %v1305_v17  ;;  %2245 = vmatpush1.msra.mxu1 %v1817_v51  ;;  %v1562_v13 = vld [vmem:[#allocation11 + $0xf88] sm:$0xff]  ;;  %v1593_v52 = vld [vmem:[#allocation11 + $0x1080] sm:$0xff] }
 0x20a   :  { %2175 = vmatprep.subr.mxu0 %v1290_v18  ;;  %2246 = vmatprep.subr.mxu1 %v1802_v26  ;;  %v1626_v16 = vld [vmem:[#allocation11 + $0x1188] sm:$0xff]  ;;  %v1625_v18 = vld [vmem:[#allocation11 + $0x1180] sm:$0xff] }
 0x20b   :  { %2176 = vmatpush1.msra.mxu0 %v1289_v19  ;;  %2247 = vmatpush1.msra.mxu1 %v1801_v28  ;;  %v1546_v17 = vld [vmem:[#allocation11 + $0xf08] sm:$0xff]  ;;  %v1545_v19 = vld [vmem:[#allocation11 + $0xf00] sm:$0xff] }
 0x20c   :  { %2177 = vmatprep.subr.mxu0 %v1274_v20  ;;  %2248 = vmatprep.subr.mxu1 %v1786_v30  ;;  %v1610_v20 = vld [vmem:[#allocation11 + $0x1108] sm:$0xff]  ;;  %v1577_v26 = vld [vmem:[#allocation11 + $0x1000] sm:$0xff] }
 0x20d   :  { %2178 = vmatpush1.msra.mxu0 %v1273_v21  ;;  %2249 = vmatpush1.msra.mxu1 %v1785_v32  ;;  %v1530_v21 = vld [vmem:[#allocation11 + $0xe88] sm:$0xff]  ;;  %v2073_v30 = vld [vmem:[#allocation11 + $0x1f80] sm:$0xff] }
 0x20e   :  { %2179 = vmatprep.subr.mxu0 %v1258_v22  ;;  %2250 = vmatprep.subr.mxu1 %v1770_v34  ;;  %v1609_v22 = vld [vmem:[#allocation11 + $0x1100] sm:$0xff]  ;;  %v1578_v51 = vld [vmem:[#allocation11 + $0x1008] sm:$0xff] }
 0x20f   :  { %2180 = vmatpush1.msra.mxu0 %v1257_v23  ;;  %2251 = vmatpush1.msra.mxu1 %v1769_v36  ;;  %v1529_v23 = vld [vmem:[#allocation11 + $0xe80] sm:$0xff]  ;;  %v2074_v28 = vld [vmem:[#allocation11 + $0x1f88] sm:$0xff] }
 0x210   :  { %2181 = vmatprep.subr.mxu0 %v1242_v24  ;;  %2252 = vmatprep.subr.mxu1 %v1754_v38  ;;  %v1594_v24 = vld [vmem:[#allocation11 + $0x1088] sm:$0xff]  ;;  %v2057_v34 = vld [vmem:[#allocation11 + $0x1f00] sm:$0xff] }
 0x211   :  { %2182 = vmatpush1.msra.mxu0 %v1241_v25  ;;  %2253 = vmatpush1.msra.mxu1 %v1753_v45  ;;  %v1514_v25 = vld [vmem:[#allocation11 + $0xe08] sm:$0xff]  ;;  %v2041_v38 = vld [vmem:[#allocation11 + $0x1e80] sm:$0xff] }
 0x212   :  { %2183 = vmatprep.subr.mxu0 %v1226_v60  ;;  %2254 = vmatprep.subr.mxu1 %v1738_v47  ;;  %v1513_v60 = vld [vmem:[#allocation11 + $0xe00] sm:$0xff]  ;;  %v2058_v32 = vld [vmem:[#allocation11 + $0x1f08] sm:$0xff] }
 0x213   :  { %2184 = vmatpush1.msra.mxu0 %v1225_v57  ;;  %2255 = vmatpush1.msra.mxu1 %v1737_v49  ;;  %v1498_v57 = vld [vmem:[#allocation11 + $0xd88] sm:$0xff]  ;;  %v2025_v47 = vld [vmem:[#allocation11 + $0x1e00] sm:$0xff] }
 0x214   :  { %2185 = vmatprep.subr.mxu0 %v1210_v27  ;;  %2256 = vmatprep.subr.mxu1 %v1722_v53  ;;  %v1497_v27 = vld [vmem:[#allocation11 + $0xd80] sm:$0xff]  ;;  %v2042_v36 = vld [vmem:[#allocation11 + $0x1e88] sm:$0xff] }
 0x215   :  { %2186 = vmatpush1.msra.mxu0 %v1209_v29  ;;  %2257 = vmatpush1.msra.mxu1 %v1721_v55  ;;  %v1482_v29 = vld [vmem:[#allocation11 + $0xd08] sm:$0xff]  ;;  %v2009_v53 = vld [vmem:[#allocation11 + $0x1d80] sm:$0xff] }
 0x216   :  { %2187 = vmatprep.subr.mxu0 %v1194_v31  ;;  %2258 = vmatprep.subr.mxu1 %v1706_v58  ;;  %v1481_v31 = vld [vmem:[#allocation11 + $0xd00] sm:$0xff]  ;;  %v2026_v45 = vld [vmem:[#allocation11 + $0x1e08] sm:$0xff] }
 0x217   :  { %2188 = vmatpush1.msra.mxu0 %v1193_v33  ;;  %2259 = vmatpush1.msra.mxu1 %v1705_v61  ;;  %v1466_v33 = vld [vmem:[#allocation11 + $0xc88] sm:$0xff]  ;;  %v1993_v58 = vld [vmem:[#allocation11 + $0x1d00] sm:$0xff] }
 0x218   :  { %2189 = vmatprep.subr.mxu0 %v1178_v35  ;;  %2260 = vmatprep.subr.mxu1 %v1690_v63  ;;  %v1465_v35 = vld [vmem:[#allocation11 + $0xc80] sm:$0xff]  ;;  %v2010_v49 = vld [vmem:[#allocation11 + $0x1d88] sm:$0xff] }
 0x219   :  { %2190 = vmatpush1.msra.mxu0 %v1177_v37  ;;  %2261 = vmatpush1.msra.mxu1 %v1689_v2  ;;  %v1450_v37 = vld [vmem:[#allocation11 + $0xc08] sm:$0xff]  ;;  %v1977_v63 = vld [vmem:[#allocation11 + $0x1c80] sm:$0xff] }
 0x21a   :  { %2191 = vmatprep.subr.mxu0 %v1162_v42  ;;  %2262 = vmatprep.subr.mxu1 %v1674_v4  ;;  %v1449_v42 = vld [vmem:[#allocation11 + $0xc00] sm:$0xff]  ;;  %v1994_v55 = vld [vmem:[#allocation11 + $0x1d08] sm:$0xff] }
 0x21b   :  { %2192 = vmatpush1.msra.mxu0 %v1161_v46  ;;  %2263 = vmatpush1.msra.mxu1 %v1673_v6  ;;  %v1434_v46 = vld [vmem:[#allocation11 + $0xb88] sm:$0xff]  ;;  %v1961_v4 = vld [vmem:[#allocation11 + $0x1c00] sm:$0xff] }
 0x21c   :  { %2193 = vmatprep.subr.mxu0 %v1146_v48  ;;  %2264 = vmatprep.subr.mxu1 %v1658_v8  ;;  %v1433_v48 = vld [vmem:[#allocation11 + $0xb80] sm:$0xff]  ;;  %v1978_v61 = vld [vmem:[#allocation11 + $0x1c88] sm:$0xff] }
 0x21d   :  { %2194 = vmatpush1.msra.mxu0 %v1145_v50  ;;  %2265 = vmatpush1.msra.mxu1 %v1657_v10  ;;  %v1418_v50 = vld [vmem:[#allocation11 + $0xb08] sm:$0xff]  ;;  %v1945_v8 = vld [vmem:[#allocation11 + $0x1b80] sm:$0xff] }
 0x21e   :  { %2195 = vmatprep.subr.mxu0 %v1130_v54  ;;  %2266 = vmatprep.subr.mxu1 %v1642_v12  ;;  %v1417_v54 = vld [vmem:[#allocation11 + $0xb00] sm:$0xff]  ;;  %v1962_v2 = vld [vmem:[#allocation11 + $0x1c08] sm:$0xff] }
 0x21f   :  { %2196 = vmatpush1.msra.mxu0 %v1129_v56  ;;  %2267 = vmatpush1.msra.mxu1 %v1641_v14  ;;  %v1402_v56 = vld [vmem:[#allocation11 + $0xa88] sm:$0xff]  ;;  %v1929_v12 = vld [vmem:[#allocation11 + $0x1b00] sm:$0xff] }
 0x220   :  { %2197 = vmatprep.subr.mxu0 %v1114_v59  ;;  %2268 = vmatprep.subr.mxu1 %v1626_v16  ;;  %v1401_v59 = vld [vmem:[#allocation11 + $0xa80] sm:$0xff]  ;;  %v1946_v6 = vld [vmem:[#allocation11 + $0x1b88] sm:$0xff] }
 0x221   :  { %2198 = vmatpush1.msra.mxu0 %v1113_v62  ;;  %2269 = vmatpush1.msra.mxu1 %v1625_v18  ;;  %v1386_v62 = vld [vmem:[#allocation11 + $0xa08] sm:$0xff]  ;;  %v1913_v16 = vld [vmem:[#allocation11 + $0x1a80] sm:$0xff] }
 0x222   :  { %2199 = vmatprep.subr.mxu0 %v1098_v1  ;;  %2270 = vmatprep.subr.mxu1 %v1610_v20  ;;  %v1385_v1 = vld [vmem:[#allocation11 + $0xa00] sm:$0xff]  ;;  %v1930_v10 = vld [vmem:[#allocation11 + $0x1b08] sm:$0xff] }
 0x223   :  { %2200 = vmatpush1.msra.mxu0 %v1097_v3  ;;  %2271 = vmatpush1.msra.mxu1 %v1609_v22  ;;  %v1370_v3 = vld [vmem:[#allocation11 + $0x988] sm:$0xff]  ;;  %v1897_v20 = vld [vmem:[#allocation11 + $0x1a00] sm:$0xff] }
 0x224   :  { %2201 = vmatprep.subr.mxu0 %v1082_v5  ;;  %2272 = vmatprep.subr.mxu1 %v1594_v24  ;;  %v1369_v5 = vld [vmem:[#allocation11 + $0x980] sm:$0xff]  ;;  %v1914_v14 = vld [vmem:[#allocation11 + $0x1a88] sm:$0xff] }
 0x225   :  { %2202 = vmatpush1.msra.mxu0 %v1081_v7  ;;  %2273 = vmatpush1.msra.mxu1 %v1593_v52  ;;  %v1354_v7 = vld [vmem:[#allocation11 + $0x908] sm:$0xff]  ;;  %v1881_v22 = vld [vmem:[#allocation11 + $0x1980] sm:$0xff] }
 0x226   :  { %2203 = vmatprep.subr.mxu0 %v1066_v9  ;;  %2274 = vmatprep.subr.mxu1 %v1578_v51  ;;  %v1353_v9 = vld [vmem:[#allocation11 + $0x900] sm:$0xff]  ;;  %v1898_v18 = vld [vmem:[#allocation11 + $0x1a08] sm:$0xff] }
 0x227   :  { %2204 = vmatpush1.msra.mxu0 %v1065_v11  ;;  %2275 = vmatpush1.msra.mxu1 %v1577_v26  ;;  %v1338_v11 = vld [vmem:[#allocation11 + $0x888] sm:$0xff]  ;;  %v1865_v24 = vld [vmem:[#allocation11 + $0x1900] sm:$0xff]  ;;  %v9237_v26 = vld [vmem:[#allocation10] sm:$0xf] }
 0x228   :  { %2205 = vmatprep.subr.mxu0 %v1562_v13  ;;  %2276 = vmatprep.subr.mxu1 %v2074_v28  ;;  %v1337_v13 = vld [vmem:[#allocation11 + $0x880] sm:$0xff]  ;;  %v764_v28 = vrot.slane %v9237_v26, %v9214_v43 }
 0x229   :  { %2206 = vmatpush2.msra.mxu0 %v1561_v15  ;;  %2277 = vmatpush2.msra.mxu1 %v2073_v30  ;;  %v1322_v15 = vld [vmem:[#allocation11 + $0x808] sm:$0xff]  ;;  %v1849_v52 = vld [vmem:[#allocation11 + $0x1880] sm:$0xff] }
 0x22a   :  { %2207 = vmatprep.subr.mxu0 %v1546_v17  ;;  %2278 = vmatprep.subr.mxu1 %v2058_v32  ;;  %v1321_v17 = vld [vmem:[#allocation11 + $0x800] sm:$0xff] }
 0x22b   :  { %2208 = vmatpush2.msra.mxu0 %v1545_v19  ;;  %2279 = vmatpush2.msra.mxu1 %v2057_v34  ;;  %v1308_v19 = vld [vmem:[#allocation11 + $0x798] sm:$0xff]  ;;  %v1833_v51 = vld [vmem:[#allocation11 + $0x1800] sm:$0xff] }
 0x22c   :  { %2209 = vmatprep.subr.mxu0 %v1530_v21  ;;  %2280 = vmatprep.subr.mxu1 %v2042_v36  ;;  %v1882_v21 = vld [vmem:[#allocation11 + $0x1988] sm:$0xff] }
 0x22d   :  { %2210 = vmatpush2.msra.mxu0 %v1529_v23  ;;  %2281 = vmatpush2.msra.mxu1 %v2041_v38  ;;  %v1866_v23 = vld [vmem:[#allocation11 + $0x1908] sm:$0xff] }
 0x22e   :  { %2211 = vmatprep.subr.mxu0 %v1514_v25  ;;  %2282 = vmatprep.subr.mxu1 %v2026_v45  ;;  %v1850_v25 = vld [vmem:[#allocation11 + $0x1888] sm:$0xff]  ;;  %v1292_v45 = vld [vmem:[#allocation11 + $0x718] sm:$0xff] }
 0x22f   :  { %2212 = vmatpush2.msra.mxu0 %v1513_v60  ;;  %2283 = vmatpush2.msra.mxu1 %v2025_v47  ;;  %v1834_v60 = vld [vmem:[#allocation11 + $0x1808] sm:$0xff]  ;;  %v1276_v47 = vld [vmem:[#allocation11 + $0x698] sm:$0xff] }
 0x230   :  { %2213 = vmatprep.subr.mxu0 %v1498_v57  ;;  %2284 = vmatprep.subr.mxu1 %v2010_v49  ;;  %v1820_v57 = vld [vmem:[#allocation11 + $0x1798] sm:$0xff] }
 0x231   :  { %2214 = vmatpush2.msra.mxu0 %v1497_v27  ;;  %2285 = vmatpush2.msra.mxu1 %v2009_v53  ;;  %v760_v27 = vrot.slane %v9237_v26, %v9211_v41  ;;  %v1260_v49 = vld [vmem:[#allocation11 + $0x618] sm:$0xff] }
 0x232   :  { %2215 = vmatprep.subr.mxu0 %v1482_v29  ;;  %2286 = vmatprep.subr.mxu1 %v1994_v55  ;;  %v1244_v53 = vld [vmem:[#allocation11 + $0x598] sm:$0xff] }
 0x233   :  { %2216 = vmatpush2.msra.mxu0 %v1481_v31  ;;  %2287 = vmatpush2.msra.mxu1 %v1993_v58  ;;  %v1228_v55 = vld [vmem:[#allocation11 + $0x518] sm:$0xff] }
 0x234   :  { %2217 = vmatprep.subr.mxu0 %v1466_v33  ;;  %2288 = vmatprep.subr.mxu1 %v1978_v61  ;;  %v1212_v58 = vld [vmem:[#allocation11 + $0x498] sm:$0xff] }
 0x235   :  { %2218 = vmatpush2.msra.mxu0 %v1465_v35  ;;  %2289 = vmatpush2.msra.mxu1 %v1977_v63  ;;  %v1196_v61 = vld [vmem:[#allocation11 + $0x418] sm:$0xff] }
 0x236   :  { %2219 = vmatprep.subr.mxu0 %v1450_v37  ;;  %2290 = vmatprep.subr.mxu1 %v1962_v2  ;;  %v1180_v63 = vld [vmem:[#allocation11 + $0x398] sm:$0xff] }
 0x237   :  { %2220 = vmatpush2.msra.mxu0 %v1449_v42  ;;  %2291 = vmatpush2.msra.mxu1 %v1961_v4  ;;  %v1307_v42 = vld [vmem:[#allocation11 + $0x790] sm:$0xff]  ;;  %v1164_v2 = vld [vmem:[#allocation11 + $0x318] sm:$0xff] }
 0x238   :  { %2221 = vmatprep.subr.mxu0 %v1434_v46  ;;  %2292 = vmatprep.subr.mxu1 %v1946_v6  ;;  %v1291_v46 = vld [vmem:[#allocation11 + $0x710] sm:$0xff]  ;;  %v1148_v4 = vld [vmem:[#allocation11 + $0x298] sm:$0xff] }
 0x239   :  { %2222 = vmatpush2.msra.mxu0 %v1433_v48  ;;  %2293 = vmatpush2.msra.mxu1 %v1945_v8  ;;  %v1275_v48 = vld [vmem:[#allocation11 + $0x690] sm:$0xff]  ;;  %v1132_v6 = vld [vmem:[#allocation11 + $0x218] sm:$0xff] }
 0x23a   :  { %2223 = vmatprep.subr.mxu0 %v1418_v50  ;;  %2294 = vmatprep.subr.mxu1 %v1930_v10  ;;  %v1259_v50 = vld [vmem:[#allocation11 + $0x610] sm:$0xff]  ;;  %v1116_v8 = vld [vmem:[#allocation11 + $0x198] sm:$0xff] }
 0x23b   :  { %2224 = vmatpush2.msra.mxu0 %v1417_v54  ;;  %2295 = vmatpush2.msra.mxu1 %v1929_v12  ;;  %v1243_v54 = vld [vmem:[#allocation11 + $0x590] sm:$0xff]  ;;  %v1100_v10 = vld [vmem:[#allocation11 + $0x118] sm:$0xff] }
 0x23c   :  { %2225 = vmatprep.subr.mxu0 %v1402_v56  ;;  %2296 = vmatprep.subr.mxu1 %v1914_v14  ;;  %v1227_v56 = vld [vmem:[#allocation11 + $0x510] sm:$0xff]  ;;  %v1084_v12 = vld [vmem:[#allocation11 + $0x98] sm:$0xff] }
 0x23d   :  { %2226 = vmatpush2.msra.mxu0 %v1401_v59  ;;  %2297 = vmatpush2.msra.mxu1 %v1913_v16  ;;  %v1211_v59 = vld [vmem:[#allocation11 + $0x490] sm:$0xff]  ;;  %v1068_v14 = vld [vmem:[#allocation11 + $0x18] sm:$0xff] }
 0x23e   :  { %2227 = vmatprep.subr.mxu0 %v1386_v62  ;;  %2298 = vmatprep.subr.mxu1 %v1898_v18  ;;  %v1195_v62 = vld [vmem:[#allocation11 + $0x410] sm:$0xff]  ;;  %v1564_v16 = vld [vmem:[#allocation11 + $0xf98] sm:$0xff] }
 0x23f   :  { %2228 = vmatpush2.msra.mxu0 %v1385_v1  ;;  %2299 = vmatpush2.msra.mxu1 %v1897_v20  ;;  %v1179_v1 = vld [vmem:[#allocation11 + $0x390] sm:$0xff]  ;;  %v1548_v18 = vld [vmem:[#allocation11 + $0xf18] sm:$0xff] }
 0x240   :  { %2229 = vmatprep.subr.mxu0 %v1370_v3  ;;  %2300 = vmatprep.subr.mxu1 %v1882_v21  ;;  %v1163_v3 = vld [vmem:[#allocation11 + $0x310] sm:$0xff]  ;;  %v1532_v20 = vld [vmem:[#allocation11 + $0xe98] sm:$0xff] }
 0x241   :  { %2230 = vmatpush2.msra.mxu0 %v1369_v5  ;;  %2301 = vmatpush2.msra.mxu1 %v1881_v22  ;;  %v1147_v5 = vld [vmem:[#allocation11 + $0x290] sm:$0xff]  ;;  %v1516_v22 = vld [vmem:[#allocation11 + $0xe18] sm:$0xff] }
 0x242   :  { %2231 = vmatprep.subr.mxu0 %v1354_v7  ;;  %2302 = vmatprep.subr.mxu1 %v1866_v23  ;;  %v1131_v7 = vld [vmem:[#allocation11 + $0x210] sm:$0xff] }
 0x243   :  { %2232 = vmatpush2.msra.mxu0 %v1353_v9  ;;  %2303 = vmatpush2.msra.mxu1 %v1865_v24  ;;  %v1115_v9 = vld [vmem:[#allocation11 + $0x190] sm:$0xff]  ;;  %v1500_v24 = vld [vmem:[#allocation11 + $0xd98] sm:$0xff] }
 0x244   :  { %2233 = vmatprep.subr.mxu0 %v1338_v11  ;;  %2304 = vmatprep.subr.mxu1 %v1850_v25  ;;  %v1099_v11 = vld [vmem:[#allocation11 + $0x110] sm:$0xff] }
 0x245   :  { %2234 = vmatpush2.msra.mxu0 %v1337_v13  ;;  %2305 = vmatpush2.msra.mxu1 %v1849_v52  ;;  %v1083_v13 = vld [vmem:[#allocation11 + $0x90] sm:$0xff]  ;;  %v1484_v52 = vld [vmem:[#allocation11 + $0xd18] sm:$0xff] }
 0x246   :  { %2235 = vmatprep.subr.mxu0 %v1322_v15  ;;  %2306 = vmatprep.subr.mxu1 %v1834_v60  ;;  %v1067_v15 = vld [vmem:[#allocation11 + $0x10] sm:$0xff] }
 0x247   :  { %2236 = vmatpush2.msra.mxu0 %v1321_v17  ;;  %2307 = vmatpush2.msra.mxu1 %v1833_v51  ;;  %v1563_v17 = vld [vmem:[#allocation11 + $0xf90] sm:$0xff]  ;;  %v1468_v51 = vld [vmem:[#allocation11 + $0xc98] sm:$0xff] }
 0x248   :  { %2315 = vmatprep.subr.mxu0 %v1308_v19  ;;  %2386 = vmatprep.subr.mxu1 %v1820_v57  ;;  %v1547_v19 = vld [vmem:[#allocation11 + $0xf10] sm:$0xff] }
 0x249   :  { %v1531_v21 = vld [vmem:[#allocation11 + $0xe90] sm:$0xff] }
 0x24a   :  { %v1515_v23 = vld [vmem:[#allocation11 + $0xe10] sm:$0xff] }
 0x24b   :  { %v1499_v25 = vld [vmem:[#allocation11 + $0xd90] sm:$0xff] }
 0x24c   :  { %v1483_v60 = vld [vmem:[#allocation11 + $0xd10] sm:$0xff] }
 0x24d   :  { %v1467_v57 = vld [vmem:[#allocation11 + $0xc90] sm:$0xff] }
 0x286   :  { %v843_v29 = vpop.f32.mrf.mxu0  ;;  %v914_v30 = vpop.f32.mrf.mxu1 }
 0x287   :  { %v844_v31 = vadd.f32 %v843_v29, %v760_v27  ;;  %v1452_v27 = vld [vmem:[#allocation11 + $0xc18] sm:$0xff] }
 0x288   :  { %v845_v32 = vpop.f32.mrf.mxu0  ;;  %v916_v35 = vpop.f32.mrf.mxu1  ;;  %v1436_v29 = vld [vmem:[#allocation11 + $0xb98] sm:$0xff] }
 0x289   :  { %v846_v33 = vadd.f32 %v845_v32, %v764_v28  ;;  %v915_v34 = vadd.f32 %v914_v30, %v844_v31  ;;  %v1451_v28 = vld [vmem:[#allocation11 + $0xc10] sm:$0xff]  ;;  %v1420_v31 = vld [vmem:[#allocation11 + $0xb18] sm:$0xff] }
 0x28a   :  { %v1435_v30 = vld [vmem:[#allocation11 + $0xb90] sm:$0xff] }
 0x28b   :  { %v917_v36 = vadd.f32 %v916_v35, %v846_v33  ;;  %v9245_v38 = vmax.f32 %v915_v34, 0.0  ;;  %v1419_v32 = vld [vmem:[#allocation11 + $0xb10] sm:$0xff]  ;;  %v1404_v33 = vld [vmem:[#allocation11 + $0xa98] sm:$0xff] }
 0x28c   :  { %v1403_v34 = vld [vmem:[#allocation11 + $0xa90] sm:$0xff]  ;;  %v1388_v35 = vld [vmem:[#allocation11 + $0xa18] sm:$0xff] }
 0x28d   :  { %v9243_v37 = vmax.f32 %v917_v36, 0.0  ;;  %v768_v36 = vrot.slane %v9237_v26, %v9208_v40 }
 0x28f   :  { %2237 = vmatprep.mubr.f32.mxu0 %v9243_v37 }
 0x290   :  { %2238 = vmatmul.mubr.f32.vlgmr.msra.gmra.mxu0 %v9245_v38 }
 0x291   :  { %2316 = vmatpush1.msra.mxu0 %v1307_v42  ;;  %2379 = vmatprep.mubr.f32.mxu0 %v9243_v37  ;;  %v1387_v42 = vld [vmem:[#allocation11 + $0xa10] sm:$0xff] }
 0x292   :  { %2317 = vmatprep.subr.mxu0 %v1292_v45  ;;  %v1372_v45 = vld [vmem:[#allocation11 + $0x998] sm:$0xff] }
 0x293   :  { %2318 = vmatpush1.msra.mxu0 %v1291_v46  ;;  %v772_v46 = vrot.slane %v9237_v26, %v9217_v44  ;;  %v1323_v26 = vld [vmem:[#allocation11 + $0x810] sm:$0xff] }
 0x294   :  { %2319 = vmatprep.subr.mxu0 %v1276_v47  ;;  %v1371_v47 = vld [vmem:[#allocation11 + $0x990] sm:$0xff] }
 0x295   :  { %2320 = vmatpush1.msra.mxu0 %v1275_v48 }
 0x296   :  { %2321 = vmatprep.subr.mxu0 %v1260_v49 }
 0x297   :  { %2322 = vmatpush1.msra.mxu0 %v1259_v50  ;;  %v1356_v50 = vld [vmem:[#allocation11 + $0x918] sm:$0xff] }
 0x298   :  { %2323 = vmatprep.subr.mxu0 %v1244_v53 }
 0x299   :  { %2324 = vmatpush1.msra.mxu0 %v1243_v54  ;;  %v1355_v54 = vld [vmem:[#allocation11 + $0x910] sm:$0xff] }
 0x29a   :  { %2325 = vmatprep.subr.mxu0 %v1228_v55 }
 0x29b   :  { %2326 = vmatpush1.msra.mxu0 %v1227_v56  ;;  %v1340_v56 = vld [vmem:[#allocation11 + $0x898] sm:$0xff] }
 0x29c   :  { %2327 = vmatprep.subr.mxu0 %v1212_v58 }
 0x29d   :  { %2328 = vmatpush1.msra.mxu0 %v1211_v59  ;;  %v1339_v59 = vld [vmem:[#allocation11 + $0x890] sm:$0xff] }
 0x29e   :  { %2329 = vmatprep.subr.mxu0 %v1196_v61 }
 0x29f   :  { %2330 = vmatpush1.msra.mxu0 %v1195_v62 }
 0x2a0   :  { %2331 = vmatprep.subr.mxu0 %v1180_v63  ;;  %v1324_v63 = vld [vmem:[#allocation11 + $0x818] sm:$0xff] }
 0x2a1   :  { %2332 = vmatpush1.msra.mxu0 %v1179_v1 }
 0x2a2   :  { %2333 = vmatprep.subr.mxu0 %v1164_v2 }
 0x2a3   :  { %2334 = vmatpush1.msra.mxu0 %v1163_v3  ;;  %v1310_v3 = vld [vmem:[#allocation11 + $0x7a8] sm:$0xff] }
 0x2a4   :  { %2335 = vmatprep.subr.mxu0 %v1148_v4 }
 0x2a5   :  { %2336 = vmatpush1.msra.mxu0 %v1147_v5  ;;  %v1819_v5 = vld [vmem:[#allocation11 + $0x1790] sm:$0xff] }
 0x2a6   :  { %2337 = vmatprep.subr.mxu0 %v1132_v6  ;;  %v1804_v6 = vld [vmem:[#allocation11 + $0x1718] sm:$0xff] }
 0x2a7   :  { %2338 = vmatpush1.msra.mxu0 %v1131_v7  ;;  %v1309_v7 = vld [vmem:[#allocation11 + $0x7a0] sm:$0xff] }
 0x2a8   :  { %2339 = vmatprep.subr.mxu0 %v1116_v8  ;;  %v1803_v8 = vld [vmem:[#allocation11 + $0x1710] sm:$0xff] }
 0x2a9   :  { %2340 = vmatpush1.msra.mxu0 %v1115_v9  ;;  %v1294_v9 = vld [vmem:[#allocation11 + $0x728] sm:$0xff] }
 0x2aa   :  { %2341 = vmatprep.subr.mxu0 %v1100_v10  ;;  %v1788_v10 = vld [vmem:[#allocation11 + $0x1698] sm:$0xff] }
 0x2ab   :  { %2342 = vmatpush1.msra.mxu0 %v1099_v11  ;;  %v1293_v11 = vld [vmem:[#allocation11 + $0x720] sm:$0xff] }
 0x2ac   :  { %2343 = vmatprep.subr.mxu0 %v1084_v12  ;;  %v1787_v12 = vld [vmem:[#allocation11 + $0x1690] sm:$0xff] }
 0x2ad   :  { %2344 = vmatpush1.msra.mxu0 %v1083_v13  ;;  %v1278_v13 = vld [vmem:[#allocation11 + $0x6a8] sm:$0xff] }
 0x2ae   :  { %2345 = vmatprep.subr.mxu0 %v1068_v14  ;;  %v1772_v14 = vld [vmem:[#allocation11 + $0x1618] sm:$0xff] }
 0x2af   :  { %2346 = vmatpush1.msra.mxu0 %v1067_v15  ;;  %v1277_v15 = vld [vmem:[#allocation11 + $0x6a0] sm:$0xff] }
 0x2b0   :  { %2347 = vmatprep.subr.mxu0 %v1564_v16  ;;  %v1771_v16 = vld [vmem:[#allocation11 + $0x1610] sm:$0xff] }
 0x2b1   :  { %2348 = vmatpush2.msra.mxu0 %v1563_v17  ;;  %v1262_v17 = vld [vmem:[#allocation11 + $0x628] sm:$0xff] }
 0x2b2   :  { %2349 = vmatprep.subr.mxu0 %v1548_v18  ;;  %v1756_v18 = vld [vmem:[#allocation11 + $0x1598] sm:$0xff] }
 0x2b3   :  { %2350 = vmatpush2.msra.mxu0 %v1547_v19  ;;  %v1261_v19 = vld [vmem:[#allocation11 + $0x620] sm:$0xff] }
 0x2b4   :  { %2351 = vmatprep.subr.mxu0 %v1532_v20  ;;  %v1755_v20 = vld [vmem:[#allocation11 + $0x1590] sm:$0xff] }
 0x2b5   :  { %2352 = vmatpush2.msra.mxu0 %v1531_v21  ;;  %v1246_v21 = vld [vmem:[#allocation11 + $0x5a8] sm:$0xff] }
 0x2b6   :  { %2353 = vmatprep.subr.mxu0 %v1516_v22  ;;  %v1740_v22 = vld [vmem:[#allocation11 + $0x1518] sm:$0xff] }
 0x2b7   :  { %2354 = vmatpush2.msra.mxu0 %v1515_v23  ;;  %v1245_v23 = vld [vmem:[#allocation11 + $0x5a0] sm:$0xff] }
 0x2b8   :  { %2355 = vmatprep.subr.mxu0 %v1500_v24  ;;  %v1739_v24 = vld [vmem:[#allocation11 + $0x1510] sm:$0xff] }
 0x2b9   :  { %2356 = vmatpush2.msra.mxu0 %v1499_v25  ;;  %v1230_v25 = vld [vmem:[#allocation11 + $0x528] sm:$0xff] }
 0x2ba   :  { %2357 = vmatprep.subr.mxu0 %v1484_v52  ;;  %v1724_v52 = vld [vmem:[#allocation11 + $0x1498] sm:$0xff] }
 0x2bb   :  { %2358 = vmatpush2.msra.mxu0 %v1483_v60  ;;  %v1229_v60 = vld [vmem:[#allocation11 + $0x520] sm:$0xff] }
 0x2bc   :  { %2359 = vmatprep.subr.mxu0 %v1468_v51  ;;  %v1723_v51 = vld [vmem:[#allocation11 + $0x1490] sm:$0xff] }
 0x2bd   :  { %2360 = vmatpush2.msra.mxu0 %v1467_v57  ;;  %v1214_v57 = vld [vmem:[#allocation11 + $0x4a8] sm:$0xff] }
 0x2be   :  { %2361 = vmatprep.subr.mxu0 %v1452_v27  ;;  %v1708_v27 = vld [vmem:[#allocation11 + $0x1418] sm:$0xff] }
 0x2bf   :  { %2362 = vmatpush2.msra.mxu0 %v1451_v28  ;;  %v1213_v28 = vld [vmem:[#allocation11 + $0x4a0] sm:$0xff] }
 0x2c0   :  { %2363 = vmatprep.subr.mxu0 %v1436_v29  ;;  %v1707_v29 = vld [vmem:[#allocation11 + $0x1410] sm:$0xff] }
 0x2c1   :  { %2364 = vmatpush2.msra.mxu0 %v1435_v30  ;;  %v1198_v30 = vld [vmem:[#allocation11 + $0x428] sm:$0xff] }
 0x2c2   :  { %2365 = vmatprep.subr.mxu0 %v1420_v31  ;;  %v1692_v31 = vld [vmem:[#allocation11 + $0x1398] sm:$0xff] }
 0x2c3   :  { %2366 = vmatpush2.msra.mxu0 %v1419_v32  ;;  %v1197_v32 = vld [vmem:[#allocation11 + $0x420] sm:$0xff] }
 0x2c4   :  { %2367 = vmatprep.subr.mxu0 %v1404_v33  ;;  %v1691_v33 = vld [vmem:[#allocation11 + $0x1390] sm:$0xff] }
 0x2c5   :  { %2368 = vmatpush2.msra.mxu0 %v1403_v34  ;;  %v1182_v34 = vld [vmem:[#allocation11 + $0x3a8] sm:$0xff] }
 0x2c6   :  { %2369 = vmatprep.subr.mxu0 %v1388_v35  ;;  %v1676_v35 = vld [vmem:[#allocation11 + $0x1318] sm:$0xff] }
 0x2c7   :  { %v985_v48 = vpop.f32.mrf.mxu0  ;;  %v1056_v49 = vpop.f32.mrf.mxu1  ;;  %2370 = vmatpush2.msra.mxu0 %v1387_v42  ;;  %v1675_v42 = vld [vmem:[#allocation11 + $0x1310] sm:$0xff] }
 0x2c8   :  { %v986_v53 = vadd.f32 %v985_v48, %v768_v36  ;;  %2371 = vmatprep.subr.mxu0 %v1372_v45  ;;  %v1181_v36 = vld [vmem:[#allocation11 + $0x3a0] sm:$0xff]  ;;  %v1166_v45 = vld [vmem:[#allocation11 + $0x328] sm:$0xff]  ;;  %v1659_v48 = vld [vmem:[#allocation11 + $0x1290] sm:$0xff] }
 0x2c9   :  { %v987_v55 = vpop.f32.mrf.mxu0  ;;  %2372 = vmatpush2.msra.mxu0 %v1371_v47  ;;  %v1058_v62 = vpop.f32.mrf.mxu1  ;;  %v1165_v47 = vld [vmem:[#allocation11 + $0x320] sm:$0xff] }
 0x2ca   :  { %v988_v58 = vadd.f32 %v987_v55, %v772_v46  ;;  %2373 = vmatprep.subr.mxu0 %v1356_v50  ;;  %v1057_v61 = vadd.f32 %v1056_v49, %v986_v53  ;;  %v1660_v46 = vld [vmem:[#allocation11 + $0x1298] sm:$0xff]  ;;  %v1150_v49 = vld [vmem:[#allocation11 + $0x2a8] sm:$0xff]  ;;  %v1149_v53 = vld [vmem:[#allocation11 + $0x2a0] sm:$0xff] }
 0x2cb   :  { %2374 = vmatpush2.msra.mxu0 %v1355_v54  ;;  %v1644_v50 = vld [vmem:[#allocation11 + $0x1218] sm:$0xff]  ;;  %v1643_v54 = vld [vmem:[#allocation11 + $0x1210] sm:$0xff]  ;;  %v1134_v55 = vld [vmem:[#allocation11 + $0x228] sm:$0xff] }
 0x2cc   :  { %v1059_v1 = vadd.f32 %v1058_v62, %v988_v58  ;;  %2375 = vmatprep.subr.mxu0 %v1340_v56  ;;  %v9256_v4 = vmax.f32 %v1057_v61, 0.0  ;;  %v1628_v56 = vld [vmem:[#allocation11 + $0x1198] sm:$0xff]  ;;  %v1133_v58 = vld [vmem:[#allocation11 + $0x220] sm:$0xff]  ;;  %v1118_v61 = vld [vmem:[#allocation11 + $0x1a8] sm:$0xff] }
 0x2cd   :  { %2376 = vmatpush2.msra.mxu0 %v1339_v59  ;;  %v1627_v59 = vld [vmem:[#allocation11 + $0x1190] sm:$0xff]  ;;  %v1612_v62 = vld [vmem:[#allocation11 + $0x1118] sm:$0xff] }
 0x2ce   :  { %v9254_v2 = vmax.f32 %v1059_v1, 0.0  ;;  %2377 = vmatprep.subr.mxu0 %v1324_v63  ;;  %v1117_v63 = vld [vmem:[#allocation11 + $0x1a0] sm:$0xff]  ;;  %v1611_v1 = vld [vmem:[#allocation11 + $0x1110] sm:$0xff] }
 0x2cf   :  { %2378 = vmatpush2.msra.mxu0 %v1323_v26  ;;  %v1102_v26 = vld [vmem:[#allocation11 + $0x128] sm:$0xff] }
 0x2d0   :  { %2308 = vmatprep.mubr.f32.mxu1 %v9254_v2  ;;  %2380 = vmatmul.mubr.f32.vlgmr.msra.gmra.mxu0 %v9245_v38 }
 0x2d1   :  { %2309 = vmatmul.mubr.f32.vlgmr.msra.gmra.mxu1 %v9256_v4  ;;  %2457 = vmatprep.subr.mxu0 %v1310_v3  ;;  %v1596_v3 = vld [vmem:[#allocation11 + $0x1098] sm:$0xff] }
 0x2d2   :  { %2387 = vmatpush1.msra.mxu1 %v1819_v5  ;;  %2450 = vmatprep.mubr.f32.mxu1 %v9254_v2  ;;  %v1101_v5 = vld [vmem:[#allocation11 + $0x120] sm:$0xff] }
 0x2d3   :  { %2388 = vmatprep.subr.mxu1 %v1804_v6  ;;  %2458 = vmatpush1.msra.mxu0 %v1309_v7  ;;  %v1595_v6 = vld [vmem:[#allocation11 + $0x1090] sm:$0xff]  ;;  %v1086_v7 = vld [vmem:[#allocation11 + $0xa8] sm:$0xff] }
 0x2d4   :  { %2521 = vmatprep.mubr.f32.mxu0 %v9243_v37  ;;  %2389 = vmatpush1.msra.mxu1 %v1803_v8  ;;  %v1580_v8 = vld [vmem:[#allocation11 + $0x1018] sm:$0xff] }
 0x2d5   :  { %2459 = vmatprep.subr.mxu0 %v1294_v9  ;;  %2390 = vmatprep.subr.mxu1 %v1788_v10  ;;  %v1085_v9 = vld [vmem:[#allocation11 + $0xa0] sm:$0xff]  ;;  %v1579_v10 = vld [vmem:[#allocation11 + $0x1010] sm:$0xff] }
 0x2d6   :  { %2460 = vmatpush1.msra.mxu0 %v1293_v11  ;;  %2391 = vmatpush1.msra.mxu1 %v1787_v12  ;;  %v1070_v11 = vld [vmem:[#allocation11 + $0x28] sm:$0xff]  ;;  %v2076_v12 = vld [vmem:[#allocation11 + $0x1f98] sm:$0xff] }
 0x2d7   :  { %2461 = vmatprep.subr.mxu0 %v1278_v13  ;;  %2392 = vmatprep.subr.mxu1 %v1772_v14  ;;  %v1069_v13 = vld [vmem:[#allocation11 + $0x20] sm:$0xff]  ;;  %v2075_v14 = vld [vmem:[#allocation11 + $0x1f90] sm:$0xff] }
 0x2d8   :  { %2462 = vmatpush1.msra.mxu0 %v1277_v15  ;;  %2393 = vmatpush1.msra.mxu1 %v1771_v16  ;;  %v1566_v15 = vld [vmem:[#allocation11 + $0xfa8] sm:$0xff]  ;;  %v2060_v16 = vld [vmem:[#allocation11 + $0x1f18] sm:$0xff] }
 0x2d9   :  { %2463 = vmatprep.subr.mxu0 %v1262_v17  ;;  %2394 = vmatprep.subr.mxu1 %v1756_v18  ;;  %v1565_v17 = vld [vmem:[#allocation11 + $0xfa0] sm:$0xff]  ;;  %v2059_v18 = vld [vmem:[#allocation11 + $0x1f10] sm:$0xff] }
 0x2da   :  { %2464 = vmatpush1.msra.mxu0 %v1261_v19  ;;  %2395 = vmatpush1.msra.mxu1 %v1755_v20  ;;  %v1550_v19 = vld [vmem:[#allocation11 + $0xf28] sm:$0xff]  ;;  %v2044_v20 = vld [vmem:[#allocation11 + $0x1e98] sm:$0xff] }
 0x2db   :  { %2465 = vmatprep.subr.mxu0 %v1246_v21  ;;  %2396 = vmatprep.subr.mxu1 %v1740_v22  ;;  %v1549_v21 = vld [vmem:[#allocation11 + $0xf20] sm:$0xff]  ;;  %v2043_v22 = vld [vmem:[#allocation11 + $0x1e90] sm:$0xff] }
 0x2dc   :  { %2466 = vmatpush1.msra.mxu0 %v1245_v23  ;;  %2397 = vmatpush1.msra.mxu1 %v1739_v24  ;;  %v1534_v23 = vld [vmem:[#allocation11 + $0xea8] sm:$0xff]  ;;  %v2028_v24 = vld [vmem:[#allocation11 + $0x1e18] sm:$0xff] }
 0x2dd   :  { %2467 = vmatprep.subr.mxu0 %v1230_v25  ;;  %2398 = vmatprep.subr.mxu1 %v1724_v52  ;;  %v1533_v25 = vld [vmem:[#allocation11 + $0xea0] sm:$0xff]  ;;  %v2027_v52 = vld [vmem:[#allocation11 + $0x1e10] sm:$0xff] }
 0x2de   :  { %2468 = vmatpush1.msra.mxu0 %v1229_v60  ;;  %2399 = vmatpush1.msra.mxu1 %v1723_v51  ;;  %v1518_v60 = vld [vmem:[#allocation11 + $0xe28] sm:$0xff]  ;;  %v2012_v51 = vld [vmem:[#allocation11 + $0x1d98] sm:$0xff] }
 0x2df   :  { %2469 = vmatprep.subr.mxu0 %v1214_v57  ;;  %2400 = vmatprep.subr.mxu1 %v1708_v27  ;;  %v1517_v57 = vld [vmem:[#allocation11 + $0xe20] sm:$0xff]  ;;  %v2011_v27 = vld [vmem:[#allocation11 + $0x1d90] sm:$0xff] }
 0x2e0   :  { %2470 = vmatpush1.msra.mxu0 %v1213_v28  ;;  %2401 = vmatpush1.msra.mxu1 %v1707_v29  ;;  %v1502_v28 = vld [vmem:[#allocation11 + $0xda8] sm:$0xff]  ;;  %v1996_v29 = vld [vmem:[#allocation11 + $0x1d18] sm:$0xff] }
 0x2e1   :  { %2471 = vmatprep.subr.mxu0 %v1198_v30  ;;  %2402 = vmatprep.subr.mxu1 %v1692_v31  ;;  %v1501_v30 = vld [vmem:[#allocation11 + $0xda0] sm:$0xff]  ;;  %v1995_v31 = vld [vmem:[#allocation11 + $0x1d10] sm:$0xff] }
 0x2e2   :  { %2472 = vmatpush1.msra.mxu0 %v1197_v32  ;;  %2403 = vmatpush1.msra.mxu1 %v1691_v33  ;;  %v1486_v32 = vld [vmem:[#allocation11 + $0xd28] sm:$0xff]  ;;  %v1980_v33 = vld [vmem:[#allocation11 + $0x1c98] sm:$0xff] }
 0x2e3   :  { %2473 = vmatprep.subr.mxu0 %v1182_v34  ;;  %2404 = vmatprep.subr.mxu1 %v1676_v35  ;;  %v1485_v34 = vld [vmem:[#allocation11 + $0xd20] sm:$0xff]  ;;  %v1979_v35 = vld [vmem:[#allocation11 + $0x1c90] sm:$0xff] }
 0x2e4   :  { %2474 = vmatpush1.msra.mxu0 %v1181_v36  ;;  %2405 = vmatpush1.msra.mxu1 %v1675_v42  ;;  %v1470_v36 = vld [vmem:[#allocation11 + $0xca8] sm:$0xff]  ;;  %v1964_v42 = vld [vmem:[#allocation11 + $0x1c18] sm:$0xff] }
 0x2e5   :  { %2475 = vmatprep.subr.mxu0 %v1166_v45  ;;  %2406 = vmatprep.subr.mxu1 %v1660_v46  ;;  %v1469_v45 = vld [vmem:[#allocation11 + $0xca0] sm:$0xff]  ;;  %v1963_v46 = vld [vmem:[#allocation11 + $0x1c10] sm:$0xff] }
 0x2e6   :  { %2476 = vmatpush1.msra.mxu0 %v1165_v47  ;;  %2407 = vmatpush1.msra.mxu1 %v1659_v48  ;;  %v1454_v47 = vld [vmem:[#allocation11 + $0xc28] sm:$0xff]  ;;  %v1948_v48 = vld [vmem:[#allocation11 + $0x1b98] sm:$0xff] }
 0x2e7   :  { %2477 = vmatprep.subr.mxu0 %v1150_v49  ;;  %2408 = vmatprep.subr.mxu1 %v1644_v50  ;;  %v1453_v49 = vld [vmem:[#allocation11 + $0xc20] sm:$0xff]  ;;  %v1947_v50 = vld [vmem:[#allocation11 + $0x1b90] sm:$0xff] }
 0x2e8   :  { %2478 = vmatpush1.msra.mxu0 %v1149_v53  ;;  %2409 = vmatpush1.msra.mxu1 %v1643_v54  ;;  %v1438_v53 = vld [vmem:[#allocation11 + $0xba8] sm:$0xff]  ;;  %v1932_v54 = vld [vmem:[#allocation11 + $0x1b18] sm:$0xff] }
 0x2e9   :  { %2479 = vmatprep.subr.mxu0 %v1134_v55  ;;  %2410 = vmatprep.subr.mxu1 %v1628_v56  ;;  %v1437_v55 = vld [vmem:[#allocation11 + $0xba0] sm:$0xff]  ;;  %v1931_v56 = vld [vmem:[#allocation11 + $0x1b10] sm:$0xff] }
 0x2ea   :  { %2480 = vmatpush1.msra.mxu0 %v1133_v58  ;;  %2411 = vmatpush1.msra.mxu1 %v1627_v59  ;;  %v1422_v58 = vld [vmem:[#allocation11 + $0xb28] sm:$0xff]  ;;  %v1916_v59 = vld [vmem:[#allocation11 + $0x1a98] sm:$0xff] }
 0x2eb   :  { %2481 = vmatprep.subr.mxu0 %v1118_v61  ;;  %2412 = vmatprep.subr.mxu1 %v1612_v62  ;;  %v1421_v61 = vld [vmem:[#allocation11 + $0xb20] sm:$0xff]  ;;  %v1915_v62 = vld [vmem:[#allocation11 + $0x1a90] sm:$0xff] }
 0x2ec   :  { %2482 = vmatpush1.msra.mxu0 %v1117_v63  ;;  %2413 = vmatpush1.msra.mxu1 %v1611_v1  ;;  %v1406_v63 = vld [vmem:[#allocation11 + $0xaa8] sm:$0xff]  ;;  %v1900_v1 = vld [vmem:[#allocation11 + $0x1a18] sm:$0xff] }
 0x2ed   :  { %2483 = vmatprep.subr.mxu0 %v1102_v26  ;;  %2414 = vmatprep.subr.mxu1 %v1596_v3  ;;  %v1405_v26 = vld [vmem:[#allocation11 + $0xaa0] sm:$0xff]  ;;  %v1899_v3 = vld [vmem:[#allocation11 + $0x1a10] sm:$0xff] }
 0x2ee   :  { %2484 = vmatpush1.msra.mxu0 %v1101_v5  ;;  %2415 = vmatpush1.msra.mxu1 %v1595_v6  ;;  %v1390_v5 = vld [vmem:[#allocation11 + $0xa28] sm:$0xff]  ;;  %v1884_v6 = vld [vmem:[#allocation11 + $0x1998] sm:$0xff] }
 0x2ef   :  { %2485 = vmatprep.subr.mxu0 %v1086_v7  ;;  %2416 = vmatprep.subr.mxu1 %v1580_v8  ;;  %v1389_v7 = vld [vmem:[#allocation11 + $0xa20] sm:$0xff]  ;;  %v1883_v8 = vld [vmem:[#allocation11 + $0x1990] sm:$0xff] }
 0x2f0   :  { %2486 = vmatpush1.msra.mxu0 %v1085_v9  ;;  %2417 = vmatpush1.msra.mxu1 %v1579_v10  ;;  %v1374_v9 = vld [vmem:[#allocation11 + $0x9a8] sm:$0xff]  ;;  %v1868_v10 = vld [vmem:[#allocation11 + $0x1918] sm:$0xff] }
 0x2f1   :  { %2487 = vmatprep.subr.mxu0 %v1070_v11  ;;  %2418 = vmatprep.subr.mxu1 %v2076_v12  ;;  %v1373_v11 = vld [vmem:[#allocation11 + $0x9a0] sm:$0xff]  ;;  %v1867_v12 = vld [vmem:[#allocation11 + $0x1910] sm:$0xff] }
 0x2f2   :  { %2488 = vmatpush1.msra.mxu0 %v1069_v13  ;;  %2419 = vmatpush2.msra.mxu1 %v2075_v14  ;;  %v1358_v13 = vld [vmem:[#allocation11 + $0x928] sm:$0xff]  ;;  %v1852_v14 = vld [vmem:[#allocation11 + $0x1898] sm:$0xff] }
 0x2f3   :  { %2489 = vmatprep.subr.mxu0 %v1566_v15  ;;  %2420 = vmatprep.subr.mxu1 %v2060_v16  ;;  %v1357_v15 = vld [vmem:[#allocation11 + $0x920] sm:$0xff]  ;;  %v1851_v16 = vld [vmem:[#allocation11 + $0x1890] sm:$0xff] }
 0x2f4   :  { %2490 = vmatpush2.msra.mxu0 %v1565_v17  ;;  %2421 = vmatpush2.msra.mxu1 %v2059_v18  ;;  %v1342_v17 = vld [vmem:[#allocation11 + $0x8a8] sm:$0xff]  ;;  %v1836_v18 = vld [vmem:[#allocation11 + $0x1818] sm:$0xff] }
 0x2f5   :  { %2491 = vmatprep.subr.mxu0 %v1550_v19  ;;  %2422 = vmatprep.subr.mxu1 %v2044_v20  ;;  %v1341_v19 = vld [vmem:[#allocation11 + $0x8a0] sm:$0xff]  ;;  %v1835_v20 = vld [vmem:[#allocation11 + $0x1810] sm:$0xff] }
 0x2f6   :  { %2492 = vmatpush2.msra.mxu0 %v1549_v21  ;;  %2423 = vmatpush2.msra.mxu1 %v2043_v22  ;;  %v1326_v21 = vld [vmem:[#allocation11 + $0x828] sm:$0xff]  ;;  %v1325_v22 = vld [vmem:[#allocation11 + $0x820] sm:$0xff] }
 0x2f7   :  { %2493 = vmatprep.subr.mxu0 %v1534_v23  ;;  %2424 = vmatprep.subr.mxu1 %v2028_v24  ;;  %v1822_v23 = vld [vmem:[#allocation11 + $0x17a8] sm:$0xff]  ;;  %v1821_v24 = vld [vmem:[#allocation11 + $0x17a0] sm:$0xff] }
 0x2f8   :  { %2494 = vmatpush2.msra.mxu0 %v1533_v25  ;;  %2425 = vmatpush2.msra.mxu1 %v2027_v52  ;;  %v1312_v25 = vld [vmem:[#allocation11 + $0x7b8] sm:$0xff]  ;;  %v1806_v52 = vld [vmem:[#allocation11 + $0x1728] sm:$0xff] }
 0x2f9   :  { %2495 = vmatprep.subr.mxu0 %v1518_v60  ;;  %2426 = vmatprep.subr.mxu1 %v2012_v51  ;;  %v1311_v60 = vld [vmem:[#allocation11 + $0x7b0] sm:$0xff]  ;;  %v1805_v51 = vld [vmem:[#allocation11 + $0x1720] sm:$0xff] }
 0x2fa   :  { %2496 = vmatpush2.msra.mxu0 %v1517_v57  ;;  %2427 = vmatpush2.msra.mxu1 %v2011_v27  ;;  %v1296_v57 = vld [vmem:[#allocation11 + $0x738] sm:$0xff]  ;;  %v1790_v27 = vld [vmem:[#allocation11 + $0x16a8] sm:$0xff] }
 0x2fb   :  { %2497 = vmatprep.subr.mxu0 %v1502_v28  ;;  %2428 = vmatprep.subr.mxu1 %v1996_v29  ;;  %v1295_v28 = vld [vmem:[#allocation11 + $0x730] sm:$0xff]  ;;  %v1789_v29 = vld [vmem:[#allocation11 + $0x16a0] sm:$0xff] }
 0x2fc   :  { %2498 = vmatpush2.msra.mxu0 %v1501_v30  ;;  %2429 = vmatpush2.msra.mxu1 %v1995_v31  ;;  %v1280_v30 = vld [vmem:[#allocation11 + $0x6b8] sm:$0xff]  ;;  %v1774_v31 = vld [vmem:[#allocation11 + $0x1628] sm:$0xff] }
 0x2fd   :  { %2499 = vmatprep.subr.mxu0 %v1486_v32  ;;  %2430 = vmatprep.subr.mxu1 %v1980_v33  ;;  %v1279_v32 = vld [vmem:[#allocation11 + $0x6b0] sm:$0xff]  ;;  %v1773_v33 = vld [vmem:[#allocation11 + $0x1620] sm:$0xff] }
 0x2fe   :  { %2500 = vmatpush2.msra.mxu0 %v1485_v34  ;;  %2431 = vmatpush2.msra.mxu1 %v1979_v35  ;;  %v1264_v34 = vld [vmem:[#allocation11 + $0x638] sm:$0xff]  ;;  %v1758_v35 = vld [vmem:[#allocation11 + $0x15a8] sm:$0xff] }
 0x2ff   :  { %2501 = vmatprep.subr.mxu0 %v1470_v36  ;;  %2432 = vmatprep.subr.mxu1 %v1964_v42  ;;  %v1263_v36 = vld [vmem:[#allocation11 + $0x630] sm:$0xff]  ;;  %v1757_v42 = vld [vmem:[#allocation11 + $0x15a0] sm:$0xff] }
 0x300   :  { %2502 = vmatpush2.msra.mxu0 %v1469_v45  ;;  %2433 = vmatpush2.msra.mxu1 %v1963_v46  ;;  %v1248_v45 = vld [vmem:[#allocation11 + $0x5b8] sm:$0xff]  ;;  %v1742_v46 = vld [vmem:[#allocation11 + $0x1528] sm:$0xff] }
 0x301   :  { %2503 = vmatprep.subr.mxu0 %v1454_v47  ;;  %2434 = vmatprep.subr.mxu1 %v1948_v48  ;;  %v1247_v47 = vld [vmem:[#allocation11 + $0x5b0] sm:$0xff]  ;;  %v1741_v48 = vld [vmem:[#allocation11 + $0x1520] sm:$0xff] }
 0x302   :  { %2504 = vmatpush2.msra.mxu0 %v1453_v49  ;;  %2435 = vmatpush2.msra.mxu1 %v1947_v50  ;;  %v1232_v49 = vld [vmem:[#allocation11 + $0x538] sm:$0xff]  ;;  %v1726_v50 = vld [vmem:[#allocation11 + $0x14a8] sm:$0xff] }
 0x303   :  { %2505 = vmatprep.subr.mxu0 %v1438_v53  ;;  %2436 = vmatprep.subr.mxu1 %v1932_v54  ;;  %v1231_v53 = vld [vmem:[#allocation11 + $0x530] sm:$0xff]  ;;  %v1725_v54 = vld [vmem:[#allocation11 + $0x14a0] sm:$0xff] }
 0x304   :  { %2506 = vmatpush2.msra.mxu0 %v1437_v55  ;;  %2437 = vmatpush2.msra.mxu1 %v1931_v56  ;;  %v1216_v55 = vld [vmem:[#allocation11 + $0x4b8] sm:$0xff]  ;;  %v1710_v56 = vld [vmem:[#allocation11 + $0x1428] sm:$0xff] }
 0x305   :  { %2507 = vmatprep.subr.mxu0 %v1422_v58  ;;  %2438 = vmatprep.subr.mxu1 %v1916_v59  ;;  %v1215_v58 = vld [vmem:[#allocation11 + $0x4b0] sm:$0xff]  ;;  %v1709_v59 = vld [vmem:[#allocation11 + $0x1420] sm:$0xff] }
 0x306   :  { %2508 = vmatpush2.msra.mxu0 %v1421_v61  ;;  %2439 = vmatpush2.msra.mxu1 %v1915_v62  ;;  %v1200_v61 = vld [vmem:[#allocation11 + $0x438] sm:$0xff]  ;;  %v1694_v62 = vld [vmem:[#allocation11 + $0x13a8] sm:$0xff] }
 0x307   :  { %2509 = vmatprep.subr.mxu0 %v1406_v63  ;;  %2440 = vmatprep.subr.mxu1 %v1900_v1  ;;  %v1199_v63 = vld [vmem:[#allocation11 + $0x430] sm:$0xff]  ;;  %v1693_v1 = vld [vmem:[#allocation11 + $0x13a0] sm:$0xff] }
 0x308   :  { %2510 = vmatpush2.msra.mxu0 %v1405_v26  ;;  %2441 = vmatpush2.msra.mxu1 %v1899_v3  ;;  %v1184_v26 = vld [vmem:[#allocation11 + $0x3b8] sm:$0xff]  ;;  %v1678_v3 = vld [vmem:[#allocation11 + $0x1328] sm:$0xff] }
 0x309   :  { %2511 = vmatprep.subr.mxu0 %v1390_v5  ;;  %2442 = vmatprep.subr.mxu1 %v1884_v6  ;;  %v1183_v5 = vld [vmem:[#allocation11 + $0x3b0] sm:$0xff]  ;;  %v1677_v6 = vld [vmem:[#allocation11 + $0x1320] sm:$0xff] }
 0x30a   :  { %2512 = vmatpush2.msra.mxu0 %v1389_v7  ;;  %2443 = vmatpush2.msra.mxu1 %v1883_v8  ;;  %v1168_v7 = vld [vmem:[#allocation11 + $0x338] sm:$0xff]  ;;  %v1662_v8 = vld [vmem:[#allocation11 + $0x12a8] sm:$0xff] }
 0x30b   :  { %2513 = vmatprep.subr.mxu0 %v1374_v9  ;;  %2444 = vmatprep.subr.mxu1 %v1868_v10  ;;  %v1167_v9 = vld [vmem:[#allocation11 + $0x330] sm:$0xff]  ;;  %v1661_v10 = vld [vmem:[#allocation11 + $0x12a0] sm:$0xff] }
 0x30c   :  { %2514 = vmatpush2.msra.mxu0 %v1373_v11  ;;  %2445 = vmatpush2.msra.mxu1 %v1867_v12  ;;  %v1152_v11 = vld [vmem:[#allocation11 + $0x2b8] sm:$0xff]  ;;  %v1646_v12 = vld [vmem:[#allocation11 + $0x1228] sm:$0xff] }
 0x30d   :  { %2515 = vmatprep.subr.mxu0 %v1358_v13  ;;  %2446 = vmatprep.subr.mxu1 %v1852_v14  ;;  %v1151_v13 = vld [vmem:[#allocation11 + $0x2b0] sm:$0xff]  ;;  %v1645_v14 = vld [vmem:[#allocation11 + $0x1220] sm:$0xff] }
 0x30e   :  { %2516 = vmatpush2.msra.mxu0 %v1357_v15  ;;  %2447 = vmatpush2.msra.mxu1 %v1851_v16  ;;  %v1136_v15 = vld [vmem:[#allocation11 + $0x238] sm:$0xff]  ;;  %v1630_v16 = vld [vmem:[#allocation11 + $0x11a8] sm:$0xff] }
 0x30f   :  { %2517 = vmatprep.subr.mxu0 %v1342_v17  ;;  %2448 = vmatprep.subr.mxu1 %v1836_v18  ;;  %v1135_v17 = vld [vmem:[#allocation11 + $0x230] sm:$0xff]  ;;  %v1629_v18 = vld [vmem:[#allocation11 + $0x11a0] sm:$0xff] }
 0x310   :  { %2518 = vmatpush2.msra.mxu0 %v1341_v19  ;;  %2449 = vmatpush2.msra.mxu1 %v1835_v20  ;;  %v1120_v19 = vld [vmem:[#allocation11 + $0x1b8] sm:$0xff]  ;;  %v1614_v20 = vld [vmem:[#allocation11 + $0x1128] sm:$0xff] }
 0x311   :  { %2519 = vmatprep.subr.mxu0 %v1326_v21  ;;  %2451 = vmatmul.mubr.f32.vlgmr.msra.gmra.mxu1 %v9256_v4  ;;  %v1119_v21 = vld [vmem:[#allocation11 + $0x1b0] sm:$0xff] }
 0x312   :  { %2520 = vmatpush2.msra.mxu0 %v1325_v22  ;;  %2528 = vmatprep.subr.mxu1 %v1822_v23  ;;  %v1613_v22 = vld [vmem:[#allocation11 + $0x1120] sm:$0xff]  ;;  %v1104_v23 = vld [vmem:[#allocation11 + $0x138] sm:$0xff] }
 0x313   :  { %2522 = vmatmul.mubr.f32.vlgmr.msra.gmra.mxu0 %v9245_v38  ;;  %2529 = vmatpush1.msra.mxu1 %v1821_v24  ;;  %v1598_v24 = vld [vmem:[#allocation11 + $0x10a8] sm:$0xff] }
 0x314   :  { %2592 = vmatprep.mubr.f32.mxu1 %v9254_v2  ;;  %2599 = vmatprep.subr.mxu0 %v1312_v25  ;;  %v1103_v25 = vld [vmem:[#allocation11 + $0x130] sm:$0xff] }
 0x315   :  { %2530 = vmatprep.subr.mxu1 %v1806_v52  ;;  %2600 = vmatpush1.msra.mxu0 %v1311_v60  ;;  %v1597_v52 = vld [vmem:[#allocation11 + $0x10a0] sm:$0xff]  ;;  %v1088_v60 = vld [vmem:[#allocation11 + $0xb8] sm:$0xff] }
 0x316   :  { %2663 = vmatprep.mubr.f32.mxu0 %v9243_v37  ;;  %2531 = vmatpush1.msra.mxu1 %v1805_v51  ;;  %v1582_v51 = vld [vmem:[#allocation11 + $0x1028] sm:$0xff] }
 0x317   :  { %2601 = vmatprep.subr.mxu0 %v1296_v57  ;;  %2532 = vmatprep.subr.mxu1 %v1790_v27  ;;  %v1087_v57 = vld [vmem:[#allocation11 + $0xb0] sm:$0xff]  ;;  %v1581_v27 = vld [vmem:[#allocation11 + $0x1020] sm:$0xff] }
 0x318   :  { %2602 = vmatpush1.msra.mxu0 %v1295_v28  ;;  %2533 = vmatpush1.msra.mxu1 %v1789_v29  ;;  %v1072_v28 = vld [vmem:[#allocation11 + $0x38] sm:$0xff]  ;;  %v2078_v29 = vld [vmem:[#allocation11 + $0x1fa8] sm:$0xff] }
 0x319   :  { %2603 = vmatprep.subr.mxu0 %v1280_v30  ;;  %2534 = vmatprep.subr.mxu1 %v1774_v31  ;;  %v1071_v30 = vld [vmem:[#allocation11 + $0x30] sm:$0xff]  ;;  %v2077_v31 = vld [vmem:[#allocation11 + $0x1fa0] sm:$0xff] }
 0x31a   :  { %2604 = vmatpush1.msra.mxu0 %v1279_v32  ;;  %2535 = vmatpush1.msra.mxu1 %v1773_v33  ;;  %v1568_v32 = vld [vmem:[#allocation11 + $0xfb8] sm:$0xff]  ;;  %v2062_v33 = vld [vmem:[#allocation11 + $0x1f28] sm:$0xff] }
 0x31b   :  { %2605 = vmatprep.subr.mxu0 %v1264_v34  ;;  %2536 = vmatprep.subr.mxu1 %v1758_v35  ;;  %v1567_v34 = vld [vmem:[#allocation11 + $0xfb0] sm:$0xff]  ;;  %v2061_v35 = vld [vmem:[#allocation11 + $0x1f20] sm:$0xff] }
 0x31c   :  { %2606 = vmatpush1.msra.mxu0 %v1263_v36  ;;  %2537 = vmatpush1.msra.mxu1 %v1757_v42  ;;  %v1552_v36 = vld [vmem:[#allocation11 + $0xf38] sm:$0xff]  ;;  %v2046_v42 = vld [vmem:[#allocation11 + $0x1ea8] sm:$0xff] }
 0x31d   :  { %2607 = vmatprep.subr.mxu0 %v1248_v45  ;;  %2538 = vmatprep.subr.mxu1 %v1742_v46  ;;  %v1551_v45 = vld [vmem:[#allocation11 + $0xf30] sm:$0xff]  ;;  %v2045_v46 = vld [vmem:[#allocation11 + $0x1ea0] sm:$0xff] }
 0x31e   :  { %2608 = vmatpush1.msra.mxu0 %v1247_v47  ;;  %2539 = vmatpush1.msra.mxu1 %v1741_v48  ;;  %v1536_v47 = vld [vmem:[#allocation11 + $0xeb8] sm:$0xff]  ;;  %v2030_v48 = vld [vmem:[#allocation11 + $0x1e28] sm:$0xff] }
 0x31f   :  { %2609 = vmatprep.subr.mxu0 %v1232_v49  ;;  %2540 = vmatprep.subr.mxu1 %v1726_v50  ;;  %v1535_v49 = vld [vmem:[#allocation11 + $0xeb0] sm:$0xff]  ;;  %v2029_v50 = vld [vmem:[#allocation11 + $0x1e20] sm:$0xff] }
 0x320   :  { %2610 = vmatpush1.msra.mxu0 %v1231_v53  ;;  %2541 = vmatpush1.msra.mxu1 %v1725_v54  ;;  %v1520_v53 = vld [vmem:[#allocation11 + $0xe38] sm:$0xff]  ;;  %v2014_v54 = vld [vmem:[#allocation11 + $0x1da8] sm:$0xff] }
 0x321   :  { %2611 = vmatprep.subr.mxu0 %v1216_v55  ;;  %2542 = vmatprep.subr.mxu1 %v1710_v56  ;;  %v1519_v55 = vld [vmem:[#allocation11 + $0xe30] sm:$0xff]  ;;  %v2013_v56 = vld [vmem:[#allocation11 + $0x1da0] sm:$0xff] }
 0x322   :  { %2612 = vmatpush1.msra.mxu0 %v1215_v58  ;;  %2543 = vmatpush1.msra.mxu1 %v1709_v59  ;;  %v1504_v58 = vld [vmem:[#allocation11 + $0xdb8] sm:$0xff]  ;;  %v1998_v59 = vld [vmem:[#allocation11 + $0x1d28] sm:$0xff] }
 0x323   :  { %2613 = vmatprep.subr.mxu0 %v1200_v61  ;;  %2544 = vmatprep.subr.mxu1 %v1694_v62  ;;  %v1503_v61 = vld [vmem:[#allocation11 + $0xdb0] sm:$0xff]  ;;  %v1997_v62 = vld [vmem:[#allocation11 + $0x1d20] sm:$0xff] }
 0x324   :  { %2614 = vmatpush1.msra.mxu0 %v1199_v63  ;;  %2545 = vmatpush1.msra.mxu1 %v1693_v1  ;;  %v1488_v63 = vld [vmem:[#allocation11 + $0xd38] sm:$0xff]  ;;  %v1982_v1 = vld [vmem:[#allocation11 + $0x1ca8] sm:$0xff] }
 0x325   :  { %2615 = vmatprep.subr.mxu0 %v1184_v26  ;;  %2546 = vmatprep.subr.mxu1 %v1678_v3  ;;  %v1487_v26 = vld [vmem:[#allocation11 + $0xd30] sm:$0xff]  ;;  %v1981_v3 = vld [vmem:[#allocation11 + $0x1ca0] sm:$0xff] }
 0x326   :  { %2616 = vmatpush1.msra.mxu0 %v1183_v5  ;;  %2547 = vmatpush1.msra.mxu1 %v1677_v6  ;;  %v1472_v5 = vld [vmem:[#allocation11 + $0xcb8] sm:$0xff]  ;;  %v1966_v6 = vld [vmem:[#allocation11 + $0x1c28] sm:$0xff] }
 0x327   :  { %2617 = vmatprep.subr.mxu0 %v1168_v7  ;;  %2548 = vmatprep.subr.mxu1 %v1662_v8  ;;  %v1471_v7 = vld [vmem:[#allocation11 + $0xcb0] sm:$0xff]  ;;  %v1965_v8 = vld [vmem:[#allocation11 + $0x1c20] sm:$0xff] }
 0x328   :  { %2618 = vmatpush1.msra.mxu0 %v1167_v9  ;;  %2549 = vmatpush1.msra.mxu1 %v1661_v10  ;;  %v1456_v9 = vld [vmem:[#allocation11 + $0xc38] sm:$0xff]  ;;  %v1950_v10 = vld [vmem:[#allocation11 + $0x1ba8] sm:$0xff] }
 0x329   :  { %2619 = vmatprep.subr.mxu0 %v1152_v11  ;;  %2550 = vmatprep.subr.mxu1 %v1646_v12  ;;  %v1455_v11 = vld [vmem:[#allocation11 + $0xc30] sm:$0xff]  ;;  %v1949_v12 = vld [vmem:[#allocation11 + $0x1ba0] sm:$0xff] }
 0x32a   :  { %2620 = vmatpush1.msra.mxu0 %v1151_v13  ;;  %2551 = vmatpush1.msra.mxu1 %v1645_v14  ;;  %v1440_v13 = vld [vmem:[#allocation11 + $0xbb8] sm:$0xff]  ;;  %v1934_v14 = vld [vmem:[#allocation11 + $0x1b28] sm:$0xff] }
 0x32b   :  { %2621 = vmatprep.subr.mxu0 %v1136_v15  ;;  %2552 = vmatprep.subr.mxu1 %v1630_v16  ;;  %v1439_v15 = vld [vmem:[#allocation11 + $0xbb0] sm:$0xff]  ;;  %v1933_v16 = vld [vmem:[#allocation11 + $0x1b20] sm:$0xff] }
 0x32c   :  { %2622 = vmatpush1.msra.mxu0 %v1135_v17  ;;  %2553 = vmatpush1.msra.mxu1 %v1629_v18  ;;  %v1424_v17 = vld [vmem:[#allocation11 + $0xb38] sm:$0xff]  ;;  %v1918_v18 = vld [vmem:[#allocation11 + $0x1aa8] sm:$0xff] }
 0x32d   :  { %2623 = vmatprep.subr.mxu0 %v1120_v19  ;;  %2554 = vmatprep.subr.mxu1 %v1614_v20  ;;  %v1423_v19 = vld [vmem:[#allocation11 + $0xb30] sm:$0xff]  ;;  %v1917_v20 = vld [vmem:[#allocation11 + $0x1aa0] sm:$0xff] }
 0x32e   :  { %2624 = vmatpush1.msra.mxu0 %v1119_v21  ;;  %2555 = vmatpush1.msra.mxu1 %v1613_v22  ;;  %v1408_v21 = vld [vmem:[#allocation11 + $0xab8] sm:$0xff]  ;;  %v1902_v22 = vld [vmem:[#allocation11 + $0x1a28] sm:$0xff] }
 0x32f   :  { %2625 = vmatprep.subr.mxu0 %v1104_v23  ;;  %2556 = vmatprep.subr.mxu1 %v1598_v24  ;;  %v1407_v23 = vld [vmem:[#allocation11 + $0xab0] sm:$0xff]  ;;  %v1901_v24 = vld [vmem:[#allocation11 + $0x1a20] sm:$0xff] }
 0x330   :  { %2626 = vmatpush1.msra.mxu0 %v1103_v25  ;;  %2557 = vmatpush1.msra.mxu1 %v1597_v52  ;;  %v1392_v25 = vld [vmem:[#allocation11 + $0xa38] sm:$0xff]  ;;  %v1886_v52 = vld [vmem:[#allocation11 + $0x19a8] sm:$0xff] }
 0x331   :  { %2627 = vmatprep.subr.mxu0 %v1088_v60  ;;  %2558 = vmatprep.subr.mxu1 %v1582_v51  ;;  %v1391_v60 = vld [vmem:[#allocation11 + $0xa30] sm:$0xff]  ;;  %v1885_v51 = vld [vmem:[#allocation11 + $0x19a0] sm:$0xff] }
 0x332   :  { %2628 = vmatpush1.msra.mxu0 %v1087_v57  ;;  %2559 = vmatpush1.msra.mxu1 %v1581_v27  ;;  %v1376_v57 = vld [vmem:[#allocation11 + $0x9b8] sm:$0xff]  ;;  %v1870_v27 = vld [vmem:[#allocation11 + $0x1928] sm:$0xff] }
 0x333   :  { %2629 = vmatprep.subr.mxu0 %v1072_v28  ;;  %2560 = vmatprep.subr.mxu1 %v2078_v29  ;;  %v1375_v28 = vld [vmem:[#allocation11 + $0x9b0] sm:$0xff]  ;;  %v1869_v29 = vld [vmem:[#allocation11 + $0x1920] sm:$0xff] }
 0x334   :  { %2630 = vmatpush1.msra.mxu0 %v1071_v30  ;;  %2561 = vmatpush2.msra.mxu1 %v2077_v31  ;;  %v1360_v30 = vld [vmem:[#allocation11 + $0x938] sm:$0xff]  ;;  %v1854_v31 = vld [vmem:[#allocation11 + $0x18a8] sm:$0xff] }
 0x335   :  { %2631 = vmatprep.subr.mxu0 %v1568_v32  ;;  %2562 = vmatprep.subr.mxu1 %v2062_v33  ;;  %v1359_v32 = vld [vmem:[#allocation11 + $0x930] sm:$0xff]  ;;  %v1853_v33 = vld [vmem:[#allocation11 + $0x18a0] sm:$0xff] }
 0x336   :  { %2632 = vmatpush2.msra.mxu0 %v1567_v34  ;;  %2563 = vmatpush2.msra.mxu1 %v2061_v35  ;;  %v1344_v34 = vld [vmem:[#allocation11 + $0x8b8] sm:$0xff]  ;;  %v1838_v35 = vld [vmem:[#allocation11 + $0x1828] sm:$0xff] }
 0x337   :  { %2633 = vmatprep.subr.mxu0 %v1552_v36  ;;  %2564 = vmatprep.subr.mxu1 %v2046_v42  ;;  %v1343_v36 = vld [vmem:[#allocation11 + $0x8b0] sm:$0xff]  ;;  %v1837_v42 = vld [vmem:[#allocation11 + $0x1820] sm:$0xff] }
 0x338   :  { %2634 = vmatpush2.msra.mxu0 %v1551_v45  ;;  %2565 = vmatpush2.msra.mxu1 %v2045_v46  ;;  %v1328_v45 = vld [vmem:[#allocation11 + $0x838] sm:$0xff]  ;;  %v1327_v46 = vld [vmem:[#allocation11 + $0x830] sm:$0xff] }
 0x339   :  { %2635 = vmatprep.subr.mxu0 %v1536_v47  ;;  %2566 = vmatprep.subr.mxu1 %v2030_v48  ;;  %v1824_v47 = vld [vmem:[#allocation11 + $0x17b8] sm:$0xff]  ;;  %v1823_v48 = vld [vmem:[#allocation11 + $0x17b0] sm:$0xff] }
 0x33a   :  { %2636 = vmatpush2.msra.mxu0 %v1535_v49  ;;  %2567 = vmatpush2.msra.mxu1 %v2029_v50  ;;  %v1314_v49 = vld [vmem:[#allocation11 + $0x7c8] sm:$0xff]  ;;  %v1808_v50 = vld [vmem:[#allocation11 + $0x1738] sm:$0xff] }
 0x33b   :  { %2637 = vmatprep.subr.mxu0 %v1520_v53  ;;  %2568 = vmatprep.subr.mxu1 %v2014_v54  ;;  %v1313_v53 = vld [vmem:[#allocation11 + $0x7c0] sm:$0xff]  ;;  %v1807_v54 = vld [vmem:[#allocation11 + $0x1730] sm:$0xff] }
 0x33c   :  { %2638 = vmatpush2.msra.mxu0 %v1519_v55  ;;  %2569 = vmatpush2.msra.mxu1 %v2013_v56  ;;  %v1298_v55 = vld [vmem:[#allocation11 + $0x748] sm:$0xff]  ;;  %v1792_v56 = vld [vmem:[#allocation11 + $0x16b8] sm:$0xff] }
 0x33d   :  { %2639 = vmatprep.subr.mxu0 %v1504_v58  ;;  %2570 = vmatprep.subr.mxu1 %v1998_v59  ;;  %v1297_v58 = vld [vmem:[#allocation11 + $0x740] sm:$0xff]  ;;  %v1791_v59 = vld [vmem:[#allocation11 + $0x16b0] sm:$0xff] }
 0x33e   :  { %2640 = vmatpush2.msra.mxu0 %v1503_v61  ;;  %2571 = vmatpush2.msra.mxu1 %v1997_v62  ;;  %v1282_v61 = vld [vmem:[#allocation11 + $0x6c8] sm:$0xff]  ;;  %v1776_v62 = vld [vmem:[#allocation11 + $0x1638] sm:$0xff] }
 0x33f   :  { %2641 = vmatprep.subr.mxu0 %v1488_v63  ;;  %2572 = vmatprep.subr.mxu1 %v1982_v1  ;;  %v1281_v63 = vld [vmem:[#allocation11 + $0x6c0] sm:$0xff]  ;;  %v1775_v1 = vld [vmem:[#allocation11 + $0x1630] sm:$0xff] }
 0x340   :  { %2642 = vmatpush2.msra.mxu0 %v1487_v26  ;;  %2573 = vmatpush2.msra.mxu1 %v1981_v3  ;;  %v1266_v26 = vld [vmem:[#allocation11 + $0x648] sm:$0xff]  ;;  %v1760_v3 = vld [vmem:[#allocation11 + $0x15b8] sm:$0xff] }
 0x341   :  { %2643 = vmatprep.subr.mxu0 %v1472_v5  ;;  %2574 = vmatprep.subr.mxu1 %v1966_v6  ;;  %v1265_v5 = vld [vmem:[#allocation11 + $0x640] sm:$0xff]  ;;  %v1759_v6 = vld [vmem:[#allocation11 + $0x15b0] sm:$0xff] }
 0x342   :  { %2644 = vmatpush2.msra.mxu0 %v1471_v7  ;;  %2575 = vmatpush2.msra.mxu1 %v1965_v8  ;;  %v1250_v7 = vld [vmem:[#allocation11 + $0x5c8] sm:$0xff]  ;;  %v1744_v8 = vld [vmem:[#allocation11 + $0x1538] sm:$0xff] }
 0x343   :  { %2645 = vmatprep.subr.mxu0 %v1456_v9  ;;  %2576 = vmatprep.subr.mxu1 %v1950_v10  ;;  %v1249_v9 = vld [vmem:[#allocation11 + $0x5c0] sm:$0xff]  ;;  %v1743_v10 = vld [vmem:[#allocation11 + $0x1530] sm:$0xff] }
 0x344   :  { %2646 = vmatpush2.msra.mxu0 %v1455_v11  ;;  %2577 = vmatpush2.msra.mxu1 %v1949_v12  ;;  %v1234_v11 = vld [vmem:[#allocation11 + $0x548] sm:$0xff]  ;;  %v1728_v12 = vld [vmem:[#allocation11 + $0x14b8] sm:$0xff] }
 0x345   :  { %2647 = vmatprep.subr.mxu0 %v1440_v13  ;;  %2578 = vmatprep.subr.mxu1 %v1934_v14  ;;  %v1233_v13 = vld [vmem:[#allocation11 + $0x540] sm:$0xff]  ;;  %v1727_v14 = vld [vmem:[#allocation11 + $0x14b0] sm:$0xff] }
 0x346   :  { %2648 = vmatpush2.msra.mxu0 %v1439_v15  ;;  %2579 = vmatpush2.msra.mxu1 %v1933_v16  ;;  %v1218_v15 = vld [vmem:[#allocation11 + $0x4c8] sm:$0xff]  ;;  %v1712_v16 = vld [vmem:[#allocation11 + $0x1438] sm:$0xff] }
 0x347   :  { %2649 = vmatprep.subr.mxu0 %v1424_v17  ;;  %2580 = vmatprep.subr.mxu1 %v1918_v18  ;;  %v1217_v17 = vld [vmem:[#allocation11 + $0x4c0] sm:$0xff]  ;;  %v1711_v18 = vld [vmem:[#allocation11 + $0x1430] sm:$0xff] }
 0x348   :  { %2650 = vmatpush2.msra.mxu0 %v1423_v19  ;;  %2581 = vmatpush2.msra.mxu1 %v1917_v20  ;;  %v1202_v19 = vld [vmem:[#allocation11 + $0x448] sm:$0xff]  ;;  %v1696_v20 = vld [vmem:[#allocation11 + $0x13b8] sm:$0xff] }
 0x349   :  { %2651 = vmatprep.subr.mxu0 %v1408_v21  ;;  %2582 = vmatprep.subr.mxu1 %v1902_v22  ;;  %v1201_v21 = vld [vmem:[#allocation11 + $0x440] sm:$0xff]  ;;  %v1695_v22 = vld [vmem:[#allocation11 + $0x13b0] sm:$0xff] }
 0x34a   :  { %2652 = vmatpush2.msra.mxu0 %v1407_v23  ;;  %2583 = vmatpush2.msra.mxu1 %v1901_v24  ;;  %v1186_v23 = vld [vmem:[#allocation11 + $0x3c8] sm:$0xff]  ;;  %v1680_v24 = vld [vmem:[#allocation11 + $0x1338] sm:$0xff] }
 0x34b   :  { %2653 = vmatprep.subr.mxu0 %v1392_v25  ;;  %2584 = vmatprep.subr.mxu1 %v1886_v52  ;;  %v1185_v25 = vld [vmem:[#allocation11 + $0x3c0] sm:$0xff]  ;;  %v1679_v52 = vld [vmem:[#allocation11 + $0x1330] sm:$0xff] }
 0x34c   :  { %2654 = vmatpush2.msra.mxu0 %v1391_v60  ;;  %2585 = vmatpush2.msra.mxu1 %v1885_v51  ;;  %v1170_v60 = vld [vmem:[#allocation11 + $0x348] sm:$0xff]  ;;  %v1664_v51 = vld [vmem:[#allocation11 + $0x12b8] sm:$0xff] }
 0x34d   :  { %2655 = vmatprep.subr.mxu0 %v1376_v57  ;;  %2586 = vmatprep.subr.mxu1 %v1870_v27  ;;  %v1169_v57 = vld [vmem:[#allocation11 + $0x340] sm:$0xff]  ;;  %v1663_v27 = vld [vmem:[#allocation11 + $0x12b0] sm:$0xff] }
 0x34e   :  { %2656 = vmatpush2.msra.mxu0 %v1375_v28  ;;  %2587 = vmatpush2.msra.mxu1 %v1869_v29  ;;  %v1154_v28 = vld [vmem:[#allocation11 + $0x2c8] sm:$0xff]  ;;  %v1648_v29 = vld [vmem:[#allocation11 + $0x1238] sm:$0xff] }
 0x34f   :  { %2657 = vmatprep.subr.mxu0 %v1360_v30  ;;  %2588 = vmatprep.subr.mxu1 %v1854_v31  ;;  %v1153_v30 = vld [vmem:[#allocation11 + $0x2c0] sm:$0xff]  ;;  %v1647_v31 = vld [vmem:[#allocation11 + $0x1230] sm:$0xff] }
 0x350   :  { %2658 = vmatpush2.msra.mxu0 %v1359_v32  ;;  %2589 = vmatpush2.msra.mxu1 %v1853_v33  ;;  %v1138_v32 = vld [vmem:[#allocation11 + $0x248] sm:$0xff]  ;;  %v1632_v33 = vld [vmem:[#allocation11 + $0x11b8] sm:$0xff] }
 0x351   :  { %2659 = vmatprep.subr.mxu0 %v1344_v34  ;;  %2590 = vmatprep.subr.mxu1 %v1838_v35  ;;  %v1137_v34 = vld [vmem:[#allocation11 + $0x240] sm:$0xff]  ;;  %v1631_v35 = vld [vmem:[#allocation11 + $0x11b0] sm:$0xff] }
 0x352   :  { %2660 = vmatpush2.msra.mxu0 %v1343_v36  ;;  %2591 = vmatpush2.msra.mxu1 %v1837_v42  ;;  %v1122_v36 = vld [vmem:[#allocation11 + $0x1c8] sm:$0xff]  ;;  %v1616_v42 = vld [vmem:[#allocation11 + $0x1138] sm:$0xff] }
 0x353   :  { %2661 = vmatprep.subr.mxu0 %v1328_v45  ;;  %2593 = vmatmul.mubr.f32.vlgmr.msra.gmra.mxu1 %v9256_v4  ;;  %v1121_v45 = vld [vmem:[#allocation11 + $0x1c0] sm:$0xff] }
 0x354   :  { %2662 = vmatpush2.msra.mxu0 %v1327_v46  ;;  %2670 = vmatprep.subr.mxu1 %v1824_v47  ;;  %v1615_v46 = vld [vmem:[#allocation11 + $0x1130] sm:$0xff]  ;;  %v1106_v47 = vld [vmem:[#allocation11 + $0x148] sm:$0xff] }
 0x355   :  { %2664 = vmatmul.mubr.f32.vlgmr.msra.gmra.mxu0 %v9245_v38  ;;  %2671 = vmatpush1.msra.mxu1 %v1823_v48  ;;  %v1600_v48 = vld [vmem:[#allocation11 + $0x10b8] sm:$0xff] }
 0x356   :  { %2734 = vmatprep.mubr.f32.mxu1 %v9254_v2  ;;  %2741 = vmatprep.subr.mxu0 %v1314_v49  ;;  %v1105_v49 = vld [vmem:[#allocation11 + $0x140] sm:$0xff] }
 0x357   :  { %2672 = vmatprep.subr.mxu1 %v1808_v50  ;;  %2742 = vmatpush1.msra.mxu0 %v1313_v53  ;;  %v1599_v50 = vld [vmem:[#allocation11 + $0x10b0] sm:$0xff]  ;;  %v1090_v53 = vld [vmem:[#allocation11 + $0xc8] sm:$0xff] }
 0x358   :  { %2805 = vmatprep.mubr.f32.mxu0 %v9243_v37  ;;  %2673 = vmatpush1.msra.mxu1 %v1807_v54  ;;  %v1584_v54 = vld [vmem:[#allocation11 + $0x1038] sm:$0xff] }
 0x359   :  { %2743 = vmatprep.subr.mxu0 %v1298_v55  ;;  %2674 = vmatprep.subr.mxu1 %v1792_v56  ;;  %v1089_v55 = vld [vmem:[#allocation11 + $0xc0] sm:$0xff]  ;;  %v1583_v56 = vld [vmem:[#allocation11 + $0x1030] sm:$0xff] }
 0x35a   :  { %2744 = vmatpush1.msra.mxu0 %v1297_v58  ;;  %2675 = vmatpush1.msra.mxu1 %v1791_v59  ;;  %v1074_v58 = vld [vmem:[#allocation11 + $0x48] sm:$0xff]  ;;  %v2080_v59 = vld [vmem:[#allocation11 + $0x1fb8] sm:$0xff] }
 0x35b   :  { %2745 = vmatprep.subr.mxu0 %v1282_v61  ;;  %2676 = vmatprep.subr.mxu1 %v1776_v62  ;;  %v1073_v61 = vld [vmem:[#allocation11 + $0x40] sm:$0xff]  ;;  %v2079_v62 = vld [vmem:[#allocation11 + $0x1fb0] sm:$0xff] }
 0x35c   :  { %2746 = vmatpush1.msra.mxu0 %v1281_v63  ;;  %2677 = vmatpush1.msra.mxu1 %v1775_v1  ;;  %v1570_v63 = vld [vmem:[#allocation11 + $0xfc8] sm:$0xff]  ;;  %v2064_v1 = vld [vmem:[#allocation11 + $0x1f38] sm:$0xff] }
 0x35d   :  { %2747 = vmatprep.subr.mxu0 %v1266_v26  ;;  %2678 = vmatprep.subr.mxu1 %v1760_v3  ;;  %v1569_v26 = vld [vmem:[#allocation11 + $0xfc0] sm:$0xff]  ;;  %v2063_v3 = vld [vmem:[#allocation11 + $0x1f30] sm:$0xff] }
 0x35e   :  { %2748 = vmatpush1.msra.mxu0 %v1265_v5  ;;  %2679 = vmatpush1.msra.mxu1 %v1759_v6  ;;  %v1554_v5 = vld [vmem:[#allocation11 + $0xf48] sm:$0xff]  ;;  %v2048_v6 = vld [vmem:[#allocation11 + $0x1eb8] sm:$0xff] }
 0x35f   :  { %2749 = vmatprep.subr.mxu0 %v1250_v7  ;;  %2680 = vmatprep.subr.mxu1 %v1744_v8  ;;  %v1553_v7 = vld [vmem:[#allocation11 + $0xf40] sm:$0xff]  ;;  %v2047_v8 = vld [vmem:[#allocation11 + $0x1eb0] sm:$0xff] }
 0x360   :  { %2750 = vmatpush1.msra.mxu0 %v1249_v9  ;;  %2681 = vmatpush1.msra.mxu1 %v1743_v10  ;;  %v1538_v9 = vld [vmem:[#allocation11 + $0xec8] sm:$0xff]  ;;  %v2032_v10 = vld [vmem:[#allocation11 + $0x1e38] sm:$0xff] }
 0x361   :  { %2751 = vmatprep.subr.mxu0 %v1234_v11  ;;  %2682 = vmatprep.subr.mxu1 %v1728_v12  ;;  %v1537_v11 = vld [vmem:[#allocation11 + $0xec0] sm:$0xff]  ;;  %v2031_v12 = vld [vmem:[#allocation11 + $0x1e30] sm:$0xff] }
 0x362   :  { %2752 = vmatpush1.msra.mxu0 %v1233_v13  ;;  %2683 = vmatpush1.msra.mxu1 %v1727_v14  ;;  %v1522_v13 = vld [vmem:[#allocation11 + $0xe48] sm:$0xff]  ;;  %v2016_v14 = vld [vmem:[#allocation11 + $0x1db8] sm:$0xff] }
 0x363   :  { %2753 = vmatprep.subr.mxu0 %v1218_v15  ;;  %2684 = vmatprep.subr.mxu1 %v1712_v16  ;;  %v1521_v15 = vld [vmem:[#allocation11 + $0xe40] sm:$0xff]  ;;  %v2015_v16 = vld [vmem:[#allocation11 + $0x1db0] sm:$0xff] }
 0x364   :  { %2754 = vmatpush1.msra.mxu0 %v1217_v17  ;;  %2685 = vmatpush1.msra.mxu1 %v1711_v18  ;;  %v1506_v17 = vld [vmem:[#allocation11 + $0xdc8] sm:$0xff]  ;;  %v2000_v18 = vld [vmem:[#allocation11 + $0x1d38] sm:$0xff] }
 0x365   :  { %2755 = vmatprep.subr.mxu0 %v1202_v19  ;;  %2686 = vmatprep.subr.mxu1 %v1696_v20  ;;  %v1505_v19 = vld [vmem:[#allocation11 + $0xdc0] sm:$0xff]  ;;  %v1999_v20 = vld [vmem:[#allocation11 + $0x1d30] sm:$0xff] }
 0x366   :  { %2756 = vmatpush1.msra.mxu0 %v1201_v21  ;;  %2687 = vmatpush1.msra.mxu1 %v1695_v22  ;;  %v1490_v21 = vld [vmem:[#allocation11 + $0xd48] sm:$0xff]  ;;  %v1984_v22 = vld [vmem:[#allocation11 + $0x1cb8] sm:$0xff] }
 0x367   :  { %2757 = vmatprep.subr.mxu0 %v1186_v23  ;;  %2688 = vmatprep.subr.mxu1 %v1680_v24  ;;  %v1489_v23 = vld [vmem:[#allocation11 + $0xd40] sm:$0xff]  ;;  %v1983_v24 = vld [vmem:[#allocation11 + $0x1cb0] sm:$0xff] }
 0x368   :  { %2758 = vmatpush1.msra.mxu0 %v1185_v25  ;;  %2689 = vmatpush1.msra.mxu1 %v1679_v52  ;;  %v1474_v25 = vld [vmem:[#allocation11 + $0xcc8] sm:$0xff]  ;;  %v1968_v52 = vld [vmem:[#allocation11 + $0x1c38] sm:$0xff] }
 0x369   :  { %2759 = vmatprep.subr.mxu0 %v1170_v60  ;;  %2690 = vmatprep.subr.mxu1 %v1664_v51  ;;  %v1473_v60 = vld [vmem:[#allocation11 + $0xcc0] sm:$0xff]  ;;  %v1967_v51 = vld [vmem:[#allocation11 + $0x1c30] sm:$0xff] }
 0x36a   :  { %2760 = vmatpush1.msra.mxu0 %v1169_v57  ;;  %2691 = vmatpush1.msra.mxu1 %v1663_v27  ;;  %v1458_v57 = vld [vmem:[#allocation11 + $0xc48] sm:$0xff]  ;;  %v1952_v27 = vld [vmem:[#allocation11 + $0x1bb8] sm:$0xff] }
 0x36b   :  { %2761 = vmatprep.subr.mxu0 %v1154_v28  ;;  %2692 = vmatprep.subr.mxu1 %v1648_v29  ;;  %v1457_v28 = vld [vmem:[#allocation11 + $0xc40] sm:$0xff]  ;;  %v1951_v29 = vld [vmem:[#allocation11 + $0x1bb0] sm:$0xff] }
 0x36c   :  { %2762 = vmatpush1.msra.mxu0 %v1153_v30  ;;  %2693 = vmatpush1.msra.mxu1 %v1647_v31  ;;  %v1442_v30 = vld [vmem:[#allocation11 + $0xbc8] sm:$0xff]  ;;  %v1936_v31 = vld [vmem:[#allocation11 + $0x1b38] sm:$0xff] }
 0x36d   :  { %2763 = vmatprep.subr.mxu0 %v1138_v32  ;;  %2694 = vmatprep.subr.mxu1 %v1632_v33  ;;  %v1441_v32 = vld [vmem:[#allocation11 + $0xbc0] sm:$0xff]  ;;  %v1935_v33 = vld [vmem:[#allocation11 + $0x1b30] sm:$0xff] }
 0x36e   :  { %2764 = vmatpush1.msra.mxu0 %v1137_v34  ;;  %2695 = vmatpush1.msra.mxu1 %v1631_v35  ;;  %v1426_v34 = vld [vmem:[#allocation11 + $0xb48] sm:$0xff]  ;;  %v1920_v35 = vld [vmem:[#allocation11 + $0x1ab8] sm:$0xff] }
 0x36f   :  { %2765 = vmatprep.subr.mxu0 %v1122_v36  ;;  %2696 = vmatprep.subr.mxu1 %v1616_v42  ;;  %v1425_v36 = vld [vmem:[#allocation11 + $0xb40] sm:$0xff]  ;;  %v1919_v42 = vld [vmem:[#allocation11 + $0x1ab0] sm:$0xff] }
 0x370   :  { %2766 = vmatpush1.msra.mxu0 %v1121_v45  ;;  %2697 = vmatpush1.msra.mxu1 %v1615_v46  ;;  %v1410_v45 = vld [vmem:[#allocation11 + $0xac8] sm:$0xff]  ;;  %v1904_v46 = vld [vmem:[#allocation11 + $0x1a38] sm:$0xff] }
 0x371   :  { %2767 = vmatprep.subr.mxu0 %v1106_v47  ;;  %2698 = vmatprep.subr.mxu1 %v1600_v48  ;;  %v1409_v47 = vld [vmem:[#allocation11 + $0xac0] sm:$0xff]  ;;  %v1903_v48 = vld [vmem:[#allocation11 + $0x1a30] sm:$0xff] }
 0x372   :  { %2768 = vmatpush1.msra.mxu0 %v1105_v49  ;;  %2699 = vmatpush1.msra.mxu1 %v1599_v50  ;;  %v1394_v49 = vld [vmem:[#allocation11 + $0xa48] sm:$0xff]  ;;  %v1888_v50 = vld [vmem:[#allocation11 + $0x19b8] sm:$0xff] }
 0x373   :  { %2769 = vmatprep.subr.mxu0 %v1090_v53  ;;  %2700 = vmatprep.subr.mxu1 %v1584_v54  ;;  %v1393_v53 = vld [vmem:[#allocation11 + $0xa40] sm:$0xff]  ;;  %v1887_v54 = vld [vmem:[#allocation11 + $0x19b0] sm:$0xff] }
 0x374   :  { %2770 = vmatpush1.msra.mxu0 %v1089_v55  ;;  %2701 = vmatpush1.msra.mxu1 %v1583_v56  ;;  %v1378_v55 = vld [vmem:[#allocation11 + $0x9c8] sm:$0xff]  ;;  %v1872_v56 = vld [vmem:[#allocation11 + $0x1938] sm:$0xff] }
 0x375   :  { %2771 = vmatprep.subr.mxu0 %v1074_v58  ;;  %2702 = vmatprep.subr.mxu1 %v2080_v59  ;;  %v1377_v58 = vld [vmem:[#allocation11 + $0x9c0] sm:$0xff]  ;;  %v1871_v59 = vld [vmem:[#allocation11 + $0x1930] sm:$0xff] }
 0x376   :  { %2772 = vmatpush1.msra.mxu0 %v1073_v61  ;;  %2703 = vmatpush2.msra.mxu1 %v2079_v62  ;;  %v1362_v61 = vld [vmem:[#allocation11 + $0x948] sm:$0xff]  ;;  %v1856_v62 = vld [vmem:[#allocation11 + $0x18b8] sm:$0xff] }
 0x377   :  { %2773 = vmatprep.subr.mxu0 %v1570_v63  ;;  %2704 = vmatprep.subr.mxu1 %v2064_v1  ;;  %v1361_v63 = vld [vmem:[#allocation11 + $0x940] sm:$0xff]  ;;  %v1855_v1 = vld [vmem:[#allocation11 + $0x18b0] sm:$0xff] }
 0x378   :  { %2774 = vmatpush2.msra.mxu0 %v1569_v26  ;;  %2705 = vmatpush2.msra.mxu1 %v2063_v3  ;;  %v1346_v26 = vld [vmem:[#allocation11 + $0x8c8] sm:$0xff]  ;;  %v1840_v3 = vld [vmem:[#allocation11 + $0x1838] sm:$0xff] }
 0x379   :  { %2775 = vmatprep.subr.mxu0 %v1554_v5  ;;  %2706 = vmatprep.subr.mxu1 %v2048_v6  ;;  %v1345_v5 = vld [vmem:[#allocation11 + $0x8c0] sm:$0xff]  ;;  %v1839_v6 = vld [vmem:[#allocation11 + $0x1830] sm:$0xff] }
 0x37a   :  { %2776 = vmatpush2.msra.mxu0 %v1553_v7  ;;  %2707 = vmatpush2.msra.mxu1 %v2047_v8  ;;  %v1330_v7 = vld [vmem:[#allocation11 + $0x848] sm:$0xff]  ;;  %v1329_v8 = vld [vmem:[#allocation11 + $0x840] sm:$0xff] }
 0x37b   :  { %2777 = vmatprep.subr.mxu0 %v1538_v9  ;;  %2708 = vmatprep.subr.mxu1 %v2032_v10  ;;  %v1826_v9 = vld [vmem:[#allocation11 + $0x17c8] sm:$0xff]  ;;  %v1825_v10 = vld [vmem:[#allocation11 + $0x17c0] sm:$0xff] }
 0x37c   :  { %2778 = vmatpush2.msra.mxu0 %v1537_v11  ;;  %2709 = vmatpush2.msra.mxu1 %v2031_v12  ;;  %v1316_v11 = vld [vmem:[#allocation11 + $0x7d8] sm:$0xff]  ;;  %v1810_v12 = vld [vmem:[#allocation11 + $0x1748] sm:$0xff] }
 0x37d   :  { %2779 = vmatprep.subr.mxu0 %v1522_v13  ;;  %2710 = vmatprep.subr.mxu1 %v2016_v14  ;;  %v1315_v13 = vld [vmem:[#allocation11 + $0x7d0] sm:$0xff]  ;;  %v1809_v14 = vld [vmem:[#allocation11 + $0x1740] sm:$0xff] }
 0x37e   :  { %2780 = vmatpush2.msra.mxu0 %v1521_v15  ;;  %2711 = vmatpush2.msra.mxu1 %v2015_v16  ;;  %v1300_v15 = vld [vmem:[#allocation11 + $0x758] sm:$0xff]  ;;  %v1794_v16 = vld [vmem:[#allocation11 + $0x16c8] sm:$0xff] }
 0x37f   :  { %2781 = vmatprep.subr.mxu0 %v1506_v17  ;;  %2712 = vmatprep.subr.mxu1 %v2000_v18  ;;  %v1299_v17 = vld [vmem:[#allocation11 + $0x750] sm:$0xff]  ;;  %v1793_v18 = vld [vmem:[#allocation11 + $0x16c0] sm:$0xff] }
 0x380   :  { %2782 = vmatpush2.msra.mxu0 %v1505_v19  ;;  %2713 = vmatpush2.msra.mxu1 %v1999_v20  ;;  %v1284_v19 = vld [vmem:[#allocation11 + $0x6d8] sm:$0xff]  ;;  %v1778_v20 = vld [vmem:[#allocation11 + $0x1648] sm:$0xff] }
 0x381   :  { %2783 = vmatprep.subr.mxu0 %v1490_v21  ;;  %2714 = vmatprep.subr.mxu1 %v1984_v22  ;;  %v1283_v21 = vld [vmem:[#allocation11 + $0x6d0] sm:$0xff]  ;;  %v1777_v22 = vld [vmem:[#allocation11 + $0x1640] sm:$0xff] }
 0x382   :  { %2784 = vmatpush2.msra.mxu0 %v1489_v23  ;;  %2715 = vmatpush2.msra.mxu1 %v1983_v24  ;;  %v1268_v23 = vld [vmem:[#allocation11 + $0x658] sm:$0xff]  ;;  %v1762_v24 = vld [vmem:[#allocation11 + $0x15c8] sm:$0xff] }
 0x383   :  { %2785 = vmatprep.subr.mxu0 %v1474_v25  ;;  %2716 = vmatprep.subr.mxu1 %v1968_v52  ;;  %v1267_v25 = vld [vmem:[#allocation11 + $0x650] sm:$0xff]  ;;  %v1761_v52 = vld [vmem:[#allocation11 + $0x15c0] sm:$0xff] }
 0x384   :  { %2786 = vmatpush2.msra.mxu0 %v1473_v60  ;;  %2717 = vmatpush2.msra.mxu1 %v1967_v51  ;;  %v1252_v60 = vld [vmem:[#allocation11 + $0x5d8] sm:$0xff]  ;;  %v1746_v51 = vld [vmem:[#allocation11 + $0x1548] sm:$0xff] }
 0x385   :  { %2787 = vmatprep.subr.mxu0 %v1458_v57  ;;  %2718 = vmatprep.subr.mxu1 %v1952_v27  ;;  %v1251_v57 = vld [vmem:[#allocation11 + $0x5d0] sm:$0xff]  ;;  %v1745_v27 = vld [vmem:[#allocation11 + $0x1540] sm:$0xff] }
 0x386   :  { %2788 = vmatpush2.msra.mxu0 %v1457_v28  ;;  %2719 = vmatpush2.msra.mxu1 %v1951_v29  ;;  %v1236_v28 = vld [vmem:[#allocation11 + $0x558] sm:$0xff]  ;;  %v1730_v29 = vld [vmem:[#allocation11 + $0x14c8] sm:$0xff] }
 0x387   :  { %2789 = vmatprep.subr.mxu0 %v1442_v30  ;;  %2720 = vmatprep.subr.mxu1 %v1936_v31  ;;  %v1235_v30 = vld [vmem:[#allocation11 + $0x550] sm:$0xff]  ;;  %v1729_v31 = vld [vmem:[#allocation11 + $0x14c0] sm:$0xff] }
 0x388   :  { %2790 = vmatpush2.msra.mxu0 %v1441_v32  ;;  %2721 = vmatpush2.msra.mxu1 %v1935_v33  ;;  %v1220_v32 = vld [vmem:[#allocation11 + $0x4d8] sm:$0xff]  ;;  %v1714_v33 = vld [vmem:[#allocation11 + $0x1448] sm:$0xff] }
 0x389   :  { %2791 = vmatprep.subr.mxu0 %v1426_v34  ;;  %2722 = vmatprep.subr.mxu1 %v1920_v35  ;;  %v1219_v34 = vld [vmem:[#allocation11 + $0x4d0] sm:$0xff]  ;;  %v1713_v35 = vld [vmem:[#allocation11 + $0x1440] sm:$0xff] }
 0x38a   :  { %2792 = vmatpush2.msra.mxu0 %v1425_v36  ;;  %2723 = vmatpush2.msra.mxu1 %v1919_v42  ;;  %v1204_v36 = vld [vmem:[#allocation11 + $0x458] sm:$0xff]  ;;  %v1698_v42 = vld [vmem:[#allocation11 + $0x13c8] sm:$0xff] }
 0x38b   :  { %2793 = vmatprep.subr.mxu0 %v1410_v45  ;;  %2724 = vmatprep.subr.mxu1 %v1904_v46  ;;  %v1203_v45 = vld [vmem:[#allocation11 + $0x450] sm:$0xff]  ;;  %v1697_v46 = vld [vmem:[#allocation11 + $0x13c0] sm:$0xff] }
 0x38c   :  { %2794 = vmatpush2.msra.mxu0 %v1409_v47  ;;  %2725 = vmatpush2.msra.mxu1 %v1903_v48  ;;  %v1188_v47 = vld [vmem:[#allocation11 + $0x3d8] sm:$0xff]  ;;  %v1682_v48 = vld [vmem:[#allocation11 + $0x1348] sm:$0xff] }
 0x38d   :  { %2795 = vmatprep.subr.mxu0 %v1394_v49  ;;  %2726 = vmatprep.subr.mxu1 %v1888_v50  ;;  %v1187_v49 = vld [vmem:[#allocation11 + $0x3d0] sm:$0xff]  ;;  %v1681_v50 = vld [vmem:[#allocation11 + $0x1340] sm:$0xff] }
 0x38e   :  { %2796 = vmatpush2.msra.mxu0 %v1393_v53  ;;  %2727 = vmatpush2.msra.mxu1 %v1887_v54  ;;  %v1172_v53 = vld [vmem:[#allocation11 + $0x358] sm:$0xff]  ;;  %v1666_v54 = vld [vmem:[#allocation11 + $0x12c8] sm:$0xff] }
 0x38f   :  { %2797 = vmatprep.subr.mxu0 %v1378_v55  ;;  %2728 = vmatprep.subr.mxu1 %v1872_v56  ;;  %v1171_v55 = vld [vmem:[#allocation11 + $0x350] sm:$0xff]  ;;  %v1665_v56 = vld [vmem:[#allocation11 + $0x12c0] sm:$0xff] }
 0x390   :  { %2798 = vmatpush2.msra.mxu0 %v1377_v58  ;;  %2729 = vmatpush2.msra.mxu1 %v1871_v59  ;;  %v1156_v58 = vld [vmem:[#allocation11 + $0x2d8] sm:$0xff]  ;;  %v1650_v59 = vld [vmem:[#allocation11 + $0x1248] sm:$0xff] }
 0x391   :  { %2799 = vmatprep.subr.mxu0 %v1362_v61  ;;  %2730 = vmatprep.subr.mxu1 %v1856_v62  ;;  %v1155_v61 = vld [vmem:[#allocation11 + $0x2d0] sm:$0xff]  ;;  %v1649_v62 = vld [vmem:[#allocation11 + $0x1240] sm:$0xff] }
 0x392   :  { %2800 = vmatpush2.msra.mxu0 %v1361_v63  ;;  %2731 = vmatpush2.msra.mxu1 %v1855_v1  ;;  %v1140_v63 = vld [vmem:[#allocation11 + $0x258] sm:$0xff]  ;;  %v1634_v1 = vld [vmem:[#allocation11 + $0x11c8] sm:$0xff] }
 0x393   :  { %2801 = vmatprep.subr.mxu0 %v1346_v26  ;;  %2732 = vmatprep.subr.mxu1 %v1840_v3  ;;  %v1139_v26 = vld [vmem:[#allocation11 + $0x250] sm:$0xff]  ;;  %v1633_v3 = vld [vmem:[#allocation11 + $0x11c0] sm:$0xff] }
 0x394   :  { %2802 = vmatpush2.msra.mxu0 %v1345_v5  ;;  %2733 = vmatpush2.msra.mxu1 %v1839_v6  ;;  %v1124_v5 = vld [vmem:[#allocation11 + $0x1d8] sm:$0xff]  ;;  %v1618_v6 = vld [vmem:[#allocation11 + $0x1148] sm:$0xff] }
 0x395   :  { %2803 = vmatprep.subr.mxu0 %v1330_v7  ;;  %2735 = vmatmul.mubr.f32.vlgmr.msra.gmra.mxu1 %v9256_v4  ;;  %v1123_v7 = vld [vmem:[#allocation11 + $0x1d0] sm:$0xff] }
 0x396   :  { %2804 = vmatpush2.msra.mxu0 %v1329_v8  ;;  %2812 = vmatprep.subr.mxu1 %v1826_v9  ;;  %v1617_v8 = vld [vmem:[#allocation11 + $0x1140] sm:$0xff]  ;;  %v1108_v9 = vld [vmem:[#allocation11 + $0x158] sm:$0xff] }
 0x397   :  { %2806 = vmatmul.mubr.f32.vlgmr.msra.gmra.mxu0 %v9245_v38  ;;  %2813 = vmatpush1.msra.mxu1 %v1825_v10  ;;  %v1602_v10 = vld [vmem:[#allocation11 + $0x10c8] sm:$0xff] }
 0x398   :  { %2876 = vmatprep.mubr.f32.mxu1 %v9254_v2  ;;  %2883 = vmatprep.subr.mxu0 %v1316_v11  ;;  %v1107_v11 = vld [vmem:[#allocation11 + $0x150] sm:$0xff] }
 0x399   :  { %2814 = vmatprep.subr.mxu1 %v1810_v12  ;;  %2884 = vmatpush1.msra.mxu0 %v1315_v13  ;;  %v1601_v12 = vld [vmem:[#allocation11 + $0x10c0] sm:$0xff]  ;;  %v1092_v13 = vld [vmem:[#allocation11 + $0xd8] sm:$0xff] }
 0x39a   :  { %2947 = vmatprep.mubr.f32.mxu0 %v9243_v37  ;;  %2815 = vmatpush1.msra.mxu1 %v1809_v14  ;;  %v1586_v14 = vld [vmem:[#allocation11 + $0x1048] sm:$0xff] }
 0x39b   :  { %2885 = vmatprep.subr.mxu0 %v1300_v15  ;;  %2816 = vmatprep.subr.mxu1 %v1794_v16  ;;  %v1091_v15 = vld [vmem:[#allocation11 + $0xd0] sm:$0xff]  ;;  %v1585_v16 = vld [vmem:[#allocation11 + $0x1040] sm:$0xff] }
 0x39c   :  { %2886 = vmatpush1.msra.mxu0 %v1299_v17  ;;  %2817 = vmatpush1.msra.mxu1 %v1793_v18  ;;  %v1076_v17 = vld [vmem:[#allocation11 + $0x58] sm:$0xff]  ;;  %v2082_v18 = vld [vmem:[#allocation11 + $0x1fc8] sm:$0xff] }
 0x39d   :  { %2887 = vmatprep.subr.mxu0 %v1284_v19  ;;  %2818 = vmatprep.subr.mxu1 %v1778_v20  ;;  %v1075_v19 = vld [vmem:[#allocation11 + $0x50] sm:$0xff]  ;;  %v2081_v20 = vld [vmem:[#allocation11 + $0x1fc0] sm:$0xff] }
 0x39e   :  { %2888 = vmatpush1.msra.mxu0 %v1283_v21  ;;  %2819 = vmatpush1.msra.mxu1 %v1777_v22  ;;  %v1572_v21 = vld [vmem:[#allocation11 + $0xfd8] sm:$0xff]  ;;  %v2066_v22 = vld [vmem:[#allocation11 + $0x1f48] sm:$0xff] }
 0x39f   :  { %2889 = vmatprep.subr.mxu0 %v1268_v23  ;;  %2820 = vmatprep.subr.mxu1 %v1762_v24  ;;  %v1571_v23 = vld [vmem:[#allocation11 + $0xfd0] sm:$0xff]  ;;  %v2065_v24 = vld [vmem:[#allocation11 + $0x1f40] sm:$0xff] }
 0x3a0   :  { %2890 = vmatpush1.msra.mxu0 %v1267_v25  ;;  %2821 = vmatpush1.msra.mxu1 %v1761_v52  ;;  %v1556_v25 = vld [vmem:[#allocation11 + $0xf58] sm:$0xff]  ;;  %v2050_v52 = vld [vmem:[#allocation11 + $0x1ec8] sm:$0xff] }
 0x3a1   :  { %2891 = vmatprep.subr.mxu0 %v1252_v60  ;;  %2822 = vmatprep.subr.mxu1 %v1746_v51  ;;  %v1555_v60 = vld [vmem:[#allocation11 + $0xf50] sm:$0xff]  ;;  %v2049_v51 = vld [vmem:[#allocation11 + $0x1ec0] sm:$0xff] }
 0x3a2   :  { %2892 = vmatpush1.msra.mxu0 %v1251_v57  ;;  %2823 = vmatpush1.msra.mxu1 %v1745_v27  ;;  %v1540_v57 = vld [vmem:[#allocation11 + $0xed8] sm:$0xff]  ;;  %v2034_v27 = vld [vmem:[#allocation11 + $0x1e48] sm:$0xff] }
 0x3a3   :  { %2893 = vmatprep.subr.mxu0 %v1236_v28  ;;  %2824 = vmatprep.subr.mxu1 %v1730_v29  ;;  %v1539_v28 = vld [vmem:[#allocation11 + $0xed0] sm:$0xff]  ;;  %v2033_v29 = vld [vmem:[#allocation11 + $0x1e40] sm:$0xff] }
 0x3a4   :  { %2894 = vmatpush1.msra.mxu0 %v1235_v30  ;;  %2825 = vmatpush1.msra.mxu1 %v1729_v31  ;;  %v1524_v30 = vld [vmem:[#allocation11 + $0xe58] sm:$0xff]  ;;  %v2018_v31 = vld [vmem:[#allocation11 + $0x1dc8] sm:$0xff] }
 0x3a5   :  { %2895 = vmatprep.subr.mxu0 %v1220_v32  ;;  %2826 = vmatprep.subr.mxu1 %v1714_v33  ;;  %v1523_v32 = vld [vmem:[#allocation11 + $0xe50] sm:$0xff]  ;;  %v2017_v33 = vld [vmem:[#allocation11 + $0x1dc0] sm:$0xff] }
 0x3a6   :  { %2896 = vmatpush1.msra.mxu0 %v1219_v34  ;;  %2827 = vmatpush1.msra.mxu1 %v1713_v35  ;;  %v1508_v34 = vld [vmem:[#allocation11 + $0xdd8] sm:$0xff]  ;;  %v2002_v35 = vld [vmem:[#allocation11 + $0x1d48] sm:$0xff] }
 0x3a7   :  { %2897 = vmatprep.subr.mxu0 %v1204_v36  ;;  %2828 = vmatprep.subr.mxu1 %v1698_v42  ;;  %v1507_v36 = vld [vmem:[#allocation11 + $0xdd0] sm:$0xff]  ;;  %v2001_v42 = vld [vmem:[#allocation11 + $0x1d40] sm:$0xff] }
 0x3a8   :  { %2898 = vmatpush1.msra.mxu0 %v1203_v45  ;;  %2829 = vmatpush1.msra.mxu1 %v1697_v46  ;;  %v1492_v45 = vld [vmem:[#allocation11 + $0xd58] sm:$0xff]  ;;  %v1986_v46 = vld [vmem:[#allocation11 + $0x1cc8] sm:$0xff] }
 0x3a9   :  { %2899 = vmatprep.subr.mxu0 %v1188_v47  ;;  %2830 = vmatprep.subr.mxu1 %v1682_v48  ;;  %v1491_v47 = vld [vmem:[#allocation11 + $0xd50] sm:$0xff]  ;;  %v1985_v48 = vld [vmem:[#allocation11 + $0x1cc0] sm:$0xff] }
 0x3aa   :  { %2900 = vmatpush1.msra.mxu0 %v1187_v49  ;;  %2831 = vmatpush1.msra.mxu1 %v1681_v50  ;;  %v1476_v49 = vld [vmem:[#allocation11 + $0xcd8] sm:$0xff]  ;;  %v1970_v50 = vld [vmem:[#allocation11 + $0x1c48] sm:$0xff] }
 0x3ab   :  { %2901 = vmatprep.subr.mxu0 %v1172_v53  ;;  %2832 = vmatprep.subr.mxu1 %v1666_v54  ;;  %v1475_v53 = vld [vmem:[#allocation11 + $0xcd0] sm:$0xff]  ;;  %v1969_v54 = vld [vmem:[#allocation11 + $0x1c40] sm:$0xff] }
 0x3ac   :  { %2902 = vmatpush1.msra.mxu0 %v1171_v55  ;;  %2833 = vmatpush1.msra.mxu1 %v1665_v56  ;;  %v1460_v55 = vld [vmem:[#allocation11 + $0xc58] sm:$0xff]  ;;  %v1954_v56 = vld [vmem:[#allocation11 + $0x1bc8] sm:$0xff] }
 0x3ad   :  { %2903 = vmatprep.subr.mxu0 %v1156_v58  ;;  %2834 = vmatprep.subr.mxu1 %v1650_v59  ;;  %v1459_v58 = vld [vmem:[#allocation11 + $0xc50] sm:$0xff]  ;;  %v1953_v59 = vld [vmem:[#allocation11 + $0x1bc0] sm:$0xff] }
 0x3ae   :  { %2904 = vmatpush1.msra.mxu0 %v1155_v61  ;;  %2835 = vmatpush1.msra.mxu1 %v1649_v62  ;;  %v1444_v61 = vld [vmem:[#allocation11 + $0xbd8] sm:$0xff]  ;;  %v1938_v62 = vld [vmem:[#allocation11 + $0x1b48] sm:$0xff] }
 0x3af   :  { %2905 = vmatprep.subr.mxu0 %v1140_v63  ;;  %2836 = vmatprep.subr.mxu1 %v1634_v1  ;;  %v9275_v63 = vpop.f32.mrf.mxu0  ;;  %v1443_v1 = vld [vmem:[#allocation11 + $0xbd0] sm:$0xff] }
 0x3b0   :  { %2906 = vmatpush1.msra.mxu0 %v1139_v26  ;;  %2837 = vmatpush1.msra.mxu1 %v1633_v3  ;;  %v1937_v26 = vld [vmem:[#allocation11 + $0x1b40] sm:$0xff]  ;;  %v1428_v3 = vld [vmem:[#allocation11 + $0xb58] sm:$0xff] }
 0x3b1   :  { %2907 = vmatprep.subr.mxu0 %v1124_v5  ;;  %2838 = vmatprep.subr.mxu1 %v1618_v6  ;;  %v1922_v5 = vld [vmem:[#allocation11 + $0x1ac8] sm:$0xff]  ;;  %v1427_v6 = vld [vmem:[#allocation11 + $0xb50] sm:$0xff] }
 0x3b2   :  { %2908 = vmatpush1.msra.mxu0 %v1123_v7  ;;  %2839 = vmatpush1.msra.mxu1 %v1617_v8  ;;  %v1921_v7 = vld [vmem:[#allocation11 + $0x1ac0] sm:$0xff]  ;;  %v1412_v8 = vld [vmem:[#allocation11 + $0xad8] sm:$0xff] }
 0x3b3   :  { %2909 = vmatprep.subr.mxu0 %v1108_v9  ;;  %2840 = vmatprep.subr.mxu1 %v1602_v10  ;;  %v1906_v9 = vld [vmem:[#allocation11 + $0x1a48] sm:$0xff]  ;;  %v2089_v10 = vld [vmem:[#allocation13] sm:$0xff] }
 0x3b4   :  { %2910 = vmatpush1.msra.mxu0 %v1107_v11  ;;  %2841 = vmatpush1.msra.mxu1 %v1601_v12  ;;  %v9277_v11 = vpop.f32.mrf.mxu0  ;;  %v9279_v12 = vpop.f32.mrf.mxu1 }
 0x3b5   :  { %2911 = vmatprep.subr.mxu0 %v1092_v13  ;;  %2842 = vmatprep.subr.mxu1 %v1586_v14  ;;  %v1411_v13 = vld [vmem:[#allocation11 + $0xad0] sm:$0xff]  ;;  %v1905_v14 = vld [vmem:[#allocation11 + $0x1a40] sm:$0xff] }
 0x3b6   :  { %2912 = vmatpush1.msra.mxu0 %v1091_v15  ;;  %2843 = vmatpush1.msra.mxu1 %v1585_v16  ;;  %v2104_v15 = vrot.slane %v2089_v10, %v9208_v40  ;;  %v1396_v16 = vld [vmem:[#allocation11 + $0xa58] sm:$0xff]  ;;  %v1237_v10 = vld [vmem:[#allocation11 + $0x560] sm:$0xff] }
 0x3b7   :  { %2913 = vmatprep.subr.mxu0 %v1076_v17  ;;  %2844 = vmatprep.subr.mxu1 %v2082_v18  ;;  %v1890_v17 = vld [vmem:[#allocation11 + $0x19c8] sm:$0xff]  ;;  %v2381_v18 = vpop.f32.mrf.mxu0 }
 0x3b8   :  { %2914 = vmatpush1.msra.mxu0 %v1075_v19  ;;  %2845 = vmatpush2.msra.mxu1 %v2081_v20  ;;  %v1395_v19 = vld [vmem:[#allocation11 + $0xa50] sm:$0xff]  ;;  %v1889_v20 = vld [vmem:[#allocation11 + $0x19c0] sm:$0xff] }
 0x3b9   :  { %2915 = vmatprep.subr.mxu0 %v1572_v21  ;;  %2846 = vmatprep.subr.mxu1 %v2066_v22  ;;  %v1380_v21 = vld [vmem:[#allocation11 + $0x9d8] sm:$0xff]  ;;  %v1874_v22 = vld [vmem:[#allocation11 + $0x1948] sm:$0xff] }
 0x3ba   :  { %2916 = vmatpush2.msra.mxu0 %v1571_v23  ;;  %2847 = vmatpush2.msra.mxu1 %v2065_v24  ;;  %v9282_v23 = vpop.f32.mrf.mxu1  ;;  %v1379_v24 = vld [vmem:[#allocation11 + $0x9d0] sm:$0xff] }
 0x3bb   :  { %2917 = vmatprep.subr.mxu0 %v1556_v25  ;;  %2848 = vmatprep.subr.mxu1 %v2050_v52  ;;  %v1873_v25 = vld [vmem:[#allocation11 + $0x1940] sm:$0xff]  ;;  %v2382_v52 = vadd.f32 %v2381_v18, %v2104_v15  ;;  %v1716_v15 = vld [vmem:[#allocation11 + $0x1458] sm:$0xff]  ;;  %v1206_v18 = vld [vmem:[#allocation11 + $0x468] sm:$0xff] }
 0x3bc   :  { %2918 = vmatpush2.msra.mxu0 %v1555_v60  ;;  %2849 = vmatpush2.msra.mxu1 %v2049_v51  ;;  %v1364_v60 = vld [vmem:[#allocation11 + $0x958] sm:$0xff]  ;;  %v1858_v51 = vld [vmem:[#allocation11 + $0x18c8] sm:$0xff] }
 0x3bd   :  { %2919 = vmatprep.subr.mxu0 %v1540_v57  ;;  %2850 = vmatprep.subr.mxu1 %v2034_v27  ;;  %v1363_v57 = vld [vmem:[#allocation11 + $0x950] sm:$0xff]  ;;  %v1857_v27 = vld [vmem:[#allocation11 + $0x18c0] sm:$0xff] }
 0x3be   :  { %2920 = vmatpush2.msra.mxu0 %v1539_v28  ;;  %2851 = vmatpush2.msra.mxu1 %v2033_v29  ;;  %v1348_v29 = vld [vmem:[#allocation11 + $0x8d8] sm:$0xff] }
 0x3bf   :  { %2921 = vmatprep.subr.mxu0 %v1524_v30  ;;  %2852 = vmatprep.subr.mxu1 %v2018_v31  ;;  %v1842_v30 = vld [vmem:[#allocation11 + $0x1848] sm:$0xff] }
 0x3c0   :  { %2922 = vmatpush2.msra.mxu0 %v1523_v32  ;;  %2853 = vmatpush2.msra.mxu1 %v2017_v33  ;;  %v1347_v32 = vld [vmem:[#allocation11 + $0x8d0] sm:$0xff]  ;;  %v1841_v33 = vld [vmem:[#allocation11 + $0x1840] sm:$0xff] }
 0x3c1   :  { %2923 = vmatprep.subr.mxu0 %v1508_v34  ;;  %2854 = vmatprep.subr.mxu1 %v2002_v35  ;;  %v1332_v34 = vld [vmem:[#allocation11 + $0x858] sm:$0xff]  ;;  %v1331_v35 = vld [vmem:[#allocation11 + $0x850] sm:$0xff] }
 0x3c2   :  { %2924 = vmatpush2.msra.mxu0 %v1507_v36  ;;  %2855 = vmatpush2.msra.mxu1 %v2001_v42  ;;  %v1828_v36 = vld [vmem:[#allocation11 + $0x17d8] sm:$0xff]  ;;  %v1827_v42 = vld [vmem:[#allocation11 + $0x17d0] sm:$0xff] }
 0x3c3   :  { %2925 = vmatprep.subr.mxu0 %v1492_v45  ;;  %2856 = vmatprep.subr.mxu1 %v1986_v46  ;;  %v1318_v45 = vld [vmem:[#allocation11 + $0x7e8] sm:$0xff]  ;;  %v1812_v46 = vld [vmem:[#allocation11 + $0x1758] sm:$0xff] }
 0x3c4   :  { %2926 = vmatpush2.msra.mxu0 %v1491_v47  ;;  %2857 = vmatpush2.msra.mxu1 %v1985_v48  ;;  %v1317_v47 = vld [vmem:[#allocation11 + $0x7e0] sm:$0xff]  ;;  %v1811_v48 = vld [vmem:[#allocation11 + $0x1750] sm:$0xff] }
 0x3c5   :  { %2927 = vmatprep.subr.mxu0 %v1476_v49  ;;  %2858 = vmatprep.subr.mxu1 %v1970_v50  ;;  %v1302_v49 = vld [vmem:[#allocation11 + $0x768] sm:$0xff]  ;;  %v1796_v50 = vld [vmem:[#allocation11 + $0x16d8] sm:$0xff] }
 0x3c6   :  { %2928 = vmatpush2.msra.mxu0 %v1475_v53  ;;  %2859 = vmatpush2.msra.mxu1 %v1969_v54  ;;  %v1301_v53 = vld [vmem:[#allocation11 + $0x760] sm:$0xff]  ;;  %v1795_v54 = vld [vmem:[#allocation11 + $0x16d0] sm:$0xff] }
 0x3c7   :  { %2929 = vmatprep.subr.mxu0 %v1460_v55  ;;  %2860 = vmatprep.subr.mxu1 %v1954_v56  ;;  %v1286_v55 = vld [vmem:[#allocation11 + $0x6e8] sm:$0xff]  ;;  %v1780_v56 = vld [vmem:[#allocation11 + $0x1658] sm:$0xff] }
 0x3c8   :  { %2930 = vmatpush2.msra.mxu0 %v1459_v58  ;;  %2861 = vmatpush2.msra.mxu1 %v1953_v59  ;;  %v1285_v58 = vld [vmem:[#allocation11 + $0x6e0] sm:$0xff]  ;;  %v1779_v59 = vld [vmem:[#allocation11 + $0x1650] sm:$0xff] }
 0x3c9   :  { %2931 = vmatprep.subr.mxu0 %v1444_v61  ;;  %2862 = vmatprep.subr.mxu1 %v1938_v62  ;;  %v1270_v61 = vld [vmem:[#allocation11 + $0x668] sm:$0xff]  ;;  %v1764_v62 = vld [vmem:[#allocation11 + $0x15d8] sm:$0xff] }
 0x3ca   :  { %2932 = vmatpush2.msra.mxu0 %v1443_v1  ;;  %2863 = vmatpush2.msra.mxu1 %v1937_v26  ;;  %v1269_v1 = vld [vmem:[#allocation11 + $0x660] sm:$0xff]  ;;  %v1763_v26 = vld [vmem:[#allocation11 + $0x15d0] sm:$0xff] }
 0x3cb   :  { %2933 = vmatprep.subr.mxu0 %v1428_v3  ;;  %2864 = vmatprep.subr.mxu1 %v1922_v5  ;;  %v1254_v3 = vld [vmem:[#allocation11 + $0x5e8] sm:$0xff]  ;;  %v1748_v5 = vld [vmem:[#allocation11 + $0x1558] sm:$0xff] }
 0x3cc   :  { %2934 = vmatpush2.msra.mxu0 %v1427_v6  ;;  %2865 = vmatpush2.msra.mxu1 %v1921_v7  ;;  %v1253_v6 = vld [vmem:[#allocation11 + $0x5e0] sm:$0xff]  ;;  %v1747_v7 = vld [vmem:[#allocation11 + $0x1550] sm:$0xff] }
 0x3cd   :  { %2935 = vmatprep.subr.mxu0 %v1412_v8  ;;  %2866 = vmatprep.subr.mxu1 %v1906_v9  ;;  %v1238_v8 = vld [vmem:[#allocation11 + $0x568] sm:$0xff]  ;;  %v1732_v9 = vld [vmem:[#allocation11 + $0x14d8] sm:$0xff] }
 0x3ce   :  { %2936 = vmatpush2.msra.mxu0 %v1411_v13  ;;  %2867 = vmatpush2.msra.mxu1 %v1905_v14  ;;  %v1731_v13 = vld [vmem:[#allocation11 + $0x14d0] sm:$0xff]  ;;  %v1222_v14 = vld [vmem:[#allocation11 + $0x4e8] sm:$0xff] }
 0x3cf   :  { %2937 = vmatprep.subr.mxu0 %v1396_v16  ;;  %2868 = vmatprep.subr.mxu1 %v1890_v17  ;;  %v1221_v16 = vld [vmem:[#allocation11 + $0x4e0] sm:$0xff]  ;;  %v1715_v17 = vld [vmem:[#allocation11 + $0x1450] sm:$0xff] }
 0x3d0   :  { %2938 = vmatpush2.msra.mxu0 %v1395_v19  ;;  %2869 = vmatpush2.msra.mxu1 %v1889_v20  ;;  %v1700_v19 = vld [vmem:[#allocation11 + $0x13d8] sm:$0xff]  ;;  %v1205_v20 = vld [vmem:[#allocation11 + $0x460] sm:$0xff] }
 0x3d1   :  { %2939 = vmatprep.subr.mxu0 %v1380_v21  ;;  %2870 = vmatprep.subr.mxu1 %v1874_v22  ;;  %v2452_v28 = vpop.f32.mrf.mxu1  ;;  %v1699_v21 = vld [vmem:[#allocation11 + $0x13d0] sm:$0xff]  ;;  %v1190_v22 = vld [vmem:[#allocation11 + $0x3e8] sm:$0xff] }
 0x3d2   :  { %2940 = vmatpush2.msra.mxu0 %v1379_v24  ;;  %2871 = vmatpush2.msra.mxu1 %v1873_v25  ;;  %v9284_v31 = vadd.f32 %v2452_v28, %v2382_v52  ;;  %v1684_v24 = vld [vmem:[#allocation11 + $0x1358] sm:$0xff]  ;;  %v1189_v25 = vld [vmem:[#allocation11 + $0x3e0] sm:$0xff]  ;;  %v1683_v52 = vld [vmem:[#allocation11 + $0x1350] sm:$0xff] }
 0x3d3   :  { %2941 = vmatprep.subr.mxu0 %v1364_v60  ;;  %2872 = vmatprep.subr.mxu1 %v1858_v51  ;;  %v1174_v60 = vld [vmem:[#allocation11 + $0x368] sm:$0xff]  ;;  %v1668_v51 = vld [vmem:[#allocation11 + $0x12d8] sm:$0xff] }
 0x3d4   :  { %2942 = vmatpush2.msra.mxu0 %v1363_v57  ;;  %2873 = vmatpush2.msra.mxu1 %v1857_v27  ;;  %v1173_v57 = vld [vmem:[#allocation11 + $0x360] sm:$0xff]  ;;  %v1667_v27 = vld [vmem:[#allocation11 + $0x12d0] sm:$0xff]  ;;  %v1158_v28 = vld [vmem:[#allocation11 + $0x2e8] sm:$0xff] }
 0x3d5   :  { %2943 = vmatprep.subr.mxu0 %v1348_v29  ;;  %2874 = vmatprep.subr.mxu1 %v1842_v30  ;;  %v1652_v29 = vld [vmem:[#allocation11 + $0x1258] sm:$0xff]  ;;  %v1157_v30 = vld [vmem:[#allocation11 + $0x2e0] sm:$0xff] }
 0x3d6   :  { %2944 = vmatpush2.msra.mxu0 %v1347_v32  ;;  %2875 = vmatpush2.msra.mxu1 %v1841_v33  ;;  %v1651_v32 = vld [vmem:[#allocation11 + $0x1250] sm:$0xff]  ;;  %v1142_v33 = vld [vmem:[#allocation11 + $0x268] sm:$0xff] }
 0x3d7   :  { %2945 = vmatprep.subr.mxu0 %v1332_v34  ;;  %2877 = vmatmul.mubr.f32.vlgmr.msra.gmra.mxu1 %v9256_v4  ;;  %v1636_v34 = vld [vmem:[#allocation11 + $0x11d8] sm:$0xff] }
 0x3d8   :  { %2946 = vmatpush2.msra.mxu0 %v1331_v35  ;;  %2954 = vmatprep.subr.mxu1 %v1828_v36  ;;  %v1141_v35 = vld [vmem:[#allocation11 + $0x260] sm:$0xff]  ;;  %v1635_v36 = vld [vmem:[#allocation11 + $0x11d0] sm:$0xff] }
 0x3d9   :  { %2948 = vmatmul.mubr.f32.vlgmr.msra.gmra.mxu0 %v9245_v38  ;;  %2955 = vmatpush1.msra.mxu1 %v1827_v42  ;;  %v1126_v42 = vld [vmem:[#allocation11 + $0x1e8] sm:$0xff] }
 0x3da   :  { %3018 = vmatprep.mubr.f32.mxu1 %v9254_v2  ;;  %3025 = vmatprep.subr.mxu0 %v1318_v45  ;;  %v1620_v45 = vld [vmem:[#allocation11 + $0x1158] sm:$0xff] }
 0x3db   :  { %2956 = vmatprep.subr.mxu1 %v1812_v46  ;;  %3026 = vmatpush1.msra.mxu0 %v1317_v47  ;;  %v1125_v46 = vld [vmem:[#allocation11 + $0x1e0] sm:$0xff]  ;;  %v1619_v47 = vld [vmem:[#allocation11 + $0x1150] sm:$0xff] }
 0x3dc   :  { %3089 = vmatprep.mubr.f32.mxu0 %v9243_v37  ;;  %2957 = vmatpush1.msra.mxu1 %v1811_v48  ;;  %v1110_v48 = vld [vmem:[#allocation11 + $0x168] sm:$0xff] }
 0x3dd   :  { %3027 = vmatprep.subr.mxu0 %v1302_v49  ;;  %2958 = vmatprep.subr.mxu1 %v1796_v50  ;;  %v1604_v49 = vld [vmem:[#allocation11 + $0x10d8] sm:$0xff]  ;;  %v1109_v50 = vld [vmem:[#allocation11 + $0x160] sm:$0xff] }
 0x3de   :  { %3028 = vmatpush1.msra.mxu0 %v1301_v53  ;;  %2959 = vmatpush1.msra.mxu1 %v1795_v54  ;;  %v1603_v53 = vld [vmem:[#allocation11 + $0x10d0] sm:$0xff]  ;;  %v1094_v54 = vld [vmem:[#allocation11 + $0xe8] sm:$0xff] }
 0x3df   :  { %3029 = vmatprep.subr.mxu0 %v1286_v55  ;;  %2960 = vmatprep.subr.mxu1 %v1780_v56  ;;  %v1588_v55 = vld [vmem:[#allocation11 + $0x1058] sm:$0xff]  ;;  %v1093_v56 = vld [vmem:[#allocation11 + $0xe0] sm:$0xff] }
 0x3e0   :  { %3030 = vmatpush1.msra.mxu0 %v1285_v58  ;;  %2961 = vmatpush1.msra.mxu1 %v1779_v59  ;;  %v1587_v58 = vld [vmem:[#allocation11 + $0x1050] sm:$0xff]  ;;  %v1078_v59 = vld [vmem:[#allocation11 + $0x68] sm:$0xff] }
 0x3e1   :  { %3031 = vmatprep.subr.mxu0 %v1270_v61  ;;  %2962 = vmatprep.subr.mxu1 %v1764_v62  ;;  %v2084_v61 = vld [vmem:[#allocation11 + $0x1fd8] sm:$0xff]  ;;  %v1077_v62 = vld [vmem:[#allocation11 + $0x60] sm:$0xff] }
 0x3e2   :  { %3032 = vmatpush1.msra.mxu0 %v1269_v1  ;;  %2963 = vmatpush1.msra.mxu1 %v1763_v26  ;;  %v2083_v1 = vld [vmem:[#allocation11 + $0x1fd0] sm:$0xff]  ;;  %v1574_v26 = vld [vmem:[#allocation11 + $0xfe8] sm:$0xff] }
 0x3e3   :  { %3033 = vmatprep.subr.mxu0 %v1254_v3  ;;  %2964 = vmatprep.subr.mxu1 %v1748_v5  ;;  %v2068_v3 = vld [vmem:[#allocation11 + $0x1f58] sm:$0xff]  ;;  %v1573_v5 = vld [vmem:[#allocation11 + $0xfe0] sm:$0xff] }
 0x3e4   :  { %3034 = vmatpush1.msra.mxu0 %v1253_v6  ;;  %2965 = vmatpush1.msra.mxu1 %v1747_v7  ;;  %v2067_v6 = vld [vmem:[#allocation11 + $0x1f50] sm:$0xff]  ;;  %v1558_v7 = vld [vmem:[#allocation11 + $0xf68] sm:$0xff] }
 0x3e5   :  { %3035 = vmatprep.subr.mxu0 %v1238_v8  ;;  %2966 = vmatprep.subr.mxu1 %v1732_v9  ;;  %v2052_v8 = vld [vmem:[#allocation11 + $0x1ed8] sm:$0xff]  ;;  %v1557_v9 = vld [vmem:[#allocation11 + $0xf60] sm:$0xff] }
 0x3e6   :  { %3036 = vmatpush1.msra.mxu0 %v1237_v10  ;;  %2967 = vmatpush1.msra.mxu1 %v1731_v13  ;;  %v2051_v10 = vld [vmem:[#allocation11 + $0x1ed0] sm:$0xff]  ;;  %v1542_v13 = vld [vmem:[#allocation11 + $0xee8] sm:$0xff] }
 0x3e7   :  { %3037 = vmatprep.subr.mxu0 %v1222_v14  ;;  %2968 = vmatprep.subr.mxu1 %v1716_v15  ;;  %v2036_v14 = vld [vmem:[#allocation11 + $0x1e58] sm:$0xff]  ;;  %v1541_v15 = vld [vmem:[#allocation11 + $0xee0] sm:$0xff] }
 0x3e8   :  { %3038 = vmatpush1.msra.mxu0 %v1221_v16  ;;  %2969 = vmatpush1.msra.mxu1 %v1715_v17  ;;  %v2035_v16 = vld [vmem:[#allocation11 + $0x1e50] sm:$0xff]  ;;  %v1526_v17 = vld [vmem:[#allocation11 + $0xe68] sm:$0xff] }
 0x3e9   :  { %3039 = vmatprep.subr.mxu0 %v1206_v18  ;;  %2970 = vmatprep.subr.mxu1 %v1700_v19  ;;  %v2020_v18 = vld [vmem:[#allocation11 + $0x1dd8] sm:$0xff]  ;;  %v1525_v19 = vld [vmem:[#allocation11 + $0xe60] sm:$0xff] }
 0x3ea   :  { %3040 = vmatpush1.msra.mxu0 %v1205_v20  ;;  %2971 = vmatpush1.msra.mxu1 %v1699_v21  ;;  %v2019_v20 = vld [vmem:[#allocation11 + $0x1dd0] sm:$0xff]  ;;  %v1510_v21 = vld [vmem:[#allocation11 + $0xde8] sm:$0xff] }
 0x3eb   :  { %3041 = vmatprep.subr.mxu0 %v1190_v22  ;;  %2972 = vmatprep.subr.mxu1 %v1684_v24  ;;  %v2004_v22 = vld [vmem:[#allocation11 + $0x1d58] sm:$0xff]  ;;  %v1509_v24 = vld [vmem:[#allocation11 + $0xde0] sm:$0xff] }
 0x3ec   :  { %3042 = vmatpush1.msra.mxu0 %v1189_v25  ;;  %2973 = vmatpush1.msra.mxu1 %v1683_v52  ;;  %v2003_v25 = vld [vmem:[#allocation11 + $0x1d50] sm:$0xff]  ;;  %v1494_v52 = vld [vmem:[#allocation11 + $0xd68] sm:$0xff] }
 0x3ed   :  { %3043 = vmatprep.subr.mxu0 %v1174_v60  ;;  %2974 = vmatprep.subr.mxu1 %v1668_v51  ;;  %v1988_v60 = vld [vmem:[#allocation11 + $0x1cd8] sm:$0xff]  ;;  %v1493_v51 = vld [vmem:[#allocation11 + $0xd60] sm:$0xff] }
 0x3ee   :  { %3044 = vmatpush1.msra.mxu0 %v1173_v57  ;;  %2975 = vmatpush1.msra.mxu1 %v1667_v27  ;;  %v1987_v57 = vld [vmem:[#allocation11 + $0x1cd0] sm:$0xff]  ;;  %v1478_v27 = vld [vmem:[#allocation11 + $0xce8] sm:$0xff] }
 0x3ef   :  { %3045 = vmatprep.subr.mxu0 %v1158_v28  ;;  %2976 = vmatprep.subr.mxu1 %v1652_v29  ;;  %v1972_v28 = vld [vmem:[#allocation11 + $0x1c58] sm:$0xff]  ;;  %v1477_v29 = vld [vmem:[#allocation11 + $0xce0] sm:$0xff] }
 0x3f0   :  { %3046 = vmatpush1.msra.mxu0 %v1157_v30  ;;  %2977 = vmatpush1.msra.mxu1 %v1651_v32  ;;  %v1971_v30 = vld [vmem:[#allocation11 + $0x1c50] sm:$0xff]  ;;  %v1462_v32 = vld [vmem:[#allocation11 + $0xc68] sm:$0xff] }
 0x3f1   :  { %3047 = vmatprep.subr.mxu0 %v1142_v33  ;;  %2978 = vmatprep.subr.mxu1 %v1636_v34  ;;  %v1956_v33 = vld [vmem:[#allocation11 + $0x1bd8] sm:$0xff]  ;;  %v1461_v34 = vld [vmem:[#allocation11 + $0xc60] sm:$0xff] }
 0x3f2   :  { %3048 = vmatpush1.msra.mxu0 %v1141_v35  ;;  %2979 = vmatpush1.msra.mxu1 %v1635_v36  ;;  %v1955_v35 = vld [vmem:[#allocation11 + $0x1bd0] sm:$0xff]  ;;  %v1446_v36 = vld [vmem:[#allocation11 + $0xbe8] sm:$0xff] }
 0x3f3   :  { %3049 = vmatprep.subr.mxu0 %v1126_v42  ;;  %2980 = vmatprep.subr.mxu1 %v1620_v45  ;;  %v1940_v42 = vld [vmem:[#allocation11 + $0x1b58] sm:$0xff]  ;;  %v1445_v45 = vld [vmem:[#allocation11 + $0xbe0] sm:$0xff] }
 0x3f4   :  { %3050 = vmatpush1.msra.mxu0 %v1125_v46  ;;  %2981 = vmatpush1.msra.mxu1 %v1619_v47  ;;  %v1939_v46 = vld [vmem:[#allocation11 + $0x1b50] sm:$0xff]  ;;  %v1430_v47 = vld [vmem:[#allocation11 + $0xb68] sm:$0xff] }
 0x3f5   :  { %3051 = vmatprep.subr.mxu0 %v1110_v48  ;;  %2982 = vmatprep.subr.mxu1 %v1604_v49  ;;  %v1924_v48 = vld [vmem:[#allocation11 + $0x1ad8] sm:$0xff]  ;;  %v1429_v49 = vld [vmem:[#allocation11 + $0xb60] sm:$0xff] }
 0x3f6   :  { %3052 = vmatpush1.msra.mxu0 %v1109_v50  ;;  %2983 = vmatpush1.msra.mxu1 %v1603_v53  ;;  %v1923_v50 = vld [vmem:[#allocation11 + $0x1ad0] sm:$0xff]  ;;  %v1414_v53 = vld [vmem:[#allocation11 + $0xae8] sm:$0xff] }
 0x3f7   :  { %3053 = vmatprep.subr.mxu0 %v1094_v54  ;;  %2984 = vmatprep.subr.mxu1 %v1588_v55  ;;  %v1908_v54 = vld [vmem:[#allocation11 + $0x1a58] sm:$0xff]  ;;  %v1413_v55 = vld [vmem:[#allocation11 + $0xae0] sm:$0xff] }
 0x3f8   :  { %3054 = vmatpush1.msra.mxu0 %v1093_v56  ;;  %2985 = vmatpush1.msra.mxu1 %v1587_v58  ;;  %v1907_v56 = vld [vmem:[#allocation11 + $0x1a50] sm:$0xff]  ;;  %v1398_v58 = vld [vmem:[#allocation11 + $0xa68] sm:$0xff] }
 0x3f9   :  { %3055 = vmatprep.subr.mxu0 %v1078_v59  ;;  %2986 = vmatprep.subr.mxu1 %v2084_v61  ;;  %v1892_v59 = vld [vmem:[#allocation11 + $0x19d8] sm:$0xff]  ;;  %v1397_v61 = vld [vmem:[#allocation11 + $0xa60] sm:$0xff] }
 0x3fa   :  { %3056 = vmatpush1.msra.mxu0 %v1077_v62  ;;  %2987 = vmatpush2.msra.mxu1 %v2083_v1  ;;  %v1891_v62 = vld [vmem:[#allocation11 + $0x19d0] sm:$0xff]  ;;  %v1382_v1 = vld [vmem:[#allocation11 + $0x9e8] sm:$0xff] }
 0x3fb   :  { %3057 = vmatprep.subr.mxu0 %v1574_v26  ;;  %2988 = vmatprep.subr.mxu1 %v2068_v3  ;;  %v1876_v26 = vld [vmem:[#allocation11 + $0x1958] sm:$0xff]  ;;  %v1381_v3 = vld [vmem:[#allocation11 + $0x9e0] sm:$0xff] }
 0x3fc   :  { %3058 = vmatpush2.msra.mxu0 %v1573_v5  ;;  %2989 = vmatpush2.msra.mxu1 %v2067_v6  ;;  %v1875_v5 = vld [vmem:[#allocation11 + $0x1950] sm:$0xff]  ;;  %v1366_v6 = vld [vmem:[#allocation11 + $0x968] sm:$0xff] }
 0x3fd   :  { %3059 = vmatprep.subr.mxu0 %v1558_v7  ;;  %2990 = vmatprep.subr.mxu1 %v2052_v8  ;;  %v1860_v7 = vld [vmem:[#allocation11 + $0x18d8] sm:$0xff]  ;;  %v1365_v8 = vld [vmem:[#allocation11 + $0x960] sm:$0xff] }
 0x3fe   :  { %3060 = vmatpush2.msra.mxu0 %v1557_v9  ;;  %2991 = vmatpush2.msra.mxu1 %v2051_v10  ;;  %v1859_v9 = vld [vmem:[#allocation11 + $0x18d0] sm:$0xff]  ;;  %v1350_v10 = vld [vmem:[#allocation11 + $0x8e8] sm:$0xff] }
 0x3ff   :  { %3061 = vmatprep.subr.mxu0 %v1542_v13  ;;  %2992 = vmatprep.subr.mxu1 %v2036_v14  ;;  %v1844_v13 = vld [vmem:[#allocation11 + $0x1858] sm:$0xff]  ;;  %v1349_v14 = vld [vmem:[#allocation11 + $0x8e0] sm:$0xff] }
 0x400   :  { %3062 = vmatpush2.msra.mxu0 %v1541_v15  ;;  %2993 = vmatpush2.msra.mxu1 %v2035_v16  ;;  %v1843_v15 = vld [vmem:[#allocation11 + $0x1850] sm:$0xff]  ;;  %v1334_v16 = vld [vmem:[#allocation11 + $0x868] sm:$0xff] }
 0x401   :  { %3063 = vmatprep.subr.mxu0 %v1526_v17  ;;  %2994 = vmatprep.subr.mxu1 %v2020_v18  ;;  %v1333_v17 = vld [vmem:[#allocation11 + $0x860] sm:$0xff]  ;;  %v1830_v18 = vld [vmem:[#allocation11 + $0x17e8] sm:$0xff] }
 0x402   :  { %3064 = vmatpush2.msra.mxu0 %v1525_v19  ;;  %2995 = vmatpush2.msra.mxu1 %v2019_v20  ;;  %v1829_v19 = vld [vmem:[#allocation11 + $0x17e0] sm:$0xff]  ;;  %v1320_v20 = vld [vmem:[#allocation11 + $0x7f8] sm:$0xff] }
 0x403   :  { %3065 = vmatprep.subr.mxu0 %v1510_v21  ;;  %2996 = vmatprep.subr.mxu1 %v2004_v22  ;;  %v1814_v21 = vld [vmem:[#allocation11 + $0x1768] sm:$0xff]  ;;  %v1319_v22 = vld [vmem:[#allocation11 + $0x7f0] sm:$0xff] }
 0x404   :  { %3066 = vmatpush2.msra.mxu0 %v1509_v24  ;;  %2997 = vmatpush2.msra.mxu1 %v2003_v25  ;;  %v1813_v24 = vld [vmem:[#allocation11 + $0x1760] sm:$0xff]  ;;  %v1304_v25 = vld [vmem:[#allocation11 + $0x778] sm:$0xff] }
 0x405   :  { %3067 = vmatprep.subr.mxu0 %v1494_v52  ;;  %2998 = vmatprep.subr.mxu1 %v1988_v60  ;;  %v1798_v52 = vld [vmem:[#allocation11 + $0x16e8] sm:$0xff]  ;;  %v1303_v60 = vld [vmem:[#allocation11 + $0x770] sm:$0xff] }
 0x406   :  { %3068 = vmatpush2.msra.mxu0 %v1493_v51  ;;  %2999 = vmatpush2.msra.mxu1 %v1987_v57  ;;  %v1797_v51 = vld [vmem:[#allocation11 + $0x16e0] sm:$0xff]  ;;  %v1288_v57 = vld [vmem:[#allocation11 + $0x6f8] sm:$0xff] }
 0x407   :  { %3069 = vmatprep.subr.mxu0 %v1478_v27  ;;  %3000 = vmatprep.subr.mxu1 %v1972_v28  ;;  %v1782_v27 = vld [vmem:[#allocation11 + $0x1668] sm:$0xff]  ;;  %v1287_v28 = vld [vmem:[#allocation11 + $0x6f0] sm:$0xff] }
 0x408   :  { %3070 = vmatpush2.msra.mxu0 %v1477_v29  ;;  %3001 = vmatpush2.msra.mxu1 %v1971_v30  ;;  %v1781_v29 = vld [vmem:[#allocation11 + $0x1660] sm:$0xff]  ;;  %v1272_v30 = vld [vmem:[#allocation11 + $0x678] sm:$0xff] }
 0x409   :  { %3071 = vmatprep.subr.mxu0 %v1462_v32  ;;  %3002 = vmatprep.subr.mxu1 %v1956_v33  ;;  %v1766_v32 = vld [vmem:[#allocation11 + $0x15e8] sm:$0xff]  ;;  %v1271_v33 = vld [vmem:[#allocation11 + $0x670] sm:$0xff] }
 0x40a   :  { %3072 = vmatpush2.msra.mxu0 %v1461_v34  ;;  %3003 = vmatpush2.msra.mxu1 %v1955_v35  ;;  %v1765_v34 = vld [vmem:[#allocation11 + $0x15e0] sm:$0xff]  ;;  %v1256_v35 = vld [vmem:[#allocation11 + $0x5f8] sm:$0xff] }
 0x40b   :  { %3073 = vmatprep.subr.mxu0 %v1446_v36  ;;  %3004 = vmatprep.subr.mxu1 %v1940_v42  ;;  %v1750_v36 = vld [vmem:[#allocation11 + $0x1568] sm:$0xff]  ;;  %v1749_v42 = vld [vmem:[#allocation11 + $0x1560] sm:$0xff] }
 0x40c   :  { %3074 = vmatpush2.msra.mxu0 %v1445_v45  ;;  %3005 = vmatpush2.msra.mxu1 %v1939_v46  ;;  %v1240_v45 = vld [vmem:[#allocation11 + $0x578] sm:$0xff]  ;;  %v1734_v46 = vld [vmem:[#allocation11 + $0x14e8] sm:$0xff] }
 0x40d   :  { %3075 = vmatprep.subr.mxu0 %v1430_v47  ;;  %3006 = vmatprep.subr.mxu1 %v1924_v48  ;;  %v1239_v47 = vld [vmem:[#allocation11 + $0x570] sm:$0xff]  ;;  %v1733_v48 = vld [vmem:[#allocation11 + $0x14e0] sm:$0xff] }
 0x40e   :  { %3076 = vmatpush2.msra.mxu0 %v1429_v49  ;;  %3007 = vmatpush2.msra.mxu1 %v1923_v50  ;;  %v1224_v49 = vld [vmem:[#allocation11 + $0x4f8] sm:$0xff]  ;;  %v1718_v50 = vld [vmem:[#allocation11 + $0x1468] sm:$0xff] }
 0x40f   :  { %3077 = vmatprep.subr.mxu0 %v1414_v53  ;;  %3008 = vmatprep.subr.mxu1 %v1908_v54  ;;  %v1223_v53 = vld [vmem:[#allocation11 + $0x4f0] sm:$0xff]  ;;  %v1717_v54 = vld [vmem:[#allocation11 + $0x1460] sm:$0xff] }
 0x410   :  { %3078 = vmatpush2.msra.mxu0 %v1413_v55  ;;  %3009 = vmatpush2.msra.mxu1 %v1907_v56  ;;  %v1208_v55 = vld [vmem:[#allocation11 + $0x478] sm:$0xff]  ;;  %v1702_v56 = vld [vmem:[#allocation11 + $0x13e8] sm:$0xff] }
 0x411   :  { %3079 = vmatprep.subr.mxu0 %v1398_v58  ;;  %3010 = vmatprep.subr.mxu1 %v1892_v59  ;;  %v1207_v58 = vld [vmem:[#allocation11 + $0x470] sm:$0xff]  ;;  %v1701_v59 = vld [vmem:[#allocation11 + $0x13e0] sm:$0xff] }
 0x412   :  { %3080 = vmatpush2.msra.mxu0 %v1397_v61  ;;  %3011 = vmatpush2.msra.mxu1 %v1891_v62  ;;  %v1192_v61 = vld [vmem:[#allocation11 + $0x3f8] sm:$0xff]  ;;  %v1686_v62 = vld [vmem:[#allocation11 + $0x1368] sm:$0xff] }
 0x413   :  { %3081 = vmatprep.subr.mxu0 %v1382_v1  ;;  %3012 = vmatprep.subr.mxu1 %v1876_v26  ;;  %v1191_v1 = vld [vmem:[#allocation11 + $0x3f0] sm:$0xff]  ;;  %v1685_v26 = vld [vmem:[#allocation11 + $0x1360] sm:$0xff] }
 0x414   :  { %3082 = vmatpush2.msra.mxu0 %v1381_v3  ;;  %3013 = vmatpush2.msra.mxu1 %v1875_v5  ;;  %v1176_v3 = vld [vmem:[#allocation11 + $0x378] sm:$0xff]  ;;  %v1670_v5 = vld [vmem:[#allocation11 + $0x12e8] sm:$0xff] }
 0x415   :  { %3083 = vmatprep.subr.mxu0 %v1366_v6  ;;  %3014 = vmatprep.subr.mxu1 %v1860_v7  ;;  %v1175_v6 = vld [vmem:[#allocation11 + $0x370] sm:$0xff]  ;;  %v1669_v7 = vld [vmem:[#allocation11 + $0x12e0] sm:$0xff] }
 0x416   :  { %3084 = vmatpush2.msra.mxu0 %v1365_v8  ;;  %3015 = vmatpush2.msra.mxu1 %v1859_v9  ;;  %v1160_v8 = vld [vmem:[#allocation11 + $0x2f8] sm:$0xff]  ;;  %v1654_v9 = vld [vmem:[#allocation11 + $0x1268] sm:$0xff] }
 0x417   :  { %3085 = vmatprep.subr.mxu0 %v1350_v10  ;;  %3016 = vmatprep.subr.mxu1 %v1844_v13  ;;  %v1159_v10 = vld [vmem:[#allocation11 + $0x2f0] sm:$0xff]  ;;  %v1653_v13 = vld [vmem:[#allocation11 + $0x1260] sm:$0xff] }
 0x418   :  { %3086 = vmatpush2.msra.mxu0 %v1349_v14  ;;  %3017 = vmatpush2.msra.mxu1 %v1843_v15  ;;  %v1144_v14 = vld [vmem:[#allocation11 + $0x278] sm:$0xff]  ;;  %v1638_v15 = vld [vmem:[#allocation11 + $0x11e8] sm:$0xff] }
 0x419   :  { %3087 = vmatprep.subr.mxu0 %v1334_v16  ;;  %3019 = vmatmul.mubr.f32.vlgmr.msra.gmra.mxu1 %v9256_v4  ;;  %v1143_v16 = vld [vmem:[#allocation11 + $0x270] sm:$0xff] }
 0x41a   :  { %3088 = vmatpush2.msra.mxu0 %v1333_v17  ;;  %3096 = vmatprep.subr.mxu1 %v1830_v18  ;;  %v1637_v17 = vld [vmem:[#allocation11 + $0x11e0] sm:$0xff]  ;;  %v1128_v18 = vld [vmem:[#allocation11 + $0x1f8] sm:$0xff] }
 0x41b   :  { %3090 = vmatmul.mubr.f32.vlgmr.msra.gmra.mxu0 %v9245_v38  ;;  %3097 = vmatpush1.msra.mxu1 %v1829_v19  ;;  %v1622_v19 = vld [vmem:[#allocation11 + $0x1168] sm:$0xff] }
 0x41c   :  { %3160 = vmatprep.mubr.f32.mxu1 %v9254_v2  ;;  %3167 = vmatprep.subr.mxu0 %v1320_v20  ;;  %v1127_v20 = vld [vmem:[#allocation11 + $0x1f0] sm:$0xff] }
 0x41d   :  { %3098 = vmatprep.subr.mxu1 %v1814_v21  ;;  %3168 = vmatpush1.msra.mxu0 %v1319_v22  ;;  %v1621_v21 = vld [vmem:[#allocation11 + $0x1160] sm:$0xff]  ;;  %v1112_v22 = vld [vmem:[#allocation11 + $0x178] sm:$0xff] }
 0x41e   :  { %3231 = vmatprep.mubr.f32.mxu0 %v9243_v37  ;;  %3099 = vmatpush1.msra.mxu1 %v1813_v24  ;;  %v1255_v37 = vld [vmem:[#allocation11 + $0x5f0] sm:$0xff]  ;;  %v1606_v24 = vld [vmem:[#allocation11 + $0x10e8] sm:$0xff] }
 0x41f   :  { %3169 = vmatprep.subr.mxu0 %v1304_v25  ;;  %3100 = vmatprep.subr.mxu1 %v1798_v52  ;;  %v1111_v25 = vld [vmem:[#allocation11 + $0x170] sm:$0xff]  ;;  %v1605_v52 = vld [vmem:[#allocation11 + $0x10e0] sm:$0xff] }
 0x420   :  { %3170 = vmatpush1.msra.mxu0 %v1303_v60  ;;  %3101 = vmatpush1.msra.mxu1 %v1797_v51  ;;  %v1096_v60 = vld [vmem:[#allocation11 + $0xf8] sm:$0xff]  ;;  %v1590_v51 = vld [vmem:[#allocation11 + $0x1068] sm:$0xff] }
 0x421   :  { %3171 = vmatprep.subr.mxu0 %v1288_v57  ;;  %3102 = vmatprep.subr.mxu1 %v1782_v27  ;;  %v1095_v57 = vld [vmem:[#allocation11 + $0xf0] sm:$0xff]  ;;  %v1589_v27 = vld [vmem:[#allocation11 + $0x1060] sm:$0xff] }
 0x422   :  { %3172 = vmatpush1.msra.mxu0 %v1287_v28  ;;  %3103 = vmatpush1.msra.mxu1 %v1781_v29  ;;  %v1080_v28 = vld [vmem:[#allocation11 + $0x78] sm:$0xff]  ;;  %v2086_v29 = vld [vmem:[#allocation11 + $0x1fe8] sm:$0xff] }
 0x423   :  { %3173 = vmatprep.subr.mxu0 %v1272_v30  ;;  %3104 = vmatprep.subr.mxu1 %v1766_v32  ;;  %v1079_v30 = vld [vmem:[#allocation11 + $0x70] sm:$0xff]  ;;  %v2085_v32 = vld [vmem:[#allocation11 + $0x1fe0] sm:$0xff] }
 0x424   :  { %3174 = vmatpush1.msra.mxu0 %v1271_v33  ;;  %3105 = vmatpush1.msra.mxu1 %v1765_v34  ;;  %v1576_v33 = vld [vmem:[#allocation11 + $0xff8] sm:$0xff]  ;;  %v2070_v34 = vld [vmem:[#allocation11 + $0x1f68] sm:$0xff] }
 0x425   :  { %3175 = vmatprep.subr.mxu0 %v1256_v35  ;;  %3106 = vmatprep.subr.mxu1 %v1750_v36  ;;  %v1575_v35 = vld [vmem:[#allocation11 + $0xff0] sm:$0xff]  ;;  %v2069_v36 = vld [vmem:[#allocation11 + $0x1f60] sm:$0xff] }
 0x426   :  { %3176 = vmatpush1.msra.mxu0 %v1255_v37  ;;  %3107 = vmatpush1.msra.mxu1 %v1749_v42  ;;  %v1560_v37 = vld [vmem:[#allocation11 + $0xf78] sm:$0xff]  ;;  %v2054_v42 = vld [vmem:[#allocation11 + $0x1ee8] sm:$0xff] }
 0x427   :  { %3177 = vmatprep.subr.mxu0 %v1240_v45  ;;  %3108 = vmatprep.subr.mxu1 %v1734_v46  ;;  %v1559_v45 = vld [vmem:[#allocation11 + $0xf70] sm:$0xff]  ;;  %v2053_v46 = vld [vmem:[#allocation11 + $0x1ee0] sm:$0xff] }
 0x428   :  { %3178 = vmatpush1.msra.mxu0 %v1239_v47  ;;  %3109 = vmatpush1.msra.mxu1 %v1733_v48  ;;  %v1544_v47 = vld [vmem:[#allocation11 + $0xef8] sm:$0xff]  ;;  %v2038_v48 = vld [vmem:[#allocation11 + $0x1e68] sm:$0xff] }
 0x429   :  { %3179 = vmatprep.subr.mxu0 %v1224_v49  ;;  %3110 = vmatprep.subr.mxu1 %v1718_v50  ;;  %v1543_v49 = vld [vmem:[#allocation11 + $0xef0] sm:$0xff]  ;;  %v2037_v50 = vld [vmem:[#allocation11 + $0x1e60] sm:$0xff] }
 0x42a   :  { %3180 = vmatpush1.msra.mxu0 %v1223_v53  ;;  %3111 = vmatpush1.msra.mxu1 %v1717_v54  ;;  %v1528_v53 = vld [vmem:[#allocation11 + $0xe78] sm:$0xff]  ;;  %v2022_v54 = vld [vmem:[#allocation11 + $0x1de8] sm:$0xff] }
 0x42b   :  { %3181 = vmatprep.subr.mxu0 %v1208_v55  ;;  %3112 = vmatprep.subr.mxu1 %v1702_v56  ;;  %v1527_v55 = vld [vmem:[#allocation11 + $0xe70] sm:$0xff]  ;;  %v2021_v56 = vld [vmem:[#allocation11 + $0x1de0] sm:$0xff] }
 0x42c   :  { %3182 = vmatpush1.msra.mxu0 %v1207_v58  ;;  %3113 = vmatpush1.msra.mxu1 %v1701_v59  ;;  %v1512_v58 = vld [vmem:[#allocation11 + $0xdf8] sm:$0xff]  ;;  %v2006_v59 = vld [vmem:[#allocation11 + $0x1d68] sm:$0xff] }
 0x42d   :  { %3183 = vmatprep.subr.mxu0 %v1192_v61  ;;  %3114 = vmatprep.subr.mxu1 %v1686_v62  ;;  %v1511_v61 = vld [vmem:[#allocation11 + $0xdf0] sm:$0xff]  ;;  %v2005_v62 = vld [vmem:[#allocation11 + $0x1d60] sm:$0xff] }
 0x42e   :  { %3184 = vmatpush1.msra.mxu0 %v1191_v1  ;;  %3115 = vmatpush1.msra.mxu1 %v1685_v26  ;;  %v1496_v1 = vld [vmem:[#allocation11 + $0xd78] sm:$0xff]  ;;  %v1990_v26 = vld [vmem:[#allocation11 + $0x1ce8] sm:$0xff] }
 0x42f   :  { %3185 = vmatprep.subr.mxu0 %v1176_v3  ;;  %3116 = vmatprep.subr.mxu1 %v1670_v5  ;;  %v1495_v3 = vld [vmem:[#allocation11 + $0xd70] sm:$0xff]  ;;  %v1989_v5 = vld [vmem:[#allocation11 + $0x1ce0] sm:$0xff] }
 0x430   :  { %3186 = vmatpush1.msra.mxu0 %v1175_v6  ;;  %3117 = vmatpush1.msra.mxu1 %v1669_v7  ;;  %v1480_v6 = vld [vmem:[#allocation11 + $0xcf8] sm:$0xff]  ;;  %v1974_v7 = vld [vmem:[#allocation11 + $0x1c68] sm:$0xff] }
 0x431   :  { %3187 = vmatprep.subr.mxu0 %v1160_v8  ;;  %3118 = vmatprep.subr.mxu1 %v1654_v9  ;;  %v1479_v8 = vld [vmem:[#allocation11 + $0xcf0] sm:$0xff]  ;;  %v1973_v9 = vld [vmem:[#allocation11 + $0x1c60] sm:$0xff] }
 0x432   :  { %3188 = vmatpush1.msra.mxu0 %v1159_v10  ;;  %3119 = vmatpush1.msra.mxu1 %v1653_v13  ;;  %v1464_v10 = vld [vmem:[#allocation11 + $0xc78] sm:$0xff]  ;;  %v1958_v13 = vld [vmem:[#allocation11 + $0x1be8] sm:$0xff] }
 0x433   :  { %3189 = vmatprep.subr.mxu0 %v1144_v14  ;;  %3120 = vmatprep.subr.mxu1 %v1638_v15  ;;  %v1463_v14 = vld [vmem:[#allocation11 + $0xc70] sm:$0xff]  ;;  %v1957_v15 = vld [vmem:[#allocation11 + $0x1be0] sm:$0xff] }
 0x434   :  { %3190 = vmatpush1.msra.mxu0 %v1143_v16  ;;  %3121 = vmatpush1.msra.mxu1 %v1637_v17  ;;  %v1448_v16 = vld [vmem:[#allocation11 + $0xbf8] sm:$0xff]  ;;  %v1942_v17 = vld [vmem:[#allocation11 + $0x1b68] sm:$0xff] }
 0x435   :  { %3191 = vmatprep.subr.mxu0 %v1128_v18  ;;  %3122 = vmatprep.subr.mxu1 %v1622_v19  ;;  %v1447_v18 = vld [vmem:[#allocation11 + $0xbf0] sm:$0xff]  ;;  %v1941_v19 = vld [vmem:[#allocation11 + $0x1b60] sm:$0xff] }
 0x436   :  { %3192 = vmatpush1.msra.mxu0 %v1127_v20  ;;  %3123 = vmatpush1.msra.mxu1 %v1621_v21  ;;  %v1432_v20 = vld [vmem:[#allocation11 + $0xb78] sm:$0xff]  ;;  %v1926_v21 = vld [vmem:[#allocation11 + $0x1ae8] sm:$0xff] }
 0x437   :  { %3193 = vmatprep.subr.mxu0 %v1112_v22  ;;  %3124 = vmatprep.subr.mxu1 %v1606_v24  ;;  %v1431_v22 = vld [vmem:[#allocation11 + $0xb70] sm:$0xff]  ;;  %v1925_v24 = vld [vmem:[#allocation11 + $0x1ae0] sm:$0xff] }
 0x438   :  { %3194 = vmatpush1.msra.mxu0 %v1111_v25  ;;  %3125 = vmatpush1.msra.mxu1 %v1605_v52  ;;  %v1416_v25 = vld [vmem:[#allocation11 + $0xaf8] sm:$0xff]  ;;  %v1910_v52 = vld [vmem:[#allocation11 + $0x1a68] sm:$0xff] }
 0x439   :  { %3195 = vmatprep.subr.mxu0 %v1096_v60  ;;  %3126 = vmatprep.subr.mxu1 %v1590_v51  ;;  %v1415_v60 = vld [vmem:[#allocation11 + $0xaf0] sm:$0xff]  ;;  %v1909_v51 = vld [vmem:[#allocation11 + $0x1a60] sm:$0xff] }
 0x43a   :  { %3196 = vmatpush1.msra.mxu0 %v1095_v57  ;;  %3127 = vmatpush1.msra.mxu1 %v1589_v27  ;;  %v1400_v57 = vld [vmem:[#allocation11 + $0xa78] sm:$0xff]  ;;  %v1894_v27 = vld [vmem:[#allocation11 + $0x19e8] sm:$0xff] }
 0x43b   :  { %3197 = vmatprep.subr.mxu0 %v1080_v28  ;;  %3128 = vmatprep.subr.mxu1 %v2086_v29  ;;  %v1399_v28 = vld [vmem:[#allocation11 + $0xa70] sm:$0xff]  ;;  %v1893_v29 = vld [vmem:[#allocation11 + $0x19e0] sm:$0xff] }
 0x43c   :  { %3198 = vmatpush1.msra.mxu0 %v1079_v30  ;;  %3129 = vmatpush2.msra.mxu1 %v2085_v32  ;;  %v1384_v30 = vld [vmem:[#allocation11 + $0x9f8] sm:$0xff]  ;;  %v1878_v32 = vld [vmem:[#allocation11 + $0x1968] sm:$0xff] }
 0x43d   :  { %3199 = vmatprep.subr.mxu0 %v1576_v33  ;;  %3130 = vmatprep.subr.mxu1 %v2070_v34  ;;  %v1383_v33 = vld [vmem:[#allocation11 + $0x9f0] sm:$0xff]  ;;  %v1877_v34 = vld [vmem:[#allocation11 + $0x1960] sm:$0xff] }
 0x43e   :  { %3200 = vmatpush2.msra.mxu0 %v1575_v35  ;;  %3131 = vmatpush2.msra.mxu1 %v2069_v36  ;;  %v9294_v35 = vld [vmem:[#allocation13] sm:$0xff] }
 0x43f   :  { %3201 = vmatprep.subr.mxu0 %v1560_v37  ;;  %3132 = vmatprep.subr.mxu1 %v2054_v42  ;;  %v2100_v36 = vrot.slane %v9294_v35, %v9214_v43  ;;  %v1368_v37 = vld [vmem:[#allocation11 + $0x978] sm:$0xff]  ;;  %v1862_v42 = vld [vmem:[#allocation11 + $0x18e8] sm:$0xff] }
 0x440   :  { %3202 = vmatpush2.msra.mxu0 %v1559_v45  ;;  %3133 = vmatpush2.msra.mxu1 %v2053_v46  ;;  %v1367_v45 = vld [vmem:[#allocation11 + $0x970] sm:$0xff]  ;;  %v1861_v46 = vld [vmem:[#allocation11 + $0x18e0] sm:$0xff] }
 0x441   :  { %3203 = vmatprep.subr.mxu0 %v1544_v47  ;;  %3134 = vmatprep.subr.mxu1 %v2038_v48  ;;  %v1352_v47 = vld [vmem:[#allocation11 + $0x8f8] sm:$0xff]  ;;  %v1846_v48 = vld [vmem:[#allocation11 + $0x1868] sm:$0xff] }
 0x442   :  { %3204 = vmatpush2.msra.mxu0 %v1543_v49  ;;  %3135 = vmatpush2.msra.mxu1 %v2037_v50  ;;  %v1351_v49 = vld [vmem:[#allocation11 + $0x8f0] sm:$0xff]  ;;  %v1845_v50 = vld [vmem:[#allocation11 + $0x1860] sm:$0xff] }
 0x443   :  { %3205 = vmatprep.subr.mxu0 %v1528_v53  ;;  %3136 = vmatprep.subr.mxu1 %v2022_v54  ;;  %v2242_v53 = vadd.f32 %v9277_v11, %v2100_v36  ;;  %v1336_v54 = vld [vmem:[#allocation11 + $0x878] sm:$0xff] }
 0x444   :  { %3206 = vmatpush2.msra.mxu0 %v1527_v55  ;;  %3137 = vmatpush2.msra.mxu1 %v2021_v56  ;;  %v1335_v55 = vld [vmem:[#allocation11 + $0x870] sm:$0xff]  ;;  %v1832_v56 = vld [vmem:[#allocation11 + $0x17f8] sm:$0xff] }
 0x445   :  { %3207 = vmatprep.subr.mxu0 %v1512_v58  ;;  %3138 = vmatprep.subr.mxu1 %v2006_v59  ;;  %v2313_v58 = vadd.f32 %v9282_v23, %v2242_v53  ;;  %v1831_v59 = vld [vmem:[#allocation11 + $0x17f0] sm:$0xff]  ;;  %v1816_v11 = vld [vmem:[#allocation11 + $0x1778] sm:$0xff] }
 0x446   :  { %3208 = vmatpush2.msra.mxu0 %v1511_v61  ;;  %3139 = vmatpush2.msra.mxu1 %v2005_v62  ;;  %v3356_v61 = vld [vmem:[%s10688_s30 + $0xf8] sm:$0xff]  ;;  %v1815_v23 = vld [vmem:[#allocation11 + $0x1770] sm:$0xff]  ;;  %v1672_v36 = vld [vmem:[#allocation11 + $0x12f8] sm:$0xff] }
 0x447   :  { %3209 = vmatprep.subr.mxu0 %v1496_v1  ;;  %3140 = vmatprep.subr.mxu1 %v1990_v26  ;;  %v3340_v62 = vld [vmem:[%s10688_s30 + $0x78] sm:$0xff]  ;;  %v3310_v1 = vmax.f32 %v2313_v58, 0.0  ;;  %v3355_v26 = vld [vmem:[%s10688_s30 + $0xf0] sm:$0xff]  ;;  %v2096_v58 = vrot.slane %v9294_v35, %v9211_v41 }
 0x448   :  { %3210 = vmatpush2.msra.mxu0 %v1495_v3  ;;  %3141 = vmatpush2.msra.mxu1 %v1989_v5  ;;  %v1800_v3 = vld [vmem:[#allocation11 + $0x16f8] sm:$0xff]  ;;  %v3339_v5 = vld [vmem:[%s10688_s30 + $0x70] sm:$0xff] }
 0x449   :  { %3211 = vmatprep.subr.mxu0 %v1480_v6  ;;  %3142 = vmatprep.subr.mxu1 %v1974_v7  ;;  %v1799_v6 = vld [vmem:[#allocation11 + $0x16f0] sm:$0xff]  ;;  %v3338_v7 = vld [vmem:[%s10688_s30 + $0x68] sm:$0xff] }
 0x44a   :  { %3212 = vmatpush2.msra.mxu0 %v1479_v8  ;;  %3143 = vmatpush2.msra.mxu1 %v1973_v9  ;;  %v1783_v8 = vld [vmem:[#allocation11 + $0x1670] sm:$0xff] }
 0x44b   :  { %3213 = vmatprep.subr.mxu0 %v1464_v10  ;;  %3144 = vmatprep.subr.mxu1 %v1958_v13  ;;  %v3353_v9 = vld [vmem:[%s10688_s30 + $0xe0] sm:$0xff]  ;;  %v1768_v10 = vld [vmem:[#allocation11 + $0x15f8] sm:$0xff] }
 0x44c   :  { %3214 = vmatpush2.msra.mxu0 %v1463_v14  ;;  %3145 = vmatpush2.msra.mxu1 %v1957_v15  ;;  %v3337_v13 = vld [vmem:[%s10688_s30 + $0x60] sm:$0xff]  ;;  %v3352_v15 = vld [vmem:[%s10688_s30 + $0xd8] sm:$0xff] }
 0x44d   :  { %3215 = vmatprep.subr.mxu0 %v1448_v16  ;;  %3146 = vmatprep.subr.mxu1 %v1942_v17  ;;  %v1767_v14 = vld [vmem:[#allocation11 + $0x15f0] sm:$0xff]  ;;  %v1752_v16 = vld [vmem:[#allocation11 + $0x1578] sm:$0xff]  ;;  %v3336_v17 = vld [vmem:[%s10688_s30 + $0x58] sm:$0xff] }
 0x44e   :  { %3216 = vmatpush2.msra.mxu0 %v1447_v18  ;;  %3147 = vmatpush2.msra.mxu1 %v1941_v19  ;;  %v1751_v18 = vld [vmem:[#allocation11 + $0x1570] sm:$0xff]  ;;  %v3351_v19 = vld [vmem:[%s10688_s30 + $0xd0] sm:$0xff] }
 0x44f   :  { %3217 = vmatprep.subr.mxu0 %v1432_v20  ;;  %3148 = vmatprep.subr.mxu1 %v1926_v21  ;;  %v1736_v20 = vld [vmem:[#allocation11 + $0x14f8] sm:$0xff]  ;;  %v3335_v21 = vld [vmem:[%s10688_s30 + $0x50] sm:$0xff] }
 0x450   :  { %3218 = vmatpush2.msra.mxu0 %v1431_v22  ;;  %3149 = vmatpush2.msra.mxu1 %v1925_v24  ;;  %v1735_v22 = vld [vmem:[#allocation11 + $0x14f0] sm:$0xff]  ;;  %v3350_v24 = vld [vmem:[%s10688_s30 + $0xc8] sm:$0xff] }
 0x451   :  { %3219 = vmatprep.subr.mxu0 %v1416_v25  ;;  %3150 = vmatprep.subr.mxu1 %v1910_v52  ;;  %v1720_v25 = vld [vmem:[#allocation11 + $0x1478] sm:$0xff] }
 0x452   :  { %3220 = vmatpush2.msra.mxu0 %v1415_v60  ;;  %3151 = vmatpush2.msra.mxu1 %v1909_v51  ;;  %v3334_v52 = vld [vmem:[%s10688_s30 + $0x48] sm:$0xff]  ;;  %v1719_v60 = vld [vmem:[#allocation11 + $0x1470] sm:$0xff] }
 0x453   :  { %3221 = vmatprep.subr.mxu0 %v1400_v57  ;;  %3152 = vmatprep.subr.mxu1 %v1894_v27  ;;  %v3349_v51 = vld [vmem:[%s10688_s30 + $0xc0] sm:$0xff]  ;;  %v1704_v57 = vld [vmem:[#allocation11 + $0x13f8] sm:$0xff] }
 0x454   :  { %3222 = vmatpush2.msra.mxu0 %v1399_v28  ;;  %3153 = vmatpush2.msra.mxu1 %v1893_v29  ;;  %v3333_v27 = vld [vmem:[%s10688_s30 + $0x40] sm:$0xff]  ;;  %v3348_v29 = vld [vmem:[%s10688_s30 + $0xb8] sm:$0xff] }
 0x455   :  { %3223 = vmatprep.subr.mxu0 %v1384_v30  ;;  %3154 = vmatprep.subr.mxu1 %v1878_v32  ;;  %v1703_v28 = vld [vmem:[#allocation11 + $0x13f0] sm:$0xff]  ;;  %v1688_v30 = vld [vmem:[#allocation11 + $0x1378] sm:$0xff]  ;;  %v3332_v32 = vld [vmem:[%s10688_s30 + $0x38] sm:$0xff] }
 0x456   :  { %3224 = vmatpush2.msra.mxu0 %v1383_v33  ;;  %3155 = vmatpush2.msra.mxu1 %v1877_v34  ;;  %v1687_v33 = vld [vmem:[#allocation11 + $0x1370] sm:$0xff]  ;;  %v3347_v34 = vld [vmem:[%s10688_s30 + $0xb0] sm:$0xff] }
 0x457   :  { %3225 = vmatprep.subr.mxu0 %v1368_v37  ;;  %3156 = vmatprep.subr.mxu1 %v1862_v42  ;;  %v3331_v37 = vld [vmem:[%s10688_s30 + $0x30] sm:$0xff]  ;;  %v1671_v42 = vld [vmem:[#allocation11 + $0x12f0] sm:$0xff] }
 0x458   :  { %3226 = vmatpush2.msra.mxu0 %v1367_v45  ;;  %3157 = vmatpush2.msra.mxu1 %v1861_v46  ;;  %v9363_v45 = vpop.f32.mrf.mxu0  ;;  %v3346_v46 = vld [vmem:[%s10688_s30 + $0xa8] sm:$0xff] }
 0x459   :  { %3227 = vmatprep.subr.mxu0 %v1352_v47  ;;  %3158 = vmatprep.subr.mxu1 %v1846_v48  ;;  %v1656_v47 = vld [vmem:[#allocation11 + $0x1278] sm:$0xff]  ;;  %v9369_v48 = vsub.s32 5, %v9205_v39 }
 0x45a   :  { %3228 = vmatpush2.msra.mxu0 %v1351_v49  ;;  %3159 = vmatpush2.msra.mxu1 %v1845_v50  ;;  %v3330_v49 = vld [vmem:[%s10688_s30 + $0x28] sm:$0xff]  ;;  %v1655_v50 = vld [vmem:[#allocation11 + $0x1270] sm:$0xff]  ;;  %v9374_v53 = vpop.f32.mrf.mxu0 }
 0x45b   :  { %3229 = vmatprep.subr.mxu0 %v1336_v54  ;;  %3161 = vmatmul.mubr.f32.vlgmr.msra.gmra.mxu1 %v9256_v4  ;;  %v9376_v54 = vpop.f32.mrf.mxu1 }
 0x45c   :  { %3230 = vmatpush2.msra.mxu0 %v1335_v55  ;;  %3238 = vmatprep.subr.mxu1 %v1832_v56  ;;  %v3345_v55 = vld [vmem:[%s10688_s30 + $0xa0] sm:$0xff]  ;;  %v1640_v56 = vld [vmem:[#allocation11 + $0x11f8] sm:$0xff] }
 0x45d   :  { %3232 = vmatmul.mubr.f32.vlgmr.msra.gmra.mxu0 %v9245_v38  ;;  %3239 = vmatpush1.msra.mxu1 %v1831_v59  ;;  %v3354_v38 = vld [vmem:[%s10688_s30 + $0xe8] sm:$0xff]  ;;  %v3329_v59 = vld [vmem:[%s10688_s30 + $0x20] sm:$0xff] }
 0x45e   :  { %3302 = vmatprep.mubr.f32.mxu1 %v9254_v2  ;;  %8121 = vmatprep.subr.mxu0 %v3356_v61  ;;  %v1784_v2 = vld [vmem:[#allocation11 + $0x1678] sm:$0xff]  ;;  %v1639_v61 = vld [vmem:[#allocation11 + $0x11f0] sm:$0xff] }
 0x45f   :  { %3240 = vmatprep.subr.mxu1 %v1816_v11  ;;  %8122 = vmatpush3.msra.mxu0 %v3340_v62  ;;  %v9386_v11 = vpop.f32.mrf.mxu1  ;;  %v3344_v62 = vld [vmem:[%s10688_s30 + $0x98] sm:$0xff] }
 0x460   :  { %3652 = vmatprep.mubr.f32.mxu0 %v3310_v1  ;;  %3241 = vmatpush1.msra.mxu1 %v1815_v23  ;;  %v1624_v23 = vld [vmem:[#allocation11 + $0x1178] sm:$0xff]  ;;  %v2116_v1 = vrot.slane %v9294_v35, %v9369_v48 }
 0x461   :  { %8123 = vmatprep.subr.mxu0 %v3355_v26  ;;  %3242 = vmatprep.subr.mxu1 %v1800_v3  ;;  %v3328_v26 = vld [vmem:[%s10688_s30 + $0x18] sm:$0xff]  ;;  %v1623_v3 = vld [vmem:[#allocation11 + $0x1170] sm:$0xff] }
 0x462   :  { %8124 = vmatpush3.msra.mxu0 %v3339_v5  ;;  %3243 = vmatpush1.msra.mxu1 %v1799_v6  ;;  %v2525_v5 = vpop.f32.mrf.mxu0  ;;  %v3343_v6 = vld [vmem:[%s10688_s30 + $0x90] sm:$0xff] }
 0x463   :  { %8125 = vmatprep.subr.mxu0 %v3354_v38  ;;  %3244 = vmatprep.subr.mxu1 %v1784_v2  ;;  %v1608_v38 = vld [vmem:[#allocation11 + $0x10f8] sm:$0xff]  ;;  %v2240_v2 = vadd.f32 %v9275_v63, %v2096_v58  ;;  %v3399_v58 = vld [vmem:[%s10688_s30 + $0x250] sm:$0xff] }
 0x464   :  { %8126 = vmatpush3.msra.mxu0 %v3338_v7  ;;  %3245 = vmatpush1.msra.mxu1 %v1783_v8  ;;  %v3327_v7 = vld [vmem:[%s10688_s30 + $0x10] sm:$0xff]  ;;  %v1607_v8 = vld [vmem:[#allocation11 + $0x10f0] sm:$0xff]  ;;  %v3326_v63 = vld [vmem:[%s10688_s30 + $0x8] sm:$0xff] }
 0x465   :  { %8127 = vmatprep.subr.mxu0 %v3353_v9  ;;  %3246 = vmatprep.subr.mxu1 %v1768_v10  ;;  %v2596_v9 = vpop.f32.mrf.mxu1  ;;  %v3342_v10 = vld [vmem:[%s10688_s30 + $0x88] sm:$0xff] }
 0x466   :  { %8128 = vmatpush3.msra.mxu0 %v3337_v13  ;;  %3247 = vmatpush1.msra.mxu1 %v1767_v14  ;;  %v1592_v13 = vld [vmem:[#allocation11 + $0x1078] sm:$0xff]  ;;  %v2311_v14 = vadd.f32 %v9279_v12, %v2240_v2  ;;  %v3325_v12 = vld [vmem:[%s10688_s30] sm:$0xff] }
 0x467   :  { %8129 = vmatprep.subr.mxu0 %v3352_v15  ;;  %3248 = vmatprep.subr.mxu1 %v1752_v16  ;;  %v2526_v15 = vadd.f32 %v2525_v5, %v2116_v1  ;;  %v1591_v16 = vld [vmem:[#allocation11 + $0x1070] sm:$0xff]  ;;  %v1944_v2 = vld [vmem:[#allocation11 + $0x1b78] sm:$0xff] }
 0x468   :  { %8130 = vmatpush3.msra.mxu0 %v3336_v17  ;;  %3249 = vmatpush1.msra.mxu1 %v1751_v18  ;;  %v3341_v17 = vld [vmem:[%s10688_s30 + $0x80] sm:$0xff]  ;;  %v2088_v18 = vld [vmem:[#allocation11 + $0x1ff8] sm:$0xff] }
 0x469   :  { %8131 = vmatprep.subr.mxu0 %v3351_v19  ;;  %3250 = vmatprep.subr.mxu1 %v1736_v20  ;;  %v2597_v19 = vadd.f32 %v2596_v9, %v2526_v15  ;;  %v2087_v20 = vld [vmem:[#allocation11 + $0x1ff0] sm:$0xff]  ;;  %v3411_v9 = vld [vmem:[%s10688_s30 + $0x2b0] sm:$0xff]  ;;  %v9477_v15 = vsub.s32 4, %v9205_v39 }
 0x46a   :  { %8132 = vmatpush3.msra.mxu0 %v3335_v21  ;;  %3251 = vmatpush1.msra.mxu1 %v1735_v22  ;;  %v3420_v21 = vld [vmem:[%s10688_s30 + $0x2f8] sm:$0xff]  ;;  %v3309_v22 = vmax.f32 %v2311_v14, 0.0  ;;  %v1975_v1 = vld [vmem:[#allocation11 + $0x1c70] sm:$0xff] }
 0x46b   :  { %8133 = vmatprep.subr.mxu0 %v3350_v24  ;;  %3252 = vmatprep.subr.mxu1 %v1720_v25  ;;  %v2072_v24 = vld [vmem:[#allocation11 + $0x1f78] sm:$0xff]  ;;  %v3404_v25 = vld [vmem:[%s10688_s30 + $0x278] sm:$0xff]  ;;  %v3397_v5 = vld [vmem:[%s10688_s30 + $0x240] sm:$0xff] }
 0x46c   :  { %8134 = vmatpush3.msra.mxu0 %v3334_v52  ;;  %3253 = vmatpush1.msra.mxu1 %v1719_v60  ;;  %v2071_v52 = vld [vmem:[#allocation11 + $0x1f70] sm:$0xff]  ;;  %v3314_v60 = vmax.f32 %v2597_v19, 0.0 }
 0x46d   :  { %8135 = vmatprep.subr.mxu0 %v3349_v51  ;;  %3254 = vmatprep.subr.mxu1 %v1704_v57  ;;  %v3419_v51 = vld [vmem:[%s10688_s30 + $0x2f0] sm:$0xff]  ;;  %v2056_v57 = vld [vmem:[#allocation11 + $0x1ef8] sm:$0xff]  ;;  %v1927_v14 = vld [vmem:[#allocation11 + $0x1af0] sm:$0xff] }
 0x46e   :  { %8136 = vmatpush3.msra.mxu0 %v3333_v27  ;;  %3255 = vmatpush1.msra.mxu1 %v1703_v28  ;;  %v3403_v27 = vld [vmem:[%s10688_s30 + $0x270] sm:$0xff]  ;;  %v2055_v28 = vld [vmem:[#allocation11 + $0x1ef0] sm:$0xff] }
 0x46f   :  { %8137 = vmatprep.subr.mxu0 %v3348_v29  ;;  %3256 = vmatprep.subr.mxu1 %v1688_v30  ;;  %v3418_v29 = vld [vmem:[%s10688_s30 + $0x2e8] sm:$0xff]  ;;  %v1911_v19 = vld [vmem:[#allocation11 + $0x1a70] sm:$0xff] }
 0x470   :  { %8138 = vmatpush3.msra.mxu0 %v3332_v32  ;;  %3257 = vmatpush1.msra.mxu1 %v1687_v33  ;;  %v2040_v30 = vld [vmem:[#allocation11 + $0x1e78] sm:$0xff]  ;;  %v2039_v33 = vld [vmem:[#allocation11 + $0x1e70] sm:$0xff] }
 0x471   :  { %8139 = vmatprep.subr.mxu0 %v3347_v34  ;;  %3258 = vmatprep.subr.mxu1 %v1672_v36  ;;  %v3402_v32 = vld [vmem:[%s10688_s30 + $0x268] sm:$0xff]  ;;  %v3417_v34 = vld [vmem:[%s10688_s30 + $0x2e0] sm:$0xff] }
 0x472   :  { %8140 = vmatpush3.msra.mxu0 %v3331_v37  ;;  %3259 = vmatpush1.msra.mxu1 %v1671_v42  ;;  %v2024_v36 = vld [vmem:[#allocation11 + $0x1df8] sm:$0xff]  ;;  %v3401_v37 = vld [vmem:[%s10688_s30 + $0x260] sm:$0xff] }
 0x473   :  { %8141 = vmatprep.subr.mxu0 %v3346_v46  ;;  %3260 = vmatprep.subr.mxu1 %v1656_v47  ;;  %v2023_v42 = vld [vmem:[#allocation11 + $0x1df0] sm:$0xff]  ;;  %v3416_v46 = vld [vmem:[%s10688_s30 + $0x2d8] sm:$0xff]  ;;  %v2008_v47 = vld [vmem:[#allocation11 + $0x1d78] sm:$0xff] }
 0x474   :  { %8142 = vmatpush3.msra.mxu0 %v3330_v49  ;;  %3261 = vmatpush1.msra.mxu1 %v1655_v50  ;;  %v3400_v49 = vld [vmem:[%s10688_s30 + $0x258] sm:$0xff]  ;;  %v2007_v50 = vld [vmem:[#allocation11 + $0x1d70] sm:$0xff] }
 0x475   :  { %8143 = vmatprep.subr.mxu0 %v3345_v55  ;;  %3262 = vmatprep.subr.mxu1 %v1640_v56  ;;  %v3415_v55 = vld [vmem:[%s10688_s30 + $0x2d0] sm:$0xff]  ;;  %v1992_v56 = vld [vmem:[#allocation11 + $0x1cf8] sm:$0xff] }
 0x476   :  { %8144 = vmatpush3.msra.mxu0 %v3329_v59  ;;  %3263 = vmatpush1.msra.mxu1 %v1639_v61  ;;  %v1991_v59 = vld [vmem:[#allocation11 + $0x1cf0] sm:$0xff]  ;;  %v3414_v61 = vld [vmem:[%s10688_s30 + $0x2c8] sm:$0xff] }
 0x477   :  { %8145 = vmatprep.subr.mxu0 %v3344_v62  ;;  %3264 = vmatprep.subr.mxu1 %v1624_v23  ;;  %v1976_v62 = vld [vmem:[#allocation11 + $0x1c78] sm:$0xff] }
 0x478   :  { %8146 = vmatpush3.msra.mxu0 %v3328_v26  ;;  %3265 = vmatpush1.msra.mxu1 %v1623_v3  ;;  %v3398_v23 = vld [vmem:[%s10688_s30 + $0x248] sm:$0xff]  ;;  %v3413_v26 = vld [vmem:[%s10688_s30 + $0x2c0] sm:$0xff] }
 0x479   :  { %8147 = vmatprep.subr.mxu0 %v3343_v6  ;;  %3266 = vmatprep.subr.mxu1 %v1608_v38  ;;  %v1960_v3 = vld [vmem:[#allocation11 + $0x1bf8] sm:$0xff]  ;;  %v1959_v6 = vld [vmem:[#allocation11 + $0x1bf0] sm:$0xff]  ;;  %v3412_v38 = vld [vmem:[%s10688_s30 + $0x2b8] sm:$0xff] }
 0x47a   :  { %8148 = vmatpush3.msra.mxu0 %v3327_v7  ;;  %3267 = vmatpush1.msra.mxu1 %v1607_v8  ;;  %v3396_v7 = vld [vmem:[%s10688_s30 + $0x238] sm:$0xff]  ;;  %v1943_v8 = vld [vmem:[#allocation11 + $0x1b70] sm:$0xff] }
 0x47b   :  { %8149 = vmatprep.subr.mxu0 %v3342_v10  ;;  %3268 = vmatprep.subr.mxu1 %v1592_v13  ;;  %v1928_v10 = vld [vmem:[#allocation11 + $0x1af8] sm:$0xff]  ;;  %v3395_v13 = vld [vmem:[%s10688_s30 + $0x230] sm:$0xff] }
 0x47c   :  { %8150 = vmatpush3.msra.mxu0 %v3326_v63  ;;  %3269 = vmatpush1.msra.mxu1 %v1591_v16  ;;  %v9479_v63 = vpop.f32.mrf.mxu0  ;;  %v3410_v16 = vld [vmem:[%s10688_s30 + $0x2a8] sm:$0xff] }
 0x47d   :  { %8151 = vmatprep.subr.mxu0 %v3341_v17  ;;  %3270 = vmatprep.subr.mxu1 %v2088_v18  ;;  %v1912_v17 = vld [vmem:[#allocation11 + $0x1a78] sm:$0xff] }
 0x47e   :  { %8152 = vmatpush3.msra.mxu0 %v3325_v12  ;;  %3271 = vmatpush2.msra.mxu1 %v2087_v20  ;;  %v3394_v18 = vld [vmem:[%s10688_s30 + $0x228] sm:$0xff]  ;;  %v9487_v12 = vpop.f32.mrf.mxu1  ;;  %v3409_v20 = vld [vmem:[%s10688_s30 + $0x2a0] sm:$0xff] }
 0x47f   :  { %3653 = vmatmul.mubr.f32.vlgmr.msra.gmra.mxu0 %v3309_v22  ;;  %8191 = vmatprep.subr.mxu0 %v3420_v21  ;;  %v1896_v21 = vld [vmem:[#allocation11 + $0x19f8] sm:$0xff]  ;;  %v2108_v22 = vrot.slane %v9294_v35, %v9217_v44 }
 0x480   :  { %3272 = vmatprep.subr.mxu1 %v2072_v24  ;;  %8192 = vmatpush3.msra.mxu0 %v3404_v25  ;;  %v3393_v24 = vld [vmem:[%s10688_s30 + $0x220] sm:$0xff] }
 0x481   :  { %3792 = vmatprep.mubr.f32.mxu0 %v3314_v60  ;;  %3273 = vmatpush2.msra.mxu1 %v2071_v52  ;;  %v1895_v25 = vld [vmem:[#allocation11 + $0x19f0] sm:$0xff]  ;;  %v2112_v52 = vrot.slane %v9294_v35, %v9477_v15  ;;  %v9499_v60 = vpop.f32.mrf.mxu0 }
 0x482   :  { %8193 = vmatprep.subr.mxu0 %v3419_v51  ;;  %3274 = vmatprep.subr.mxu1 %v2056_v57  ;;  %v3408_v51 = vld [vmem:[%s10688_s30 + $0x298] sm:$0xff]  ;;  %v1880_v57 = vld [vmem:[#allocation11 + $0x1978] sm:$0xff] }
 0x483   :  { %8194 = vmatpush3.msra.mxu0 %v3403_v27  ;;  %3275 = vmatpush2.msra.mxu1 %v2055_v28  ;;  %v3392_v27 = vld [vmem:[%s10688_s30 + $0x218] sm:$0xff]  ;;  %v1879_v28 = vld [vmem:[#allocation11 + $0x1970] sm:$0xff] }
 0x484   :  { %8195 = vmatprep.subr.mxu0 %v3418_v29  ;;  %3276 = vmatprep.subr.mxu1 %v2040_v30  ;;  %v9507_v29 = vpop.f32.mrf.mxu0  ;;  %v9509_v30 = vpop.f32.mrf.mxu1 }
 0x485   :  { %8196 = vmatpush3.msra.mxu0 %v3402_v32  ;;  %3277 = vmatpush2.msra.mxu1 %v2039_v33  ;;  %v3407_v32 = vld [vmem:[%s10688_s30 + $0x290] sm:$0xff]  ;;  %v1864_v33 = vld [vmem:[#allocation11 + $0x18f8] sm:$0xff] }
 0x486   :  { %8197 = vmatprep.subr.mxu0 %v3417_v34  ;;  %3278 = vmatprep.subr.mxu1 %v2024_v36  ;;  %v2384_v34 = vadd.f32 %v9363_v45, %v2108_v22  ;;  %v3391_v36 = vld [vmem:[%s10688_s30 + $0x210] sm:$0xff]  ;;  %v3368_v22 = vld [vmem:[%s10688_s30 + $0x158] sm:$0xff] }
 0x487   :  { %8198 = vmatpush3.msra.mxu0 %v3401_v37  ;;  %3279 = vmatpush2.msra.mxu1 %v2023_v42  ;;  %v1863_v37 = vld [vmem:[#allocation11 + $0x18f0] sm:$0xff]  ;;  %v2524_v42 = vadd.f32 %v9374_v53, %v2112_v52  ;;  %v3390_v53 = vld [vmem:[%s10688_s30 + $0x208] sm:$0xff]  ;;  %v3464_v52 = vld [vmem:[%s10688_s30 + $0x458] sm:$0xff] }
 0x488   :  { %8199 = vmatprep.subr.mxu0 %v3416_v46  ;;  %3280 = vmatprep.subr.mxu1 %v2008_v47  ;;  %v9519_v46 = vld [vmem:[#allocation13 + $0x8] sm:$0xff]  ;;  %v3406_v47 = vld [vmem:[%s10688_s30 + $0x288] sm:$0xff]  ;;  %v2455_v45 = vadd.f32 %v9376_v54, %v2384_v34  ;;  %v3381_v34 = vld [vmem:[%s10688_s30 + $0x1c0] sm:$0xff] }
 0x489   :  { %8200 = vmatpush3.msra.mxu0 %v3400_v49  ;;  %3281 = vmatpush2.msra.mxu1 %v2007_v50  ;;  %v1848_v49 = vld [vmem:[#allocation11 + $0x1878] sm:$0xff]  ;;  %v3388_v54 = vld [vmem:[%s10688_s30 + $0x1f8] sm:$0xff] }
 0x48a   :  { %8201 = vmatprep.subr.mxu0 %v3415_v55  ;;  %3282 = vmatprep.subr.mxu1 %v1992_v56  ;;  %v2132_v55 = vrot.slane %v9519_v46, %v9214_v43  ;;  %v1847_v56 = vld [vmem:[#allocation11 + $0x1870] sm:$0xff] }
 0x48b   :  { %8202 = vmatpush3.msra.mxu0 %v3399_v58  ;;  %3283 = vmatpush2.msra.mxu1 %v1991_v59  ;;  %v2595_v58 = vadd.f32 %v9386_v11, %v2524_v42  ;;  %v2809_v59 = vpop.f32.mrf.mxu0  ;;  %v3372_v11 = vld [vmem:[%s10688_s30 + $0x178] sm:$0xff]  ;;  %v3477_v42 = vld [vmem:[%s10688_s30 + $0x4c0] sm:$0xff] }
 0x48c   :  { %8203 = vmatprep.subr.mxu0 %v3414_v61  ;;  %3284 = vmatprep.subr.mxu1 %v1976_v62  ;;  %v3405_v61 = vld [vmem:[%s10688_s30 + $0x280] sm:$0xff] }
 0x48d   :  { %8204 = vmatpush3.msra.mxu0 %v3398_v23  ;;  %3285 = vmatpush2.msra.mxu1 %v1975_v1  ;;  %v3389_v62 = vld [vmem:[%s10688_s30 + $0x200] sm:$0xff]  ;;  %v3312_v1 = vmax.f32 %v2455_v45, 0.0  ;;  %v3364_v45 = vld [vmem:[%s10688_s30 + $0x138] sm:$0xff] }
 0x48e   :  { %8205 = vmatprep.subr.mxu0 %v3413_v26  ;;  %3286 = vmatprep.subr.mxu1 %v1960_v3  ;;  %v2810_v26 = vadd.f32 %v2809_v59, %v2132_v55  ;;  %v3484_v3 = vld [vmem:[%s10688_s30 + $0x4f8] sm:$0xff]  ;;  %v3475_v59 = vld [vmem:[%s10688_s30 + $0x4b0] sm:$0xff] }
 0x48f   :  { %8206 = vmatpush3.msra.mxu0 %v3397_v5  ;;  %3287 = vmatpush2.msra.mxu1 %v1959_v6  ;;  %v3313_v5 = vmax.f32 %v2595_v58, 0.0  ;;  %v3387_v6 = vld [vmem:[%s10688_s30 + $0x1f0] sm:$0xff]  ;;  %v3476_v55 = vld [vmem:[%s10688_s30 + $0x4b8] sm:$0xff] }
 0x490   :  { %8207 = vmatprep.subr.mxu0 %v3412_v38  ;;  %3288 = vmatprep.subr.mxu1 %v1944_v2  ;;  %v3468_v38 = vld [vmem:[%s10688_s30 + $0x478] sm:$0xff]  ;;  %v3363_v58 = vld [vmem:[%s10688_s30 + $0x130] sm:$0xff] }
 0x491   :  { %8208 = vmatpush3.msra.mxu0 %v3396_v7  ;;  %3289 = vmatpush2.msra.mxu1 %v1943_v8  ;;  %v3483_v7 = vld [vmem:[%s10688_s30 + $0x4f0] sm:$0xff]  ;;  %v3386_v8 = vld [vmem:[%s10688_s30 + $0x1e8] sm:$0xff] }
 0x492   :  { %8209 = vmatprep.subr.mxu0 %v3411_v9  ;;  %3290 = vmatprep.subr.mxu1 %v1928_v10  ;;  %v3467_v9 = vld [vmem:[%s10688_s30 + $0x470] sm:$0xff]  ;;  %v3370_v10 = vld [vmem:[%s10688_s30 + $0x168] sm:$0xff] }
 0x493   :  { %8210 = vmatpush3.msra.mxu0 %v3395_v13  ;;  %3291 = vmatpush2.msra.mxu1 %v1927_v14  ;;  %v3482_v13 = vld [vmem:[%s10688_s30 + $0x4e8] sm:$0xff]  ;;  %v3385_v14 = vld [vmem:[%s10688_s30 + $0x1e0] sm:$0xff] }
 0x494   :  { %8211 = vmatprep.subr.mxu0 %v3410_v16  ;;  %3292 = vmatprep.subr.mxu1 %v1912_v17  ;;  %v3466_v16 = vld [vmem:[%s10688_s30 + $0x468] sm:$0xff] }
 0x495   :  { %8212 = vmatpush3.msra.mxu0 %v3394_v18  ;;  %3293 = vmatpush2.msra.mxu1 %v1911_v19  ;;  %v3369_v18 = vld [vmem:[%s10688_s30 + $0x160] sm:$0xff] }
 0x496   :  { %8213 = vmatprep.subr.mxu0 %v3409_v20  ;;  %3294 = vmatprep.subr.mxu1 %v1896_v21  ;;  %v3481_v19 = vld [vmem:[%s10688_s30 + $0x4e0] sm:$0xff]  ;;  %v3384_v20 = vld [vmem:[%s10688_s30 + $0x1d8] sm:$0xff] }
 0x497   :  { %8214 = vmatpush3.msra.mxu0 %v3393_v24  ;;  %3295 = vmatpush2.msra.mxu1 %v1895_v25  ;;  %v9524_v50 = vpop.f32.mrf.mxu1  ;;  %v3465_v21 = vld [vmem:[%s10688_s30 + $0x460] sm:$0xff]  ;;  %v3480_v24 = vld [vmem:[%s10688_s30 + $0x4d8] sm:$0xff]  ;;  %v3383_v25 = vld [vmem:[%s10688_s30 + $0x1d0] sm:$0xff] }
 0x498   :  { %8215 = vmatprep.subr.mxu0 %v3408_v51  ;;  %3296 = vmatprep.subr.mxu1 %v1880_v57  ;;  %v3367_v51 = vld [vmem:[%s10688_s30 + $0x150] sm:$0xff] }
 0x499   :  { %8216 = vmatpush3.msra.mxu0 %v3392_v27  ;;  %3297 = vmatpush2.msra.mxu1 %v1879_v28  ;;  %v2880_v23 = vpop.f32.mrf.mxu1  ;;  %v3479_v57 = vld [vmem:[%s10688_s30 + $0x4d0] sm:$0xff]  ;;  %v3382_v27 = vld [vmem:[%s10688_s30 + $0x1c8] sm:$0xff] }
 0x49a   :  { %8217 = vmatprep.subr.mxu0 %v3407_v32  ;;  %3298 = vmatprep.subr.mxu1 %v1864_v33  ;;  %v2881_v2 = vadd.f32 %v2880_v23, %v2810_v26  ;;  %v3463_v28 = vld [vmem:[%s10688_s30 + $0x450] sm:$0xff]  ;;  %v3366_v32 = vld [vmem:[%s10688_s30 + $0x148] sm:$0xff] }
 0x49b   :  { %8218 = vmatpush3.msra.mxu0 %v3391_v36  ;;  %3299 = vmatpush2.msra.mxu1 %v1863_v37  ;;  %v3478_v33 = vld [vmem:[%s10688_s30 + $0x4c8] sm:$0xff]  ;;  %v3365_v37 = vld [vmem:[%s10688_s30 + $0x140] sm:$0xff] }
 0x49c   :  { %8219 = vmatprep.subr.mxu0 %v3406_v47  ;;  %3300 = vmatprep.subr.mxu1 %v1848_v49  ;;  %v3318_v17 = vmax.f32 %v2881_v2, 0.0  ;;  %v3462_v36 = vld [vmem:[%s10688_s30 + $0x448] sm:$0xff]  ;;  %v3380_v47 = vld [vmem:[%s10688_s30 + $0x1b8] sm:$0xff]  ;;  %v3461_v49 = vld [vmem:[%s10688_s30 + $0x440] sm:$0xff] }
 0x49d   :  { %8220 = vmatpush3.msra.mxu0 %v3390_v53  ;;  %3301 = vmatpush2.msra.mxu1 %v1847_v56  ;;  %v3379_v53 = vld [vmem:[%s10688_s30 + $0x1b0] sm:$0xff]  ;;  %v3460_v56 = vld [vmem:[%s10688_s30 + $0x438] sm:$0xff]  ;;  %v3474_v23 = vld [vmem:[%s10688_s30 + $0x4a8] sm:$0xff] }
 0x49e   :  { %8221 = vmatprep.subr.mxu0 %v3405_v61  ;;  %3303 = vmatmul.mubr.f32.vlgmr.msra.gmra.mxu1 %v9256_v4  ;;  %v3371_v4 = vld [vmem:[%s10688_s30 + $0x170] sm:$0xff]  ;;  %v3378_v61 = vld [vmem:[%s10688_s30 + $0x1a8] sm:$0xff]  ;;  %v3457_v2 = vld [vmem:[%s10688_s30 + $0x420] sm:$0xff] }
 0x49f   :  { %8156 = vmatprep.subr.mxu1 %v3388_v54  ;;  %8222 = vmatpush3.msra.mxu0 %v3389_v62  ;;  %v9661_v54 = vsub.s32 7, %v9205_v39  ;;  %v3459_v62 = vld [vmem:[%s10688_s30 + $0x430] sm:$0xff]  ;;  %v3458_v26 = vld [vmem:[%s10688_s30 + $0x428] sm:$0xff] }
 0x4a0   :  { %8157 = vmatpush3.msra.mxu1 %v3372_v11  ;;  %3722 = vmatprep.mubr.f32.mxu1 %v3312_v1  ;;  %v3362_v11 = vld [vmem:[%s10688_s30 + $0x128] sm:$0xff]  ;;  %v3377_v1 = vld [vmem:[%s10688_s30 + $0x1a0] sm:$0xff] }
 0x4a1   :  { %3793 = vmatmul.mubr.f32.vlgmr.msra.gmra.mxu0 %v3313_v5  ;;  %8261 = vmatprep.subr.mxu0 %v3484_v3  ;;  %v3361_v3 = vld [vmem:[%s10688_s30 + $0x120] sm:$0xff] }
 0x4a2   :  { %8158 = vmatprep.subr.mxu1 %v3387_v6  ;;  %8262 = vmatpush3.msra.mxu0 %v3468_v38  ;;  %v3473_v5 = vld [vmem:[%s10688_s30 + $0x4a0] sm:$0xff]  ;;  %v3376_v6 = vld [vmem:[%s10688_s30 + $0x198] sm:$0xff]  ;;  %v2124_v38 = vrot.slane %v9294_v35, %v9661_v54  ;;  %v3375_v35 = vld [vmem:[%s10688_s30 + $0x190] sm:$0xff] }
 0x4a3   :  { %8159 = vmatpush3.msra.mxu1 %v3371_v4  ;;  %8263 = vmatprep.subr.mxu0 %v3483_v7  ;;  %v3360_v4 = vld [vmem:[%s10688_s30 + $0x118] sm:$0xff]  ;;  %v2128_v7 = vrot.slane %v9519_v46, %v9211_v41 }
 0x4a4   :  { %8160 = vmatprep.subr.mxu1 %v3386_v8  ;;  %8264 = vmatpush3.msra.mxu0 %v3467_v9  ;;  %v3472_v8 = vld [vmem:[%s10688_s30 + $0x498] sm:$0xff] }
 0x4a5   :  { %8161 = vmatpush3.msra.mxu1 %v3370_v10  ;;  %8265 = vmatprep.subr.mxu0 %v3482_v13  ;;  %v3456_v9 = vld [vmem:[%s10688_s30 + $0x418] sm:$0xff]  ;;  %v3359_v10 = vld [vmem:[%s10688_s30 + $0x110] sm:$0xff] }
 0x4a6   :  { %8162 = vmatprep.subr.mxu1 %v3385_v14  ;;  %8266 = vmatpush3.msra.mxu0 %v3466_v16  ;;  %v3471_v13 = vld [vmem:[%s10688_s30 + $0x490] sm:$0xff]  ;;  %v3374_v14 = vld [vmem:[%s10688_s30 + $0x188] sm:$0xff]  ;;  %v2668_v16 = vadd.f32 %v9499_v60, %v2124_v38  ;;  %v3373_v60 = vld [vmem:[%s10688_s30 + $0x180] sm:$0xff] }
 0x4a7   :  { %8163 = vmatpush3.msra.mxu1 %v3369_v18  ;;  %8267 = vmatprep.subr.mxu0 %v3481_v19  ;;  %v3358_v18 = vld [vmem:[%s10688_s30 + $0x108] sm:$0xff]  ;;  %v2808_v19 = vadd.f32 %v9507_v29, %v2128_v7  ;;  %v3357_v29 = vld [vmem:[%s10688_s30 + $0x100] sm:$0xff] }
 0x4a8   :  { %3932 = vmatprep.mubr.f32.mxu0 %v3318_v17  ;;  %8164 = vmatprep.subr.mxu1 %v3384_v20  ;;  %v3455_v17 = vld [vmem:[%s10688_s30 + $0x410] sm:$0xff]  ;;  %v3470_v20 = vld [vmem:[%s10688_s30 + $0x488] sm:$0xff]  ;;  %v3429_v38 = vld [vmem:[%s10688_s30 + $0x340] sm:$0xff] }
 0x4a9   :  { %8268 = vmatpush3.msra.mxu0 %v3465_v21  ;;  %8165 = vmatpush3.msra.mxu1 %v3368_v22  ;;  %v2739_v21 = vadd.f32 %v9509_v30, %v2668_v16  ;;  %v3454_v22 = vld [vmem:[%s10688_s30 + $0x408] sm:$0xff]  ;;  %v3311_v30 = vmax.f32 %v9284_v31, 0.0  ;;  %v3451_v31 = vld [vmem:[%s10688_s30 + $0x3f0] sm:$0xff]  ;;  %v3540_v16 = vld [vmem:[%s10688_s30 + $0x6b8] sm:$0xff] }
 0x4aa   :  { %8269 = vmatprep.subr.mxu0 %v3480_v24  ;;  %8166 = vmatprep.subr.mxu1 %v3383_v25  ;;  %v2879_v24 = vadd.f32 %v9524_v50, %v2808_v19  ;;  %v3469_v25 = vld [vmem:[%s10688_s30 + $0x480] sm:$0xff]  ;;  %v3436_v50 = vld [vmem:[%s10688_s30 + $0x378] sm:$0xff]  ;;  %v3526_v7 = vld [vmem:[%s10688_s30 + $0x648] sm:$0xff] }
 0x4ab   :  { %8270 = vmatpush3.msra.mxu0 %v3464_v52  ;;  %8167 = vmatpush3.msra.mxu1 %v3367_v51  ;;  %v3452_v52 = vld [vmem:[%s10688_s30 + $0x3f8] sm:$0xff]  ;;  %v3453_v51 = vld [vmem:[%s10688_s30 + $0x400] sm:$0xff]  ;;  %v3426_v19 = vld [vmem:[%s10688_s30 + $0x328] sm:$0xff] }
 0x4ac   :  { %8271 = vmatprep.subr.mxu0 %v3479_v57  ;;  %8168 = vmatprep.subr.mxu1 %v3382_v27  ;;  %v3316_v57 = vmax.f32 %v2739_v21, 0.0  ;;  %v3317_v27 = vmax.f32 %v2879_v24, 0.0  ;;  %v3523_v21 = vld [vmem:[%s10688_s30 + $0x630] sm:$0xff]  ;;  %v3425_v24 = vld [vmem:[%s10688_s30 + $0x320] sm:$0xff] }
 0x4ad   :  { %8272 = vmatpush3.msra.mxu0 %v3463_v28  ;;  %8169 = vmatpush3.msra.mxu1 %v3366_v32  ;;  %v3435_v28 = vld [vmem:[%s10688_s30 + $0x370] sm:$0xff]  ;;  %v3548_v32 = vld [vmem:[%s10688_s30 + $0x6f8] sm:$0xff] }
 0x4ae   :  { %8273 = vmatprep.subr.mxu0 %v3478_v33  ;;  %8170 = vmatprep.subr.mxu1 %v3381_v34  ;;  %v3450_v33 = vld [vmem:[%s10688_s30 + $0x3e8] sm:$0xff]  ;;  %v3532_v34 = vld [vmem:[%s10688_s30 + $0x678] sm:$0xff] }
 0x4af   :  { %8274 = vmatpush3.msra.mxu0 %v3462_v36  ;;  %8171 = vmatpush3.msra.mxu1 %v3365_v37  ;;  %v3434_v36 = vld [vmem:[%s10688_s30 + $0x368] sm:$0xff]  ;;  %v3547_v37 = vld [vmem:[%s10688_s30 + $0x6f0] sm:$0xff] }
 0x4b0   :  { %8275 = vmatprep.subr.mxu0 %v3477_v42  ;;  %8172 = vmatprep.subr.mxu1 %v3380_v47  ;;  %v3449_v42 = vld [vmem:[%s10688_s30 + $0x3e0] sm:$0xff]  ;;  %v3531_v47 = vld [vmem:[%s10688_s30 + $0x670] sm:$0xff] }
 0x4b1   :  { %8276 = vmatpush3.msra.mxu0 %v3461_v49  ;;  %8173 = vmatpush3.msra.mxu1 %v3364_v45  ;;  %v3433_v49 = vld [vmem:[%s10688_s30 + $0x360] sm:$0xff]  ;;  %v3546_v45 = vld [vmem:[%s10688_s30 + $0x6e8] sm:$0xff] }
 0x4b2   :  { %8277 = vmatprep.subr.mxu0 %v3476_v55  ;;  %8174 = vmatprep.subr.mxu1 %v3379_v53  ;;  %v3448_v55 = vld [vmem:[%s10688_s30 + $0x3d8] sm:$0xff]  ;;  %v3530_v53 = vld [vmem:[%s10688_s30 + $0x668] sm:$0xff] }
 0x4b3   :  { %8278 = vmatpush3.msra.mxu0 %v3460_v56  ;;  %8175 = vmatpush3.msra.mxu1 %v3363_v58  ;;  %v3432_v56 = vld [vmem:[%s10688_s30 + $0x358] sm:$0xff]  ;;  %v3545_v58 = vld [vmem:[%s10688_s30 + $0x6e0] sm:$0xff] }
 0x4b4   :  { %8279 = vmatprep.subr.mxu0 %v3475_v59  ;;  %8176 = vmatprep.subr.mxu1 %v3378_v61  ;;  %v3447_v59 = vld [vmem:[%s10688_s30 + $0x3d0] sm:$0xff]  ;;  %v3529_v61 = vld [vmem:[%s10688_s30 + $0x660] sm:$0xff] }
 0x4b5   :  { %8280 = vmatpush3.msra.mxu0 %v3459_v62  ;;  %8177 = vmatpush3.msra.mxu1 %v3362_v11  ;;  %v3431_v62 = vld [vmem:[%s10688_s30 + $0x350] sm:$0xff]  ;;  %v3544_v11 = vld [vmem:[%s10688_s30 + $0x6d8] sm:$0xff] }
 0x4b6   :  { %8281 = vmatprep.subr.mxu0 %v3474_v23  ;;  %8178 = vmatprep.subr.mxu1 %v3377_v1  ;;  %v3446_v23 = vld [vmem:[%s10688_s30 + $0x3c8] sm:$0xff]  ;;  %v3528_v1 = vld [vmem:[%s10688_s30 + $0x658] sm:$0xff] }
 0x4b7   :  { %8282 = vmatpush3.msra.mxu0 %v3458_v26  ;;  %8179 = vmatpush3.msra.mxu1 %v3361_v3  ;;  %v3430_v26 = vld [vmem:[%s10688_s30 + $0x348] sm:$0xff]  ;;  %v3543_v3 = vld [vmem:[%s10688_s30 + $0x6d0] sm:$0xff] }
 0x4b8   :  { %8283 = vmatprep.subr.mxu0 %v3473_v5  ;;  %8180 = vmatprep.subr.mxu1 %v3376_v6  ;;  %v3445_v5 = vld [vmem:[%s10688_s30 + $0x3c0] sm:$0xff]  ;;  %v3527_v6 = vld [vmem:[%s10688_s30 + $0x650] sm:$0xff] }
 0x4b9   :  { %8284 = vmatpush3.msra.mxu0 %v3457_v2  ;;  %8181 = vmatpush3.msra.mxu1 %v3360_v4  ;;  %v3542_v2 = vld [vmem:[%s10688_s30 + $0x6c8] sm:$0xff]  ;;  %v3444_v4 = vld [vmem:[%s10688_s30 + $0x3b8] sm:$0xff] }
 0x4ba   :  { %8285 = vmatprep.subr.mxu0 %v3472_v8  ;;  %8182 = vmatprep.subr.mxu1 %v3375_v35  ;;  %v3428_v8 = vld [vmem:[%s10688_s30 + $0x338] sm:$0xff]  ;;  %v3541_v35 = vld [vmem:[%s10688_s30 + $0x6c0] sm:$0xff] }
 0x4bb   :  { %8286 = vmatpush3.msra.mxu0 %v3456_v9  ;;  %8183 = vmatpush3.msra.mxu1 %v3359_v10  ;;  %v3443_v9 = vld [vmem:[%s10688_s30 + $0x3b0] sm:$0xff]  ;;  %v3525_v10 = vld [vmem:[%s10688_s30 + $0x640] sm:$0xff] }
 0x4bc   :  { %8287 = vmatprep.subr.mxu0 %v3471_v13  ;;  %8184 = vmatprep.subr.mxu1 %v3374_v14  ;;  %v9850_v13 = vsub.s32 6, %v9205_v39  ;;  %v3427_v14 = vld [vmem:[%s10688_s30 + $0x330] sm:$0xff]  ;;  %v3524_v39 = vld [vmem:[%s10688_s30 + $0x638] sm:$0xff] }
 0x4bd   :  { %8288 = vmatpush3.msra.mxu0 %v3455_v17  ;;  %8185 = vmatpush3.msra.mxu1 %v3358_v18  ;;  %v3442_v17 = vld [vmem:[%s10688_s30 + $0x3a8] sm:$0xff]  ;;  %v9864_v18 = vpop.f32.mrf.mxu0 }
 0x4be   :  { %8289 = vmatprep.subr.mxu0 %v3470_v20  ;;  %8186 = vmatprep.subr.mxu1 %v3373_v60  ;;  %v3539_v20 = vld [vmem:[%s10688_s30 + $0x6b0] sm:$0xff]  ;;  %v3441_v60 = vld [vmem:[%s10688_s30 + $0x3a0] sm:$0xff] }
 0x4bf   :  { %8290 = vmatpush3.msra.mxu0 %v3454_v22  ;;  %8187 = vmatpush3.msra.mxu1 %v3357_v29  ;;  %v8530_v22 = vld [vmem:[#allocation13] sm:$0xff] }
 0x4c0   :  { %8291 = vmatprep.subr.mxu0 %v3469_v25  ;;  %3723 = vmatmul.mubr.f32.vlgmr.msra.gmra.mxu1 %v3311_v30  ;;  %v2120_v29 = vrot.slane %v8530_v22, %v9850_v13  ;;  %v3538_v25 = vld [vmem:[%s10688_s30 + $0x6a8] sm:$0xff]  ;;  %v2140_v30 = vrot.slane %v9519_v46, %v9217_v44 }
 0x4c1   :  { %8226 = vmatprep.subr.mxu1 %v3452_v52  ;;  %8292 = vmatpush3.msra.mxu0 %v3453_v51  ;;  %v3440_v52 = vld [vmem:[%s10688_s30 + $0x398] sm:$0xff]  ;;  %v3522_v51 = vld [vmem:[%s10688_s30 + $0x628] sm:$0xff] }
 0x4c2   :  { %8227 = vmatpush3.msra.mxu1 %v3436_v50  ;;  %3862 = vmatprep.mubr.f32.mxu1 %v3316_v57  ;;  %v2951_v50 = vpop.f32.mrf.mxu0  ;;  %v3424_v57 = vld [vmem:[%s10688_s30 + $0x318] sm:$0xff]  ;;  %v3506_v22 = vld [vmem:[%s10688_s30 + $0x5a8] sm:$0xff] }
 0x4c3   :  { %3933 = vmatmul.mubr.f32.vlgmr.msra.gmra.mxu0 %v3317_v27  ;;  %8228 = vmatprep.subr.mxu1 %v3451_v31  ;;  %v3537_v31 = vld [vmem:[%s10688_s30 + $0x6a0] sm:$0xff]  ;;  %v3439_v27 = vld [vmem:[%s10688_s30 + $0x390] sm:$0xff] }
 0x4c4   :  { %8229 = vmatpush3.msra.mxu1 %v3435_v28  ;;  %8331 = vmatprep.subr.mxu0 %v3548_v32  ;;  %v3521_v28 = vld [vmem:[%s10688_s30 + $0x620] sm:$0xff]  ;;  %v2666_v32 = vadd.f32 %v9479_v63, %v2120_v29  ;;  %v3520_v63 = vld [vmem:[%s10688_s30 + $0x618] sm:$0xff]  ;;  %v3490_v29 = vld [vmem:[%s10688_s30 + $0x528] sm:$0xff] }
 0x4c5   :  { %8230 = vmatprep.subr.mxu1 %v3450_v33  ;;  %8332 = vmatpush3.msra.mxu0 %v3532_v34  ;;  %v3423_v33 = vld [vmem:[%s10688_s30 + $0x310] sm:$0xff] }
 0x4c6   :  { %8231 = vmatpush3.msra.mxu1 %v3434_v36  ;;  %8333 = vmatprep.subr.mxu0 %v3547_v37  ;;  %v3536_v36 = vld [vmem:[%s10688_s30 + $0x698] sm:$0xff]  ;;  %v2952_v37 = vadd.f32 %v2951_v50, %v2140_v30  ;;  %v3489_v30 = vld [vmem:[%s10688_s30 + $0x520] sm:$0xff]  ;;  %v3503_v50 = vld [vmem:[%s10688_s30 + $0x590] sm:$0xff] }
 0x4c7   :  { %8232 = vmatprep.subr.mxu1 %v3449_v42  ;;  %8334 = vmatpush3.msra.mxu0 %v3531_v47  ;;  %v3438_v42 = vld [vmem:[%s10688_s30 + $0x388] sm:$0xff]  ;;  %v2737_v47 = vadd.f32 %v9487_v12, %v2666_v32  ;;  %v3519_v12 = vld [vmem:[%s10688_s30 + $0x610] sm:$0xff] }
 0x4c8   :  { %8233 = vmatpush3.msra.mxu1 %v3433_v49  ;;  %8335 = vmatprep.subr.mxu0 %v3546_v45  ;;  %v3422_v49 = vld [vmem:[%s10688_s30 + $0x308] sm:$0xff] }
 0x4c9   :  { %8234 = vmatprep.subr.mxu1 %v3448_v55  ;;  %8336 = vmatpush3.msra.mxu0 %v3530_v53  ;;  %v3535_v55 = vld [vmem:[%s10688_s30 + $0x690] sm:$0xff]  ;;  %v3437_v53 = vld [vmem:[%s10688_s30 + $0x380] sm:$0xff]  ;;  %v3486_v32 = vld [vmem:[%s10688_s30 + $0x508] sm:$0xff] }
 0x4ca   :  { %8235 = vmatpush3.msra.mxu1 %v3432_v56  ;;  %8337 = vmatprep.subr.mxu0 %v3545_v58  ;;  %v3421_v58 = vld [vmem:[%s10688_s30 + $0x300] sm:$0xff] }
 0x4cb   :  { %8236 = vmatprep.subr.mxu1 %v3447_v59  ;;  %8338 = vmatpush3.msra.mxu0 %v3529_v61  ;;  %v3534_v59 = vld [vmem:[%s10688_s30 + $0x688] sm:$0xff]  ;;  %v3516_v61 = vld [vmem:[%s10688_s30 + $0x5f8] sm:$0xff] }
 0x4cc   :  { %8237 = vmatpush3.msra.mxu1 %v3431_v62  ;;  %8339 = vmatprep.subr.mxu0 %v3544_v11  ;;  %v3315_v11 = vmax.f32 %v2737_v47, 0.0  ;;  %v3578_v47 = vld [vmem:[%s10688_s30 + $0x7e8] sm:$0xff] }
 0x4cd   :  { %8238 = vmatprep.subr.mxu1 %v3446_v23  ;;  %8340 = vmatpush3.msra.mxu0 %v3528_v1  ;;  %v3500_v23 = vld [vmem:[%s10688_s30 + $0x578] sm:$0xff]  ;;  %v3515_v1 = vld [vmem:[%s10688_s30 + $0x5f0] sm:$0xff] }
 0x4ce   :  { %8239 = vmatpush3.msra.mxu1 %v3430_v26  ;;  %8341 = vmatprep.subr.mxu0 %v3543_v3  ;;  %v3518_v26 = vld [vmem:[%s10688_s30 + $0x608] sm:$0xff]  ;;  %v3499_v3 = vld [vmem:[%s10688_s30 + $0x570] sm:$0xff] }
 0x4cf   :  { %8240 = vmatprep.subr.mxu1 %v3445_v5  ;;  %8342 = vmatpush3.msra.mxu0 %v3527_v6  ;;  %v3533_v5 = vld [vmem:[%s10688_s30 + $0x680] sm:$0xff]  ;;  %v3514_v6 = vld [vmem:[%s10688_s30 + $0x5e8] sm:$0xff] }
 0x4d0   :  { %8241 = vmatpush3.msra.mxu1 %v3429_v38  ;;  %8343 = vmatprep.subr.mxu0 %v3542_v2  ;;  %v3517_v38 = vld [vmem:[%s10688_s30 + $0x600] sm:$0xff]  ;;  %v3498_v2 = vld [vmem:[%s10688_s30 + $0x568] sm:$0xff] }
 0x4d1   :  { %8242 = vmatprep.subr.mxu1 %v3444_v4  ;;  %8344 = vmatpush3.msra.mxu0 %v3526_v7  ;;  %v3513_v4 = vld [vmem:[%s10688_s30 + $0x5e0] sm:$0xff] }
 0x4d2   :  { %8243 = vmatpush3.msra.mxu1 %v3428_v8  ;;  %8345 = vmatprep.subr.mxu0 %v3541_v35  ;;  %v3497_v7 = vld [vmem:[%s10688_s30 + $0x560] sm:$0xff]  ;;  %v3512_v8 = vld [vmem:[%s10688_s30 + $0x5d8] sm:$0xff] }
 0x4d3   :  { %8244 = vmatprep.subr.mxu1 %v3443_v9  ;;  %8346 = vmatpush3.msra.mxu0 %v3525_v10  ;;  %v3496_v35 = vld [vmem:[%s10688_s30 + $0x558] sm:$0xff]  ;;  %v3511_v9 = vld [vmem:[%s10688_s30 + $0x5d0] sm:$0xff] }
 0x4d4   :  { %8245 = vmatpush3.msra.mxu1 %v3427_v14  ;;  %8347 = vmatprep.subr.mxu0 %v3540_v16  ;;  %v3495_v10 = vld [vmem:[%s10688_s30 + $0x550] sm:$0xff]  ;;  %v3510_v14 = vld [vmem:[%s10688_s30 + $0x5c8] sm:$0xff] }
 0x4d5   :  { %8246 = vmatprep.subr.mxu1 %v3442_v17  ;;  %8348 = vmatpush3.msra.mxu0 %v3524_v39  ;;  %v3494_v16 = vld [vmem:[%s10688_s30 + $0x548] sm:$0xff]  ;;  %v3509_v17 = vld [vmem:[%s10688_s30 + $0x5c0] sm:$0xff] }
 0x4d6   :  { %8247 = vmatpush3.msra.mxu1 %v3426_v19  ;;  %8349 = vmatprep.subr.mxu0 %v3539_v20  ;;  %v3493_v39 = vld [vmem:[%s10688_s30 + $0x540] sm:$0xff]  ;;  %v3508_v19 = vld [vmem:[%s10688_s30 + $0x5b8] sm:$0xff] }
 0x4d7   :  { %8248 = vmatprep.subr.mxu1 %v3441_v60  ;;  %8350 = vmatpush3.msra.mxu0 %v3523_v21  ;;  %v3492_v20 = vld [vmem:[%s10688_s30 + $0x538] sm:$0xff]  ;;  %v3507_v60 = vld [vmem:[%s10688_s30 + $0x5b0] sm:$0xff] }
 0x4d8   :  { %8249 = vmatpush3.msra.mxu1 %v3425_v24  ;;  %8351 = vmatprep.subr.mxu0 %v3538_v25  ;;  %v3491_v21 = vld [vmem:[%s10688_s30 + $0x530] sm:$0xff]  ;;  %v3505_v24 = vld [vmem:[%s10688_s30 + $0x5a0] sm:$0xff]  ;;  %v2136_v25 = vrot.slane %v9519_v46, %v9208_v40 }
 0x4d9   :  { %8250 = vmatprep.subr.mxu1 %v3440_v52  ;;  %v9909_v34 = vpop.f32.mrf.mxu1  ;;  %8352 = vmatpush3.msra.mxu0 %v3522_v51  ;;  %v3504_v52 = vld [vmem:[%s10688_s30 + $0x598] sm:$0xff] }
 0x4da   :  { %8251 = vmatpush3.msra.mxu1 %v3424_v57  ;;  %8353 = vmatprep.subr.mxu0 %v3537_v31  ;;  %v3488_v51 = vld [vmem:[%s10688_s30 + $0x518] sm:$0xff]  ;;  %v2950_v57 = vadd.f32 %v9864_v18, %v2136_v25  ;;  %v3487_v31 = vld [vmem:[%s10688_s30 + $0x510] sm:$0xff]  ;;  %v3501_v18 = vld [vmem:[%s10688_s30 + $0x580] sm:$0xff] }
 0x4db   :  { %8252 = vmatprep.subr.mxu1 %v3439_v27  ;;  %v3022_v45 = vpop.f32.mrf.mxu1  ;;  %8354 = vmatpush3.msra.mxu0 %v3521_v28  ;;  %v3502_v27 = vld [vmem:[%s10688_s30 + $0x588] sm:$0xff] }
 0x4dc   :  { %8253 = vmatpush3.msra.mxu1 %v3423_v33  ;;  %v3023_v56 = vadd.f32 %v3022_v45, %v2952_v37  ;;  %8355 = vmatprep.subr.mxu0 %v3536_v36  ;;  %v3021_v28 = vadd.f32 %v9909_v34, %v2950_v57  ;;  %v3485_v33 = vld [vmem:[%s10688_s30 + $0x500] sm:$0xff]  ;;  %v3580_v34 = vld [vmem:[%s10688_s30 + $0x7f8] sm:$0xff]  ;;  %v2156_v57 = vrot.slane %v9519_v46, %v9661_v54 }
 0x4dd   :  { %8254 = vmatprep.subr.mxu1 %v3438_v42  ;;  %8356 = vmatpush3.msra.mxu0 %v3520_v63  ;;  %v3564_v37 = vld [vmem:[%s10688_s30 + $0x778] sm:$0xff]  ;;  %v3579_v42 = vld [vmem:[%s10688_s30 + $0x7f0] sm:$0xff]  ;;  %v3577_v45 = vld [vmem:[%s10688_s30 + $0x7e0] sm:$0xff] }
 0x4de   :  { %8255 = vmatpush3.msra.mxu1 %v3422_v49  ;;  %v3320_v62 = vmax.f32 %v3023_v56, 0.0  ;;  %8357 = vmatprep.subr.mxu0 %v3535_v55  ;;  %v3319_v36 = vmax.f32 %v3021_v28, 0.0  ;;  %v3563_v63 = vld [vmem:[%s10688_s30 + $0x770] sm:$0xff]  ;;  %v3562_v49 = vld [vmem:[%s10688_s30 + $0x768] sm:$0xff]  ;;  %v3561_v55 = vld [vmem:[%s10688_s30 + $0x760] sm:$0xff] }
 0x4df   :  { %8256 = vmatprep.subr.mxu1 %v3437_v53  ;;  %8358 = vmatpush3.msra.mxu0 %v3519_v12  ;;  %v3576_v53 = vld [vmem:[%s10688_s30 + $0x7d8] sm:$0xff]  ;;  %v3575_v12 = vld [vmem:[%s10688_s30 + $0x7d0] sm:$0xff] }
 0x4e0   :  { %8257 = vmatpush3.msra.mxu1 %v3421_v58  ;;  %8359 = vmatprep.subr.mxu0 %v3534_v59  ;;  %v3560_v56 = vld [vmem:[%s10688_s30 + $0x758] sm:$0xff]  ;;  %v3559_v58 = vld [vmem:[%s10688_s30 + $0x750] sm:$0xff]  ;;  %v3574_v59 = vld [vmem:[%s10688_s30 + $0x7c8] sm:$0xff] }
 0x4e1   :  { %3863 = vmatmul.mubr.f32.vlgmr.msra.gmra.mxu1 %v3315_v11  ;;  %8296 = vmatprep.subr.mxu1 %v3516_v61  ;;  %v3558_v61 = vld [vmem:[%s10688_s30 + $0x748] sm:$0xff]  ;;  %v3557_v11 = vld [vmem:[%s10688_s30 + $0x740] sm:$0xff] }
 0x4e2   :  { %8297 = vmatpush3.msra.mxu1 %v3500_v23  ;;  %4002 = vmatprep.mubr.f32.mxu1 %v3320_v62  ;;  %v3573_v62 = vld [vmem:[%s10688_s30 + $0x7c0] sm:$0xff]  ;;  %v3572_v23 = vld [vmem:[%s10688_s30 + $0x7b8] sm:$0xff] }
 0x4e3   :  { %8298 = vmatprep.subr.mxu1 %v3515_v1  ;;  %8360 = vmatpush3.msra.mxu0 %v3518_v26  ;;  %v3556_v1 = vld [vmem:[%s10688_s30 + $0x738] sm:$0xff]  ;;  %v3571_v26 = vld [vmem:[%s10688_s30 + $0x7b0] sm:$0xff] }
 0x4e4   :  { %8299 = vmatpush3.msra.mxu1 %v3499_v3  ;;  %8361 = vmatprep.subr.mxu0 %v3533_v5  ;;  %v3555_v3 = vld [vmem:[%s10688_s30 + $0x730] sm:$0xff]  ;;  %v3570_v5 = vld [vmem:[%s10688_s30 + $0x7a8] sm:$0xff] }
 0x4e5   :  { %8300 = vmatprep.subr.mxu1 %v3514_v6  ;;  %8362 = vmatpush3.msra.mxu0 %v3517_v38  ;;  %v3554_v6 = vld [vmem:[%s10688_s30 + $0x728] sm:$0xff]  ;;  %v3569_v38 = vld [vmem:[%s10688_s30 + $0x7a0] sm:$0xff] }
 0x4e6   :  { %8301 = vmatpush3.msra.mxu1 %v3498_v2  ;;  %v3091_v2 = vpop.f32.mrf.mxu0 }
 0x4e7   :  { %8302 = vmatprep.subr.mxu1 %v3513_v4  ;;  %v3553_v4 = vld [vmem:[%s10688_s30 + $0x720] sm:$0xff] }
 0x4e8   :  { %8303 = vmatpush3.msra.mxu1 %v3497_v7  ;;  %v3568_v7 = vld [vmem:[%s10688_s30 + $0x798] sm:$0xff] }
 0x4e9   :  { %8304 = vmatprep.subr.mxu1 %v3512_v8  ;;  %v2144_v8 = vrot.slane %v9519_v46, %v9477_v15 }
 0x4ea   :  { %8305 = vmatpush3.msra.mxu1 %v3496_v35  ;;  %v3552_v35 = vld [vmem:[%s10688_s30 + $0x718] sm:$0xff] }
 0x4eb   :  { %8306 = vmatprep.subr.mxu1 %v3511_v9  ;;  %v2148_v9 = vrot.slane %v9519_v46, %v9369_v48 }
 0x4ec   :  { %8307 = vmatpush3.msra.mxu1 %v3495_v10  ;;  %v3567_v10 = vld [vmem:[%s10688_s30 + $0x790] sm:$0xff] }
 0x4ed   :  { %8308 = vmatprep.subr.mxu1 %v3510_v14  ;;  %v3093_v14 = vpop.f32.mrf.mxu0 }
 0x4ee   :  { %8309 = vmatpush3.msra.mxu1 %v3494_v16  ;;  %v3551_v16 = vld [vmem:[%s10688_s30 + $0x710] sm:$0xff] }
 0x4ef   :  { %8310 = vmatprep.subr.mxu1 %v3509_v17  ;;  %v3566_v17 = vld [vmem:[%s10688_s30 + $0x788] sm:$0xff] }
 0x4f0   :  { %8311 = vmatpush3.msra.mxu1 %v3493_v39  ;;  %v3092_v39 = vadd.f32 %v3091_v2, %v2144_v8 }
 0x4f1   :  { %8312 = vmatprep.subr.mxu1 %v3508_v19 }
 0x4f2   :  { %8313 = vmatpush3.msra.mxu1 %v3492_v20  ;;  %v3550_v20 = vld [vmem:[%s10688_s30 + $0x708] sm:$0xff] }
 0x4f3   :  { %8314 = vmatprep.subr.mxu1 %v3507_v60  ;;  %v3094_v60 = vadd.f32 %v3093_v14, %v2148_v9 }
 0x4f4   :  { %8315 = vmatpush3.msra.mxu1 %v3491_v21  ;;  %v3565_v21 = vld [vmem:[%s10688_s30 + $0x780] sm:$0xff] }
 0x4f5   :  { %8316 = vmatprep.subr.mxu1 %v3506_v22 }
 0x4f6   :  { %8317 = vmatpush3.msra.mxu1 %v3490_v29 }
 0x4f7   :  { %8318 = vmatprep.subr.mxu1 %v3505_v24  ;;  %v3549_v24 = vld [vmem:[%s10688_s30 + $0x700] sm:$0xff] }
 0x4f8   :  { %8319 = vmatpush3.msra.mxu1 %v3489_v30 }
 0x4f9   :  { %8320 = vmatprep.subr.mxu1 %v3504_v52 }
 0x4fa   :  { %8321 = vmatpush3.msra.mxu1 %v3488_v51 }
 0x4fb   :  { %8322 = vmatprep.subr.mxu1 %v3503_v50  ;;  %v2152_v50 = vrot.slane %v9519_v46, %v9850_v13  ;;  %v4184_v46 = vld [vmem:[#allocation16 + $0x108] sm:$0xff] }
 0x4fc   :  { %8323 = vmatpush3.msra.mxu1 %v3487_v31 }
 0x4fd   :  { %8324 = vmatprep.subr.mxu1 %v3502_v27 }
 0x4fe   :  { %8325 = vmatpush3.msra.mxu1 %v3486_v32 }
 0x4ff   :  { %8326 = vmatprep.subr.mxu1 %v3501_v18 }
 0x500   :  { %8327 = vmatpush3.msra.mxu1 %v3485_v33 }
 0x501   :  { %4003 = vmatmul.mubr.f32.vlgmr.msra.gmra.mxu1 %v3319_v36  ;;  %8366 = vmatprep.subr.mxu1 %v3580_v34 }
 0x502   :  { %8367 = vmatpush3.msra.mxu1 %v3564_v37 }
 0x503   :  { %8368 = vmatprep.subr.mxu1 %v3579_v42  ;;  %v4200_v42 = vld [vmem:[#allocation16 + $0x188] sm:$0xff] }
 0x504   :  { %8369 = vmatpush3.msra.mxu1 %v3563_v63  ;;  %v4202_v63 = vld [vmem:[#allocation16 + $0x198] sm:$0xff]  ;;  %4326 = vmatprep.subr.mxu0 %v4200_v42  ;;  %v4187_v42 = vld [vmem:[#allocation16 + $0x120] sm:$0xff] }
 0x505   :  { %8370 = vmatprep.subr.mxu1 %v3578_v47  ;;  %v4199_v47 = vld [vmem:[#allocation16 + $0x180] sm:$0xff] }
 0x506   :  { %8371 = vmatpush3.msra.mxu1 %v3562_v49  ;;  %v4201_v49 = vld [vmem:[#allocation16 + $0x190] sm:$0xff] }
 0x507   :  { %8372 = vmatprep.subr.mxu1 %v3577_v45  ;;  %v4186_v45 = vld [vmem:[#allocation16 + $0x118] sm:$0xff] }
 0x508   :  { %8373 = vmatpush3.msra.mxu1 %v3561_v55  ;;  %v4183_v55 = vld [vmem:[#allocation16 + $0x100] sm:$0xff] }
 0x509   :  { %8374 = vmatprep.subr.mxu1 %v3576_v53  ;;  %v4185_v53 = vld [vmem:[#allocation16 + $0x110] sm:$0xff] }
 0x50a   :  { %8375 = vmatpush3.msra.mxu1 %v3560_v56  ;;  %v4168_v56 = vld [vmem:[#allocation16 + $0x88] sm:$0xff] }
 0x50b   :  { %8376 = vmatprep.subr.mxu1 %v3575_v12  ;;  %v4170_v12 = vld [vmem:[#allocation16 + $0x98] sm:$0xff] }
 0x50c   :  { %8377 = vmatpush3.msra.mxu1 %v3559_v58  ;;  %v4167_v58 = vld [vmem:[#allocation16 + $0x80] sm:$0xff] }
 0x50d   :  { %8378 = vmatprep.subr.mxu1 %v3574_v59  ;;  %v4169_v59 = vld [vmem:[#allocation16 + $0x90] sm:$0xff] }
 0x50e   :  { %8379 = vmatpush3.msra.mxu1 %v3558_v61  ;;  %v4152_v61 = vld [vmem:[#allocation16 + $0x8] sm:$0xff] }
 0x50f   :  { %8380 = vmatprep.subr.mxu1 %v3573_v62  ;;  %v4154_v62 = vld [vmem:[#allocation16 + $0x18] sm:$0xff] }
 0x510   :  { %8381 = vmatpush3.msra.mxu1 %v3557_v11  ;;  %v4151_v11 = vld [vmem:[#allocation16] sm:$0xff] }
 0x511   :  { %8382 = vmatprep.subr.mxu1 %v3572_v23  ;;  %v4153_v23 = vld [vmem:[#allocation16 + $0x10] sm:$0xff] }
 0x512   :  { %8383 = vmatpush3.msra.mxu1 %v3556_v1  ;;  %v4204_v1 = vld [vmem:[#allocation16 + $0x1a8] sm:$0xff] }
 0x513   :  { %8384 = vmatprep.subr.mxu1 %v3571_v26  ;;  %v4206_v26 = vld [vmem:[#allocation16 + $0x1b8] sm:$0xff] }
 0x514   :  { %8385 = vmatpush3.msra.mxu1 %v3555_v3 }
 0x515   :  { %8386 = vmatprep.subr.mxu1 %v3570_v5 }
 0x516   :  { %8387 = vmatpush3.msra.mxu1 %v3554_v6 }
 0x517   :  { %8388 = vmatprep.subr.mxu1 %v3569_v38 }
 0x518   :  { %8389 = vmatpush3.msra.mxu1 %v3553_v4 }
 0x519   :  { %8390 = vmatprep.subr.mxu1 %v3568_v7  ;;  %v8106_v7 = vld [vmem:[#allocation14] ss:$0 sm:$0xff] }
 0x51a   :  { %8391 = vmatpush3.msra.mxu1 %v3552_v35 }
 0x51b   :  { %v3162_v19 = vpop.f32.mrf.mxu1  ;;  %8392 = vmatprep.subr.mxu1 %v3567_v10 }
 0x51c   :  { %8393 = vmatpush3.msra.mxu1 %v3551_v16  ;;  %v3163_v22 = vadd.f32 %v3162_v19, %v3092_v39 }
 0x51d   :  { %v3164_v29 = vpop.f32.mrf.mxu1  ;;  %8394 = vmatprep.subr.mxu1 %v3566_v17  ;;  %v3233_v51 = vpop.f32.mrf.mxu0 }
 0x51e   :  { %v3165_v25 = vadd.f32 %v3164_v29, %v3094_v60  ;;  %8395 = vmatpush3.msra.mxu1 %v3550_v20  ;;  %v3321_v52 = vmax.f32 %v3163_v22, 0.0  ;;  %v3234_v27 = vadd.f32 %v3233_v51, %v2152_v50 }
 0x51f   :  { %8396 = vmatprep.subr.mxu1 %v3565_v21  ;;  %v3235_v31 = vpop.f32.mrf.mxu0 }
 0x520   :  { %v3322_v30 = vmax.f32 %v3165_v25, 0.0  ;;  %8397 = vmatpush3.msra.mxu1 %v3549_v24  ;;  %v3236_v32 = vadd.f32 %v3235_v31, %v2156_v57 }
 0x521   :  { %4397 = vmatprep.subr.mxu1 %v4202_v63  ;;  %v4189_v63 = vld [vmem:[#allocation16 + $0x130] sm:$0xff] }
 0x522   :  { %4072 = vmatprep.mubr.f32.mxu0 %v3322_v30 }
 0x523   :  { %4073 = vmatmul.mubr.f32.vlgmr.msra.gmra.mxu0 %v3321_v52 }
 0x524   :  { %4366 = vmatprep.mubr.f32.mxu0 %v8999_v0  ;;  %4327 = vmatpush1.msra.mxu0 %v4199_v47 }
 0x525   :  { %4328 = vmatprep.subr.mxu0 %v4184_v46  ;;  %v4172_v46 = vld [vmem:[#allocation16 + $0xa8] sm:$0xff] }
 0x526   :  { %4329 = vmatpush1.msra.mxu0 %v4183_v55  ;;  %v4174_v55 = vld [vmem:[#allocation16 + $0xb8] sm:$0xff] }
 0x527   :  { %4330 = vmatprep.subr.mxu0 %v4168_v56  ;;  %v4173_v56 = vld [vmem:[#allocation16 + $0xb0] sm:$0xff] }
 0x528   :  { %4331 = vmatpush1.msra.mxu0 %v4167_v58  ;;  %v4158_v58 = vld [vmem:[#allocation16 + $0x38] sm:$0xff] }
 0x529   :  { %4332 = vmatprep.subr.mxu0 %v4152_v61  ;;  %v4157_v61 = vld [vmem:[#allocation16 + $0x30] sm:$0xff] }
 0x52a   :  { %4333 = vmatpush1.msra.mxu0 %v4151_v11  ;;  %v4210_v11 = vld [vmem:[#allocation16 + $0x1d8] sm:$0xff] }
 0x52b   :  { %4468 = vmatprep.subr.mxu0 %v4204_v1  ;;  %v4209_v1 = vld [vmem:[#allocation16 + $0x1d0] sm:$0xff] }
 0x53f   :  { %v8153_v3 = vpop.f32.mrf.mxu0 }
 0x541   :  { %v8154_v5 = vpop.f32.mrf.mxu0 }
 0x542   :  { %v8155_v4 = vadd.f32 %v8154_v5, %v8153_v3  ;;  %v4194_v3 = vld [vmem:[#allocation16 + $0x158] sm:$0xff]  ;;  %v4191_v5 = vld [vmem:[#allocation16 + $0x140] sm:$0xff] }
 0x544   :  { %v3655_v14 = vadd.f32 %v8155_v4, %v8106_v7  ;;  %v4175_v4 = vld [vmem:[#allocation16 + $0xc0] sm:$0xff]  ;;  %v4177_v7 = vld [vmem:[#allocation16 + $0xd0] sm:$0xff] }
 0x55e   :  { %v3304_v28 = vpop.f32.mrf.mxu1 }
 0x55f   :  { %v3305_v18 = vadd.f32 %v3304_v28, %v3234_v27 }
 0x560   :  { %v3306_v33 = vpop.f32.mrf.mxu1 }
 0x561   :  { %v3307_v34 = vadd.f32 %v3306_v33, %v3236_v32  ;;  %v3323_v37 = vmax.f32 %v3305_v18, 0.0  ;;  %v8223_v38 = vpop.f32.mrf.mxu0  ;;  %v4203_v33 = vld [vmem:[#allocation16 + $0x1a0] sm:$0xff] }
 0x563   :  { %v3324_v36 = vmax.f32 %v3307_v34, 0.0  ;;  %v8224_v8 = vpop.f32.mrf.mxu0  ;;  %v4205_v34 = vld [vmem:[#allocation16 + $0x1b0] sm:$0xff] }
 0x564   :  { %v8225_v20 = vadd.f32 %v8224_v8, %v8223_v38  ;;  %v4176_v38 = vld [vmem:[#allocation16 + $0xc8] sm:$0xff] }
 0x565   :  { %4142 = vmatprep.mubr.f32.mxu1 %v3324_v36  ;;  %v4188_v36 = vld [vmem:[#allocation16 + $0x128] sm:$0xff] }
 0x566   :  { %4143 = vmatmul.mubr.f32.vlgmr.msra.gmra.mxu1 %v3323_v37  ;;  %v4190_v37 = vld [vmem:[#allocation16 + $0x138] sm:$0xff]  ;;  %v4160_v8 = vld [vmem:[#allocation16 + $0x48] sm:$0xff] }
 0x567   :  { %4437 = vmatprep.mubr.f32.mxu1 %v8999_v0  ;;  %4398 = vmatpush1.msra.mxu1 %v4201_v49 }
 0x568   :  { %4399 = vmatprep.subr.mxu1 %v4186_v45 }
 0x569   :  { %4400 = vmatpush1.msra.mxu1 %v4185_v53  ;;  %v4171_v53 = vld [vmem:[#allocation16 + $0xa0] sm:$0xff] }
 0x56a   :  { %4401 = vmatprep.subr.mxu1 %v4170_v12  ;;  %v4156_v12 = vld [vmem:[#allocation16 + $0x28] sm:$0xff] }
 0x56b   :  { %4402 = vmatpush1.msra.mxu1 %v4169_v59  ;;  %v4155_v59 = vld [vmem:[#allocation16 + $0x20] sm:$0xff] }
 0x56c   :  { %4403 = vmatprep.subr.mxu1 %v4154_v62  ;;  %v4208_v62 = vld [vmem:[#allocation16 + $0x1c8] sm:$0xff] }
 0x56d   :  { %4404 = vmatpush1.msra.mxu1 %v4153_v23  ;;  %v4207_v23 = vld [vmem:[#allocation16 + $0x1c0] sm:$0xff] }
 0x56e   :  { %4539 = vmatprep.subr.mxu1 %v4206_v26  ;;  %v4192_v26 = vld [vmem:[#allocation16 + $0x148] sm:$0xff] }
 0x580   :  { %v8188_v6 = vpop.f32.mrf.mxu1 }
 0x582   :  { %v8189_v2 = vpop.f32.mrf.mxu1 }
 0x583   :  { %v8190_v9 = vadd.f32 %v8189_v2, %v8188_v6  ;;  %v8293_v10 = vpop.f32.mrf.mxu0  ;;  %v4193_v6 = vld [vmem:[#allocation16 + $0x150] sm:$0xff]  ;;  %v4178_v2 = vld [vmem:[#allocation16 + $0xd8] sm:$0xff] }
 0x585   :  { %v3725_v17 = vadd.f32 %v8190_v9, %v3655_v14  ;;  %v8294_v39 = vpop.f32.mrf.mxu0  ;;  %v4159_v9 = vld [vmem:[#allocation16 + $0x40] sm:$0xff]  ;;  %v4212_v14 = vld [vmem:[#allocation16 + $0x1e8] sm:$0xff] }
 0x586   :  { %v8295_v30 = vadd.f32 %v8294_v39, %v8293_v10  ;;  %v4161_v10 = vld [vmem:[#allocation16 + $0x50] sm:$0xff] }
 0x587   :  { %v3795_v22 = vadd.f32 %v8225_v20, %v3725_v17  ;;  %v4211_v17 = vld [vmem:[#allocation16 + $0x1e0] sm:$0xff]  ;;  %v4213_v39 = vld [vmem:[#allocation16 + $0x1f0] sm:$0xff]  ;;  %v4198_v20 = vld [vmem:[#allocation16 + $0x178] sm:$0xff] }
 0x5a1   :  { %v8258_v35 = vpop.f32.mrf.mxu1 }
 0x5a3   :  { %v8259_v16 = vpop.f32.mrf.mxu1 }
 0x5a4   :  { %v8260_v60 = vadd.f32 %v8259_v16, %v8258_v35  ;;  %v4162_v35 = vld [vmem:[#allocation16 + $0x58] sm:$0xff] }
 0x5a5   :  { %v4214_v16 = vld [vmem:[#allocation16 + $0x1f8] sm:$0xff] }
 0x5a6   :  { %v3865_v24 = vadd.f32 %v8260_v60, %v3795_v22  ;;  %v4195_v60 = vld [vmem:[#allocation16 + $0x160] sm:$0xff]  ;;  %v4180_v22 = vld [vmem:[#allocation16 + $0xe8] sm:$0xff] }
 0x5a8   :  { %v3935_v51 = vadd.f32 %v8295_v30, %v3865_v24  ;;  %v4179_v24 = vld [vmem:[#allocation16 + $0xe0] sm:$0xff]  ;;  %v4164_v30 = vld [vmem:[#allocation16 + $0x68] sm:$0xff] }
 0x5c1   :  { %v8328_v19 = vpop.f32.mrf.mxu1 }
 0x5c3   :  { %v8329_v29 = vpop.f32.mrf.mxu1 }
 0x5c4   :  { %v8330_v52 = vadd.f32 %v8329_v29, %v8328_v19  ;;  %v4196_v19 = vld [vmem:[#allocation16 + $0x168] sm:$0xff]  ;;  %v4182_v29 = vld [vmem:[#allocation16 + $0xf8] sm:$0xff] }
 0x5c6   :  { %v4005_v31 = vadd.f32 %v8330_v52, %v3935_v51  ;;  %v4166_v52 = vld [vmem:[#allocation16 + $0x78] sm:$0xff]  ;;  %v4163_v51 = vld [vmem:[#allocation16 + $0x60] sm:$0xff] }
 0x5e3   :  { %v8363_v21 = vpop.f32.mrf.mxu0 }
 0x5e5   :  { %v8364_v25 = vpop.f32.mrf.mxu0 }
 0x5e6   :  { %v8365_v50 = vadd.f32 %v8364_v25, %v8363_v21  ;;  %v4197_v21 = vld [vmem:[#allocation16 + $0x170] sm:$0xff] }
 0x5e7   :  { %v4181_v25 = vld [vmem:[#allocation16 + $0xf0] sm:$0xff] }
 0x5e8   :  { %v4075_v28 = vadd.f32 %v8365_v50, %v4005_v31  ;;  %v4165_v50 = vld [vmem:[#allocation16 + $0x70] sm:$0xff]  ;;  %v5075_v31 = vld [vmem:[#allocation19 + $0x5e8] sm:$0xff] }
 0x626   :  { %v8398_v57 = vpop.f32.mrf.mxu1 }
 0x628   :  { %v8399_v27 = vpop.f32.mrf.mxu1 }
 0x629   :  { %v8400_v32 = vadd.f32 %v8399_v27, %v8398_v57  ;;  %v4947_v57 = vld [vmem:[#allocation19 + $0x1e8] sm:$0xff]  ;;  %v4946_v27 = vld [vmem:[#allocation19 + $0x1e0] sm:$0xff] }
 0x62b   :  { %v10154_v18 = vadd.f32 %v8400_v32, %v4075_v28  ;;  %v5074_v28 = vld [vmem:[#allocation19 + $0x5e0] sm:$0xff]  ;;  %v4943_v32 = vld [vmem:[#allocation19 + $0x1c8] sm:$0xff] }
 0x62d   :  { %8107 = vmatmul.mubr.msk.f32.vlgmr.msra.gmra.mxu0 %vm4148_vm1, %v10154_v18  ;;  %8108 = vmatmul.mubr.msk.f32.vlgmr.msra.gmra.mxu1 %vm4148_vm1, %v10154_v18  ;;  %v7949_v47 = vmul.f32 %v10154_v18, %v10154_v18  ;;  %v4149_v49 = vsel %vm4148_vm1, %v10154_v18, 0.0 }
 0x62e   :  { %4469 = vmatpush1.msra.mxu0 %v4203_v33  ;;  %4540 = vmatpush1.msra.mxu1 %v4205_v34  ;;  %4150 = vst [vmem:[#allocation31] sm:$0xff] %v4149_v49  ;;  %v5071_v33 = vld [vmem:[#allocation19 + $0x5c8] sm:$0xff]  ;;  %v4942_v34 = vld [vmem:[#allocation19 + $0x1c0] sm:$0xff] }
 0x62f   :  { %4470 = vmatprep.subr.mxu0 %v4188_v36  ;;  %4541 = vmatprep.subr.mxu1 %v4190_v37  ;;  %v7950_v45 = vsel %vm4148_vm1, %v7949_v47, 0.0  ;;  %v5070_v36 = vld [vmem:[#allocation19 + $0x5c0] sm:$0xff]  ;;  %v4939_v37 = vld [vmem:[#allocation19 + $0x1a8] sm:$0xff] }
 0x630   :  { %4471 = vmatpush1.msra.mxu0 %v4187_v42  ;;  %4542 = vmatpush1.msra.mxu1 %v4189_v63  ;;  %v5067_v42 = vld [vmem:[#allocation19 + $0x5a8] sm:$0xff]  ;;  %v4938_v63 = vld [vmem:[#allocation19 + $0x1a0] sm:$0xff] }
 0x631   :  { %7951 = vadd.xlane.f32.xlu0 %v7950_v45  ;;  %4472 = vmatprep.subr.mxu0 %v4172_v46  ;;  %v5066_v47 = vld [vmem:[#allocation19 + $0x5a0] sm:$0xff]  ;;  %v4935_v49 = vld [vmem:[#allocation19 + $0x188] sm:$0xff] }
 0x632   :  { %4543 = vmatprep.subr.mxu1 %v4174_v55  ;;  %4473 = vmatpush1.msra.mxu0 %v4171_v53  ;;  %v5063_v46 = vld [vmem:[#allocation19 + $0x588] sm:$0xff]  ;;  %v4934_v45 = vld [vmem:[#allocation19 + $0x180] sm:$0xff] }
 0x633   :  { %4544 = vmatpush1.msra.mxu1 %v4173_v56  ;;  %4474 = vmatprep.subr.mxu0 %v4156_v12  ;;  %v5062_v55 = vld [vmem:[#allocation19 + $0x580] sm:$0xff]  ;;  %v4931_v53 = vld [vmem:[#allocation19 + $0x168] sm:$0xff] }
 0x634   :  { %4545 = vmatprep.subr.mxu1 %v4158_v58  ;;  %4475 = vmatpush1.msra.mxu0 %v4155_v59  ;;  %v5059_v56 = vld [vmem:[#allocation19 + $0x568] sm:$0xff]  ;;  %v4930_v12 = vld [vmem:[#allocation19 + $0x160] sm:$0xff] }
 0x635   :  { %4508 = vmatprep.mubr.f32.mxu0 %v8999_v0  ;;  %4546 = vmatpush1.msra.mxu1 %v4157_v61  ;;  %v5058_v58 = vld [vmem:[#allocation19 + $0x560] sm:$0xff]  ;;  %v4927_v59 = vld [vmem:[#allocation19 + $0x148] sm:$0xff] }
 0x636   :  { %4579 = vmatprep.mubr.f32.mxu1 %v8999_v0  ;;  %8109 = vmatmul.mubr.msk.f32.vlgmr.msra.gmra.mxu0 %vm4148_vm1, %v10154_v18  ;;  %v5055_v61 = vld [vmem:[#allocation19 + $0x548] sm:$0xff] }
 0x637   :  { %8110 = vmatmul.mubr.msk.f32.vlgmr.msra.gmra.mxu1 %vm4148_vm1, %v10154_v18  ;;  %4610 = vmatprep.subr.mxu0 %v4208_v62  ;;  %v4926_v62 = vld [vmem:[#allocation19 + $0x140] sm:$0xff] }
 0x638   :  { %4681 = vmatprep.subr.mxu1 %v4210_v11  ;;  %4611 = vmatpush1.msra.mxu0 %v4207_v23  ;;  %v5054_v11 = vld [vmem:[#allocation19 + $0x540] sm:$0xff]  ;;  %v4923_v23 = vld [vmem:[#allocation19 + $0x128] sm:$0xff] }
 0x639   :  { %4682 = vmatpush1.msra.mxu1 %v4209_v1  ;;  %4612 = vmatprep.subr.mxu0 %v4192_v26  ;;  %v5051_v1 = vld [vmem:[#allocation19 + $0x528] sm:$0xff]  ;;  %v4922_v26 = vld [vmem:[#allocation19 + $0x120] sm:$0xff] }
 0x63a   :  { %4683 = vmatprep.subr.mxu1 %v4194_v3  ;;  %4613 = vmatpush1.msra.mxu0 %v4191_v5  ;;  %v5050_v3 = vld [vmem:[#allocation19 + $0x520] sm:$0xff]  ;;  %v4919_v5 = vld [vmem:[#allocation19 + $0x108] sm:$0xff] }
 0x63b   :  { %4684 = vmatpush1.msra.mxu1 %v4193_v6  ;;  %4614 = vmatprep.subr.mxu0 %v4176_v38  ;;  %v5047_v6 = vld [vmem:[#allocation19 + $0x508] sm:$0xff]  ;;  %v4918_v38 = vld [vmem:[#allocation19 + $0x100] sm:$0xff] }
 0x63c   :  { %4685 = vmatprep.subr.mxu1 %v4178_v2  ;;  %4615 = vmatpush1.msra.mxu0 %v4175_v4  ;;  %v5046_v2 = vld [vmem:[#allocation19 + $0x500] sm:$0xff]  ;;  %v4915_v4 = vld [vmem:[#allocation19 + $0xe8] sm:$0xff] }
 0x63d   :  { %4686 = vmatpush1.msra.mxu1 %v4177_v7  ;;  %4616 = vmatprep.subr.mxu0 %v4160_v8  ;;  %v5043_v7 = vld [vmem:[#allocation19 + $0x4e8] sm:$0xff]  ;;  %v4914_v8 = vld [vmem:[#allocation19 + $0xe0] sm:$0xff] }
 0x63e   :  { %4687 = vmatprep.subr.mxu1 %v4162_v35  ;;  %4617 = vmatpush1.msra.mxu0 %v4159_v9  ;;  %v5042_v35 = vld [vmem:[#allocation19 + $0x4e0] sm:$0xff]  ;;  %v4911_v9 = vld [vmem:[#allocation19 + $0xc8] sm:$0xff] }
 0x63f   :  { %4650 = vmatprep.mubr.f32.mxu0 %v8999_v0  ;;  %4688 = vmatpush1.msra.mxu1 %v4161_v10  ;;  %v5039_v10 = vld [vmem:[#allocation19 + $0x4c8] sm:$0xff] }
 0x640   :  { %4721 = vmatprep.mubr.f32.mxu1 %v8999_v0  ;;  %8111 = vmatmul.mubr.msk.f32.vlgmr.msra.gmra.mxu0 %vm4148_vm1, %v10154_v18 }
 0x641   :  { %8112 = vmatmul.mubr.msk.f32.vlgmr.msra.gmra.mxu1 %vm4148_vm1, %v10154_v18  ;;  %4752 = vmatprep.subr.mxu0 %v4212_v14  ;;  %v4910_v14 = vld [vmem:[#allocation19 + $0xc0] sm:$0xff] }
 0x642   :  { %4823 = vmatprep.subr.mxu1 %v4214_v16  ;;  %4753 = vmatpush1.msra.mxu0 %v4211_v17  ;;  %v5038_v16 = vld [vmem:[#allocation19 + $0x4c0] sm:$0xff]  ;;  %v4907_v17 = vld [vmem:[#allocation19 + $0xa8] sm:$0xff] }
 0x643   :  { %4824 = vmatpush1.msra.mxu1 %v4213_v39  ;;  %4754 = vmatprep.subr.mxu0 %v4196_v19  ;;  %v5035_v39 = vld [vmem:[#allocation19 + $0x4a8] sm:$0xff]  ;;  %v4906_v19 = vld [vmem:[#allocation19 + $0xa0] sm:$0xff] }
 0x644   :  { %4825 = vmatprep.subr.mxu1 %v4198_v20  ;;  %4755 = vmatpush1.msra.mxu0 %v4195_v60  ;;  %v5034_v20 = vld [vmem:[#allocation19 + $0x4a0] sm:$0xff]  ;;  %v4903_v60 = vld [vmem:[#allocation19 + $0x88] sm:$0xff] }
 0x645   :  { %4826 = vmatpush1.msra.mxu1 %v4197_v21  ;;  %4756 = vmatprep.subr.mxu0 %v4180_v22  ;;  %v5031_v21 = vld [vmem:[#allocation19 + $0x488] sm:$0xff]  ;;  %v4902_v22 = vld [vmem:[#allocation19 + $0x80] sm:$0xff] }
 0x646   :  { %4827 = vmatprep.subr.mxu1 %v4182_v29  ;;  %4757 = vmatpush1.msra.mxu0 %v4179_v24  ;;  %v5030_v29 = vld [vmem:[#allocation19 + $0x480] sm:$0xff]  ;;  %v4899_v24 = vld [vmem:[#allocation19 + $0x68] sm:$0xff] }
 0x647   :  { %4828 = vmatpush1.msra.mxu1 %v4181_v25  ;;  %4758 = vmatprep.subr.mxu0 %v4164_v30  ;;  %v5027_v25 = vld [vmem:[#allocation19 + $0x468] sm:$0xff]  ;;  %v4898_v30 = vld [vmem:[#allocation19 + $0x60] sm:$0xff] }
 0x648   :  { %4829 = vmatprep.subr.mxu1 %v4166_v52  ;;  %4759 = vmatpush1.msra.mxu0 %v4163_v51  ;;  %v5026_v52 = vld [vmem:[#allocation19 + $0x460] sm:$0xff]  ;;  %v4895_v51 = vld [vmem:[#allocation19 + $0x48] sm:$0xff] }
 0x649   :  { %4792 = vmatprep.mubr.f32.mxu0 %v8999_v0  ;;  %4830 = vmatpush1.msra.mxu1 %v4165_v50  ;;  %v5023_v50 = vld [vmem:[#allocation19 + $0x448] sm:$0xff] }
 0x64a   :  { %4863 = vmatprep.mubr.f32.mxu1 %v8999_v0  ;;  %8113 = vmatmul.mubr.msk.f32.vlgmr.msra.gmra.mxu0 %vm4148_vm1, %v10154_v18 }
 0x64b   :  { %8114 = vmatmul.mubr.msk.f32.vlgmr.msra.gmra.mxu1 %vm4148_vm1, %v10154_v18  ;;  %5932 = vmatprep.subr.mxu0 %v4947_v57  ;;  %v4894_v57 = vld [vmem:[#allocation19 + $0x40] sm:$0xff] }
 0x64c   :  { %6003 = vmatprep.subr.mxu1 %v5075_v31  ;;  %5933 = vmatpush1.msra.mxu0 %v4946_v27  ;;  %v5022_v31 = vld [vmem:[#allocation19 + $0x440] sm:$0xff]  ;;  %v4891_v27 = vld [vmem:[#allocation19 + $0x28] sm:$0xff] }
 0x64d   :  { %6004 = vmatpush1.msra.mxu1 %v5074_v28  ;;  %5934 = vmatprep.subr.mxu0 %v4943_v32  ;;  %v5019_v28 = vld [vmem:[#allocation19 + $0x428] sm:$0xff]  ;;  %v4890_v32 = vld [vmem:[#allocation19 + $0x20] sm:$0xff] }
 0x64e   :  { %6005 = vmatprep.subr.mxu1 %v5071_v33  ;;  %5935 = vmatpush1.msra.mxu0 %v4942_v34  ;;  %v5018_v33 = vld [vmem:[#allocation19 + $0x420] sm:$0xff]  ;;  %v4887_v34 = vld [vmem:[#allocation19 + $0x8] sm:$0xff] }
 0x64f   :  { %6006 = vmatpush1.msra.mxu1 %v5070_v36  ;;  %5936 = vmatprep.subr.mxu0 %v4939_v37  ;;  %v5015_v36 = vld [vmem:[#allocation19 + $0x408] sm:$0xff]  ;;  %v4886_v37 = vld [vmem:[#allocation19] sm:$0xff] }
 0x650   :  { %6007 = vmatprep.subr.mxu1 %v5067_v42  ;;  %5937 = vmatpush1.msra.mxu0 %v4938_v63  ;;  %v5014_v42 = vld [vmem:[#allocation19 + $0x400] sm:$0xff]  ;;  %v5011_v63 = vld [vmem:[#allocation19 + $0x3e8] sm:$0xff] }
 0x651   :  { %6008 = vmatpush1.msra.mxu1 %v5066_v47  ;;  %5938 = vmatprep.subr.mxu0 %v4935_v49  ;;  %v5139_v47 = vld [vmem:[#allocation19 + $0x7e8] sm:$0xff]  ;;  %v5010_v49 = vld [vmem:[#allocation19 + $0x3e0] sm:$0xff] }
 0x652   :  { %6009 = vmatprep.subr.mxu1 %v5063_v46  ;;  %5939 = vmatpush1.msra.mxu0 %v4934_v45  ;;  %v5138_v46 = vld [vmem:[#allocation19 + $0x7e0] sm:$0xff]  ;;  %v5007_v45 = vld [vmem:[#allocation19 + $0x3c8] sm:$0xff] }
 0x653   :  { %6010 = vmatpush1.msra.mxu1 %v5062_v55  ;;  %5940 = vmatprep.subr.mxu0 %v4931_v53  ;;  %v5135_v55 = vld [vmem:[#allocation19 + $0x7c8] sm:$0xff]  ;;  %v5006_v53 = vld [vmem:[#allocation19 + $0x3c0] sm:$0xff] }
 0x654   :  { %6011 = vmatprep.subr.mxu1 %v5059_v56  ;;  %5941 = vmatpush1.msra.mxu0 %v4930_v12  ;;  %v5134_v56 = vld [vmem:[#allocation19 + $0x7c0] sm:$0xff]  ;;  %v5003_v12 = vld [vmem:[#allocation19 + $0x3a8] sm:$0xff] }
 0x655   :  { %6012 = vmatpush1.msra.mxu1 %v5058_v58  ;;  %5942 = vmatprep.subr.mxu0 %v4927_v59  ;;  %v5131_v58 = vld [vmem:[#allocation19 + $0x7a8] sm:$0xff]  ;;  %v5002_v59 = vld [vmem:[#allocation19 + $0x3a0] sm:$0xff] }
 0x656   :  { %6013 = vmatprep.subr.mxu1 %v5055_v61  ;;  %5943 = vmatpush1.msra.mxu0 %v4926_v62  ;;  %v5130_v61 = vld [vmem:[#allocation19 + $0x7a0] sm:$0xff]  ;;  %v4999_v62 = vld [vmem:[#allocation19 + $0x388] sm:$0xff] }
 0x657   :  { %6014 = vmatpush1.msra.mxu1 %v5054_v11  ;;  %5944 = vmatprep.subr.mxu0 %v4923_v23  ;;  %v5127_v11 = vld [vmem:[#allocation19 + $0x788] sm:$0xff]  ;;  %v4998_v23 = vld [vmem:[#allocation19 + $0x380] sm:$0xff] }
 0x658   :  { %6015 = vmatprep.subr.mxu1 %v5051_v1  ;;  %5945 = vmatpush1.msra.mxu0 %v4922_v26  ;;  %v5126_v1 = vld [vmem:[#allocation19 + $0x780] sm:$0xff]  ;;  %v4995_v26 = vld [vmem:[#allocation19 + $0x368] sm:$0xff] }
 0x659   :  { %6016 = vmatpush1.msra.mxu1 %v5050_v3  ;;  %5946 = vmatprep.subr.mxu0 %v4919_v5  ;;  %v5123_v3 = vld [vmem:[#allocation19 + $0x768] sm:$0xff]  ;;  %v4994_v5 = vld [vmem:[#allocation19 + $0x360] sm:$0xff] }
 0x65a   :  { %6017 = vmatprep.subr.mxu1 %v5047_v6  ;;  %5947 = vmatpush1.msra.mxu0 %v4918_v38  ;;  %v5122_v6 = vld [vmem:[#allocation19 + $0x760] sm:$0xff]  ;;  %v4991_v38 = vld [vmem:[#allocation19 + $0x348] sm:$0xff] }
 0x65b   :  { %6018 = vmatpush1.msra.mxu1 %v5046_v2  ;;  %5948 = vmatprep.subr.mxu0 %v4915_v4  ;;  %v5119_v2 = vld [vmem:[#allocation19 + $0x748] sm:$0xff]  ;;  %v4990_v4 = vld [vmem:[#allocation19 + $0x340] sm:$0xff] }
 0x65c   :  { %6019 = vmatprep.subr.mxu1 %v5043_v7  ;;  %5949 = vmatpush1.msra.mxu0 %v4914_v8  ;;  %v5118_v7 = vld [vmem:[#allocation19 + $0x740] sm:$0xff]  ;;  %v4987_v8 = vld [vmem:[#allocation19 + $0x328] sm:$0xff] }
 0x65d   :  { %6020 = vmatpush1.msra.mxu1 %v5042_v35  ;;  %5950 = vmatprep.subr.mxu0 %v4911_v9  ;;  %v5115_v35 = vld [vmem:[#allocation19 + $0x728] sm:$0xff]  ;;  %v4986_v9 = vld [vmem:[#allocation19 + $0x320] sm:$0xff] }
 0x65e   :  { %6021 = vmatprep.subr.mxu1 %v5039_v10  ;;  %5951 = vmatpush1.msra.mxu0 %v4910_v14  ;;  %v5114_v10 = vld [vmem:[#allocation19 + $0x720] sm:$0xff]  ;;  %v4983_v14 = vld [vmem:[#allocation19 + $0x308] sm:$0xff] }
 0x65f   :  { %6022 = vmatpush1.msra.mxu1 %v5038_v16  ;;  %5952 = vmatprep.subr.mxu0 %v4907_v17  ;;  %v5111_v16 = vld [vmem:[#allocation19 + $0x708] sm:$0xff]  ;;  %v4982_v17 = vld [vmem:[#allocation19 + $0x300] sm:$0xff] }
 0x660   :  { %6023 = vmatprep.subr.mxu1 %v5035_v39  ;;  %5953 = vmatpush1.msra.mxu0 %v4906_v19  ;;  %v5110_v39 = vld [vmem:[#allocation19 + $0x700] sm:$0xff]  ;;  %v4979_v19 = vld [vmem:[#allocation19 + $0x2e8] sm:$0xff] }
 0x661   :  { %6024 = vmatpush1.msra.mxu1 %v5034_v20  ;;  %5954 = vmatprep.subr.mxu0 %v4903_v60  ;;  %v5107_v20 = vld [vmem:[#allocation19 + $0x6e8] sm:$0xff]  ;;  %v4978_v60 = vld [vmem:[#allocation19 + $0x2e0] sm:$0xff] }
 0x662   :  { %6025 = vmatprep.subr.mxu1 %v5031_v21  ;;  %5955 = vmatpush1.msra.mxu0 %v4902_v22  ;;  %v5106_v21 = vld [vmem:[#allocation19 + $0x6e0] sm:$0xff]  ;;  %v4975_v22 = vld [vmem:[#allocation19 + $0x2c8] sm:$0xff] }
 0x663   :  { %6026 = vmatpush1.msra.mxu1 %v5030_v29  ;;  %5956 = vmatprep.subr.mxu0 %v4899_v24  ;;  %v5103_v29 = vld [vmem:[#allocation19 + $0x6c8] sm:$0xff]  ;;  %v4974_v24 = vld [vmem:[#allocation19 + $0x2c0] sm:$0xff] }
 0x664   :  { %6027 = vmatprep.subr.mxu1 %v5027_v25  ;;  %5957 = vmatpush1.msra.mxu0 %v4898_v30  ;;  %v5102_v25 = vld [vmem:[#allocation19 + $0x6c0] sm:$0xff]  ;;  %v4971_v30 = vld [vmem:[#allocation19 + $0x2a8] sm:$0xff] }
 0x665   :  { %6028 = vmatpush1.msra.mxu1 %v5026_v52  ;;  %5958 = vmatprep.subr.mxu0 %v4895_v51  ;;  %v5099_v52 = vld [vmem:[#allocation19 + $0x6a8] sm:$0xff]  ;;  %v4970_v51 = vld [vmem:[#allocation19 + $0x2a0] sm:$0xff] }
 0x666   :  { %6029 = vmatprep.subr.mxu1 %v5023_v50  ;;  %5959 = vmatpush1.msra.mxu0 %v4894_v57  ;;  %v5098_v50 = vld [vmem:[#allocation19 + $0x6a0] sm:$0xff]  ;;  %v4967_v57 = vld [vmem:[#allocation19 + $0x288] sm:$0xff] }
 0x667   :  { %6030 = vmatpush1.msra.mxu1 %v5022_v31  ;;  %5960 = vmatprep.subr.mxu0 %v4891_v27  ;;  %v5095_v31 = vld [vmem:[#allocation19 + $0x688] sm:$0xff]  ;;  %v4966_v27 = vld [vmem:[#allocation19 + $0x280] sm:$0xff] }
 0x668   :  { %6031 = vmatprep.subr.mxu1 %v5019_v28  ;;  %5961 = vmatpush1.msra.mxu0 %v4890_v32  ;;  %v5094_v28 = vld [vmem:[#allocation19 + $0x680] sm:$0xff]  ;;  %v4963_v32 = vld [vmem:[#allocation19 + $0x268] sm:$0xff] }
 0x669   :  { %6032 = vmatpush1.msra.mxu1 %v5018_v33  ;;  %5962 = vmatprep.subr.mxu0 %v4887_v34  ;;  %v5091_v33 = vld [vmem:[#allocation19 + $0x668] sm:$0xff]  ;;  %v4962_v34 = vld [vmem:[#allocation19 + $0x260] sm:$0xff] }
 0x66a   :  { %6033 = vmatprep.subr.mxu1 %v5015_v36  ;;  %5963 = vmatpush1.msra.mxu0 %v4886_v37  ;;  %v5090_v36 = vld [vmem:[#allocation19 + $0x660] sm:$0xff]  ;;  %v4959_v37 = vld [vmem:[#allocation19 + $0x248] sm:$0xff] }
 0x66b   :  { %6034 = vmatpush1.msra.mxu1 %v5014_v42  ;;  %5964 = vmatprep.subr.mxu0 %v5011_v63  ;;  %v5087_v42 = vld [vmem:[#allocation19 + $0x648] sm:$0xff]  ;;  %v4958_v63 = vld [vmem:[#allocation19 + $0x240] sm:$0xff] }
 0x66c   :  { %6035 = vmatprep.subr.mxu1 %v5139_v47  ;;  %5965 = vmatpush2.msra.mxu0 %v5010_v49  ;;  %v5086_v47 = vld [vmem:[#allocation19 + $0x640] sm:$0xff]  ;;  %v4955_v49 = vld [vmem:[#allocation19 + $0x228] sm:$0xff] }
 0x66d   :  { %6036 = vmatpush2.msra.mxu1 %v5138_v46  ;;  %5966 = vmatprep.subr.mxu0 %v5007_v45  ;;  %v5083_v46 = vld [vmem:[#allocation19 + $0x628] sm:$0xff]  ;;  %v4954_v45 = vld [vmem:[#allocation19 + $0x220] sm:$0xff] }
 0x66e   :  { %6037 = vmatprep.subr.mxu1 %v5135_v55  ;;  %5967 = vmatpush2.msra.mxu0 %v5006_v53  ;;  %v5082_v55 = vld [vmem:[#allocation19 + $0x620] sm:$0xff]  ;;  %v4951_v53 = vld [vmem:[#allocation19 + $0x208] sm:$0xff] }
 0x66f   :  { %6038 = vmatpush2.msra.mxu1 %v5134_v56  ;;  %5968 = vmatprep.subr.mxu0 %v5003_v12  ;;  %v5079_v56 = vld [vmem:[#allocation19 + $0x608] sm:$0xff]  ;;  %v4950_v12 = vld [vmem:[#allocation19 + $0x200] sm:$0xff] }
 0x670   :  { %6039 = vmatprep.subr.mxu1 %v5131_v58  ;;  %5969 = vmatpush2.msra.mxu0 %v5002_v59  ;;  %v5078_v58 = vld [vmem:[#allocation19 + $0x600] sm:$0xff]  ;;  %v5203_v59 = vld [vmem:[#allocation19 + $0x9e8] sm:$0xff] }
 0x671   :  { %6040 = vmatpush2.msra.mxu1 %v5130_v61  ;;  %5970 = vmatprep.subr.mxu0 %v4999_v62  ;;  %v5331_v61 = vld [vmem:[#allocation19 + $0xde8] sm:$0xff]  ;;  %v10183_v62 = vld [vmem:[#allocation17] sm:$0xff] }
 0x672   :  { %6041 = vmatprep.subr.mxu1 %v5127_v11  ;;  %5971 = vmatpush2.msra.mxu0 %v4998_v23  ;;  %v4222_v11 = vrot.slane %v10183_v62, %v9211_v41  ;;  %v4230_v23 = vrot.slane %v10183_v62, %v9208_v40 }
 0x673   :  { %6042 = vmatpush2.msra.mxu1 %v5126_v1  ;;  %5972 = vmatprep.subr.mxu0 %v4995_v26  ;;  %v4226_v1 = vrot.slane %v10183_v62, %v9214_v43  ;;  %v4234_v26 = vrot.slane %v10183_v62, %v9217_v44 }
 0x674   :  { %6043 = vmatprep.subr.mxu1 %v5123_v3  ;;  %5973 = vmatpush2.msra.mxu0 %v4994_v5 }
 0x675   :  { %6044 = vmatpush2.msra.mxu1 %v5122_v6  ;;  %5974 = vmatprep.subr.mxu0 %v4991_v38 }
 0x676   :  { %6045 = vmatprep.subr.mxu1 %v5119_v2  ;;  %5975 = vmatpush2.msra.mxu0 %v4990_v4 }
 0x677   :  { %6046 = vmatpush2.msra.mxu1 %v5118_v7  ;;  %5976 = vmatprep.subr.mxu0 %v4987_v8 }
 0x678   :  { %6047 = vmatprep.subr.mxu1 %v5115_v35  ;;  %5977 = vmatpush2.msra.mxu0 %v4986_v9 }
 0x679   :  { %6048 = vmatpush2.msra.mxu1 %v5114_v10  ;;  %5978 = vmatprep.subr.mxu0 %v4983_v14 }
 0x67a   :  { %6049 = vmatprep.subr.mxu1 %v5111_v16  ;;  %5979 = vmatpush2.msra.mxu0 %v4982_v17  ;;  %v5202_v16 = vld [vmem:[#allocation19 + $0x9e0] sm:$0xff] }
 0x67b   :  { %6050 = vmatpush2.msra.mxu1 %v5110_v39  ;;  %5980 = vmatprep.subr.mxu0 %v4979_v19  ;;  %v5330_v17 = vld [vmem:[#allocation19 + $0xde0] sm:$0xff]  ;;  %v5199_v39 = vld [vmem:[#allocation19 + $0x9c8] sm:$0xff] }
 0x67c   :  { %6051 = vmatprep.subr.mxu1 %v5107_v20  ;;  %5981 = vmatpush2.msra.mxu0 %v4978_v60  ;;  %v5327_v19 = vld [vmem:[#allocation19 + $0xdc8] sm:$0xff]  ;;  %v4242_v20 = vrot.slane %v10183_v62, %v9369_v48  ;;  %v5198_v60 = vld [vmem:[#allocation19 + $0x9c0] sm:$0xff] }
 0x67d   :  { %6052 = vmatpush2.msra.mxu1 %v5106_v21  ;;  %5982 = vmatprep.subr.mxu0 %v4975_v22  ;;  %v5326_v21 = vld [vmem:[#allocation19 + $0xdc0] sm:$0xff] }
 0x67e   :  { %6053 = vmatprep.subr.mxu1 %v5103_v29  ;;  %5983 = vmatpush2.msra.mxu0 %v4974_v24  ;;  %v4250_v29 = vrot.slane %v10183_v62, %v9661_v54  ;;  %v5195_v24 = vld [vmem:[#allocation19 + $0x9a8] sm:$0xff] }
 0x67f   :  { %6054 = vmatpush2.msra.mxu1 %v5102_v25  ;;  %5984 = vmatprep.subr.mxu0 %v4971_v30  ;;  %v5323_v25 = vld [vmem:[#allocation19 + $0xda8] sm:$0xff] }
 0x680   :  { %6055 = vmatprep.subr.mxu1 %v5099_v52  ;;  %5985 = vmatpush2.msra.mxu0 %v4970_v51  ;;  %v5194_v52 = vld [vmem:[#allocation19 + $0x9a0] sm:$0xff] }
 0x681   :  { %6056 = vmatpush2.msra.mxu1 %v5098_v50  ;;  %5986 = vmatprep.subr.mxu0 %v4967_v57  ;;  %v5322_v51 = vld [vmem:[#allocation19 + $0xda0] sm:$0xff]  ;;  %v5191_v57 = vld [vmem:[#allocation19 + $0x988] sm:$0xff] }
 0x682   :  { %6057 = vmatprep.subr.mxu1 %v5095_v31  ;;  %5987 = vmatpush2.msra.mxu0 %v4966_v27  ;;  %v5319_v31 = vld [vmem:[#allocation19 + $0xd88] sm:$0xff] }
 0x683   :  { %6058 = vmatpush2.msra.mxu1 %v5094_v28  ;;  %5988 = vmatprep.subr.mxu0 %v4963_v32  ;;  %v5190_v32 = vld [vmem:[#allocation19 + $0x980] sm:$0xff] }
 0x684   :  { %6059 = vmatprep.subr.mxu1 %v5091_v33  ;;  %5989 = vmatpush2.msra.mxu0 %v4962_v34  ;;  %v5318_v33 = vld [vmem:[#allocation19 + $0xd80] sm:$0xff] }
 0x685   :  { %6060 = vmatpush2.msra.mxu1 %v5090_v36  ;;  %5990 = vmatprep.subr.mxu0 %v4959_v37  ;;  %v10225_v36 = vld [vmem:[#allocation17 + $0x8] sm:$0xff]  ;;  %v5187_v37 = vld [vmem:[#allocation19 + $0x968] sm:$0xff] }
 0x686   :  { %6061 = vmatprep.subr.mxu1 %v5087_v42  ;;  %5991 = vmatpush2.msra.mxu0 %v4958_v63  ;;  %v5315_v63 = vld [vmem:[#allocation19 + $0xd68] sm:$0xff] }
 0x687   :  { %6062 = vmatpush2.msra.mxu1 %v5086_v47  ;;  %5992 = vmatprep.subr.mxu0 %v4955_v49  ;;  %v5186_v49 = vld [vmem:[#allocation19 + $0x960] sm:$0xff] }
 0x688   :  { %6063 = vmatprep.subr.mxu1 %v5083_v46  ;;  %5993 = vmatpush2.msra.mxu0 %v4954_v45  ;;  %v5314_v46 = vld [vmem:[#allocation19 + $0xd60] sm:$0xff]  ;;  %v4254_v45 = vrot.slane %v10225_v36, %v9211_v41 }
 0x689   :  { %6064 = vmatpush2.msra.mxu1 %v5082_v55  ;;  %5994 = vmatprep.subr.mxu0 %v4951_v53  ;;  %v5183_v55 = vld [vmem:[#allocation19 + $0x948] sm:$0xff] }
 0x68a   :  { %6065 = vmatprep.subr.mxu1 %v5079_v56  ;;  %5995 = vmatpush2.msra.mxu0 %v4950_v12  ;;  %v5311_v53 = vld [vmem:[#allocation19 + $0xd48] sm:$0xff]  ;;  %v4262_v56 = vrot.slane %v10225_v36, %v9208_v40  ;;  %v5182_v12 = vld [vmem:[#allocation19 + $0x940] sm:$0xff] }
 0x68b   :  { %6066 = vmatpush2.msra.mxu1 %v5078_v58  ;;  %6074 = vmatprep.subr.mxu0 %v5203_v59  ;;  %v5310_v58 = vld [vmem:[#allocation19 + $0xd40] sm:$0xff]  ;;  %v5179_v59 = vld [vmem:[#allocation19 + $0x928] sm:$0xff] }
 0x68c   :  { %6145 = vmatprep.subr.mxu1 %v5331_v61  ;;  %v5307_v61 = vld [vmem:[#allocation19 + $0xd28] sm:$0xff] }
 0x6ed   :  { %v4368_v3 = vpop.f32.mrf.mxu0  ;;  %v4439_v5 = vpop.f32.mrf.mxu1 }
 0x6ee   :  { %v10193_v6 = vadd.f32 %v4368_v3, %v4222_v11  ;;  %v10195_v38 = vadd.f32 %v4439_v5, %v4230_v23  ;;  %v5178_v23 = vld [vmem:[#allocation19 + $0x920] sm:$0xff]  ;;  %v5175_v5 = vld [vmem:[#allocation19 + $0x908] sm:$0xff] }
 0x6ef   :  { %v4370_v2 = vpop.f32.mrf.mxu0  ;;  %v4441_v4 = vpop.f32.mrf.mxu1 }
 0x6f0   :  { %v10197_v7 = vadd.f32 %v4370_v2, %v4226_v1  ;;  %v10199_v8 = vadd.f32 %v4441_v4, %v4234_v26  ;;  %v4870_v10 = vmax.f32 %v10193_v6, 0.0  ;;  %v4872_v14 = vmax.f32 %v10195_v38, 0.0  ;;  %v5306_v1 = vld [vmem:[#allocation19 + $0xd20] sm:$0xff]  ;;  %v5303_v2 = vld [vmem:[#allocation19 + $0xd08] sm:$0xff]  ;;  %v5197_v6 = vld [vmem:[#allocation19 + $0x9b8] sm:$0xff] }
 0x6f1   :  { %v5196_v38 = vld [vmem:[#allocation19 + $0x9b0] sm:$0xff] }
 0x6f2   :  { %v4871_v35 = vmax.f32 %v10197_v7, 0.0  ;;  %v4873_v9 = vmax.f32 %v10199_v8, 0.0  ;;  %v4936_v7 = vld [vmem:[#allocation19 + $0x190] sm:$0xff] }
 0x6f3   :  { %v4932_v8 = vld [vmem:[#allocation19 + $0x170] sm:$0xff] }
 0x6f4   :  { %5996 = vmatprep.mubr.f32.mxu0 %v4871_v35  ;;  %6067 = vmatprep.mubr.f32.mxu1 %v4873_v9 }
 0x6f5   :  { %5997 = vmatmul.mubr.f32.vlgmr.msra.gmra.mxu0 %v4870_v10  ;;  %6068 = vmatmul.mubr.f32.vlgmr.msra.gmra.mxu1 %v4872_v14 }
 0x6f6   :  { %v10215_v22 = vpop.f32.mrf.mxu0  ;;  %6075 = vmatpush1.msra.mxu0 %v5202_v16  ;;  %6146 = vmatpush1.msra.mxu1 %v5330_v17  ;;  %v5174_v16 = vld [vmem:[#allocation19 + $0x900] sm:$0xff] }
 0x6f7   :  { %v10219_v30 = vpop.f32.mrf.mxu1  ;;  %6076 = vmatprep.subr.mxu0 %v5199_v39  ;;  %6147 = vmatprep.subr.mxu1 %v5327_v19  ;;  %v5302_v17 = vld [vmem:[#allocation19 + $0xd00] sm:$0xff]  ;;  %v5171_v39 = vld [vmem:[#allocation19 + $0x8e8] sm:$0xff] }
 0x6f8   :  { %v4512_v50 = vpop.f32.mrf.mxu0  ;;  %6077 = vmatpush1.msra.mxu0 %v5198_v60  ;;  %6148 = vmatpush1.msra.mxu1 %v5326_v21  ;;  %v5299_v19 = vld [vmem:[#allocation19 + $0xce8] sm:$0xff]  ;;  %v5298_v60 = vld [vmem:[#allocation19 + $0xce0] sm:$0xff] }
 0x6f9   :  { %v10221_v27 = vadd.f32 %v4512_v50, %v4242_v20  ;;  %v4583_v28 = vpop.f32.mrf.mxu1  ;;  %6078 = vmatprep.subr.mxu0 %v5195_v24  ;;  %6149 = vmatprep.subr.mxu1 %v5323_v25  ;;  %v5170_v20 = vld [vmem:[#allocation19 + $0x8e0] sm:$0xff]  ;;  %v5167_v21 = vld [vmem:[#allocation19 + $0x8c8] sm:$0xff] }
 0x6fa   :  { %v10223_v34 = vadd.f32 %v4583_v28, %v4250_v29  ;;  %6079 = vmatpush1.msra.mxu0 %v5194_v52  ;;  %6150 = vmatpush1.msra.mxu1 %v5322_v51  ;;  %v5295_v29 = vld [vmem:[#allocation19 + $0xcc8] sm:$0xff]  ;;  %v5166_v24 = vld [vmem:[#allocation19 + $0x8c0] sm:$0xff]  ;;  %v4270_v52 = vrot.slane %v10225_v36, %v9477_v15 }
 0x6fb   :  { %v4875_v42 = vmax.f32 %v10221_v27, 0.0  ;;  %6080 = vmatprep.subr.mxu0 %v5191_v57  ;;  %6151 = vmatprep.subr.mxu1 %v5319_v31  ;;  %v5294_v25 = vld [vmem:[#allocation19 + $0xcc0] sm:$0xff]  ;;  %v5163_v51 = vld [vmem:[#allocation19 + $0x8a8] sm:$0xff]  ;;  %v4278_v31 = vrot.slane %v10225_v36, %v9850_v13  ;;  %v5192_v27 = vld [vmem:[#allocation19 + $0x990] sm:$0xff] }
 0x6fc   :  { %v4877_v47 = vmax.f32 %v10223_v34, 0.0  ;;  %6081 = vmatpush1.msra.mxu0 %v5190_v32  ;;  %6152 = vmatpush1.msra.mxu1 %v5318_v33  ;;  %v5291_v50 = vld [vmem:[#allocation19 + $0xca8] sm:$0xff]  ;;  %v5162_v28 = vld [vmem:[#allocation19 + $0x8a0] sm:$0xff]  ;;  %v5188_v34 = vld [vmem:[#allocation19 + $0x970] sm:$0xff] }
 0x6fd   :  { %6138 = vmatprep.mubr.f32.mxu0 %v4875_v42  ;;  %6082 = vmatprep.subr.mxu0 %v5187_v37  ;;  %v5290_v32 = vld [vmem:[#allocation19 + $0xca0] sm:$0xff]  ;;  %v5159_v37 = vld [vmem:[#allocation19 + $0x888] sm:$0xff] }
 0x6fe   :  { %6209 = vmatprep.mubr.f32.mxu1 %v4877_v47  ;;  %6153 = vmatprep.subr.mxu1 %v5315_v63  ;;  %v5287_v63 = vld [vmem:[#allocation19 + $0xc88] sm:$0xff] }
 0x6ff   :  { %6083 = vmatpush1.msra.mxu0 %v5186_v49  ;;  %6154 = vmatpush1.msra.mxu1 %v5314_v46  ;;  %v5158_v46 = vld [vmem:[#allocation19 + $0x880] sm:$0xff] }
 0x700   :  { %v4652_v11 = vpop.f32.mrf.mxu0  ;;  %6084 = vmatprep.subr.mxu0 %v5183_v55  ;;  %6155 = vmatprep.subr.mxu1 %v5311_v53 }
 0x701   :  { %v10237_v26 = vadd.f32 %v4652_v11, %v4254_v45  ;;  %v4723_v3 = vpop.f32.mrf.mxu1  ;;  %6085 = vmatpush1.msra.mxu0 %v5182_v12  ;;  %6156 = vmatpush1.msra.mxu1 %v5310_v58  ;;  %v5286_v45 = vld [vmem:[#allocation19 + $0xc80] sm:$0xff]  ;;  %v5283_v12 = vld [vmem:[#allocation19 + $0xc68] sm:$0xff] }
 0x702   :  { %v10239_v4 = vadd.f32 %v4723_v3, %v4262_v56  ;;  %6086 = vmatprep.subr.mxu0 %v5179_v59  ;;  %6157 = vmatprep.subr.mxu1 %v5307_v61  ;;  %v10243_v57 = vpop.f32.mrf.mxu0  ;;  %v5155_v56 = vld [vmem:[#allocation19 + $0x868] sm:$0xff]  ;;  %v5154_v59 = vld [vmem:[#allocation19 + $0x860] sm:$0xff] }
 0x703   :  { %6087 = vmatpush1.msra.mxu0 %v5178_v23  ;;  %6158 = vmatpush1.msra.mxu1 %v5306_v1  ;;  %v10247_v33 = vpop.f32.mrf.mxu1  ;;  %v5282_v61 = vld [vmem:[#allocation19 + $0xc60] sm:$0xff]  ;;  %v5151_v11 = vld [vmem:[#allocation19 + $0x848] sm:$0xff] }
 0x704   :  { %6088 = vmatprep.subr.mxu0 %v5175_v5  ;;  %6159 = vmatprep.subr.mxu1 %v5303_v2  ;;  %v5279_v23 = vld [vmem:[#allocation19 + $0xc48] sm:$0xff]  ;;  %v5150_v1 = vld [vmem:[#allocation19 + $0x840] sm:$0xff] }
 0x705   :  { %6089 = vmatpush1.msra.mxu0 %v5174_v16  ;;  %6160 = vmatpush1.msra.mxu1 %v5302_v17  ;;  %v5278_v3 = vld [vmem:[#allocation19 + $0xc40] sm:$0xff]  ;;  %v5147_v5 = vld [vmem:[#allocation19 + $0x828] sm:$0xff] }
 0x706   :  { %6090 = vmatprep.subr.mxu0 %v5171_v39  ;;  %6161 = vmatprep.subr.mxu1 %v5299_v19  ;;  %v5275_v2 = vld [vmem:[#allocation19 + $0xc28] sm:$0xff]  ;;  %v5146_v16 = vld [vmem:[#allocation19 + $0x820] sm:$0xff] }
 0x707   :  { %6091 = vmatpush1.msra.mxu0 %v5170_v20  ;;  %6162 = vmatpush1.msra.mxu1 %v5298_v60  ;;  %v5274_v17 = vld [vmem:[#allocation19 + $0xc20] sm:$0xff]  ;;  %v5143_v39 = vld [vmem:[#allocation19 + $0x808] sm:$0xff] }
 0x708   :  { %6092 = vmatprep.subr.mxu0 %v5167_v21  ;;  %6163 = vmatprep.subr.mxu1 %v5295_v29  ;;  %v5271_v19 = vld [vmem:[#allocation19 + $0xc08] sm:$0xff]  ;;  %v5142_v20 = vld [vmem:[#allocation19 + $0x800] sm:$0xff] }
 0x709   :  { %6093 = vmatpush1.msra.mxu0 %v5166_v24  ;;  %6164 = vmatpush1.msra.mxu1 %v5294_v25  ;;  %v5270_v60 = vld [vmem:[#allocation19 + $0xc00] sm:$0xff]  ;;  %v5267_v21 = vld [vmem:[#allocation19 + $0xbe8] sm:$0xff] }
 0x70a   :  { %v4794_v49 = vpop.f32.mrf.mxu0  ;;  %6094 = vmatprep.subr.mxu0 %v5163_v51  ;;  %6165 = vmatprep.subr.mxu1 %v5291_v50  ;;  %v5395_v29 = vld [vmem:[#allocation19 + $0xfe8] sm:$0xff]  ;;  %v5266_v24 = vld [vmem:[#allocation19 + $0xbe0] sm:$0xff] }
 0x70b   :  { %v10249_v55 = vadd.f32 %v4794_v49, %v4270_v52  ;;  %v4865_v53 = vpop.f32.mrf.mxu1  ;;  %6095 = vmatpush1.msra.mxu0 %v5162_v28  ;;  %6166 = vmatpush1.msra.mxu1 %v5290_v32  ;;  %v5394_v25 = vld [vmem:[#allocation19 + $0xfe0] sm:$0xff]  ;;  %v5263_v52 = vld [vmem:[#allocation19 + $0xbc8] sm:$0xff] }
 0x70c   :  { %v10251_v58 = vadd.f32 %v4865_v53, %v4278_v31  ;;  %6096 = vmatprep.subr.mxu0 %v5159_v37  ;;  %6167 = vmatprep.subr.mxu1 %v5287_v63  ;;  %v5391_v51 = vld [vmem:[#allocation19 + $0xfc8] sm:$0xff]  ;;  %v5262_v50 = vld [vmem:[#allocation19 + $0xbc0] sm:$0xff] }
 0x70d   :  { %6097 = vmatpush1.msra.mxu0 %v5158_v46  ;;  %6168 = vmatpush1.msra.mxu1 %v5286_v45  ;;  %v5390_v31 = vld [vmem:[#allocation19 + $0xfc0] sm:$0xff]  ;;  %v5259_v28 = vld [vmem:[#allocation19 + $0xba8] sm:$0xff] }
 0x70e   :  { %6098 = vmatprep.subr.mxu0 %v5155_v56  ;;  %6169 = vmatprep.subr.mxu1 %v5283_v12  ;;  %v5387_v32 = vld [vmem:[#allocation19 + $0xfa8] sm:$0xff]  ;;  %v5258_v37 = vld [vmem:[#allocation19 + $0xba0] sm:$0xff] }
 0x70f   :  { %6099 = vmatpush1.msra.mxu0 %v5154_v59  ;;  %6170 = vmatpush1.msra.mxu1 %v5282_v61  ;;  %v5386_v63 = vld [vmem:[#allocation19 + $0xfa0] sm:$0xff]  ;;  %v5255_v49 = vld [vmem:[#allocation19 + $0xb88] sm:$0xff] }
 0x710   :  { %6100 = vmatprep.subr.mxu0 %v5151_v11  ;;  %6171 = vmatprep.subr.mxu1 %v5279_v23  ;;  %v5383_v46 = vld [vmem:[#allocation19 + $0xf88] sm:$0xff]  ;;  %v5254_v45 = vld [vmem:[#allocation19 + $0xb80] sm:$0xff] }
 0x711   :  { %6101 = vmatpush1.msra.mxu0 %v5150_v1  ;;  %6172 = vmatpush1.msra.mxu1 %v5278_v3  ;;  %v5382_v53 = vld [vmem:[#allocation19 + $0xf80] sm:$0xff]  ;;  %v5251_v56 = vld [vmem:[#allocation19 + $0xb68] sm:$0xff] }
 0x712   :  { %6102 = vmatprep.subr.mxu0 %v5147_v5  ;;  %6173 = vmatprep.subr.mxu1 %v5275_v2  ;;  %v5379_v12 = vld [vmem:[#allocation19 + $0xf68] sm:$0xff]  ;;  %v5250_v59 = vld [vmem:[#allocation19 + $0xb60] sm:$0xff] }
 0x713   :  { %6103 = vmatpush1.msra.mxu0 %v5146_v16  ;;  %6174 = vmatpush1.msra.mxu1 %v5274_v17  ;;  %v5378_v61 = vld [vmem:[#allocation19 + $0xf60] sm:$0xff]  ;;  %v5247_v11 = vld [vmem:[#allocation19 + $0xb48] sm:$0xff] }
 0x714   :  { %6104 = vmatprep.subr.mxu0 %v5143_v39  ;;  %6175 = vmatprep.subr.mxu1 %v5271_v19  ;;  %v5375_v23 = vld [vmem:[#allocation19 + $0xf48] sm:$0xff]  ;;  %v5246_v1 = vld [vmem:[#allocation19 + $0xb40] sm:$0xff] }
 0x715   :  { %6105 = vmatpush1.msra.mxu0 %v5142_v20  ;;  %6176 = vmatpush1.msra.mxu1 %v5270_v60  ;;  %v5374_v3 = vld [vmem:[#allocation19 + $0xf40] sm:$0xff]  ;;  %v5243_v5 = vld [vmem:[#allocation19 + $0xb28] sm:$0xff] }
 0x716   :  { %6106 = vmatprep.subr.mxu0 %v5267_v21  ;;  %6177 = vmatprep.subr.mxu1 %v5395_v29  ;;  %v5371_v2 = vld [vmem:[#allocation19 + $0xf28] sm:$0xff]  ;;  %v5242_v16 = vld [vmem:[#allocation19 + $0xb20] sm:$0xff] }
 0x717   :  { %6107 = vmatpush2.msra.mxu0 %v5266_v24  ;;  %6178 = vmatpush2.msra.mxu1 %v5394_v25  ;;  %v5370_v17 = vld [vmem:[#allocation19 + $0xf20] sm:$0xff]  ;;  %v5239_v39 = vld [vmem:[#allocation19 + $0xb08] sm:$0xff] }
 0x718   :  { %6108 = vmatprep.subr.mxu0 %v5263_v52  ;;  %6179 = vmatprep.subr.mxu1 %v5391_v51  ;;  %v5367_v19 = vld [vmem:[#allocation19 + $0xf08] sm:$0xff]  ;;  %v5238_v20 = vld [vmem:[#allocation19 + $0xb00] sm:$0xff] }
 0x719   :  { %6109 = vmatpush2.msra.mxu0 %v5262_v50  ;;  %6180 = vmatpush2.msra.mxu1 %v5390_v31  ;;  %v5366_v60 = vld [vmem:[#allocation19 + $0xf00] sm:$0xff]  ;;  %v5235_v21 = vld [vmem:[#allocation19 + $0xae8] sm:$0xff] }
 0x71a   :  { %6110 = vmatprep.subr.mxu0 %v5259_v28  ;;  %6181 = vmatprep.subr.mxu1 %v5387_v32  ;;  %v5363_v29 = vld [vmem:[#allocation19 + $0xee8] sm:$0xff]  ;;  %v5234_v24 = vld [vmem:[#allocation19 + $0xae0] sm:$0xff] }
 0x71b   :  { %6111 = vmatpush2.msra.mxu0 %v5258_v37  ;;  %6182 = vmatpush2.msra.mxu1 %v5386_v63  ;;  %v5362_v25 = vld [vmem:[#allocation19 + $0xee0] sm:$0xff]  ;;  %v5231_v52 = vld [vmem:[#allocation19 + $0xac8] sm:$0xff] }
 0x71c   :  { %6112 = vmatprep.subr.mxu0 %v5255_v49  ;;  %6183 = vmatprep.subr.mxu1 %v5383_v46  ;;  %v5359_v51 = vld [vmem:[#allocation19 + $0xec8] sm:$0xff]  ;;  %v5230_v50 = vld [vmem:[#allocation19 + $0xac0] sm:$0xff] }
 0x71d   :  { %6113 = vmatpush2.msra.mxu0 %v5254_v45  ;;  %6184 = vmatpush2.msra.mxu1 %v5382_v53  ;;  %v5358_v31 = vld [vmem:[#allocation19 + $0xec0] sm:$0xff]  ;;  %v5227_v28 = vld [vmem:[#allocation19 + $0xaa8] sm:$0xff] }
 0x71e   :  { %6114 = vmatprep.subr.mxu0 %v5251_v56  ;;  %6185 = vmatprep.subr.mxu1 %v5379_v12  ;;  %v5355_v32 = vld [vmem:[#allocation19 + $0xea8] sm:$0xff]  ;;  %v5226_v37 = vld [vmem:[#allocation19 + $0xaa0] sm:$0xff] }
 0x71f   :  { %6115 = vmatpush2.msra.mxu0 %v5250_v59  ;;  %6186 = vmatpush2.msra.mxu1 %v5378_v61  ;;  %v5354_v63 = vld [vmem:[#allocation19 + $0xea0] sm:$0xff]  ;;  %v5223_v49 = vld [vmem:[#allocation19 + $0xa88] sm:$0xff]  ;;  %v4238_v59 = vrot.slane %v10183_v62, %v9477_v15  ;;  %v4246_v61 = vrot.slane %v10183_v62, %v9850_v13  ;;  %v4266_v15 = vrot.slane %v10225_v36, %v9217_v44 }
 0x720   :  { %6116 = vmatprep.subr.mxu0 %v5247_v11  ;;  %6187 = vmatprep.subr.mxu1 %v5375_v23  ;;  %v5351_v46 = vld [vmem:[#allocation19 + $0xe88] sm:$0xff]  ;;  %v5222_v45 = vld [vmem:[#allocation19 + $0xa80] sm:$0xff] }
 0x721   :  { %6117 = vmatpush2.msra.mxu0 %v5246_v1  ;;  %6188 = vmatpush2.msra.mxu1 %v5374_v3  ;;  %v5350_v53 = vld [vmem:[#allocation19 + $0xe80] sm:$0xff]  ;;  %v5219_v56 = vld [vmem:[#allocation19 + $0xa68] sm:$0xff] }
 0x722   :  { %6118 = vmatprep.subr.mxu0 %v5243_v5  ;;  %6189 = vmatprep.subr.mxu1 %v5371_v2  ;;  %v5347_v12 = vld [vmem:[#allocation19 + $0xe68] sm:$0xff]  ;;  %v5218_v11 = vld [vmem:[#allocation19 + $0xa60] sm:$0xff]  ;;  %v4258_v5 = vrot.slane %v10225_v36, %v9214_v43 }
 0x723   :  { %6119 = vmatpush2.msra.mxu0 %v5242_v16  ;;  %6190 = vmatpush2.msra.mxu1 %v5370_v17  ;;  %v5346_v23 = vld [vmem:[#allocation19 + $0xe60] sm:$0xff]  ;;  %v5215_v1 = vld [vmem:[#allocation19 + $0xa48] sm:$0xff]  ;;  %v10262_v17 = vadd.f32 %v10215_v22, %v4238_v59  ;;  %v10271_v22 = vadd.f32 %v10247_v33, %v4266_v15 }
 0x724   :  { %6120 = vmatprep.subr.mxu0 %v5239_v39  ;;  %6191 = vmatprep.subr.mxu1 %v5367_v19  ;;  %v5343_v3 = vld [vmem:[#allocation19 + $0xe48] sm:$0xff]  ;;  %v5214_v2 = vld [vmem:[#allocation19 + $0xa40] sm:$0xff]  ;;  %v10265_v39 = vadd.f32 %v10219_v30, %v4246_v61 }
 0x725   :  { %6121 = vmatpush2.msra.mxu0 %v5238_v20  ;;  %6192 = vmatpush2.msra.mxu1 %v5366_v60  ;;  %v5342_v16 = vld [vmem:[#allocation19 + $0xe40] sm:$0xff]  ;;  %v5211_v13 = vld [vmem:[#allocation19 + $0xa28] sm:$0xff]  ;;  %v4874_v30 = vmax.f32 %v10262_v17, 0.0  ;;  %v5453_v17 = vld [vmem:[#allocation19 + $0x11b8] sm:$0xff] }
 0x726   :  { %6122 = vmatprep.subr.mxu0 %v5235_v21  ;;  %6193 = vmatprep.subr.mxu1 %v5363_v29  ;;  %v5339_v62 = vld [vmem:[#allocation19 + $0xe28] sm:$0xff]  ;;  %v5210_v19 = vld [vmem:[#allocation19 + $0xa20] sm:$0xff]  ;;  %v10268_v29 = vadd.f32 %v10243_v57, %v4258_v5 }
 0x727   :  { %6123 = vmatpush2.msra.mxu0 %v5234_v24  ;;  %6194 = vmatpush2.msra.mxu1 %v5362_v25  ;;  %v5338_v20 = vld [vmem:[#allocation19 + $0xe20] sm:$0xff]  ;;  %v5207_v60 = vld [vmem:[#allocation19 + $0xa08] sm:$0xff] }
 0x728   :  { %6124 = vmatprep.subr.mxu0 %v5231_v52  ;;  %6195 = vmatprep.subr.mxu1 %v5359_v51  ;;  %v5335_v21 = vld [vmem:[#allocation19 + $0xe08] sm:$0xff]  ;;  %v5206_v24 = vld [vmem:[#allocation19 + $0xa00] sm:$0xff]  ;;  %v4876_v52 = vmax.f32 %v10265_v39, 0.0  ;;  %v5452_v39 = vld [vmem:[#allocation19 + $0x11b0] sm:$0xff] }
 0x729   :  { %6125 = vmatpush2.msra.mxu0 %v5230_v50  ;;  %6196 = vmatpush2.msra.mxu1 %v5358_v31  ;;  %v5334_v25 = vld [vmem:[#allocation19 + $0xe00] sm:$0xff]  ;;  %v5459_v51 = vld [vmem:[#allocation19 + $0x11e8] sm:$0xff]  ;;  %v4879_v31 = vmax.f32 %v10268_v29, 0.0  ;;  %v5448_v29 = vld [vmem:[#allocation19 + $0x1190] sm:$0xff] }
 0x72a   :  { %6126 = vmatprep.subr.mxu0 %v5227_v28  ;;  %6197 = vmatprep.subr.mxu1 %v5355_v32  ;;  %v5587_v50 = vld [vmem:[#allocation19 + $0x15e8] sm:$0xff]  ;;  %v5458_v57 = vld [vmem:[#allocation19 + $0x11e0] sm:$0xff]  ;;  %v4881_v28 = vmax.f32 %v10271_v22, 0.0  ;;  %v5444_v22 = vld [vmem:[#allocation19 + $0x1170] sm:$0xff] }
 0x72b   :  { %6127 = vmatpush2.msra.mxu0 %v5226_v37  ;;  %6198 = vmatpush2.msra.mxu1 %v5354_v63  ;;  %v5586_v33 = vld [vmem:[#allocation19 + $0x15e0] sm:$0xff]  ;;  %v5455_v32 = vld [vmem:[#allocation19 + $0x11c8] sm:$0xff] }
 0x72c   :  { %6128 = vmatprep.subr.mxu0 %v5223_v49  ;;  %6199 = vmatprep.subr.mxu1 %v5351_v46  ;;  %v5583_v37 = vld [vmem:[#allocation19 + $0x15c8] sm:$0xff]  ;;  %v5454_v63 = vld [vmem:[#allocation19 + $0x11c0] sm:$0xff] }
 0x72d   :  { %6129 = vmatpush2.msra.mxu0 %v5222_v45  ;;  %6200 = vmatpush2.msra.mxu1 %v5350_v53  ;;  %v5582_v49 = vld [vmem:[#allocation19 + $0x15c0] sm:$0xff]  ;;  %v5451_v46 = vld [vmem:[#allocation19 + $0x11a8] sm:$0xff] }
 0x72e   :  { %6130 = vmatprep.subr.mxu0 %v5219_v56  ;;  %6201 = vmatprep.subr.mxu1 %v5347_v12  ;;  %v5579_v45 = vld [vmem:[#allocation19 + $0x15a8] sm:$0xff]  ;;  %v5450_v53 = vld [vmem:[#allocation19 + $0x11a0] sm:$0xff] }
 0x72f   :  { %6131 = vmatpush2.msra.mxu0 %v5218_v11  ;;  %6202 = vmatpush2.msra.mxu1 %v5346_v23  ;;  %v5578_v56 = vld [vmem:[#allocation19 + $0x15a0] sm:$0xff]  ;;  %v5447_v12 = vld [vmem:[#allocation19 + $0x1188] sm:$0xff] }
 0x730   :  { %6132 = vmatprep.subr.mxu0 %v5215_v1  ;;  %6203 = vmatprep.subr.mxu1 %v5343_v3  ;;  %v5575_v59 = vld [vmem:[#allocation19 + $0x1588] sm:$0xff]  ;;  %v5446_v61 = vld [vmem:[#allocation19 + $0x1180] sm:$0xff] }
 0x731   :  { %6133 = vmatpush2.msra.mxu0 %v5214_v2  ;;  %6204 = vmatpush2.msra.mxu1 %v5342_v16  ;;  %v5574_v11 = vld [vmem:[#allocation19 + $0x1580] sm:$0xff]  ;;  %v5443_v23 = vld [vmem:[#allocation19 + $0x1168] sm:$0xff] }
 0x732   :  { %6134 = vmatprep.subr.mxu0 %v5211_v13  ;;  %6205 = vmatprep.subr.mxu1 %v5339_v62  ;;  %v5571_v1 = vld [vmem:[#allocation19 + $0x1568] sm:$0xff]  ;;  %v5442_v3 = vld [vmem:[#allocation19 + $0x1160] sm:$0xff] }
 0x733   :  { %6135 = vmatpush2.msra.mxu0 %v5210_v19  ;;  %6206 = vmatpush2.msra.mxu1 %v5338_v20  ;;  %v5570_v5 = vld [vmem:[#allocation19 + $0x1560] sm:$0xff]  ;;  %v5439_v2 = vld [vmem:[#allocation19 + $0x1148] sm:$0xff] }
 0x734   :  { %6136 = vmatprep.subr.mxu0 %v5207_v60  ;;  %6207 = vmatprep.subr.mxu1 %v5335_v21  ;;  %v5567_v16 = vld [vmem:[#allocation19 + $0x1548] sm:$0xff]  ;;  %v5438_v15 = vld [vmem:[#allocation19 + $0x1140] sm:$0xff] }
 0x735   :  { %6137 = vmatpush2.msra.mxu0 %v5206_v24  ;;  %6208 = vmatpush2.msra.mxu1 %v5334_v25  ;;  %v5566_v13 = vld [vmem:[#allocation19 + $0x1540] sm:$0xff]  ;;  %v5435_v62 = vld [vmem:[#allocation19 + $0x1128] sm:$0xff] }
 0x736   :  { %6139 = vmatmul.mubr.f32.vlgmr.msra.gmra.mxu0 %v4874_v30  ;;  %6210 = vmatmul.mubr.f32.vlgmr.msra.gmra.mxu1 %v4876_v52  ;;  %v5563_v19 = vld [vmem:[#allocation19 + $0x1528] sm:$0xff]  ;;  %v5434_v20 = vld [vmem:[#allocation19 + $0x1120] sm:$0xff] }
 0x737   :  { %6216 = vmatprep.subr.mxu0 %v5459_v51  ;;  %6287 = vmatprep.subr.mxu1 %v5587_v50  ;;  %v5562_v60 = vld [vmem:[#allocation19 + $0x1520] sm:$0xff]  ;;  %v5431_v21 = vld [vmem:[#allocation19 + $0x1108] sm:$0xff] }
 0x738   :  { %6217 = vmatpush1.msra.mxu0 %v5458_v57  ;;  %6280 = vmatprep.mubr.f32.mxu0 %v4879_v31  ;;  %v5559_v24 = vld [vmem:[#allocation19 + $0x1508] sm:$0xff]  ;;  %v5430_v25 = vld [vmem:[#allocation19 + $0x1100] sm:$0xff] }
 0x739   :  { %6288 = vmatpush1.msra.mxu1 %v5586_v33  ;;  %6351 = vmatprep.mubr.f32.mxu1 %v4881_v28  ;;  %v5558_v51 = vld [vmem:[#allocation19 + $0x1500] sm:$0xff]  ;;  %v5427_v50 = vld [vmem:[#allocation19 + $0x10e8] sm:$0xff] }
 0x73a   :  { %6218 = vmatprep.subr.mxu0 %v5455_v32  ;;  %6289 = vmatprep.subr.mxu1 %v5583_v37  ;;  %v5555_v57 = vld [vmem:[#allocation19 + $0x14e8] sm:$0xff]  ;;  %v5426_v33 = vld [vmem:[#allocation19 + $0x10e0] sm:$0xff] }
 0x73b   :  { %6219 = vmatpush1.msra.mxu0 %v5454_v63  ;;  %6290 = vmatpush1.msra.mxu1 %v5582_v49  ;;  %v5554_v32 = vld [vmem:[#allocation19 + $0x14e0] sm:$0xff]  ;;  %v5423_v37 = vld [vmem:[#allocation19 + $0x10c8] sm:$0xff] }
 0x73c   :  { %6220 = vmatprep.subr.mxu0 %v5451_v46  ;;  %6291 = vmatprep.subr.mxu1 %v5579_v45  ;;  %v5551_v63 = vld [vmem:[#allocation19 + $0x14c8] sm:$0xff]  ;;  %v5422_v49 = vld [vmem:[#allocation19 + $0x10c0] sm:$0xff] }
 0x73d   :  { %6221 = vmatpush1.msra.mxu0 %v5450_v53  ;;  %6292 = vmatpush1.msra.mxu1 %v5578_v56  ;;  %v5550_v46 = vld [vmem:[#allocation19 + $0x14c0] sm:$0xff]  ;;  %v5419_v45 = vld [vmem:[#allocation19 + $0x10a8] sm:$0xff] }
 0x73e   :  { %6222 = vmatprep.subr.mxu0 %v5447_v12  ;;  %6293 = vmatprep.subr.mxu1 %v5575_v59  ;;  %v5547_v53 = vld [vmem:[#allocation19 + $0x14a8] sm:$0xff]  ;;  %v5418_v56 = vld [vmem:[#allocation19 + $0x10a0] sm:$0xff] }
 0x73f   :  { %6223 = vmatpush1.msra.mxu0 %v5446_v61  ;;  %6294 = vmatpush1.msra.mxu1 %v5574_v11  ;;  %v5546_v12 = vld [vmem:[#allocation19 + $0x14a0] sm:$0xff]  ;;  %v5415_v59 = vld [vmem:[#allocation19 + $0x1088] sm:$0xff] }
 0x740   :  { %6224 = vmatprep.subr.mxu0 %v5443_v23  ;;  %6295 = vmatprep.subr.mxu1 %v5571_v1  ;;  %v5543_v61 = vld [vmem:[#allocation19 + $0x1488] sm:$0xff]  ;;  %v5414_v11 = vld [vmem:[#allocation19 + $0x1080] sm:$0xff] }
 0x741   :  { %6225 = vmatpush1.msra.mxu0 %v5442_v3  ;;  %6296 = vmatpush1.msra.mxu1 %v5570_v5  ;;  %v5542_v23 = vld [vmem:[#allocation19 + $0x1480] sm:$0xff]  ;;  %v5411_v1 = vld [vmem:[#allocation19 + $0x1068] sm:$0xff] }
 0x742   :  { %6226 = vmatprep.subr.mxu0 %v5439_v2  ;;  %6297 = vmatprep.subr.mxu1 %v5567_v16  ;;  %v5539_v3 = vld [vmem:[#allocation19 + $0x1468] sm:$0xff]  ;;  %v5410_v5 = vld [vmem:[#allocation19 + $0x1060] sm:$0xff] }
 0x743   :  { %6227 = vmatpush1.msra.mxu0 %v5438_v15  ;;  %6298 = vmatpush1.msra.mxu1 %v5566_v13  ;;  %v5538_v2 = vld [vmem:[#allocation19 + $0x1460] sm:$0xff]  ;;  %v5407_v16 = vld [vmem:[#allocation19 + $0x1048] sm:$0xff] }
 0x744   :  { %6228 = vmatprep.subr.mxu0 %v5435_v62  ;;  %6299 = vmatprep.subr.mxu1 %v5563_v19  ;;  %v5535_v15 = vld [vmem:[#allocation19 + $0x1448] sm:$0xff]  ;;  %v5406_v13 = vld [vmem:[#allocation19 + $0x1040] sm:$0xff] }
 0x745   :  { %6229 = vmatpush1.msra.mxu0 %v5434_v20  ;;  %6300 = vmatpush1.msra.mxu1 %v5562_v60  ;;  %v5534_v62 = vld [vmem:[#allocation19 + $0x1440] sm:$0xff]  ;;  %v5403_v19 = vld [vmem:[#allocation19 + $0x1028] sm:$0xff] }
 0x746   :  { %6230 = vmatprep.subr.mxu0 %v5431_v21  ;;  %6301 = vmatprep.subr.mxu1 %v5559_v24  ;;  %v5531_v20 = vld [vmem:[#allocation19 + $0x1428] sm:$0xff]  ;;  %v5402_v60 = vld [vmem:[#allocation19 + $0x1020] sm:$0xff] }
 0x747   :  { %6231 = vmatpush1.msra.mxu0 %v5430_v25  ;;  %6302 = vmatpush1.msra.mxu1 %v5558_v51  ;;  %v5530_v21 = vld [vmem:[#allocation19 + $0x1420] sm:$0xff]  ;;  %v5399_v24 = vld [vmem:[#allocation19 + $0x1008] sm:$0xff] }
 0x748   :  { %6232 = vmatprep.subr.mxu0 %v5427_v50  ;;  %6303 = vmatprep.subr.mxu1 %v5555_v57  ;;  %v5527_v25 = vld [vmem:[#allocation19 + $0x1408] sm:$0xff]  ;;  %v5398_v51 = vld [vmem:[#allocation19 + $0x1000] sm:$0xff] }
 0x749   :  { %6233 = vmatpush1.msra.mxu0 %v5426_v33  ;;  %6304 = vmatpush1.msra.mxu1 %v5554_v32  ;;  %v5526_v50 = vld [vmem:[#allocation19 + $0x1400] sm:$0xff]  ;;  %v5523_v57 = vld [vmem:[#allocation19 + $0x13e8] sm:$0xff] }
 0x74a   :  { %6234 = vmatprep.subr.mxu0 %v5423_v37  ;;  %6305 = vmatprep.subr.mxu1 %v5551_v63  ;;  %v5651_v33 = vld [vmem:[#allocation19 + $0x17e8] sm:$0xff]  ;;  %v5522_v32 = vld [vmem:[#allocation19 + $0x13e0] sm:$0xff] }
 0x74b   :  { %6235 = vmatpush1.msra.mxu0 %v5422_v49  ;;  %6306 = vmatpush1.msra.mxu1 %v5550_v46  ;;  %v5650_v37 = vld [vmem:[#allocation19 + $0x17e0] sm:$0xff]  ;;  %v5519_v63 = vld [vmem:[#allocation19 + $0x13c8] sm:$0xff] }
 0x74c   :  { %6236 = vmatprep.subr.mxu0 %v5419_v45  ;;  %6307 = vmatprep.subr.mxu1 %v5547_v53  ;;  %v5647_v49 = vld [vmem:[#allocation19 + $0x17c8] sm:$0xff]  ;;  %v5518_v46 = vld [vmem:[#allocation19 + $0x13c0] sm:$0xff] }
 0x74d   :  { %6237 = vmatpush1.msra.mxu0 %v5418_v56  ;;  %6308 = vmatpush1.msra.mxu1 %v5546_v12  ;;  %v5646_v45 = vld [vmem:[#allocation19 + $0x17c0] sm:$0xff]  ;;  %v5515_v53 = vld [vmem:[#allocation19 + $0x13a8] sm:$0xff] }
 0x74e   :  { %6238 = vmatprep.subr.mxu0 %v5415_v59  ;;  %6309 = vmatprep.subr.mxu1 %v5543_v61  ;;  %v5643_v56 = vld [vmem:[#allocation19 + $0x17a8] sm:$0xff]  ;;  %v5514_v12 = vld [vmem:[#allocation19 + $0x13a0] sm:$0xff] }
 0x74f   :  { %6239 = vmatpush1.msra.mxu0 %v5414_v11  ;;  %6310 = vmatpush1.msra.mxu1 %v5542_v23  ;;  %v5642_v59 = vld [vmem:[#allocation19 + $0x17a0] sm:$0xff]  ;;  %v5511_v61 = vld [vmem:[#allocation19 + $0x1388] sm:$0xff] }
 0x750   :  { %6240 = vmatprep.subr.mxu0 %v5411_v1  ;;  %6311 = vmatprep.subr.mxu1 %v5539_v3  ;;  %v5639_v11 = vld [vmem:[#allocation19 + $0x1788] sm:$0xff]  ;;  %v5510_v23 = vld [vmem:[#allocation19 + $0x1380] sm:$0xff] }
 0x751   :  { %6241 = vmatpush1.msra.mxu0 %v5410_v5  ;;  %6312 = vmatpush1.msra.mxu1 %v5538_v2  ;;  %v5638_v1 = vld [vmem:[#allocation19 + $0x1780] sm:$0xff]  ;;  %v5507_v3 = vld [vmem:[#allocation19 + $0x1368] sm:$0xff] }
 0x752   :  { %6242 = vmatprep.subr.mxu0 %v5407_v16  ;;  %6313 = vmatprep.subr.mxu1 %v5535_v15  ;;  %v5635_v5 = vld [vmem:[#allocation19 + $0x1768] sm:$0xff]  ;;  %v5506_v2 = vld [vmem:[#allocation19 + $0x1360] sm:$0xff] }
 0x753   :  { %6243 = vmatpush1.msra.mxu0 %v5406_v13  ;;  %6314 = vmatpush1.msra.mxu1 %v5534_v62  ;;  %v5634_v16 = vld [vmem:[#allocation19 + $0x1760] sm:$0xff]  ;;  %v5503_v15 = vld [vmem:[#allocation19 + $0x1348] sm:$0xff] }
 0x754   :  { %6244 = vmatprep.subr.mxu0 %v5403_v19  ;;  %6315 = vmatprep.subr.mxu1 %v5531_v20  ;;  %v5631_v13 = vld [vmem:[#allocation19 + $0x1748] sm:$0xff]  ;;  %v5502_v62 = vld [vmem:[#allocation19 + $0x1340] sm:$0xff] }
 0x755   :  { %6245 = vmatpush1.msra.mxu0 %v5402_v60  ;;  %6316 = vmatpush1.msra.mxu1 %v5530_v21  ;;  %v5630_v19 = vld [vmem:[#allocation19 + $0x1740] sm:$0xff]  ;;  %v5499_v20 = vld [vmem:[#allocation19 + $0x1328] sm:$0xff] }
 0x756   :  { %6246 = vmatprep.subr.mxu0 %v5399_v24  ;;  %6317 = vmatprep.subr.mxu1 %v5527_v25  ;;  %v5627_v60 = vld [vmem:[#allocation19 + $0x1728] sm:$0xff]  ;;  %v5498_v21 = vld [vmem:[#allocation19 + $0x1320] sm:$0xff] }
 0x757   :  { %6247 = vmatpush1.msra.mxu0 %v5398_v51  ;;  %6318 = vmatpush1.msra.mxu1 %v5526_v50  ;;  %v5626_v24 = vld [vmem:[#allocation19 + $0x1720] sm:$0xff]  ;;  %v5495_v25 = vld [vmem:[#allocation19 + $0x1308] sm:$0xff] }
 0x758   :  { %6248 = vmatprep.subr.mxu0 %v5523_v57  ;;  %6319 = vmatprep.subr.mxu1 %v5651_v33  ;;  %v5623_v51 = vld [vmem:[#allocation19 + $0x1708] sm:$0xff]  ;;  %v5494_v50 = vld [vmem:[#allocation19 + $0x1300] sm:$0xff] }
 0x759   :  { %6249 = vmatpush2.msra.mxu0 %v5522_v32  ;;  %6320 = vmatpush2.msra.mxu1 %v5650_v37  ;;  %v5622_v57 = vld [vmem:[#allocation19 + $0x1700] sm:$0xff]  ;;  %v5491_v33 = vld [vmem:[#allocation19 + $0x12e8] sm:$0xff] }
 0x75a   :  { %6250 = vmatprep.subr.mxu0 %v5519_v63  ;;  %6321 = vmatprep.subr.mxu1 %v5647_v49  ;;  %v5619_v32 = vld [vmem:[#allocation19 + $0x16e8] sm:$0xff]  ;;  %v5490_v37 = vld [vmem:[#allocation19 + $0x12e0] sm:$0xff] }
 0x75b   :  { %6251 = vmatpush2.msra.mxu0 %v5518_v46  ;;  %6322 = vmatpush2.msra.mxu1 %v5646_v45  ;;  %v5618_v63 = vld [vmem:[#allocation19 + $0x16e0] sm:$0xff]  ;;  %v5487_v49 = vld [vmem:[#allocation19 + $0x12c8] sm:$0xff] }
 0x75c   :  { %6252 = vmatprep.subr.mxu0 %v5515_v53  ;;  %6323 = vmatprep.subr.mxu1 %v5643_v56  ;;  %v5615_v46 = vld [vmem:[#allocation19 + $0x16c8] sm:$0xff]  ;;  %v5486_v45 = vld [vmem:[#allocation19 + $0x12c0] sm:$0xff] }
 0x75d   :  { %6253 = vmatpush2.msra.mxu0 %v5514_v12  ;;  %6324 = vmatpush2.msra.mxu1 %v5642_v59  ;;  %v5614_v53 = vld [vmem:[#allocation19 + $0x16c0] sm:$0xff]  ;;  %v5483_v56 = vld [vmem:[#allocation19 + $0x12a8] sm:$0xff] }
 0x75e   :  { %6254 = vmatprep.subr.mxu0 %v5511_v61  ;;  %6325 = vmatprep.subr.mxu1 %v5639_v11  ;;  %v5611_v12 = vld [vmem:[#allocation19 + $0x16a8] sm:$0xff]  ;;  %v5482_v59 = vld [vmem:[#allocation19 + $0x12a0] sm:$0xff] }
 0x75f   :  { %6255 = vmatpush2.msra.mxu0 %v5510_v23  ;;  %6326 = vmatpush2.msra.mxu1 %v5638_v1  ;;  %v5610_v61 = vld [vmem:[#allocation19 + $0x16a0] sm:$0xff]  ;;  %v5479_v11 = vld [vmem:[#allocation19 + $0x1288] sm:$0xff] }
 0x760   :  { %6256 = vmatprep.subr.mxu0 %v5507_v3  ;;  %6327 = vmatprep.subr.mxu1 %v5635_v5  ;;  %v5607_v23 = vld [vmem:[#allocation19 + $0x1688] sm:$0xff]  ;;  %v5478_v1 = vld [vmem:[#allocation19 + $0x1280] sm:$0xff] }
 0x761   :  { %6257 = vmatpush2.msra.mxu0 %v5506_v2  ;;  %6328 = vmatpush2.msra.mxu1 %v5634_v16  ;;  %v5606_v3 = vld [vmem:[#allocation19 + $0x1680] sm:$0xff]  ;;  %v5475_v5 = vld [vmem:[#allocation19 + $0x1268] sm:$0xff] }
 0x762   :  { %6258 = vmatprep.subr.mxu0 %v5503_v15  ;;  %6329 = vmatprep.subr.mxu1 %v5631_v13  ;;  %v5603_v2 = vld [vmem:[#allocation19 + $0x1668] sm:$0xff]  ;;  %v5474_v16 = vld [vmem:[#allocation19 + $0x1260] sm:$0xff] }
 0x763   :  { %6259 = vmatpush2.msra.mxu0 %v5502_v62  ;;  %6330 = vmatpush2.msra.mxu1 %v5630_v19  ;;  %v5602_v15 = vld [vmem:[#allocation19 + $0x1660] sm:$0xff]  ;;  %v5471_v13 = vld [vmem:[#allocation19 + $0x1248] sm:$0xff]  ;;  %v4274_v19 = vrot.slane %v10225_v36, %v9369_v48 }
 0x764   :  { %6260 = vmatprep.subr.mxu0 %v5499_v20  ;;  %6331 = vmatprep.subr.mxu1 %v5627_v60  ;;  %v5599_v62 = vld [vmem:[#allocation19 + $0x1648] sm:$0xff]  ;;  %v5470_v20 = vld [vmem:[#allocation19 + $0x1240] sm:$0xff] }
 0x765   :  { %6261 = vmatpush2.msra.mxu0 %v5498_v21  ;;  %6332 = vmatpush2.msra.mxu1 %v5626_v24  ;;  %v5598_v60 = vld [vmem:[#allocation19 + $0x1640] sm:$0xff]  ;;  %v4796_v21 = vpop.f32.mrf.mxu0  ;;  %v4282_v24 = vrot.slane %v10225_v36, %v9661_v54  ;;  %v5463_v48 = vld [vmem:[#allocation19 + $0x1208] sm:$0xff]  ;;  %v4878_v36 = vmax.f32 %v10237_v26, 0.0  ;;  %v5709_v26 = vld [vmem:[#allocation19 + $0x19b8] sm:$0xff] }
 0x766   :  { %6262 = vmatprep.subr.mxu0 %v5495_v25  ;;  %6333 = vmatprep.subr.mxu1 %v5623_v51  ;;  %v5467_v25 = vld [vmem:[#allocation19 + $0x1228] sm:$0xff] }
 0x767   :  { %6263 = vmatpush2.msra.mxu0 %v5494_v50  ;;  %6334 = vmatpush2.msra.mxu1 %v5622_v57  ;;  %v5595_v51 = vld [vmem:[#allocation19 + $0x1628] sm:$0xff]  ;;  %v4867_v50 = vpop.f32.mrf.mxu1  ;;  %v5466_v57 = vld [vmem:[#allocation19 + $0x1220] sm:$0xff] }
 0x768   :  { %6264 = vmatprep.subr.mxu0 %v5491_v33  ;;  %6335 = vmatprep.subr.mxu1 %v5619_v32  ;;  %v5594_v33 = vld [vmem:[#allocation19 + $0x1620] sm:$0xff]  ;;  %v5591_v32 = vld [vmem:[#allocation19 + $0x1608] sm:$0xff]  ;;  %v10291_v54 = vadd.f32 %v4867_v50, %v4282_v24 }
 0x769   :  { %6265 = vmatpush2.msra.mxu0 %v5490_v37  ;;  %6336 = vmatpush2.msra.mxu1 %v5618_v63  ;;  %v10289_v37 = vadd.f32 %v4796_v21, %v4274_v19  ;;  %v5462_v63 = vld [vmem:[#allocation19 + $0x1200] sm:$0xff]  ;;  %v5827_v21 = vld [vmem:[#allocation19 + $0x1d68] sm:$0xff] }
 0x76a   :  { %6266 = vmatprep.subr.mxu0 %v5487_v49  ;;  %6337 = vmatprep.subr.mxu1 %v5615_v46  ;;  %v5590_v49 = vld [vmem:[#allocation19 + $0x1600] sm:$0xff]  ;;  %v4880_v46 = vmax.f32 %v10239_v4, 0.0  ;;  %v5823_v50 = vld [vmem:[#allocation19 + $0x1d48] sm:$0xff]  ;;  %v5708_v4 = vld [vmem:[#allocation19 + $0x19b0] sm:$0xff] }
 0x76b   :  { %6267 = vmatpush2.msra.mxu0 %v5486_v45  ;;  %6338 = vmatpush2.msra.mxu1 %v5614_v53  ;;  %v5715_v45 = vld [vmem:[#allocation19 + $0x19e8] sm:$0xff]  ;;  %v5702_v19 = vld [vmem:[#allocation19 + $0x1980] sm:$0xff] }
 0x76c   :  { %6268 = vmatprep.subr.mxu0 %v5483_v56  ;;  %6339 = vmatprep.subr.mxu1 %v5611_v12  ;;  %v5843_v53 = vld [vmem:[#allocation19 + $0x1de8] sm:$0xff]  ;;  %v5714_v56 = vld [vmem:[#allocation19 + $0x19e0] sm:$0xff]  ;;  %v4883_v12 = vmax.f32 %v10289_v37, 0.0  ;;  %v5704_v37 = vld [vmem:[#allocation19 + $0x1990] sm:$0xff] }
 0x76d   :  { %6269 = vmatpush2.msra.mxu0 %v5482_v59  ;;  %6340 = vmatpush2.msra.mxu1 %v5610_v61  ;;  %v5842_v59 = vld [vmem:[#allocation19 + $0x1de0] sm:$0xff]  ;;  %v4885_v61 = vmax.f32 %v10291_v54, 0.0  ;;  %v5700_v54 = vld [vmem:[#allocation19 + $0x1970] sm:$0xff] }
 0x76e   :  { %6270 = vmatprep.subr.mxu0 %v5479_v11  ;;  %6341 = vmatprep.subr.mxu1 %v5607_v23  ;;  %v5711_v11 = vld [vmem:[#allocation19 + $0x19c8] sm:$0xff]  ;;  %v5698_v24 = vld [vmem:[#allocation19 + $0x1960] sm:$0xff] }
 0x76f   :  { %6271 = vmatpush2.msra.mxu0 %v5478_v1  ;;  %6342 = vmatpush2.msra.mxu1 %v5606_v3  ;;  %v5839_v23 = vld [vmem:[#allocation19 + $0x1dc8] sm:$0xff]  ;;  %v5710_v1 = vld [vmem:[#allocation19 + $0x19c0] sm:$0xff] }
 0x770   :  { %6272 = vmatprep.subr.mxu0 %v5475_v5  ;;  %6343 = vmatprep.subr.mxu1 %v5603_v2  ;;  %v5838_v3 = vld [vmem:[#allocation19 + $0x1dc0] sm:$0xff]  ;;  %v5707_v5 = vld [vmem:[#allocation19 + $0x19a8] sm:$0xff] }
 0x771   :  { %6273 = vmatpush2.msra.mxu0 %v5474_v16  ;;  %6344 = vmatpush2.msra.mxu1 %v5602_v15  ;;  %v5835_v2 = vld [vmem:[#allocation19 + $0x1da8] sm:$0xff]  ;;  %v5706_v16 = vld [vmem:[#allocation19 + $0x19a0] sm:$0xff] }
 0x772   :  { %6274 = vmatprep.subr.mxu0 %v5471_v13  ;;  %6345 = vmatprep.subr.mxu1 %v5599_v62  ;;  %v5834_v15 = vld [vmem:[#allocation19 + $0x1da0] sm:$0xff]  ;;  %v5703_v13 = vld [vmem:[#allocation19 + $0x1988] sm:$0xff] }
 0x773   :  { %6275 = vmatpush2.msra.mxu0 %v5470_v20  ;;  %6346 = vmatpush2.msra.mxu1 %v5598_v60  ;;  %v5831_v62 = vld [vmem:[#allocation19 + $0x1d88] sm:$0xff]  ;;  %v5830_v20 = vld [vmem:[#allocation19 + $0x1d80] sm:$0xff] }
 0x774   :  { %6276 = vmatprep.subr.mxu0 %v5467_v25  ;;  %6347 = vmatprep.subr.mxu1 %v5595_v51  ;;  %v5699_v60 = vld [vmem:[#allocation19 + $0x1968] sm:$0xff]  ;;  %v5826_v25 = vld [vmem:[#allocation19 + $0x1d60] sm:$0xff] }
 0x775   :  { %6277 = vmatpush2.msra.mxu0 %v5466_v57  ;;  %6348 = vmatpush2.msra.mxu1 %v5594_v33  ;;  %v5695_v51 = vld [vmem:[#allocation19 + $0x1948] sm:$0xff]  ;;  %v5694_v57 = vld [vmem:[#allocation19 + $0x1940] sm:$0xff] }
 0x776   :  { %6278 = vmatprep.subr.mxu0 %v5463_v48  ;;  %6349 = vmatprep.subr.mxu1 %v5591_v32  ;;  %v5822_v33 = vld [vmem:[#allocation19 + $0x1d40] sm:$0xff]  ;;  %v5691_v48 = vld [vmem:[#allocation19 + $0x1928] sm:$0xff] }
 0x777   :  { %6279 = vmatpush2.msra.mxu0 %v5462_v63  ;;  %6350 = vmatpush2.msra.mxu1 %v5590_v49  ;;  %v5819_v32 = vld [vmem:[#allocation19 + $0x1d28] sm:$0xff]  ;;  %v5690_v63 = vld [vmem:[#allocation19 + $0x1920] sm:$0xff] }
 0x778   :  { %6281 = vmatmul.mubr.f32.vlgmr.msra.gmra.mxu0 %v4878_v36  ;;  %6352 = vmatmul.mubr.f32.vlgmr.msra.gmra.mxu1 %v4880_v46  ;;  %v5818_v49 = vld [vmem:[#allocation19 + $0x1d20] sm:$0xff] }
 0x779   :  { %6358 = vmatprep.subr.mxu0 %v5715_v45  ;;  %6429 = vmatprep.subr.mxu1 %v5843_v53  ;;  %v5687_v45 = vld [vmem:[#allocation19 + $0x1908] sm:$0xff] }
 0x77a   :  { %6359 = vmatpush1.msra.mxu0 %v5714_v56  ;;  %6422 = vmatprep.mubr.f32.mxu0 %v4883_v12  ;;  %v5815_v53 = vld [vmem:[#allocation19 + $0x1d08] sm:$0xff]  ;;  %v5686_v56 = vld [vmem:[#allocation19 + $0x1900] sm:$0xff] }
 0x77b   :  { %6430 = vmatpush1.msra.mxu1 %v5842_v59  ;;  %6493 = vmatprep.mubr.f32.mxu1 %v4885_v61  ;;  %v5814_v59 = vld [vmem:[#allocation19 + $0x1d00] sm:$0xff] }
 0x77c   :  { %6360 = vmatprep.subr.mxu0 %v5711_v11  ;;  %6431 = vmatprep.subr.mxu1 %v5839_v23  ;;  %v5683_v11 = vld [vmem:[#allocation19 + $0x18e8] sm:$0xff] }
 0x77d   :  { %6361 = vmatpush1.msra.mxu0 %v5710_v1  ;;  %6432 = vmatpush1.msra.mxu1 %v5838_v3  ;;  %v5811_v23 = vld [vmem:[#allocation19 + $0x1ce8] sm:$0xff]  ;;  %v5682_v1 = vld [vmem:[#allocation19 + $0x18e0] sm:$0xff] }
 0x77e   :  { %6362 = vmatprep.subr.mxu0 %v5707_v5  ;;  %6433 = vmatprep.subr.mxu1 %v5835_v2  ;;  %v5810_v3 = vld [vmem:[#allocation19 + $0x1ce0] sm:$0xff]  ;;  %v5679_v5 = vld [vmem:[#allocation19 + $0x18c8] sm:$0xff] }
 0x77f   :  { %6363 = vmatpush1.msra.mxu0 %v5706_v16  ;;  %6434 = vmatpush1.msra.mxu1 %v5834_v15  ;;  %v5807_v2 = vld [vmem:[#allocation19 + $0x1cc8] sm:$0xff]  ;;  %v5678_v16 = vld [vmem:[#allocation19 + $0x18c0] sm:$0xff] }
 0x780   :  { %6364 = vmatprep.subr.mxu0 %v5703_v13  ;;  %6435 = vmatprep.subr.mxu1 %v5831_v62  ;;  %v5806_v15 = vld [vmem:[#allocation19 + $0x1cc0] sm:$0xff]  ;;  %v5675_v13 = vld [vmem:[#allocation19 + $0x18a8] sm:$0xff] }
 0x781   :  { %6365 = vmatpush1.msra.mxu0 %v5702_v19  ;;  %6436 = vmatpush1.msra.mxu1 %v5830_v20  ;;  %v5803_v62 = vld [vmem:[#allocation19 + $0x1ca8] sm:$0xff]  ;;  %v5674_v19 = vld [vmem:[#allocation19 + $0x18a0] sm:$0xff] }
 0x782   :  { %6366 = vmatprep.subr.mxu0 %v5699_v60  ;;  %6437 = vmatprep.subr.mxu1 %v5827_v21  ;;  %v5802_v20 = vld [vmem:[#allocation19 + $0x1ca0] sm:$0xff]  ;;  %v5671_v60 = vld [vmem:[#allocation19 + $0x1888] sm:$0xff] }
 0x783   :  { %6367 = vmatpush1.msra.mxu0 %v5698_v24  ;;  %6438 = vmatpush1.msra.mxu1 %v5826_v25  ;;  %v5799_v21 = vld [vmem:[#allocation19 + $0x1c88] sm:$0xff]  ;;  %v5670_v24 = vld [vmem:[#allocation19 + $0x1880] sm:$0xff] }
 0x784   :  { %6368 = vmatprep.subr.mxu0 %v5695_v51  ;;  %6439 = vmatprep.subr.mxu1 %v5823_v50  ;;  %v5798_v25 = vld [vmem:[#allocation19 + $0x1c80] sm:$0xff]  ;;  %v5667_v51 = vld [vmem:[#allocation19 + $0x1868] sm:$0xff] }
 0x785   :  { %6369 = vmatpush1.msra.mxu0 %v5694_v57  ;;  %6440 = vmatpush1.msra.mxu1 %v5822_v33  ;;  %v5795_v50 = vld [vmem:[#allocation19 + $0x1c68] sm:$0xff]  ;;  %v5666_v57 = vld [vmem:[#allocation19 + $0x1860] sm:$0xff] }
 0x786   :  { %6370 = vmatprep.subr.mxu0 %v5691_v48  ;;  %6441 = vmatprep.subr.mxu1 %v5819_v32  ;;  %v5794_v33 = vld [vmem:[#allocation19 + $0x1c60] sm:$0xff]  ;;  %v5663_v48 = vld [vmem:[#allocation19 + $0x1848] sm:$0xff] }
 0x787   :  { %6371 = vmatpush1.msra.mxu0 %v5690_v63  ;;  %6442 = vmatpush1.msra.mxu1 %v5818_v49  ;;  %v5791_v32 = vld [vmem:[#allocation19 + $0x1c48] sm:$0xff]  ;;  %v5662_v63 = vld [vmem:[#allocation19 + $0x1840] sm:$0xff] }
 0x788   :  { %6372 = vmatprep.subr.mxu0 %v5687_v45  ;;  %6443 = vmatprep.subr.mxu1 %v5815_v53  ;;  %v5790_v49 = vld [vmem:[#allocation19 + $0x1c40] sm:$0xff]  ;;  %v5659_v45 = vld [vmem:[#allocation19 + $0x1828] sm:$0xff] }
 0x789   :  { %6373 = vmatpush1.msra.mxu0 %v5686_v56  ;;  %6444 = vmatpush1.msra.mxu1 %v5814_v59  ;;  %v5787_v53 = vld [vmem:[#allocation19 + $0x1c28] sm:$0xff]  ;;  %v5658_v56 = vld [vmem:[#allocation19 + $0x1820] sm:$0xff] }
 0x78a   :  { %6374 = vmatprep.subr.mxu0 %v5683_v11  ;;  %6445 = vmatprep.subr.mxu1 %v5811_v23  ;;  %v5786_v59 = vld [vmem:[#allocation19 + $0x1c20] sm:$0xff]  ;;  %v5655_v11 = vld [vmem:[#allocation19 + $0x1808] sm:$0xff] }
 0x78b   :  { %6375 = vmatpush1.msra.mxu0 %v5682_v1  ;;  %6446 = vmatpush1.msra.mxu1 %v5810_v3  ;;  %v5783_v23 = vld [vmem:[#allocation19 + $0x1c08] sm:$0xff]  ;;  %v5654_v1 = vld [vmem:[#allocation19 + $0x1800] sm:$0xff] }
 0x78c   :  { %6376 = vmatprep.subr.mxu0 %v5679_v5  ;;  %6447 = vmatprep.subr.mxu1 %v5807_v2  ;;  %v5782_v3 = vld [vmem:[#allocation19 + $0x1c00] sm:$0xff]  ;;  %v5779_v5 = vld [vmem:[#allocation19 + $0x1be8] sm:$0xff] }
 0x78d   :  { %6377 = vmatpush1.msra.mxu0 %v5678_v16  ;;  %6448 = vmatpush1.msra.mxu1 %v5806_v15  ;;  %v5907_v2 = vld [vmem:[#allocation19 + $0x1fe8] sm:$0xff]  ;;  %v5778_v16 = vld [vmem:[#allocation19 + $0x1be0] sm:$0xff] }
 0x78e   :  { %6378 = vmatprep.subr.mxu0 %v5675_v13  ;;  %6449 = vmatprep.subr.mxu1 %v5803_v62  ;;  %v5906_v15 = vld [vmem:[#allocation19 + $0x1fe0] sm:$0xff]  ;;  %v5775_v13 = vld [vmem:[#allocation19 + $0x1bc8] sm:$0xff] }
 0x78f   :  { %6379 = vmatpush1.msra.mxu0 %v5674_v19  ;;  %6450 = vmatpush1.msra.mxu1 %v5802_v20  ;;  %v5903_v62 = vld [vmem:[#allocation19 + $0x1fc8] sm:$0xff]  ;;  %v5774_v19 = vld [vmem:[#allocation19 + $0x1bc0] sm:$0xff] }
 0x790   :  { %6380 = vmatprep.subr.mxu0 %v5671_v60  ;;  %6451 = vmatprep.subr.mxu1 %v5799_v21  ;;  %v5902_v20 = vld [vmem:[#allocation19 + $0x1fc0] sm:$0xff]  ;;  %v5771_v60 = vld [vmem:[#allocation19 + $0x1ba8] sm:$0xff] }
 0x791   :  { %6381 = vmatpush1.msra.mxu0 %v5670_v24  ;;  %6452 = vmatpush1.msra.mxu1 %v5798_v25  ;;  %v5899_v21 = vld [vmem:[#allocation19 + $0x1fa8] sm:$0xff]  ;;  %v5770_v24 = vld [vmem:[#allocation19 + $0x1ba0] sm:$0xff] }
 0x792   :  { %6382 = vmatprep.subr.mxu0 %v5667_v51  ;;  %6453 = vmatprep.subr.mxu1 %v5795_v50  ;;  %v5898_v25 = vld [vmem:[#allocation19 + $0x1fa0] sm:$0xff]  ;;  %v5767_v51 = vld [vmem:[#allocation19 + $0x1b88] sm:$0xff] }
 0x793   :  { %6383 = vmatpush1.msra.mxu0 %v5666_v57  ;;  %6454 = vmatpush1.msra.mxu1 %v5794_v33  ;;  %v5895_v50 = vld [vmem:[#allocation19 + $0x1f88] sm:$0xff]  ;;  %v5766_v57 = vld [vmem:[#allocation19 + $0x1b80] sm:$0xff] }
 0x794   :  { %6384 = vmatprep.subr.mxu0 %v5663_v48  ;;  %6455 = vmatprep.subr.mxu1 %v5791_v32  ;;  %v5894_v33 = vld [vmem:[#allocation19 + $0x1f80] sm:$0xff]  ;;  %v5763_v48 = vld [vmem:[#allocation19 + $0x1b68] sm:$0xff] }
 0x795   :  { %6385 = vmatpush1.msra.mxu0 %v5662_v63  ;;  %6456 = vmatpush1.msra.mxu1 %v5790_v49  ;;  %v5891_v32 = vld [vmem:[#allocation19 + $0x1f68] sm:$0xff]  ;;  %v5762_v63 = vld [vmem:[#allocation19 + $0x1b60] sm:$0xff] }
 0x796   :  { %6386 = vmatprep.subr.mxu0 %v5659_v45  ;;  %6457 = vmatprep.subr.mxu1 %v5787_v53  ;;  %v5890_v49 = vld [vmem:[#allocation19 + $0x1f60] sm:$0xff]  ;;  %v5759_v45 = vld [vmem:[#allocation19 + $0x1b48] sm:$0xff] }
 0x797   :  { %6387 = vmatpush1.msra.mxu0 %v5658_v56  ;;  %6458 = vmatpush1.msra.mxu1 %v5786_v59  ;;  %v5887_v53 = vld [vmem:[#allocation19 + $0x1f48] sm:$0xff]  ;;  %v5758_v56 = vld [vmem:[#allocation19 + $0x1b40] sm:$0xff] }
 0x798   :  { %6388 = vmatprep.subr.mxu0 %v5655_v11  ;;  %6459 = vmatprep.subr.mxu1 %v5783_v23  ;;  %v5886_v59 = vld [vmem:[#allocation19 + $0x1f40] sm:$0xff]  ;;  %v5755_v11 = vld [vmem:[#allocation19 + $0x1b28] sm:$0xff] }
 0x799   :  { %6389 = vmatpush1.msra.mxu0 %v5654_v1  ;;  %6460 = vmatpush1.msra.mxu1 %v5782_v3  ;;  %v5883_v23 = vld [vmem:[#allocation19 + $0x1f28] sm:$0xff]  ;;  %v5754_v1 = vld [vmem:[#allocation19 + $0x1b20] sm:$0xff] }
 0x79a   :  { %6390 = vmatprep.subr.mxu0 %v5779_v5  ;;  %6461 = vmatprep.subr.mxu1 %v5907_v2  ;;  %v5882_v3 = vld [vmem:[#allocation19 + $0x1f20] sm:$0xff]  ;;  %v5751_v5 = vld [vmem:[#allocation19 + $0x1b08] sm:$0xff] }
 0x79b   :  { %6391 = vmatpush2.msra.mxu0 %v5778_v16  ;;  %6462 = vmatpush2.msra.mxu1 %v5906_v15  ;;  %v5879_v2 = vld [vmem:[#allocation19 + $0x1f08] sm:$0xff]  ;;  %v5750_v16 = vld [vmem:[#allocation19 + $0x1b00] sm:$0xff] }
 0x79c   :  { %6392 = vmatprep.subr.mxu0 %v5775_v13  ;;  %6463 = vmatprep.subr.mxu1 %v5903_v62  ;;  %v5878_v15 = vld [vmem:[#allocation19 + $0x1f00] sm:$0xff]  ;;  %v5747_v13 = vld [vmem:[#allocation19 + $0x1ae8] sm:$0xff] }
 0x79d   :  { %6393 = vmatpush2.msra.mxu0 %v5774_v19  ;;  %6464 = vmatpush2.msra.mxu1 %v5902_v20  ;;  %v5875_v62 = vld [vmem:[#allocation19 + $0x1ee8] sm:$0xff]  ;;  %v5746_v19 = vld [vmem:[#allocation19 + $0x1ae0] sm:$0xff] }
 0x79e   :  { %6394 = vmatprep.subr.mxu0 %v5771_v60  ;;  %6465 = vmatprep.subr.mxu1 %v5899_v21  ;;  %v5874_v20 = vld [vmem:[#allocation19 + $0x1ee0] sm:$0xff]  ;;  %v5743_v60 = vld [vmem:[#allocation19 + $0x1ac8] sm:$0xff] }
 0x79f   :  { %6395 = vmatpush2.msra.mxu0 %v5770_v24  ;;  %6466 = vmatpush2.msra.mxu1 %v5898_v25  ;;  %v5871_v21 = vld [vmem:[#allocation19 + $0x1ec8] sm:$0xff]  ;;  %v5742_v24 = vld [vmem:[#allocation19 + $0x1ac0] sm:$0xff] }
 0x7a0   :  { %6396 = vmatprep.subr.mxu0 %v5767_v51  ;;  %6467 = vmatprep.subr.mxu1 %v5895_v50  ;;  %v5870_v25 = vld [vmem:[#allocation19 + $0x1ec0] sm:$0xff]  ;;  %v5739_v51 = vld [vmem:[#allocation19 + $0x1aa8] sm:$0xff] }
 0x7a1   :  { %6397 = vmatpush2.msra.mxu0 %v5766_v57  ;;  %6468 = vmatpush2.msra.mxu1 %v5894_v33  ;;  %v5867_v50 = vld [vmem:[#allocation19 + $0x1ea8] sm:$0xff]  ;;  %v5738_v57 = vld [vmem:[#allocation19 + $0x1aa0] sm:$0xff] }
 0x7a2   :  { %6398 = vmatprep.subr.mxu0 %v5763_v48  ;;  %6469 = vmatprep.subr.mxu1 %v5891_v32  ;;  %v5866_v33 = vld [vmem:[#allocation19 + $0x1ea0] sm:$0xff]  ;;  %v5735_v48 = vld [vmem:[#allocation19 + $0x1a88] sm:$0xff] }
 0x7a3   :  { %6399 = vmatpush2.msra.mxu0 %v5762_v63  ;;  %6470 = vmatpush2.msra.mxu1 %v5890_v49  ;;  %v5863_v32 = vld [vmem:[#allocation19 + $0x1e88] sm:$0xff]  ;;  %v5734_v63 = vld [vmem:[#allocation19 + $0x1a80] sm:$0xff] }
 0x7a4   :  { %6400 = vmatprep.subr.mxu0 %v5759_v45  ;;  %6471 = vmatprep.subr.mxu1 %v5887_v53  ;;  %v5862_v49 = vld [vmem:[#allocation19 + $0x1e80] sm:$0xff]  ;;  %v5731_v45 = vld [vmem:[#allocation19 + $0x1a68] sm:$0xff] }
 0x7a5   :  { %6401 = vmatpush2.msra.mxu0 %v5758_v56  ;;  %6472 = vmatpush2.msra.mxu1 %v5886_v59  ;;  %v5859_v53 = vld [vmem:[#allocation19 + $0x1e68] sm:$0xff]  ;;  %v5910_v56 = vld [vmem:[#allocation20] sm:$0xf] }
 0x7a6   :  { %6402 = vmatprep.subr.mxu0 %v5755_v11  ;;  %6473 = vmatprep.subr.mxu1 %v5883_v23  ;;  %v5730_v59 = vld [vmem:[#allocation19 + $0x1a60] sm:$0xff]  ;;  %v5727_v23 = vld [vmem:[#allocation19 + $0x1a48] sm:$0xff] }
 0x7a7   :  { %6403 = vmatpush2.msra.mxu0 %v5754_v1  ;;  %6474 = vmatpush2.msra.mxu1 %v5882_v3  ;;  %v5858_v11 = vld [vmem:[#allocation19 + $0x1e60] sm:$0xff]  ;;  %v5855_v1 = vld [vmem:[#allocation19 + $0x1e48] sm:$0xff] }
 0x7a8   :  { %6404 = vmatprep.subr.mxu0 %v5751_v5  ;;  %6475 = vmatprep.subr.mxu1 %v5879_v2  ;;  %v5726_v3 = vld [vmem:[#allocation19 + $0x1a40] sm:$0xff]  ;;  %v5915_v2 = vrot.slane %v5910_v56, %v9211_v41  ;;  %v4944_v56 = vld [vmem:[#allocation19 + $0x1d0] sm:$0xff] }
 0x7a9   :  { %6405 = vmatpush2.msra.mxu0 %v5750_v16  ;;  %6476 = vmatpush2.msra.mxu1 %v5878_v15  ;;  %v5854_v5 = vld [vmem:[#allocation19 + $0x1e40] sm:$0xff]  ;;  %v5723_v16 = vld [vmem:[#allocation19 + $0x1a28] sm:$0xff] }
 0x7aa   :  { %6406 = vmatprep.subr.mxu0 %v5747_v13  ;;  %6477 = vmatprep.subr.mxu1 %v5875_v62  ;;  %v5851_v15 = vld [vmem:[#allocation19 + $0x1e28] sm:$0xff]  ;;  %v5722_v13 = vld [vmem:[#allocation19 + $0x1a20] sm:$0xff] }
 0x7ab   :  { %6407 = vmatpush2.msra.mxu0 %v5746_v19  ;;  %6478 = vmatpush2.msra.mxu1 %v5874_v20  ;;  %v5850_v62 = vld [vmem:[#allocation19 + $0x1e20] sm:$0xff]  ;;  %v5719_v19 = vld [vmem:[#allocation19 + $0x1a08] sm:$0xff] }
 0x7ac   :  { %6408 = vmatprep.subr.mxu0 %v5743_v60  ;;  %6479 = vmatprep.subr.mxu1 %v5871_v21  ;;  %v5847_v20 = vld [vmem:[#allocation19 + $0x1e08] sm:$0xff]  ;;  %v5718_v21 = vld [vmem:[#allocation19 + $0x1a00] sm:$0xff] }
 0x7ad   :  { %6409 = vmatpush2.msra.mxu0 %v5742_v24  ;;  %6480 = vmatpush2.msra.mxu1 %v5870_v25  ;;  %v5846_v24 = vld [vmem:[#allocation19 + $0x1e00] sm:$0xff] }
 0x7ae   :  { %6410 = vmatprep.subr.mxu0 %v5739_v51  ;;  %6481 = vmatprep.subr.mxu1 %v5867_v50  ;;  %v4882_v50 = vmax.f32 %v10249_v55, 0.0  ;;  %v7256_v55 = vld [vmem:[#allocation22 + $0x5c0] sm:$0xff] }
 0x7af   :  { %6411 = vmatpush2.msra.mxu0 %v5738_v57  ;;  %6482 = vmatpush2.msra.mxu1 %v5866_v33  ;;  %v4884_v57 = vmax.f32 %v10251_v58, 0.0  ;;  %v4949_v33 = vld [vmem:[#allocation19 + $0x1f8] sm:$0xff]  ;;  %v7120_v58 = vld [vmem:[#allocation22 + $0x180] sm:$0xff] }
 0x7b0   :  { %6412 = vmatprep.subr.mxu0 %v5735_v48  ;;  %6483 = vmatprep.subr.mxu1 %v5863_v32  ;;  %v5077_v48 = vld [vmem:[#allocation19 + $0x5f8] sm:$0xff] }
 0x7b1   :  { %6413 = vmatpush2.msra.mxu0 %v5734_v63  ;;  %6484 = vmatpush2.msra.mxu1 %v5862_v49  ;;  %v4948_v63 = vld [vmem:[#allocation19 + $0x1f0] sm:$0xff] }
 0x7b2   :  { %6414 = vmatprep.subr.mxu0 %v5731_v45  ;;  %6485 = vmatprep.subr.mxu1 %v5859_v53  ;;  %v5076_v49 = vld [vmem:[#allocation19 + $0x5f0] sm:$0xff]  ;;  %v4945_v45 = vld [vmem:[#allocation19 + $0x1d8] sm:$0xff] }
 0x7b3   :  { %6415 = vmatpush2.msra.mxu0 %v5730_v59  ;;  %6486 = vmatpush2.msra.mxu1 %v5858_v11  ;;  %v5073_v53 = vld [vmem:[#allocation19 + $0x5d8] sm:$0xff]  ;;  %v5072_v59 = vld [vmem:[#allocation19 + $0x5d0] sm:$0xff] }
 0x7b4   :  { %6416 = vmatprep.subr.mxu0 %v5727_v23  ;;  %6487 = vmatprep.subr.mxu1 %v5855_v1  ;;  %v4941_v11 = vld [vmem:[#allocation19 + $0x1b8] sm:$0xff]  ;;  %v4940_v1 = vld [vmem:[#allocation19 + $0x1b0] sm:$0xff] }
 0x7b5   :  { %6417 = vmatpush2.msra.mxu0 %v5726_v3  ;;  %6488 = vmatpush2.msra.mxu1 %v5854_v5  ;;  %v5998_v60 = vpop.f32.mrf.mxu0  ;;  %v6069_v51 = vpop.f32.mrf.mxu1  ;;  %v5069_v23 = vld [vmem:[#allocation19 + $0x5b8] sm:$0xff]  ;;  %v5068_v3 = vld [vmem:[#allocation19 + $0x5b0] sm:$0xff] }
 0x7b6   :  { %6418 = vmatprep.subr.mxu0 %v5723_v16  ;;  %6489 = vmatprep.subr.mxu1 %v5851_v15  ;;  %v5999_v25 = vadd.f32 %v5998_v60, %v5915_v2  ;;  %v4937_v5 = vld [vmem:[#allocation19 + $0x198] sm:$0xff] }
 0x7b7   :  { %6419 = vmatpush2.msra.mxu0 %v5722_v13  ;;  %6490 = vmatpush2.msra.mxu1 %v5850_v62  ;;  %v5065_v2 = vld [vmem:[#allocation19 + $0x598] sm:$0xff] }
 0x7b8   :  { %6420 = vmatprep.subr.mxu0 %v5719_v19  ;;  %6491 = vmatprep.subr.mxu1 %v5847_v20  ;;  %v10308_v32 = vadd.f32 %v6069_v51, %v5999_v25  ;;  %v4933_v16 = vld [vmem:[#allocation19 + $0x178] sm:$0xff]  ;;  %v4928_v19 = vld [vmem:[#allocation19 + $0x150] sm:$0xff] }
 0x7b9   :  { %6421 = vmatpush2.msra.mxu0 %v5718_v21  ;;  %6492 = vmatpush2.msra.mxu1 %v5846_v24  ;;  %v5061_v15 = vld [vmem:[#allocation19 + $0x578] sm:$0xff]  ;;  %v5056_v20 = vld [vmem:[#allocation19 + $0x550] sm:$0xff] }
 0x7ba   :  { %6423 = vmatmul.mubr.f32.vlgmr.msra.gmra.mxu0 %v4882_v50  ;;  %6494 = vmatmul.mubr.f32.vlgmr.msra.gmra.mxu1 %v4884_v57  ;;  %v4929_v13 = vld [vmem:[#allocation19 + $0x158] sm:$0xff]  ;;  %v4924_v24 = vld [vmem:[#allocation19 + $0x130] sm:$0xff] }
 0x7bb   :  { %6500 = vmatprep.subr.mxu0 %v4949_v33  ;;  %6571 = vmatprep.subr.mxu1 %v5077_v48  ;;  %v5057_v62 = vld [vmem:[#allocation19 + $0x558] sm:$0xff]  ;;  %v5052_v25 = vld [vmem:[#allocation19 + $0x530] sm:$0xff] }
 0x7bc   :  { %6501 = vmatpush1.msra.mxu0 %v4948_v63  ;;  %6564 = vmatprep.mubr.f32.mxu0 %v4871_v35  ;;  %v5064_v35 = vld [vmem:[#allocation19 + $0x590] sm:$0xff]  ;;  %v4925_v60 = vld [vmem:[#allocation19 + $0x138] sm:$0xff] }
 0x7bd   :  { %6572 = vmatpush1.msra.mxu1 %v5076_v49  ;;  %6635 = vmatprep.mubr.f32.mxu1 %v4873_v9  ;;  %v5060_v9 = vld [vmem:[#allocation19 + $0x570] sm:$0xff]  ;;  %v5053_v21 = vld [vmem:[#allocation19 + $0x538] sm:$0xff] }
 0x7be   :  { %6502 = vmatprep.subr.mxu0 %v4945_v45  ;;  %6573 = vmatprep.subr.mxu1 %v5073_v53  ;;  %v4921_v51 = vld [vmem:[#allocation19 + $0x118] sm:$0xff]  ;;  %v4920_v48 = vld [vmem:[#allocation19 + $0x110] sm:$0xff] }
 0x7bf   :  { %6503 = vmatpush1.msra.mxu0 %v4944_v56  ;;  %6574 = vmatpush1.msra.mxu1 %v5072_v59  ;;  %v5049_v33 = vld [vmem:[#allocation19 + $0x518] sm:$0xff]  ;;  %v5048_v63 = vld [vmem:[#allocation19 + $0x510] sm:$0xff] }
 0x7c0   :  { %6504 = vmatprep.subr.mxu0 %v4941_v11  ;;  %6575 = vmatprep.subr.mxu1 %v5069_v23  ;;  %v4917_v49 = vld [vmem:[#allocation19 + $0xf8] sm:$0xff]  ;;  %v4916_v53 = vld [vmem:[#allocation19 + $0xf0] sm:$0xff] }
 0x7c1   :  { %6505 = vmatpush1.msra.mxu0 %v4940_v1  ;;  %6576 = vmatpush1.msra.mxu1 %v5068_v3  ;;  %v5045_v45 = vld [vmem:[#allocation19 + $0x4f8] sm:$0xff]  ;;  %v5044_v56 = vld [vmem:[#allocation19 + $0x4f0] sm:$0xff] }
 0x7c2   :  { %6506 = vmatprep.subr.mxu0 %v4937_v5  ;;  %6577 = vmatprep.subr.mxu1 %v5065_v2  ;;  %v4913_v59 = vld [vmem:[#allocation19 + $0xd8] sm:$0xff]  ;;  %v4912_v23 = vld [vmem:[#allocation19 + $0xd0] sm:$0xff] }
 0x7c3   :  { %6507 = vmatpush1.msra.mxu0 %v4936_v7  ;;  %6578 = vmatpush1.msra.mxu1 %v5064_v35  ;;  %v5041_v11 = vld [vmem:[#allocation19 + $0x4d8] sm:$0xff]  ;;  %v5040_v1 = vld [vmem:[#allocation19 + $0x4d0] sm:$0xff] }
 0x7c4   :  { %6508 = vmatprep.subr.mxu0 %v4933_v16  ;;  %6579 = vmatprep.subr.mxu1 %v5061_v15  ;;  %v4909_v3 = vld [vmem:[#allocation19 + $0xb8] sm:$0xff]  ;;  %v4908_v2 = vld [vmem:[#allocation19 + $0xb0] sm:$0xff] }
 0x7c5   :  { %6509 = vmatpush1.msra.mxu0 %v4932_v8  ;;  %6580 = vmatpush1.msra.mxu1 %v5060_v9  ;;  %v5037_v5 = vld [vmem:[#allocation19 + $0x4b8] sm:$0xff]  ;;  %v5036_v7 = vld [vmem:[#allocation19 + $0x4b0] sm:$0xff] }
 0x7c6   :  { %6510 = vmatprep.subr.mxu0 %v4929_v13  ;;  %6581 = vmatprep.subr.mxu1 %v5057_v62  ;;  %v4905_v35 = vld [vmem:[#allocation19 + $0x98] sm:$0xff]  ;;  %v4904_v15 = vld [vmem:[#allocation19 + $0x90] sm:$0xff] }
 0x7c7   :  { %6511 = vmatpush1.msra.mxu0 %v4928_v19  ;;  %6582 = vmatpush1.msra.mxu1 %v5056_v20  ;;  %v5033_v16 = vld [vmem:[#allocation19 + $0x498] sm:$0xff]  ;;  %v5032_v8 = vld [vmem:[#allocation19 + $0x490] sm:$0xff] }
 0x7c8   :  { %6512 = vmatprep.subr.mxu0 %v4925_v60  ;;  %6583 = vmatprep.subr.mxu1 %v5053_v21  ;;  %v4901_v9 = vld [vmem:[#allocation19 + $0x78] sm:$0xff]  ;;  %v4900_v62 = vld [vmem:[#allocation19 + $0x70] sm:$0xff] }
 0x7c9   :  { %6513 = vmatpush1.msra.mxu0 %v4924_v24  ;;  %6584 = vmatpush1.msra.mxu1 %v5052_v25  ;;  %v5029_v13 = vld [vmem:[#allocation19 + $0x478] sm:$0xff]  ;;  %v5028_v19 = vld [vmem:[#allocation19 + $0x470] sm:$0xff] }
 0x7ca   :  { %6514 = vmatprep.subr.mxu0 %v4921_v51  ;;  %6585 = vmatprep.subr.mxu1 %v5049_v33  ;;  %v4897_v20 = vld [vmem:[#allocation19 + $0x58] sm:$0xff]  ;;  %v4896_v21 = vld [vmem:[#allocation19 + $0x50] sm:$0xff] }
 0x7cb   :  { %6515 = vmatpush1.msra.mxu0 %v4920_v48  ;;  %6586 = vmatpush1.msra.mxu1 %v5048_v63  ;;  %v5025_v60 = vld [vmem:[#allocation19 + $0x458] sm:$0xff]  ;;  %v5024_v24 = vld [vmem:[#allocation19 + $0x450] sm:$0xff] }
 0x7cc   :  { %6516 = vmatprep.subr.mxu0 %v4917_v49  ;;  %6587 = vmatprep.subr.mxu1 %v5045_v45  ;;  %v4893_v25 = vld [vmem:[#allocation19 + $0x38] sm:$0xff]  ;;  %v4892_v33 = vld [vmem:[#allocation19 + $0x30] sm:$0xff] }
 0x7cd   :  { %6517 = vmatpush1.msra.mxu0 %v4916_v53  ;;  %6588 = vmatpush1.msra.mxu1 %v5044_v56  ;;  %v5021_v51 = vld [vmem:[#allocation19 + $0x438] sm:$0xff]  ;;  %v5020_v48 = vld [vmem:[#allocation19 + $0x430] sm:$0xff] }
 0x7ce   :  { %6518 = vmatprep.subr.mxu0 %v4913_v59  ;;  %6589 = vmatprep.subr.mxu1 %v5041_v11  ;;  %v4889_v63 = vld [vmem:[#allocation19 + $0x18] sm:$0xff]  ;;  %v4888_v45 = vld [vmem:[#allocation19 + $0x10] sm:$0xff] }
 0x7cf   :  { %6519 = vmatpush1.msra.mxu0 %v4912_v23  ;;  %6590 = vmatpush1.msra.mxu1 %v5040_v1  ;;  %v5017_v49 = vld [vmem:[#allocation19 + $0x418] sm:$0xff]  ;;  %v5016_v53 = vld [vmem:[#allocation19 + $0x410] sm:$0xff] }
 0x7d0   :  { %6520 = vmatprep.subr.mxu0 %v4909_v3  ;;  %6591 = vmatprep.subr.mxu1 %v5037_v5  ;;  %v5013_v56 = vld [vmem:[#allocation19 + $0x3f8] sm:$0xff]  ;;  %v5012_v11 = vld [vmem:[#allocation19 + $0x3f0] sm:$0xff] }
 0x7d1   :  { %6521 = vmatpush1.msra.mxu0 %v4908_v2  ;;  %6592 = vmatpush1.msra.mxu1 %v5036_v7  ;;  %v5141_v59 = vld [vmem:[#allocation19 + $0x7f8] sm:$0xff]  ;;  %v5140_v23 = vld [vmem:[#allocation19 + $0x7f0] sm:$0xff] }
 0x7d2   :  { %6522 = vmatprep.subr.mxu0 %v4905_v35  ;;  %6593 = vmatprep.subr.mxu1 %v5033_v16  ;;  %v5009_v1 = vld [vmem:[#allocation19 + $0x3d8] sm:$0xff]  ;;  %v5008_v5 = vld [vmem:[#allocation19 + $0x3d0] sm:$0xff] }
 0x7d3   :  { %6523 = vmatpush1.msra.mxu0 %v4904_v15  ;;  %6594 = vmatpush1.msra.mxu1 %v5032_v8  ;;  %v5137_v3 = vld [vmem:[#allocation19 + $0x7d8] sm:$0xff]  ;;  %v5136_v2 = vld [vmem:[#allocation19 + $0x7d0] sm:$0xff] }
 0x7d4   :  { %6524 = vmatprep.subr.mxu0 %v4901_v9  ;;  %6595 = vmatprep.subr.mxu1 %v5029_v13  ;;  %v5005_v7 = vld [vmem:[#allocation19 + $0x3b8] sm:$0xff]  ;;  %v5004_v16 = vld [vmem:[#allocation19 + $0x3b0] sm:$0xff] }
 0x7d5   :  { %6525 = vmatpush1.msra.mxu0 %v4900_v62  ;;  %6596 = vmatpush1.msra.mxu1 %v5028_v19  ;;  %v5133_v35 = vld [vmem:[#allocation19 + $0x7b8] sm:$0xff]  ;;  %v5132_v15 = vld [vmem:[#allocation19 + $0x7b0] sm:$0xff] }
 0x7d6   :  { %6526 = vmatprep.subr.mxu0 %v4897_v20  ;;  %6597 = vmatprep.subr.mxu1 %v5025_v60  ;;  %v5001_v8 = vld [vmem:[#allocation19 + $0x398] sm:$0xff]  ;;  %v5000_v13 = vld [vmem:[#allocation19 + $0x390] sm:$0xff] }
 0x7d7   :  { %6527 = vmatpush1.msra.mxu0 %v4896_v21  ;;  %6598 = vmatpush1.msra.mxu1 %v5024_v24  ;;  %v5129_v9 = vld [vmem:[#allocation19 + $0x798] sm:$0xff]  ;;  %v5128_v62 = vld [vmem:[#allocation19 + $0x790] sm:$0xff] }
 0x7d8   :  { %6528 = vmatprep.subr.mxu0 %v4893_v25  ;;  %6599 = vmatprep.subr.mxu1 %v5021_v51  ;;  %v4997_v19 = vld [vmem:[#allocation19 + $0x378] sm:$0xff]  ;;  %v4996_v60 = vld [vmem:[#allocation19 + $0x370] sm:$0xff] }
 0x7d9   :  { %6529 = vmatpush1.msra.mxu0 %v4892_v33  ;;  %6600 = vmatpush1.msra.mxu1 %v5020_v48  ;;  %v5125_v20 = vld [vmem:[#allocation19 + $0x778] sm:$0xff]  ;;  %v5124_v21 = vld [vmem:[#allocation19 + $0x770] sm:$0xff] }
 0x7da   :  { %6530 = vmatprep.subr.mxu0 %v4889_v63  ;;  %6601 = vmatprep.subr.mxu1 %v5017_v49  ;;  %v4993_v24 = vld [vmem:[#allocation19 + $0x358] sm:$0xff]  ;;  %v4992_v51 = vld [vmem:[#allocation19 + $0x350] sm:$0xff] }
 0x7db   :  { %6531 = vmatpush1.msra.mxu0 %v4888_v45  ;;  %6602 = vmatpush1.msra.mxu1 %v5016_v53  ;;  %v5121_v25 = vld [vmem:[#allocation19 + $0x758] sm:$0xff]  ;;  %v5120_v33 = vld [vmem:[#allocation19 + $0x750] sm:$0xff] }
 0x7dc   :  { %6532 = vmatprep.subr.mxu0 %v5013_v56  ;;  %6603 = vmatprep.subr.mxu1 %v5141_v59  ;;  %v4989_v48 = vld [vmem:[#allocation19 + $0x338] sm:$0xff]  ;;  %v4988_v49 = vld [vmem:[#allocation19 + $0x330] sm:$0xff] }
 0x7dd   :  { %6533 = vmatpush2.msra.mxu0 %v5012_v11  ;;  %6604 = vmatpush2.msra.mxu1 %v5140_v23  ;;  %v5117_v63 = vld [vmem:[#allocation19 + $0x738] sm:$0xff]  ;;  %v5116_v45 = vld [vmem:[#allocation19 + $0x730] sm:$0xff] }
 0x7de   :  { %6534 = vmatprep.subr.mxu0 %v5009_v1  ;;  %6605 = vmatprep.subr.mxu1 %v5137_v3  ;;  %v4985_v53 = vld [vmem:[#allocation19 + $0x318] sm:$0xff]  ;;  %v4984_v59 = vld [vmem:[#allocation19 + $0x310] sm:$0xff] }
 0x7df   :  { %6535 = vmatpush2.msra.mxu0 %v5008_v5  ;;  %6606 = vmatpush2.msra.mxu1 %v5136_v2  ;;  %v5113_v56 = vld [vmem:[#allocation19 + $0x718] sm:$0xff]  ;;  %v5112_v11 = vld [vmem:[#allocation19 + $0x710] sm:$0xff] }
 0x7e0   :  { %6536 = vmatprep.subr.mxu0 %v5005_v7  ;;  %6607 = vmatprep.subr.mxu1 %v5133_v35  ;;  %v4981_v23 = vld [vmem:[#allocation19 + $0x2f8] sm:$0xff]  ;;  %v4980_v3 = vld [vmem:[#allocation19 + $0x2f0] sm:$0xff] }
 0x7e1   :  { %6537 = vmatpush2.msra.mxu0 %v5004_v16  ;;  %6608 = vmatpush2.msra.mxu1 %v5132_v15  ;;  %v5109_v1 = vld [vmem:[#allocation19 + $0x6f8] sm:$0xff]  ;;  %v5108_v5 = vld [vmem:[#allocation19 + $0x6f0] sm:$0xff] }
 0x7e2   :  { %6538 = vmatprep.subr.mxu0 %v5001_v8  ;;  %6609 = vmatprep.subr.mxu1 %v5129_v9  ;;  %v4977_v2 = vld [vmem:[#allocation19 + $0x2d8] sm:$0xff]  ;;  %v4976_v35 = vld [vmem:[#allocation19 + $0x2d0] sm:$0xff] }
 0x7e3   :  { %6539 = vmatpush2.msra.mxu0 %v5000_v13  ;;  %6610 = vmatpush2.msra.mxu1 %v5128_v62  ;;  %v5105_v7 = vld [vmem:[#allocation19 + $0x6d8] sm:$0xff]  ;;  %v5104_v16 = vld [vmem:[#allocation19 + $0x6d0] sm:$0xff] }
 0x7e4   :  { %6540 = vmatprep.subr.mxu0 %v4997_v19  ;;  %6611 = vmatprep.subr.mxu1 %v5125_v20  ;;  %v4973_v15 = vld [vmem:[#allocation19 + $0x2b8] sm:$0xff]  ;;  %v4972_v9 = vld [vmem:[#allocation19 + $0x2b0] sm:$0xff] }
 0x7e5   :  { %6541 = vmatpush2.msra.mxu0 %v4996_v60  ;;  %6612 = vmatpush2.msra.mxu1 %v5124_v21  ;;  %v5101_v8 = vld [vmem:[#allocation19 + $0x6b8] sm:$0xff]  ;;  %v5100_v13 = vld [vmem:[#allocation19 + $0x6b0] sm:$0xff] }
 0x7e6   :  { %6542 = vmatprep.subr.mxu0 %v4993_v24  ;;  %6613 = vmatprep.subr.mxu1 %v5121_v25  ;;  %v4969_v62 = vld [vmem:[#allocation19 + $0x298] sm:$0xff]  ;;  %v4968_v20 = vld [vmem:[#allocation19 + $0x290] sm:$0xff] }
 0x7e7   :  { %6543 = vmatpush2.msra.mxu0 %v4992_v51  ;;  %6614 = vmatpush2.msra.mxu1 %v5120_v33  ;;  %v5097_v19 = vld [vmem:[#allocation19 + $0x698] sm:$0xff]  ;;  %v5096_v60 = vld [vmem:[#allocation19 + $0x690] sm:$0xff] }
 0x7e8   :  { %6544 = vmatprep.subr.mxu0 %v4989_v48  ;;  %6615 = vmatprep.subr.mxu1 %v5117_v63  ;;  %v4965_v21 = vld [vmem:[#allocation19 + $0x278] sm:$0xff]  ;;  %v4964_v25 = vld [vmem:[#allocation19 + $0x270] sm:$0xff]  ;;  %v10318_v63 = vpop.f32.mrf.mxu0 }
 0x7e9   :  { %6545 = vmatpush2.msra.mxu0 %v4988_v49  ;;  %6616 = vmatpush2.msra.mxu1 %v5116_v45  ;;  %v5093_v24 = vld [vmem:[#allocation19 + $0x678] sm:$0xff]  ;;  %v5092_v51 = vld [vmem:[#allocation19 + $0x670] sm:$0xff] }
 0x7ea   :  { %6546 = vmatprep.subr.mxu0 %v4985_v53  ;;  %6617 = vmatprep.subr.mxu1 %v5113_v56  ;;  %v4961_v33 = vld [vmem:[#allocation19 + $0x258] sm:$0xff]  ;;  %v4960_v49 = vld [vmem:[#allocation19 + $0x250] sm:$0xff] }
 0x7eb   :  { %6547 = vmatpush2.msra.mxu0 %v4984_v59  ;;  %6618 = vmatpush2.msra.mxu1 %v5112_v11  ;;  %v5089_v48 = vld [vmem:[#allocation19 + $0x658] sm:$0xff]  ;;  %v5088_v45 = vld [vmem:[#allocation19 + $0x650] sm:$0xff]  ;;  %v10320_v59 = vpop.f32.mrf.mxu1 }
 0x7ec   :  { %6548 = vmatprep.subr.mxu0 %v4981_v23  ;;  %6619 = vmatprep.subr.mxu1 %v5109_v1  ;;  %v4957_v53 = vld [vmem:[#allocation19 + $0x238] sm:$0xff]  ;;  %v4956_v11 = vld [vmem:[#allocation19 + $0x230] sm:$0xff] }
 0x7ed   :  { %6549 = vmatpush2.msra.mxu0 %v4980_v3  ;;  %6620 = vmatpush2.msra.mxu1 %v5108_v5  ;;  %v5085_v56 = vld [vmem:[#allocation19 + $0x638] sm:$0xff]  ;;  %v5084_v23 = vld [vmem:[#allocation19 + $0x630] sm:$0xff] }
 0x7ee   :  { %6550 = vmatprep.subr.mxu0 %v4977_v2  ;;  %6621 = vmatprep.subr.mxu1 %v5105_v7  ;;  %v4953_v3 = vld [vmem:[#allocation19 + $0x218] sm:$0xff]  ;;  %v4952_v7 = vld [vmem:[#allocation19 + $0x210] sm:$0xff] }
 0x7ef   :  { %6551 = vmatpush2.msra.mxu0 %v4976_v35  ;;  %6622 = vmatpush2.msra.mxu1 %v5104_v16  ;;  %v5081_v5 = vld [vmem:[#allocation19 + $0x618] sm:$0xff]  ;;  %v5080_v35 = vld [vmem:[#allocation19 + $0x610] sm:$0xff] }
 0x7f0   :  { %6552 = vmatprep.subr.mxu0 %v4973_v15  ;;  %6623 = vmatprep.subr.mxu1 %v5101_v8  ;;  %v5205_v8 = vld [vmem:[#allocation19 + $0x9f8] sm:$0xff] }
 0x7f1   :  { %6553 = vmatpush2.msra.mxu0 %v4972_v9  ;;  %6624 = vmatpush2.msra.mxu1 %v5100_v13  ;;  %v5333_v9 = vld [vmem:[#allocation19 + $0xdf8] sm:$0xff]  ;;  %v5204_v13 = vld [vmem:[#allocation19 + $0x9f0] sm:$0xff] }
 0x7f2   :  { %6554 = vmatprep.subr.mxu0 %v4969_v62  ;;  %6625 = vmatprep.subr.mxu1 %v5097_v19  ;;  %v5201_v62 = vld [vmem:[#allocation19 + $0x9d8] sm:$0xff] }
 0x7f3   :  { %6555 = vmatpush2.msra.mxu0 %v4968_v20  ;;  %6626 = vmatpush2.msra.mxu1 %v5096_v60  ;;  %v5329_v19 = vld [vmem:[#allocation19 + $0xdd8] sm:$0xff]  ;;  %v5200_v20 = vld [vmem:[#allocation19 + $0x9d0] sm:$0xff] }
 0x7f4   :  { %6556 = vmatprep.subr.mxu0 %v4965_v21  ;;  %6627 = vmatprep.subr.mxu1 %v5093_v24  ;;  %v5328_v60 = vld [vmem:[#allocation19 + $0xdd0] sm:$0xff]  ;;  %v5193_v21 = vld [vmem:[#allocation19 + $0x998] sm:$0xff] }
 0x7f5   :  { %6557 = vmatpush2.msra.mxu0 %v4964_v25  ;;  %6628 = vmatpush2.msra.mxu1 %v5092_v51  ;;  %v5321_v24 = vld [vmem:[#allocation19 + $0xd98] sm:$0xff] }
 0x7f6   :  { %6558 = vmatprep.subr.mxu0 %v4961_v33  ;;  %6629 = vmatprep.subr.mxu1 %v5089_v48  ;;  %v6140_v1 = vpop.f32.mrf.mxu0  ;;  %v6211_v16 = vpop.f32.mrf.mxu1  ;;  %v5189_v25 = vld [vmem:[#allocation19 + $0x978] sm:$0xff] }
 0x7f7   :  { %6559 = vmatpush2.msra.mxu0 %v4960_v49  ;;  %6630 = vmatpush2.msra.mxu1 %v5088_v45  ;;  %v6141_v2 = vadd.f32 %v6140_v1, %v10308_v32  ;;  %v5332_v32 = vld [vmem:[#allocation19 + $0xdf0] sm:$0xff]  ;;  %v5317_v51 = vld [vmem:[#allocation19 + $0xd78] sm:$0xff] }
 0x7f8   :  { %6560 = vmatprep.subr.mxu0 %v4957_v53  ;;  %6631 = vmatprep.subr.mxu1 %v5085_v56  ;;  %v5185_v33 = vld [vmem:[#allocation19 + $0x958] sm:$0xff]  ;;  %v5184_v49 = vld [vmem:[#allocation19 + $0x950] sm:$0xff] }
 0x7f9   :  { %6561 = vmatpush2.msra.mxu0 %v4956_v11  ;;  %6632 = vmatpush2.msra.mxu1 %v5084_v23  ;;  %v10323_v15 = vadd.f32 %v6211_v16, %v6141_v2  ;;  %v5313_v48 = vld [vmem:[#allocation19 + $0xd58] sm:$0xff]  ;;  %v5312_v45 = vld [vmem:[#allocation19 + $0xd50] sm:$0xff] }
 0x7fa   :  { %6562 = vmatprep.subr.mxu0 %v4953_v3  ;;  %6633 = vmatprep.subr.mxu1 %v5081_v5  ;;  %v5181_v53 = vld [vmem:[#allocation19 + $0x938] sm:$0xff]  ;;  %v5180_v11 = vld [vmem:[#allocation19 + $0x930] sm:$0xff] }
 0x7fb   :  { %6563 = vmatpush2.msra.mxu0 %v4952_v7  ;;  %6634 = vmatpush2.msra.mxu1 %v5080_v35  ;;  %v5309_v56 = vld [vmem:[#allocation19 + $0xd38] sm:$0xff]  ;;  %v5308_v23 = vld [vmem:[#allocation19 + $0xd30] sm:$0xff] }
 0x7fc   :  { %6565 = vmatmul.mubr.f32.vlgmr.msra.gmra.mxu0 %v4870_v10  ;;  %6636 = vmatmul.mubr.f32.vlgmr.msra.gmra.mxu1 %v4872_v14  ;;  %v5325_v10 = vld [vmem:[#allocation19 + $0xdb8] sm:$0xff]  ;;  %v5324_v14 = vld [vmem:[#allocation19 + $0xdb0] sm:$0xff] }
 0x7fd   :  { %6642 = vmatprep.subr.mxu0 %v5205_v8  ;;  %6713 = vmatprep.subr.mxu1 %v5333_v9  ;;  %v5177_v1 = vld [vmem:[#allocation19 + $0x918] sm:$0xff]  ;;  %v5176_v5 = vld [vmem:[#allocation19 + $0x910] sm:$0xff] }
 0x7fe   :  { %6643 = vmatpush1.msra.mxu0 %v5204_v13  ;;  %6706 = vmatprep.mubr.f32.mxu0 %v4875_v42  ;;  %v5320_v42 = vld [vmem:[#allocation19 + $0xd90] sm:$0xff]  ;;  %v5305_v3 = vld [vmem:[#allocation19 + $0xd18] sm:$0xff] }
 0x7ff   :  { %6714 = vmatpush1.msra.mxu1 %v5332_v32  ;;  %6777 = vmatprep.mubr.f32.mxu1 %v4877_v47  ;;  %v5316_v47 = vld [vmem:[#allocation19 + $0xd70] sm:$0xff]  ;;  %v5173_v7 = vld [vmem:[#allocation19 + $0x8f8] sm:$0xff] }
 0x800   :  { %6644 = vmatprep.subr.mxu0 %v5201_v62  ;;  %6715 = vmatprep.subr.mxu1 %v5329_v19  ;;  %v5304_v2 = vld [vmem:[#allocation19 + $0xd10] sm:$0xff]  ;;  %v5301_v35 = vld [vmem:[#allocation19 + $0xcf8] sm:$0xff] }
 0x801   :  { %6645 = vmatpush1.msra.mxu0 %v5200_v20  ;;  %6716 = vmatpush1.msra.mxu1 %v5328_v60  ;;  %v5172_v16 = vld [vmem:[#allocation19 + $0x8f0] sm:$0xff]  ;;  %v5169_v9 = vld [vmem:[#allocation19 + $0x8d8] sm:$0xff] }
 0x802   :  { %6646 = vmatprep.subr.mxu0 %v5197_v6  ;;  %6717 = vmatprep.subr.mxu1 %v5325_v10  ;;  %v5300_v8 = vld [vmem:[#allocation19 + $0xcf0] sm:$0xff]  ;;  %v5297_v13 = vld [vmem:[#allocation19 + $0xcd8] sm:$0xff] }
 0x803   :  { %6647 = vmatpush1.msra.mxu0 %v5196_v38  ;;  %6718 = vmatpush1.msra.mxu1 %v5324_v14  ;;  %v5168_v32 = vld [vmem:[#allocation19 + $0x8d0] sm:$0xff]  ;;  %v5165_v19 = vld [vmem:[#allocation19 + $0x8b8] sm:$0xff] }
 0x804   :  { %6648 = vmatprep.subr.mxu0 %v5193_v21  ;;  %6719 = vmatprep.subr.mxu1 %v5321_v24  ;;  %v5296_v62 = vld [vmem:[#allocation19 + $0xcd0] sm:$0xff]  ;;  %v5293_v20 = vld [vmem:[#allocation19 + $0xcb8] sm:$0xff] }
 0x805   :  { %6649 = vmatpush1.msra.mxu0 %v5192_v27  ;;  %6720 = vmatpush1.msra.mxu1 %v5320_v42  ;;  %v5164_v60 = vld [vmem:[#allocation19 + $0x8b0] sm:$0xff]  ;;  %v5161_v10 = vld [vmem:[#allocation19 + $0x898] sm:$0xff] }
 0x806   :  { %6650 = vmatprep.subr.mxu0 %v5189_v25  ;;  %6721 = vmatprep.subr.mxu1 %v5317_v51  ;;  %v5292_v6 = vld [vmem:[#allocation19 + $0xcb0] sm:$0xff]  ;;  %v5289_v38 = vld [vmem:[#allocation19 + $0xc98] sm:$0xff] }
 0x807   :  { %6651 = vmatpush1.msra.mxu0 %v5188_v34  ;;  %6722 = vmatpush1.msra.mxu1 %v5316_v47  ;;  %v5160_v14 = vld [vmem:[#allocation19 + $0x890] sm:$0xff]  ;;  %v5157_v24 = vld [vmem:[#allocation19 + $0x878] sm:$0xff] }
 0x808   :  { %6652 = vmatprep.subr.mxu0 %v5185_v33  ;;  %6723 = vmatprep.subr.mxu1 %v5313_v48  ;;  %v5288_v21 = vld [vmem:[#allocation19 + $0xc90] sm:$0xff]  ;;  %v5285_v27 = vld [vmem:[#allocation19 + $0xc78] sm:$0xff] }
 0x809   :  { %6653 = vmatpush1.msra.mxu0 %v5184_v49  ;;  %6724 = vmatpush1.msra.mxu1 %v5312_v45  ;;  %v5156_v42 = vld [vmem:[#allocation19 + $0x870] sm:$0xff]  ;;  %v5153_v51 = vld [vmem:[#allocation19 + $0x858] sm:$0xff] }
 0x80a   :  { %6654 = vmatprep.subr.mxu0 %v5181_v53  ;;  %6725 = vmatprep.subr.mxu1 %v5309_v56  ;;  %v5284_v25 = vld [vmem:[#allocation19 + $0xc70] sm:$0xff]  ;;  %v5281_v34 = vld [vmem:[#allocation19 + $0xc58] sm:$0xff] }
 0x80b   :  { %6655 = vmatpush1.msra.mxu0 %v5180_v11  ;;  %6726 = vmatpush1.msra.mxu1 %v5308_v23  ;;  %v5152_v47 = vld [vmem:[#allocation19 + $0x850] sm:$0xff]  ;;  %v5149_v48 = vld [vmem:[#allocation19 + $0x838] sm:$0xff] }
 0x80c   :  { %6656 = vmatprep.subr.mxu0 %v5177_v1  ;;  %6727 = vmatprep.subr.mxu1 %v5305_v3  ;;  %v5280_v33 = vld [vmem:[#allocation19 + $0xc50] sm:$0xff]  ;;  %v5277_v49 = vld [vmem:[#allocation19 + $0xc38] sm:$0xff] }
 0x80d   :  { %6657 = vmatpush1.msra.mxu0 %v5176_v5  ;;  %6728 = vmatpush1.msra.mxu1 %v5304_v2  ;;  %v5148_v45 = vld [vmem:[#allocation19 + $0x830] sm:$0xff]  ;;  %v5145_v56 = vld [vmem:[#allocation19 + $0x818] sm:$0xff] }
 0x80e   :  { %6658 = vmatprep.subr.mxu0 %v5173_v7  ;;  %6729 = vmatprep.subr.mxu1 %v5301_v35  ;;  %v5276_v53 = vld [vmem:[#allocation19 + $0xc30] sm:$0xff]  ;;  %v5273_v11 = vld [vmem:[#allocation19 + $0xc18] sm:$0xff] }
 0x80f   :  { %6659 = vmatpush1.msra.mxu0 %v5172_v16  ;;  %6730 = vmatpush1.msra.mxu1 %v5300_v8  ;;  %v5144_v23 = vld [vmem:[#allocation19 + $0x810] sm:$0xff]  ;;  %v5269_v3 = vld [vmem:[#allocation19 + $0xbf8] sm:$0xff] }
 0x810   :  { %6660 = vmatprep.subr.mxu0 %v5169_v9  ;;  %6731 = vmatprep.subr.mxu1 %v5297_v13  ;;  %v5272_v1 = vld [vmem:[#allocation19 + $0xc10] sm:$0xff]  ;;  %v5397_v5 = vld [vmem:[#allocation19 + $0xff8] sm:$0xff] }
 0x811   :  { %6661 = vmatpush1.msra.mxu0 %v5168_v32  ;;  %6732 = vmatpush1.msra.mxu1 %v5296_v62  ;;  %v5268_v2 = vld [vmem:[#allocation19 + $0xbf0] sm:$0xff]  ;;  %v5265_v35 = vld [vmem:[#allocation19 + $0xbd8] sm:$0xff] }
 0x812   :  { %6662 = vmatprep.subr.mxu0 %v5165_v19  ;;  %6733 = vmatprep.subr.mxu1 %v5293_v20  ;;  %v5396_v7 = vld [vmem:[#allocation19 + $0xff0] sm:$0xff]  ;;  %v5393_v16 = vld [vmem:[#allocation19 + $0xfd8] sm:$0xff] }
 0x813   :  { %6663 = vmatpush1.msra.mxu0 %v5164_v60  ;;  %6734 = vmatpush1.msra.mxu1 %v5292_v6  ;;  %v5264_v8 = vld [vmem:[#allocation19 + $0xbd0] sm:$0xff]  ;;  %v5261_v13 = vld [vmem:[#allocation19 + $0xbb8] sm:$0xff] }
 0x814   :  { %6664 = vmatprep.subr.mxu0 %v5161_v10  ;;  %6735 = vmatprep.subr.mxu1 %v5289_v38  ;;  %v5392_v9 = vld [vmem:[#allocation19 + $0xfd0] sm:$0xff]  ;;  %v5389_v32 = vld [vmem:[#allocation19 + $0xfb8] sm:$0xff] }
 0x815   :  { %6665 = vmatpush1.msra.mxu0 %v5160_v14  ;;  %6736 = vmatpush1.msra.mxu1 %v5288_v21  ;;  %v5260_v62 = vld [vmem:[#allocation19 + $0xbb0] sm:$0xff]  ;;  %v5257_v20 = vld [vmem:[#allocation19 + $0xb98] sm:$0xff] }
 0x816   :  { %6666 = vmatprep.subr.mxu0 %v5157_v24  ;;  %6737 = vmatprep.subr.mxu1 %v5285_v27  ;;  %v5388_v19 = vld [vmem:[#allocation19 + $0xfb0] sm:$0xff]  ;;  %v5385_v60 = vld [vmem:[#allocation19 + $0xf98] sm:$0xff] }
 0x817   :  { %6667 = vmatpush1.msra.mxu0 %v5156_v42  ;;  %6738 = vmatpush1.msra.mxu1 %v5284_v25  ;;  %v5256_v6 = vld [vmem:[#allocation19 + $0xb90] sm:$0xff]  ;;  %v5253_v38 = vld [vmem:[#allocation19 + $0xb78] sm:$0xff] }
 0x818   :  { %6668 = vmatprep.subr.mxu0 %v5153_v51  ;;  %6739 = vmatprep.subr.mxu1 %v5281_v34  ;;  %v5384_v10 = vld [vmem:[#allocation19 + $0xf90] sm:$0xff]  ;;  %v5381_v14 = vld [vmem:[#allocation19 + $0xf78] sm:$0xff] }
 0x819   :  { %6669 = vmatpush1.msra.mxu0 %v5152_v47  ;;  %6740 = vmatpush1.msra.mxu1 %v5280_v33  ;;  %v5252_v21 = vld [vmem:[#allocation19 + $0xb70] sm:$0xff]  ;;  %v5249_v27 = vld [vmem:[#allocation19 + $0xb58] sm:$0xff] }
 0x81a   :  { %6670 = vmatprep.subr.mxu0 %v5149_v48  ;;  %6741 = vmatprep.subr.mxu1 %v5277_v49  ;;  %v5380_v24 = vld [vmem:[#allocation19 + $0xf70] sm:$0xff]  ;;  %v5377_v42 = vld [vmem:[#allocation19 + $0xf58] sm:$0xff] }
 0x81b   :  { %6671 = vmatpush1.msra.mxu0 %v5148_v45  ;;  %6742 = vmatpush1.msra.mxu1 %v5276_v53  ;;  %v5248_v25 = vld [vmem:[#allocation19 + $0xb50] sm:$0xff]  ;;  %v5245_v34 = vld [vmem:[#allocation19 + $0xb38] sm:$0xff] }
 0x81c   :  { %6672 = vmatprep.subr.mxu0 %v5145_v56  ;;  %6743 = vmatprep.subr.mxu1 %v5273_v11  ;;  %v5376_v51 = vld [vmem:[#allocation19 + $0xf50] sm:$0xff]  ;;  %v5373_v47 = vld [vmem:[#allocation19 + $0xf38] sm:$0xff] }
 0x81d   :  { %6673 = vmatpush1.msra.mxu0 %v5144_v23  ;;  %6744 = vmatpush1.msra.mxu1 %v5272_v1  ;;  %v5244_v33 = vld [vmem:[#allocation19 + $0xb30] sm:$0xff]  ;;  %v5241_v49 = vld [vmem:[#allocation19 + $0xb18] sm:$0xff] }
 0x81e   :  { %6674 = vmatprep.subr.mxu0 %v5269_v3  ;;  %6745 = vmatprep.subr.mxu1 %v5397_v5  ;;  %v5372_v48 = vld [vmem:[#allocation19 + $0xf30] sm:$0xff]  ;;  %v5369_v45 = vld [vmem:[#allocation19 + $0xf18] sm:$0xff] }
 0x81f   :  { %6675 = vmatpush2.msra.mxu0 %v5268_v2  ;;  %6746 = vmatpush2.msra.mxu1 %v5396_v7  ;;  %v5240_v53 = vld [vmem:[#allocation19 + $0xb10] sm:$0xff]  ;;  %v5237_v11 = vld [vmem:[#allocation19 + $0xaf8] sm:$0xff] }
 0x820   :  { %6676 = vmatprep.subr.mxu0 %v5265_v35  ;;  %6747 = vmatprep.subr.mxu1 %v5393_v16  ;;  %v5368_v56 = vld [vmem:[#allocation19 + $0xf10] sm:$0xff]  ;;  %v5365_v23 = vld [vmem:[#allocation19 + $0xef8] sm:$0xff] }
 0x821   :  { %6677 = vmatpush2.msra.mxu0 %v5264_v8  ;;  %6748 = vmatpush2.msra.mxu1 %v5392_v9  ;;  %v5236_v1 = vld [vmem:[#allocation19 + $0xaf0] sm:$0xff]  ;;  %v5233_v5 = vld [vmem:[#allocation19 + $0xad8] sm:$0xff] }
 0x822   :  { %6678 = vmatprep.subr.mxu0 %v5261_v13  ;;  %6749 = vmatprep.subr.mxu1 %v5389_v32  ;;  %v5364_v3 = vld [vmem:[#allocation19 + $0xef0] sm:$0xff]  ;;  %v5361_v2 = vld [vmem:[#allocation19 + $0xed8] sm:$0xff] }
 0x823   :  { %6679 = vmatpush2.msra.mxu0 %v5260_v62  ;;  %6750 = vmatpush2.msra.mxu1 %v5388_v19  ;;  %v5232_v7 = vld [vmem:[#allocation19 + $0xad0] sm:$0xff]  ;;  %v5229_v16 = vld [vmem:[#allocation19 + $0xab8] sm:$0xff] }
 0x824   :  { %6680 = vmatprep.subr.mxu0 %v5257_v20  ;;  %6751 = vmatprep.subr.mxu1 %v5385_v60  ;;  %v5360_v35 = vld [vmem:[#allocation19 + $0xed0] sm:$0xff]  ;;  %v5357_v8 = vld [vmem:[#allocation19 + $0xeb8] sm:$0xff] }
 0x825   :  { %6681 = vmatpush2.msra.mxu0 %v5256_v6  ;;  %6752 = vmatpush2.msra.mxu1 %v5384_v10  ;;  %v5228_v9 = vld [vmem:[#allocation19 + $0xab0] sm:$0xff]  ;;  %v5225_v32 = vld [vmem:[#allocation19 + $0xa98] sm:$0xff] }
 0x826   :  { %6682 = vmatprep.subr.mxu0 %v5253_v38  ;;  %6753 = vmatprep.subr.mxu1 %v5381_v14  ;;  %v5356_v13 = vld [vmem:[#allocation19 + $0xeb0] sm:$0xff]  ;;  %v5353_v62 = vld [vmem:[#allocation19 + $0xe98] sm:$0xff] }
 0x827   :  { %6683 = vmatpush2.msra.mxu0 %v5252_v21  ;;  %6754 = vmatpush2.msra.mxu1 %v5380_v24  ;;  %v5224_v19 = vld [vmem:[#allocation19 + $0xa90] sm:$0xff]  ;;  %v5221_v60 = vld [vmem:[#allocation19 + $0xa78] sm:$0xff]  ;;  %v10333_v24 = vpop.f32.mrf.mxu0 }
 0x828   :  { %6684 = vmatprep.subr.mxu0 %v5249_v27  ;;  %6755 = vmatprep.subr.mxu1 %v5377_v42  ;;  %v5352_v20 = vld [vmem:[#allocation19 + $0xe90] sm:$0xff]  ;;  %v5349_v6 = vld [vmem:[#allocation19 + $0xe78] sm:$0xff] }
 0x829   :  { %6685 = vmatpush2.msra.mxu0 %v5248_v25  ;;  %6756 = vmatpush2.msra.mxu1 %v5376_v51  ;;  %v5220_v10 = vld [vmem:[#allocation19 + $0xa70] sm:$0xff]  ;;  %v5217_v14 = vld [vmem:[#allocation19 + $0xa58] sm:$0xff] }
 0x82a   :  { %6686 = vmatprep.subr.mxu0 %v5245_v34  ;;  %6757 = vmatprep.subr.mxu1 %v5373_v47  ;;  %v5348_v38 = vld [vmem:[#allocation19 + $0xe70] sm:$0xff]  ;;  %v5345_v21 = vld [vmem:[#allocation19 + $0xe58] sm:$0xff]  ;;  %v10335_v34 = vpop.f32.mrf.mxu1 }
 0x82b   :  { %6687 = vmatpush2.msra.mxu0 %v5244_v33  ;;  %6758 = vmatpush2.msra.mxu1 %v5372_v48  ;;  %v5216_v27 = vld [vmem:[#allocation19 + $0xa50] sm:$0xff]  ;;  %v5213_v25 = vld [vmem:[#allocation19 + $0xa38] sm:$0xff] }
 0x82c   :  { %6688 = vmatprep.subr.mxu0 %v5241_v49  ;;  %6759 = vmatprep.subr.mxu1 %v5369_v45  ;;  %v5344_v42 = vld [vmem:[#allocation19 + $0xe50] sm:$0xff]  ;;  %v5341_v51 = vld [vmem:[#allocation19 + $0xe38] sm:$0xff] }
 0x82d   :  { %6689 = vmatpush2.msra.mxu0 %v5240_v53  ;;  %6760 = vmatpush2.msra.mxu1 %v5368_v56  ;;  %v5212_v47 = vld [vmem:[#allocation19 + $0xa30] sm:$0xff]  ;;  %v5209_v49 = vld [vmem:[#allocation19 + $0xa18] sm:$0xff] }
 0x82e   :  { %6690 = vmatprep.subr.mxu0 %v5237_v11  ;;  %6761 = vmatprep.subr.mxu1 %v5365_v23  ;;  %v5340_v33 = vld [vmem:[#allocation19 + $0xe30] sm:$0xff]  ;;  %v5337_v45 = vld [vmem:[#allocation19 + $0xe18] sm:$0xff] }
 0x82f   :  { %6691 = vmatpush2.msra.mxu0 %v5236_v1  ;;  %6762 = vmatpush2.msra.mxu1 %v5364_v3  ;;  %v5208_v56 = vld [vmem:[#allocation19 + $0xa10] sm:$0xff]  ;;  %v5461_v3 = vld [vmem:[#allocation19 + $0x11f8] sm:$0xff] }
 0x830   :  { %6692 = vmatprep.subr.mxu0 %v5233_v5  ;;  %6763 = vmatprep.subr.mxu1 %v5361_v2  ;;  %v5336_v11 = vld [vmem:[#allocation19 + $0xe10] sm:$0xff]  ;;  %v5589_v5 = vld [vmem:[#allocation19 + $0x15f8] sm:$0xff] }
 0x831   :  { %6693 = vmatpush2.msra.mxu0 %v5232_v7  ;;  %6764 = vmatpush2.msra.mxu1 %v5360_v35  ;;  %v5460_v2 = vld [vmem:[#allocation19 + $0x11f0] sm:$0xff]  ;;  %v5457_v7 = vld [vmem:[#allocation19 + $0x11d8] sm:$0xff] }
 0x832   :  { %6694 = vmatprep.subr.mxu0 %v5229_v16  ;;  %6765 = vmatprep.subr.mxu1 %v5357_v8  ;;  %v5585_v35 = vld [vmem:[#allocation19 + $0x15d8] sm:$0xff]  ;;  %v5456_v16 = vld [vmem:[#allocation19 + $0x11d0] sm:$0xff] }
 0x833   :  { %6695 = vmatpush2.msra.mxu0 %v5228_v9  ;;  %6766 = vmatpush2.msra.mxu1 %v5356_v13  ;;  %v5584_v8 = vld [vmem:[#allocation19 + $0x15d0] sm:$0xff]  ;;  %v5449_v9 = vld [vmem:[#allocation19 + $0x1198] sm:$0xff] }
 0x834   :  { %6696 = vmatprep.subr.mxu0 %v5225_v32  ;;  %6767 = vmatprep.subr.mxu1 %v5353_v62  ;;  %v5577_v13 = vld [vmem:[#allocation19 + $0x1598] sm:$0xff] }
 0x835   :  { %6697 = vmatpush2.msra.mxu0 %v5224_v19  ;;  %6768 = vmatpush2.msra.mxu1 %v5352_v20  ;;  %v5445_v32 = vld [vmem:[#allocation19 + $0x1178] sm:$0xff] }
 0x836   :  { %6698 = vmatprep.subr.mxu0 %v5221_v60  ;;  %6769 = vmatprep.subr.mxu1 %v5349_v6  ;;  %v5573_v62 = vld [vmem:[#allocation19 + $0x1578] sm:$0xff]  ;;  %v5440_v60 = vld [vmem:[#allocation19 + $0x1150] sm:$0xff] }
 0x837   :  { %6699 = vmatpush2.msra.mxu0 %v5220_v10  ;;  %6770 = vmatpush2.msra.mxu1 %v5348_v38  ;;  %v5441_v19 = vld [vmem:[#allocation19 + $0x1158] sm:$0xff]  ;;  %v5568_v6 = vld [vmem:[#allocation19 + $0x1550] sm:$0xff] }
 0x838   :  { %6700 = vmatprep.subr.mxu0 %v5217_v14  ;;  %6771 = vmatprep.subr.mxu1 %v5345_v21  ;;  %v6282_v48 = vpop.f32.mrf.mxu0  ;;  %v6353_v23 = vpop.f32.mrf.mxu1  ;;  %v5569_v20 = vld [vmem:[#allocation19 + $0x1558] sm:$0xff]  ;;  %v5436_v14 = vld [vmem:[#allocation19 + $0x1130] sm:$0xff] }
 0x839   :  { %6701 = vmatpush2.msra.mxu0 %v5216_v27  ;;  %6772 = vmatpush2.msra.mxu1 %v5344_v42  ;;  %v6283_v53 = vadd.f32 %v6282_v48, %v10323_v15  ;;  %v5588_v15 = vld [vmem:[#allocation19 + $0x15f0] sm:$0xff]  ;;  %v5437_v10 = vld [vmem:[#allocation19 + $0x1138] sm:$0xff] }
 0x83a   :  { %6702 = vmatprep.subr.mxu0 %v5213_v25  ;;  %6773 = vmatprep.subr.mxu1 %v5341_v51  ;;  %v5565_v38 = vld [vmem:[#allocation19 + $0x1538] sm:$0xff]  ;;  %v5564_v21 = vld [vmem:[#allocation19 + $0x1530] sm:$0xff] }
 0x83b   :  { %6703 = vmatpush2.msra.mxu0 %v5212_v47  ;;  %6774 = vmatpush2.msra.mxu1 %v5340_v33  ;;  %v10338_v1 = vadd.f32 %v6353_v23, %v6283_v53  ;;  %v5433_v27 = vld [vmem:[#allocation19 + $0x1118] sm:$0xff]  ;;  %v5432_v25 = vld [vmem:[#allocation19 + $0x1110] sm:$0xff] }
 0x83c   :  { %6704 = vmatprep.subr.mxu0 %v5209_v49  ;;  %6775 = vmatprep.subr.mxu1 %v5337_v45  ;;  %v5561_v42 = vld [vmem:[#allocation19 + $0x1518] sm:$0xff]  ;;  %v5560_v51 = vld [vmem:[#allocation19 + $0x1510] sm:$0xff] }
 0x83d   :  { %6705 = vmatpush2.msra.mxu0 %v5208_v56  ;;  %6776 = vmatpush2.msra.mxu1 %v5336_v11  ;;  %v5429_v47 = vld [vmem:[#allocation19 + $0x10f8] sm:$0xff]  ;;  %v5428_v48 = vld [vmem:[#allocation19 + $0x10f0] sm:$0xff] }
 0x83e   :  { %6707 = vmatmul.mubr.f32.vlgmr.msra.gmra.mxu0 %v4874_v30  ;;  %6778 = vmatmul.mubr.f32.vlgmr.msra.gmra.mxu1 %v4876_v52  ;;  %v5581_v30 = vld [vmem:[#allocation19 + $0x15b8] sm:$0xff]  ;;  %v5580_v52 = vld [vmem:[#allocation19 + $0x15b0] sm:$0xff] }
 0x83f   :  { %6784 = vmatprep.subr.mxu0 %v5461_v3  ;;  %6855 = vmatprep.subr.mxu1 %v5589_v5  ;;  %v5557_v33 = vld [vmem:[#allocation19 + $0x14f8] sm:$0xff]  ;;  %v5556_v49 = vld [vmem:[#allocation19 + $0x14f0] sm:$0xff] }
 0x840   :  { %6785 = vmatpush1.msra.mxu0 %v5460_v2  ;;  %6848 = vmatprep.mubr.f32.mxu0 %v4879_v31  ;;  %v5576_v31 = vld [vmem:[#allocation19 + $0x1590] sm:$0xff]  ;;  %v5425_v45 = vld [vmem:[#allocation19 + $0x10d8] sm:$0xff] }
 0x841   :  { %6856 = vmatpush1.msra.mxu1 %v5588_v15  ;;  %6919 = vmatprep.mubr.f32.mxu1 %v4881_v28  ;;  %v5572_v28 = vld [vmem:[#allocation19 + $0x1570] sm:$0xff]  ;;  %v5553_v53 = vld [vmem:[#allocation19 + $0x14d8] sm:$0xff] }
 0x842   :  { %6786 = vmatprep.subr.mxu0 %v5457_v7  ;;  %6857 = vmatprep.subr.mxu1 %v5585_v35  ;;  %v5424_v56 = vld [vmem:[#allocation19 + $0x10d0] sm:$0xff]  ;;  %v5421_v23 = vld [vmem:[#allocation19 + $0x10b8] sm:$0xff] }
 0x843   :  { %6787 = vmatpush1.msra.mxu0 %v5456_v16  ;;  %6858 = vmatpush1.msra.mxu1 %v5584_v8  ;;  %v5552_v11 = vld [vmem:[#allocation19 + $0x14d0] sm:$0xff]  ;;  %v5549_v3 = vld [vmem:[#allocation19 + $0x14b8] sm:$0xff] }
 0x844   :  { %6788 = vmatprep.subr.mxu0 %v5453_v17  ;;  %6859 = vmatprep.subr.mxu1 %v5581_v30  ;;  %v5420_v5 = vld [vmem:[#allocation19 + $0x10b0] sm:$0xff]  ;;  %v5417_v15 = vld [vmem:[#allocation19 + $0x1098] sm:$0xff] }
 0x845   :  { %6789 = vmatpush1.msra.mxu0 %v5452_v39  ;;  %6860 = vmatpush1.msra.mxu1 %v5580_v52  ;;  %v5548_v2 = vld [vmem:[#allocation19 + $0x14b0] sm:$0xff]  ;;  %v5545_v7 = vld [vmem:[#allocation19 + $0x1498] sm:$0xff] }
 0x846   :  { %6790 = vmatprep.subr.mxu0 %v5449_v9  ;;  %6861 = vmatprep.subr.mxu1 %v5577_v13  ;;  %v5416_v35 = vld [vmem:[#allocation19 + $0x1090] sm:$0xff]  ;;  %v5413_v8 = vld [vmem:[#allocation19 + $0x1078] sm:$0xff] }
 0x847   :  { %6791 = vmatpush1.msra.mxu0 %v5448_v29  ;;  %6862 = vmatpush1.msra.mxu1 %v5576_v31  ;;  %v5544_v16 = vld [vmem:[#allocation19 + $0x1490] sm:$0xff]  ;;  %v5541_v17 = vld [vmem:[#allocation19 + $0x1478] sm:$0xff] }
 0x848   :  { %6792 = vmatprep.subr.mxu0 %v5445_v32  ;;  %6863 = vmatprep.subr.mxu1 %v5573_v62  ;;  %v5412_v30 = vld [vmem:[#allocation19 + $0x1070] sm:$0xff]  ;;  %v5409_v52 = vld [vmem:[#allocation19 + $0x1058] sm:$0xff] }
 0x849   :  { %6793 = vmatpush1.msra.mxu0 %v5444_v22  ;;  %6864 = vmatpush1.msra.mxu1 %v5572_v28  ;;  %v5540_v39 = vld [vmem:[#allocation19 + $0x1470] sm:$0xff]  ;;  %v5537_v9 = vld [vmem:[#allocation19 + $0x1458] sm:$0xff] }
 0x84a   :  { %6794 = vmatprep.subr.mxu0 %v5441_v19  ;;  %6865 = vmatprep.subr.mxu1 %v5569_v20  ;;  %v5408_v13 = vld [vmem:[#allocation19 + $0x1050] sm:$0xff]  ;;  %v5405_v31 = vld [vmem:[#allocation19 + $0x1038] sm:$0xff] }
 0x84b   :  { %6795 = vmatpush1.msra.mxu0 %v5440_v60  ;;  %6866 = vmatpush1.msra.mxu1 %v5568_v6  ;;  %v5536_v29 = vld [vmem:[#allocation19 + $0x1450] sm:$0xff]  ;;  %v5533_v32 = vld [vmem:[#allocation19 + $0x1438] sm:$0xff] }
 0x84c   :  { %6796 = vmatprep.subr.mxu0 %v5437_v10  ;;  %6867 = vmatprep.subr.mxu1 %v5565_v38  ;;  %v5404_v62 = vld [vmem:[#allocation19 + $0x1030] sm:$0xff]  ;;  %v5401_v28 = vld [vmem:[#allocation19 + $0x1018] sm:$0xff] }
 0x84d   :  { %6797 = vmatpush1.msra.mxu0 %v5436_v14  ;;  %6868 = vmatpush1.msra.mxu1 %v5564_v21  ;;  %v5532_v22 = vld [vmem:[#allocation19 + $0x1430] sm:$0xff]  ;;  %v5529_v19 = vld [vmem:[#allocation19 + $0x1418] sm:$0xff] }
 0x84e   :  { %6798 = vmatprep.subr.mxu0 %v5433_v27  ;;  %6869 = vmatprep.subr.mxu1 %v5561_v42  ;;  %v5400_v20 = vld [vmem:[#allocation19 + $0x1010] sm:$0xff]  ;;  %v5525_v6 = vld [vmem:[#allocation19 + $0x13f8] sm:$0xff] }
 0x84f   :  { %6799 = vmatpush1.msra.mxu0 %v5432_v25  ;;  %6870 = vmatpush1.msra.mxu1 %v5560_v51  ;;  %v5528_v60 = vld [vmem:[#allocation19 + $0x1410] sm:$0xff]  ;;  %v5653_v10 = vld [vmem:[#allocation19 + $0x17f8] sm:$0xff] }
 0x850   :  { %6800 = vmatprep.subr.mxu0 %v5429_v47  ;;  %6871 = vmatprep.subr.mxu1 %v5557_v33  ;;  %v5524_v38 = vld [vmem:[#allocation19 + $0x13f0] sm:$0xff]  ;;  %v5521_v21 = vld [vmem:[#allocation19 + $0x13d8] sm:$0xff] }
 0x851   :  { %6801 = vmatpush1.msra.mxu0 %v5428_v48  ;;  %6872 = vmatpush1.msra.mxu1 %v5556_v49  ;;  %v5652_v14 = vld [vmem:[#allocation19 + $0x17f0] sm:$0xff]  ;;  %v5649_v27 = vld [vmem:[#allocation19 + $0x17d8] sm:$0xff] }
 0x852   :  { %6802 = vmatprep.subr.mxu0 %v5425_v45  ;;  %6873 = vmatprep.subr.mxu1 %v5553_v53  ;;  %v5520_v42 = vld [vmem:[#allocation19 + $0x13d0] sm:$0xff]  ;;  %v5517_v51 = vld [vmem:[#allocation19 + $0x13b8] sm:$0xff] }
 0x853   :  { %6803 = vmatpush1.msra.mxu0 %v5424_v56  ;;  %6874 = vmatpush1.msra.mxu1 %v5552_v11  ;;  %v5648_v25 = vld [vmem:[#allocation19 + $0x17d0] sm:$0xff]  ;;  %v5645_v47 = vld [vmem:[#allocation19 + $0x17b8] sm:$0xff] }
 0x854   :  { %6804 = vmatprep.subr.mxu0 %v5421_v23  ;;  %6875 = vmatprep.subr.mxu1 %v5549_v3  ;;  %v5516_v33 = vld [vmem:[#allocation19 + $0x13b0] sm:$0xff]  ;;  %v5513_v49 = vld [vmem:[#allocation19 + $0x1398] sm:$0xff] }
 0x855   :  { %6805 = vmatpush1.msra.mxu0 %v5420_v5  ;;  %6876 = vmatpush1.msra.mxu1 %v5548_v2  ;;  %v5644_v48 = vld [vmem:[#allocation19 + $0x17b0] sm:$0xff]  ;;  %v5641_v45 = vld [vmem:[#allocation19 + $0x1798] sm:$0xff] }
 0x856   :  { %6806 = vmatprep.subr.mxu0 %v5417_v15  ;;  %6877 = vmatprep.subr.mxu1 %v5545_v7  ;;  %v5512_v53 = vld [vmem:[#allocation19 + $0x1390] sm:$0xff]  ;;  %v5509_v11 = vld [vmem:[#allocation19 + $0x1378] sm:$0xff] }
 0x857   :  { %6807 = vmatpush1.msra.mxu0 %v5416_v35  ;;  %6878 = vmatpush1.msra.mxu1 %v5544_v16  ;;  %v5640_v56 = vld [vmem:[#allocation19 + $0x1790] sm:$0xff]  ;;  %v5637_v23 = vld [vmem:[#allocation19 + $0x1778] sm:$0xff] }
 0x858   :  { %6808 = vmatprep.subr.mxu0 %v5413_v8  ;;  %6879 = vmatprep.subr.mxu1 %v5541_v17  ;;  %v5508_v3 = vld [vmem:[#allocation19 + $0x1370] sm:$0xff]  ;;  %v5505_v2 = vld [vmem:[#allocation19 + $0x1358] sm:$0xff] }
 0x859   :  { %6809 = vmatpush1.msra.mxu0 %v5412_v30  ;;  %6880 = vmatpush1.msra.mxu1 %v5540_v39  ;;  %v5636_v5 = vld [vmem:[#allocation19 + $0x1770] sm:$0xff]  ;;  %v5633_v15 = vld [vmem:[#allocation19 + $0x1758] sm:$0xff] }
 0x85a   :  { %6810 = vmatprep.subr.mxu0 %v5409_v52  ;;  %6881 = vmatprep.subr.mxu1 %v5537_v9  ;;  %v5504_v7 = vld [vmem:[#allocation19 + $0x1350] sm:$0xff]  ;;  %v5501_v16 = vld [vmem:[#allocation19 + $0x1338] sm:$0xff] }
 0x85b   :  { %6811 = vmatpush1.msra.mxu0 %v5408_v13  ;;  %6882 = vmatpush1.msra.mxu1 %v5536_v29  ;;  %v5632_v35 = vld [vmem:[#allocation19 + $0x1750] sm:$0xff]  ;;  %v5629_v8 = vld [vmem:[#allocation19 + $0x1738] sm:$0xff] }
 0x85c   :  { %6812 = vmatprep.subr.mxu0 %v5405_v31  ;;  %6883 = vmatprep.subr.mxu1 %v5533_v32  ;;  %v5500_v17 = vld [vmem:[#allocation19 + $0x1330] sm:$0xff]  ;;  %v5497_v39 = vld [vmem:[#allocation19 + $0x1318] sm:$0xff] }
 0x85d   :  { %6813 = vmatpush1.msra.mxu0 %v5404_v62  ;;  %6884 = vmatpush1.msra.mxu1 %v5532_v22  ;;  %v5628_v30 = vld [vmem:[#allocation19 + $0x1730] sm:$0xff]  ;;  %v5625_v52 = vld [vmem:[#allocation19 + $0x1718] sm:$0xff] }
 0x85e   :  { %6814 = vmatprep.subr.mxu0 %v5401_v28  ;;  %6885 = vmatprep.subr.mxu1 %v5529_v19  ;;  %v5496_v9 = vld [vmem:[#allocation19 + $0x1310] sm:$0xff]  ;;  %v5493_v29 = vld [vmem:[#allocation19 + $0x12f8] sm:$0xff] }
 0x85f   :  { %6815 = vmatpush1.msra.mxu0 %v5400_v20  ;;  %6886 = vmatpush1.msra.mxu1 %v5528_v60  ;;  %v5624_v13 = vld [vmem:[#allocation19 + $0x1710] sm:$0xff]  ;;  %v5621_v31 = vld [vmem:[#allocation19 + $0x16f8] sm:$0xff] }
 0x860   :  { %6816 = vmatprep.subr.mxu0 %v5525_v6  ;;  %6887 = vmatprep.subr.mxu1 %v5653_v10  ;;  %v5492_v32 = vld [vmem:[#allocation19 + $0x12f0] sm:$0xff]  ;;  %v5489_v22 = vld [vmem:[#allocation19 + $0x12d8] sm:$0xff] }
 0x861   :  { %6817 = vmatpush2.msra.mxu0 %v5524_v38  ;;  %6888 = vmatpush2.msra.mxu1 %v5652_v14  ;;  %v5620_v62 = vld [vmem:[#allocation19 + $0x16f0] sm:$0xff]  ;;  %v5617_v28 = vld [vmem:[#allocation19 + $0x16d8] sm:$0xff] }
 0x862   :  { %6818 = vmatprep.subr.mxu0 %v5521_v21  ;;  %6889 = vmatprep.subr.mxu1 %v5649_v27  ;;  %v5488_v19 = vld [vmem:[#allocation19 + $0x12d0] sm:$0xff]  ;;  %v5485_v60 = vld [vmem:[#allocation19 + $0x12b8] sm:$0xff] }
 0x863   :  { %6819 = vmatpush2.msra.mxu0 %v5520_v42  ;;  %6890 = vmatpush2.msra.mxu1 %v5648_v25  ;;  %v5616_v20 = vld [vmem:[#allocation19 + $0x16d0] sm:$0xff]  ;;  %v5613_v6 = vld [vmem:[#allocation19 + $0x16b8] sm:$0xff] }
 0x864   :  { %6820 = vmatprep.subr.mxu0 %v5517_v51  ;;  %6891 = vmatprep.subr.mxu1 %v5645_v47  ;;  %v5484_v10 = vld [vmem:[#allocation19 + $0x12b0] sm:$0xff]  ;;  %v5481_v14 = vld [vmem:[#allocation19 + $0x1298] sm:$0xff] }
 0x865   :  { %6821 = vmatpush2.msra.mxu0 %v5516_v33  ;;  %6892 = vmatpush2.msra.mxu1 %v5644_v48  ;;  %v5612_v38 = vld [vmem:[#allocation19 + $0x16b0] sm:$0xff]  ;;  %v5609_v21 = vld [vmem:[#allocation19 + $0x1698] sm:$0xff] }
 0x866   :  { %6822 = vmatprep.subr.mxu0 %v5513_v49  ;;  %6893 = vmatprep.subr.mxu1 %v5641_v45  ;;  %v5480_v27 = vld [vmem:[#allocation19 + $0x1290] sm:$0xff]  ;;  %v5477_v25 = vld [vmem:[#allocation19 + $0x1278] sm:$0xff]  ;;  %v10348_v45 = vpop.f32.mrf.mxu0 }
 0x867   :  { %6823 = vmatpush2.msra.mxu0 %v5512_v53  ;;  %6894 = vmatpush2.msra.mxu1 %v5640_v56  ;;  %v5608_v42 = vld [vmem:[#allocation19 + $0x1690] sm:$0xff]  ;;  %v5605_v51 = vld [vmem:[#allocation19 + $0x1678] sm:$0xff] }
 0x868   :  { %6824 = vmatprep.subr.mxu0 %v5509_v11  ;;  %6895 = vmatprep.subr.mxu1 %v5637_v23  ;;  %v5476_v47 = vld [vmem:[#allocation19 + $0x1270] sm:$0xff]  ;;  %v5473_v48 = vld [vmem:[#allocation19 + $0x1258] sm:$0xff] }
 0x869   :  { %6825 = vmatpush2.msra.mxu0 %v5508_v3  ;;  %6896 = vmatpush2.msra.mxu1 %v5636_v5  ;;  %v5604_v33 = vld [vmem:[#allocation19 + $0x1670] sm:$0xff]  ;;  %v5601_v49 = vld [vmem:[#allocation19 + $0x1658] sm:$0xff]  ;;  %v10350_v3 = vpop.f32.mrf.mxu1 }
 0x86a   :  { %6826 = vmatprep.subr.mxu0 %v5505_v2  ;;  %6897 = vmatprep.subr.mxu1 %v5633_v15  ;;  %v5472_v53 = vld [vmem:[#allocation19 + $0x1250] sm:$0xff]  ;;  %v5469_v11 = vld [vmem:[#allocation19 + $0x1238] sm:$0xff] }
 0x86b   :  { %6827 = vmatpush2.msra.mxu0 %v5504_v7  ;;  %6898 = vmatpush2.msra.mxu1 %v5632_v35  ;;  %v5600_v56 = vld [vmem:[#allocation19 + $0x1650] sm:$0xff]  ;;  %v5597_v23 = vld [vmem:[#allocation19 + $0x1638] sm:$0xff] }
 0x86c   :  { %6828 = vmatprep.subr.mxu0 %v5501_v16  ;;  %6899 = vmatprep.subr.mxu1 %v5629_v8  ;;  %v5468_v5 = vld [vmem:[#allocation19 + $0x1230] sm:$0xff]  ;;  %v5465_v7 = vld [vmem:[#allocation19 + $0x1218] sm:$0xff] }
 0x86d   :  { %6829 = vmatpush2.msra.mxu0 %v5500_v17  ;;  %6900 = vmatpush2.msra.mxu1 %v5628_v30  ;;  %v5596_v2 = vld [vmem:[#allocation19 + $0x1630] sm:$0xff]  ;;  %v5593_v35 = vld [vmem:[#allocation19 + $0x1618] sm:$0xff] }
 0x86e   :  { %6830 = vmatprep.subr.mxu0 %v5497_v39  ;;  %6901 = vmatprep.subr.mxu1 %v5625_v52  ;;  %v5464_v8 = vld [vmem:[#allocation19 + $0x1210] sm:$0xff]  ;;  %v5717_v52 = vld [vmem:[#allocation19 + $0x19f8] sm:$0xff] }
 0x86f   :  { %6831 = vmatpush2.msra.mxu0 %v5496_v9  ;;  %6902 = vmatpush2.msra.mxu1 %v5624_v13  ;;  %v5592_v17 = vld [vmem:[#allocation19 + $0x1610] sm:$0xff]  ;;  %v5845_v9 = vld [vmem:[#allocation19 + $0x1df8] sm:$0xff] }
 0x870   :  { %6832 = vmatprep.subr.mxu0 %v5493_v29  ;;  %6903 = vmatprep.subr.mxu1 %v5621_v31  ;;  %v5716_v13 = vld [vmem:[#allocation19 + $0x19f0] sm:$0xff]  ;;  %v5713_v29 = vld [vmem:[#allocation19 + $0x19d8] sm:$0xff] }
 0x871   :  { %6833 = vmatpush2.msra.mxu0 %v5492_v32  ;;  %6904 = vmatpush2.msra.mxu1 %v5620_v62  ;;  %v5841_v31 = vld [vmem:[#allocation19 + $0x1dd8] sm:$0xff]  ;;  %v5712_v32 = vld [vmem:[#allocation19 + $0x19d0] sm:$0xff] }
 0x872   :  { %6834 = vmatprep.subr.mxu0 %v5489_v22  ;;  %6905 = vmatprep.subr.mxu1 %v5617_v28  ;;  %v5840_v62 = vld [vmem:[#allocation19 + $0x1dd0] sm:$0xff]  ;;  %v5705_v22 = vld [vmem:[#allocation19 + $0x1998] sm:$0xff] }
 0x873   :  { %6835 = vmatpush2.msra.mxu0 %v5488_v19  ;;  %6906 = vmatpush2.msra.mxu1 %v5616_v20  ;;  %v5833_v28 = vld [vmem:[#allocation19 + $0x1d98] sm:$0xff] }
 0x874   :  { %6836 = vmatprep.subr.mxu0 %v5485_v60  ;;  %6907 = vmatprep.subr.mxu1 %v5613_v6  ;;  %v5701_v19 = vld [vmem:[#allocation19 + $0x1978] sm:$0xff] }
 0x875   :  { %6837 = vmatpush2.msra.mxu0 %v5484_v10  ;;  %6908 = vmatpush2.msra.mxu1 %v5612_v38  ;;  %v5829_v20 = vld [vmem:[#allocation19 + $0x1d78] sm:$0xff]  ;;  %v5696_v10 = vld [vmem:[#allocation19 + $0x1950] sm:$0xff] }
 0x876   :  { %6838 = vmatprep.subr.mxu0 %v5481_v14  ;;  %6909 = vmatprep.subr.mxu1 %v5609_v21  ;;  %v5697_v60 = vld [vmem:[#allocation19 + $0x1958] sm:$0xff]  ;;  %v5824_v38 = vld [vmem:[#allocation19 + $0x1d50] sm:$0xff] }
 0x877   :  { %6839 = vmatpush2.msra.mxu0 %v5480_v27  ;;  %6910 = vmatpush2.msra.mxu1 %v5608_v42  ;;  %v5825_v6 = vld [vmem:[#allocation19 + $0x1d58] sm:$0xff]  ;;  %v5692_v27 = vld [vmem:[#allocation19 + $0x1930] sm:$0xff] }
 0x878   :  { %6840 = vmatprep.subr.mxu0 %v5477_v25  ;;  %6911 = vmatprep.subr.mxu1 %v5605_v51  ;;  %v5693_v14 = vld [vmem:[#allocation19 + $0x1938] sm:$0xff]  ;;  %v5820_v42 = vld [vmem:[#allocation19 + $0x1d30] sm:$0xff] }
 0x879   :  { %6841 = vmatpush2.msra.mxu0 %v5476_v47  ;;  %6912 = vmatpush2.msra.mxu1 %v5604_v33  ;;  %v5821_v21 = vld [vmem:[#allocation19 + $0x1d38] sm:$0xff]  ;;  %v5688_v47 = vld [vmem:[#allocation19 + $0x1910] sm:$0xff] }
 0x87a   :  { %6842 = vmatprep.subr.mxu0 %v5473_v48  ;;  %6913 = vmatprep.subr.mxu1 %v5601_v49  ;;  %v6424_v15 = vpop.f32.mrf.mxu0  ;;  %v6495_v30 = vpop.f32.mrf.mxu1  ;;  %v5689_v25 = vld [vmem:[#allocation19 + $0x1918] sm:$0xff]  ;;  %v5816_v33 = vld [vmem:[#allocation19 + $0x1d10] sm:$0xff] }
 0x87b   :  { %6843 = vmatpush2.msra.mxu0 %v5472_v53  ;;  %6914 = vmatpush2.msra.mxu1 %v5600_v56  ;;  %v6425_v16 = vadd.f32 %v6424_v15, %v10338_v1  ;;  %v5844_v1 = vld [vmem:[#allocation19 + $0x1df0] sm:$0xff]  ;;  %v5817_v51 = vld [vmem:[#allocation19 + $0x1d18] sm:$0xff] }
 0x87c   :  { %6844 = vmatprep.subr.mxu0 %v5469_v11  ;;  %6915 = vmatprep.subr.mxu1 %v5597_v23  ;;  %v5685_v48 = vld [vmem:[#allocation19 + $0x18f8] sm:$0xff]  ;;  %v5684_v53 = vld [vmem:[#allocation19 + $0x18f0] sm:$0xff] }
 0x87d   :  { %6845 = vmatpush2.msra.mxu0 %v5468_v5  ;;  %6916 = vmatpush2.msra.mxu1 %v5596_v2  ;;  %v10353_v39 = vadd.f32 %v6495_v30, %v6425_v16  ;;  %v5813_v49 = vld [vmem:[#allocation19 + $0x1cf8] sm:$0xff]  ;;  %v5812_v56 = vld [vmem:[#allocation19 + $0x1cf0] sm:$0xff] }
 0x87e   :  { %6846 = vmatprep.subr.mxu0 %v5465_v7  ;;  %6917 = vmatprep.subr.mxu1 %v5593_v35  ;;  %v5681_v11 = vld [vmem:[#allocation19 + $0x18d8] sm:$0xff]  ;;  %v5680_v5 = vld [vmem:[#allocation19 + $0x18d0] sm:$0xff] }
 0x87f   :  { %6847 = vmatpush2.msra.mxu0 %v5464_v8  ;;  %6918 = vmatpush2.msra.mxu1 %v5592_v17  ;;  %v5809_v23 = vld [vmem:[#allocation19 + $0x1cd8] sm:$0xff]  ;;  %v5808_v2 = vld [vmem:[#allocation19 + $0x1cd0] sm:$0xff] }
 0x880   :  { %6849 = vmatmul.mubr.f32.vlgmr.msra.gmra.mxu0 %v4878_v36  ;;  %6920 = vmatmul.mubr.f32.vlgmr.msra.gmra.mxu1 %v4880_v46  ;;  %v5837_v36 = vld [vmem:[#allocation19 + $0x1db8] sm:$0xff]  ;;  %v5836_v46 = vld [vmem:[#allocation19 + $0x1db0] sm:$0xff] }
 0x881   :  { %6926 = vmatprep.subr.mxu0 %v5717_v52  ;;  %6997 = vmatprep.subr.mxu1 %v5845_v9  ;;  %v5677_v15 = vld [vmem:[#allocation19 + $0x18b8] sm:$0xff]  ;;  %v5676_v35 = vld [vmem:[#allocation19 + $0x18b0] sm:$0xff] }
 0x882   :  { %6927 = vmatpush1.msra.mxu0 %v5716_v13  ;;  %6990 = vmatprep.mubr.f32.mxu0 %v4883_v12  ;;  %v5832_v12 = vld [vmem:[#allocation19 + $0x1d90] sm:$0xff]  ;;  %v5805_v7 = vld [vmem:[#allocation19 + $0x1cb8] sm:$0xff] }
 0x883   :  { %6998 = vmatpush1.msra.mxu1 %v5844_v1  ;;  %7061 = vmatprep.mubr.f32.mxu1 %v4885_v61  ;;  %v5828_v61 = vld [vmem:[#allocation19 + $0x1d70] sm:$0xff]  ;;  %v5673_v8 = vld [vmem:[#allocation19 + $0x1898] sm:$0xff] }
 0x884   :  { %6928 = vmatprep.subr.mxu0 %v5713_v29  ;;  %6999 = vmatprep.subr.mxu1 %v5841_v31  ;;  %v5804_v16 = vld [vmem:[#allocation19 + $0x1cb0] sm:$0xff]  ;;  %v5801_v17 = vld [vmem:[#allocation19 + $0x1c98] sm:$0xff] }
 0x885   :  { %6929 = vmatpush1.msra.mxu0 %v5712_v32  ;;  %7000 = vmatpush1.msra.mxu1 %v5840_v62  ;;  %v5672_v30 = vld [vmem:[#allocation19 + $0x1890] sm:$0xff]  ;;  %v5669_v9 = vld [vmem:[#allocation19 + $0x1878] sm:$0xff] }
 0x886   :  { %6930 = vmatprep.subr.mxu0 %v5709_v26  ;;  %7001 = vmatprep.subr.mxu1 %v5837_v36  ;;  %v5800_v52 = vld [vmem:[#allocation19 + $0x1c90] sm:$0xff]  ;;  %v5797_v13 = vld [vmem:[#allocation19 + $0x1c78] sm:$0xff] }
 0x887   :  { %6931 = vmatpush1.msra.mxu0 %v5708_v4  ;;  %7002 = vmatpush1.msra.mxu1 %v5836_v46  ;;  %v5668_v1 = vld [vmem:[#allocation19 + $0x1870] sm:$0xff]  ;;  %v5665_v31 = vld [vmem:[#allocation19 + $0x1858] sm:$0xff] }
 0x888   :  { %6932 = vmatprep.subr.mxu0 %v5705_v22  ;;  %7003 = vmatprep.subr.mxu1 %v5833_v28  ;;  %v5796_v29 = vld [vmem:[#allocation19 + $0x1c70] sm:$0xff]  ;;  %v5793_v32 = vld [vmem:[#allocation19 + $0x1c58] sm:$0xff] }
 0x889   :  { %6933 = vmatpush1.msra.mxu0 %v5704_v37  ;;  %7004 = vmatpush1.msra.mxu1 %v5832_v12  ;;  %v5664_v62 = vld [vmem:[#allocation19 + $0x1850] sm:$0xff]  ;;  %v5661_v36 = vld [vmem:[#allocation19 + $0x1838] sm:$0xff] }
 0x88a   :  { %6934 = vmatprep.subr.mxu0 %v5701_v19  ;;  %7005 = vmatprep.subr.mxu1 %v5829_v20  ;;  %v5792_v26 = vld [vmem:[#allocation19 + $0x1c50] sm:$0xff]  ;;  %v5789_v4 = vld [vmem:[#allocation19 + $0x1c38] sm:$0xff] }
 0x88b   :  { %6935 = vmatpush1.msra.mxu0 %v5700_v54  ;;  %7006 = vmatpush1.msra.mxu1 %v5828_v61  ;;  %v5660_v46 = vld [vmem:[#allocation19 + $0x1830] sm:$0xff]  ;;  %v5657_v28 = vld [vmem:[#allocation19 + $0x1818] sm:$0xff] }
 0x88c   :  { %6936 = vmatprep.subr.mxu0 %v5697_v60  ;;  %7007 = vmatprep.subr.mxu1 %v5825_v6  ;;  %v5788_v22 = vld [vmem:[#allocation19 + $0x1c30] sm:$0xff]  ;;  %v5785_v37 = vld [vmem:[#allocation19 + $0x1c18] sm:$0xff] }
 0x88d   :  { %6937 = vmatpush1.msra.mxu0 %v5696_v10  ;;  %7008 = vmatpush1.msra.mxu1 %v5824_v38  ;;  %v5656_v12 = vld [vmem:[#allocation19 + $0x1810] sm:$0xff]  ;;  %v5781_v20 = vld [vmem:[#allocation19 + $0x1bf8] sm:$0xff] }
 0x88e   :  { %6938 = vmatprep.subr.mxu0 %v5693_v14  ;;  %7009 = vmatprep.subr.mxu1 %v5821_v21  ;;  %v5784_v19 = vld [vmem:[#allocation19 + $0x1c10] sm:$0xff]  ;;  %v5909_v54 = vld [vmem:[#allocation19 + $0x1ff8] sm:$0xff]  ;;  %v8531_v21 = vld [vmem:[#allocation20] sm:$0xf] }
 0x88f   :  { %6939 = vmatpush1.msra.mxu0 %v5692_v27  ;;  %7010 = vmatpush1.msra.mxu1 %v5820_v42  ;;  %v5780_v61 = vld [vmem:[#allocation19 + $0x1bf0] sm:$0xff]  ;;  %v5777_v6 = vld [vmem:[#allocation19 + $0x1bd8] sm:$0xff]  ;;  %v5919_v27 = vrot.slane %v8531_v21, %v9214_v43 }
 0x890   :  { %6940 = vmatprep.subr.mxu0 %v5689_v25  ;;  %7011 = vmatprep.subr.mxu1 %v5817_v51  ;;  %v5908_v60 = vld [vmem:[#allocation19 + $0x1ff0] sm:$0xff]  ;;  %v5905_v10 = vld [vmem:[#allocation19 + $0x1fd8] sm:$0xff] }
 0x891   :  { %6941 = vmatpush1.msra.mxu0 %v5688_v47  ;;  %7012 = vmatpush1.msra.mxu1 %v5816_v33  ;;  %v5776_v38 = vld [vmem:[#allocation19 + $0x1bd0] sm:$0xff]  ;;  %v5773_v42 = vld [vmem:[#allocation19 + $0x1bb8] sm:$0xff] }
 0x892   :  { %6942 = vmatprep.subr.mxu0 %v5685_v48  ;;  %7013 = vmatprep.subr.mxu1 %v5813_v49  ;;  %v5904_v14 = vld [vmem:[#allocation19 + $0x1fd0] sm:$0xff]  ;;  %v5901_v25 = vld [vmem:[#allocation19 + $0x1fb8] sm:$0xff] }
 0x893   :  { %6943 = vmatpush1.msra.mxu0 %v5684_v53  ;;  %7014 = vmatpush1.msra.mxu1 %v5812_v56  ;;  %v5772_v51 = vld [vmem:[#allocation19 + $0x1bb0] sm:$0xff]  ;;  %v5769_v33 = vld [vmem:[#allocation19 + $0x1b98] sm:$0xff]  ;;  %v6001_v56 = vadd.f32 %v10318_v63, %v5919_v27 }
 0x894   :  { %6944 = vmatprep.subr.mxu0 %v5681_v11  ;;  %7015 = vmatprep.subr.mxu1 %v5809_v23  ;;  %v5900_v47 = vld [vmem:[#allocation19 + $0x1fb0] sm:$0xff]  ;;  %v5897_v48 = vld [vmem:[#allocation19 + $0x1f98] sm:$0xff] }
 0x895   :  { %6945 = vmatpush1.msra.mxu0 %v5680_v5  ;;  %7016 = vmatpush1.msra.mxu1 %v5808_v2  ;;  %v5768_v49 = vld [vmem:[#allocation19 + $0x1b90] sm:$0xff]  ;;  %v5765_v11 = vld [vmem:[#allocation19 + $0x1b78] sm:$0xff] }
 0x896   :  { %6946 = vmatprep.subr.mxu0 %v5677_v15  ;;  %7017 = vmatprep.subr.mxu1 %v5805_v7  ;;  %v5896_v53 = vld [vmem:[#allocation19 + $0x1f90] sm:$0xff]  ;;  %v5893_v23 = vld [vmem:[#allocation19 + $0x1f78] sm:$0xff] }
 0x897   :  { %6947 = vmatpush1.msra.mxu0 %v5676_v35  ;;  %7018 = vmatpush1.msra.mxu1 %v5804_v16  ;;  %v5764_v5 = vld [vmem:[#allocation19 + $0x1b70] sm:$0xff]  ;;  %v5761_v15 = vld [vmem:[#allocation19 + $0x1b58] sm:$0xff] }
 0x898   :  { %6948 = vmatprep.subr.mxu0 %v5673_v8  ;;  %7019 = vmatprep.subr.mxu1 %v5801_v17  ;;  %v5892_v2 = vld [vmem:[#allocation19 + $0x1f70] sm:$0xff]  ;;  %v5889_v7 = vld [vmem:[#allocation19 + $0x1f58] sm:$0xff]  ;;  %v6072_v8 = vadd.f32 %v10320_v59, %v6001_v56 }
 0x899   :  { %6949 = vmatpush1.msra.mxu0 %v5672_v30  ;;  %7020 = vmatpush1.msra.mxu1 %v5800_v52  ;;  %v5760_v35 = vld [vmem:[#allocation19 + $0x1b50] sm:$0xff]  ;;  %v5757_v63 = vld [vmem:[#allocation19 + $0x1b38] sm:$0xff] }
 0x89a   :  { %6950 = vmatprep.subr.mxu0 %v5669_v9  ;;  %7021 = vmatprep.subr.mxu1 %v5797_v13  ;;  %v5888_v16 = vld [vmem:[#allocation19 + $0x1f50] sm:$0xff]  ;;  %v5885_v17 = vld [vmem:[#allocation19 + $0x1f38] sm:$0xff]  ;;  %v6143_v9 = vadd.f32 %v10333_v24, %v6072_v8  ;;  %v7128_v8 = vld [vmem:[#allocation22 + $0x1c0] sm:$0xff] }
 0x89b   :  { %6951 = vmatpush1.msra.mxu0 %v5668_v1  ;;  %7022 = vmatpush1.msra.mxu1 %v5796_v29  ;;  %v5756_v30 = vld [vmem:[#allocation19 + $0x1b30] sm:$0xff]  ;;  %v5753_v13 = vld [vmem:[#allocation19 + $0x1b18] sm:$0xff] }
 0x89c   :  { %6952 = vmatprep.subr.mxu0 %v5665_v31  ;;  %7023 = vmatprep.subr.mxu1 %v5793_v32  ;;  %v5884_v52 = vld [vmem:[#allocation19 + $0x1f30] sm:$0xff]  ;;  %v5881_v1 = vld [vmem:[#allocation19 + $0x1f18] sm:$0xff] }
 0x89d   :  { %6953 = vmatpush1.msra.mxu0 %v5664_v62  ;;  %7024 = vmatpush1.msra.mxu1 %v5792_v26  ;;  %v5752_v29 = vld [vmem:[#allocation19 + $0x1b10] sm:$0xff]  ;;  %v5749_v59 = vld [vmem:[#allocation19 + $0x1af8] sm:$0xff] }
 0x89e   :  { %6954 = vmatprep.subr.mxu0 %v5661_v36  ;;  %7025 = vmatprep.subr.mxu1 %v5789_v4  ;;  %v5880_v31 = vld [vmem:[#allocation19 + $0x1f10] sm:$0xff]  ;;  %v5877_v32 = vld [vmem:[#allocation19 + $0x1ef8] sm:$0xff]  ;;  %v6214_v36 = vadd.f32 %v10335_v34, %v6143_v9 }
 0x89f   :  { %6955 = vmatpush1.msra.mxu0 %v5660_v46  ;;  %7026 = vmatpush1.msra.mxu1 %v5788_v22  ;;  %v5748_v62 = vld [vmem:[#allocation19 + $0x1af0] sm:$0xff]  ;;  %v5745_v24 = vld [vmem:[#allocation19 + $0x1ad8] sm:$0xff] }
 0x8a0   :  { %6956 = vmatprep.subr.mxu0 %v5657_v28  ;;  %7027 = vmatprep.subr.mxu1 %v5785_v37  ;;  %v5876_v26 = vld [vmem:[#allocation19 + $0x1ef0] sm:$0xff]  ;;  %v5873_v4 = vld [vmem:[#allocation19 + $0x1ed8] sm:$0xff]  ;;  %v6285_v28 = vadd.f32 %v10348_v45, %v6214_v36 }
 0x8a1   :  { %6957 = vmatpush1.msra.mxu0 %v5656_v12  ;;  %7028 = vmatpush1.msra.mxu1 %v5784_v19  ;;  %v5744_v46 = vld [vmem:[#allocation19 + $0x1ad0] sm:$0xff]  ;;  %v5741_v37 = vld [vmem:[#allocation19 + $0x1ab8] sm:$0xff] }
 0x8a2   :  { %6958 = vmatprep.subr.mxu0 %v5781_v20  ;;  %7029 = vmatprep.subr.mxu1 %v5909_v54  ;;  %v5872_v22 = vld [vmem:[#allocation19 + $0x1ed0] sm:$0xff]  ;;  %v5869_v12 = vld [vmem:[#allocation19 + $0x1eb8] sm:$0xff] }
 0x8a3   :  { %6959 = vmatpush2.msra.mxu0 %v5780_v61  ;;  %7030 = vmatpush2.msra.mxu1 %v5908_v60  ;;  %v5740_v19 = vld [vmem:[#allocation19 + $0x1ab0] sm:$0xff]  ;;  %v5737_v34 = vld [vmem:[#allocation19 + $0x1a98] sm:$0xff]  ;;  %v6426_v61 = vpop.f32.mrf.mxu0 }
 0x8a4   :  { %6960 = vmatprep.subr.mxu0 %v5777_v6  ;;  %7031 = vmatprep.subr.mxu1 %v5905_v10  ;;  %v5868_v20 = vld [vmem:[#allocation19 + $0x1eb0] sm:$0xff]  ;;  %v5865_v54 = vld [vmem:[#allocation19 + $0x1e98] sm:$0xff]  ;;  %v6356_v10 = vadd.f32 %v10350_v3, %v6285_v28  ;;  %v7240_v28 = vld [vmem:[#allocation22 + $0x540] sm:$0xff] }
 0x8a5   :  { %6961 = vmatpush2.msra.mxu0 %v5776_v38  ;;  %7032 = vmatpush2.msra.mxu1 %v5904_v14  ;;  %v5736_v60 = vld [vmem:[#allocation19 + $0x1a90] sm:$0xff]  ;;  %v5733_v45 = vld [vmem:[#allocation19 + $0x1a78] sm:$0xff] }
 0x8a6   :  { %6962 = vmatprep.subr.mxu0 %v5773_v42  ;;  %7033 = vmatprep.subr.mxu1 %v5901_v25  ;;  %v5864_v6 = vld [vmem:[#allocation19 + $0x1e90] sm:$0xff]  ;;  %v5861_v38 = vld [vmem:[#allocation19 + $0x1e78] sm:$0xff]  ;;  %v6427_v27 = vadd.f32 %v6426_v61, %v6356_v10 }
 0x8a7   :  { %6963 = vmatpush2.msra.mxu0 %v5772_v51  ;;  %7034 = vmatpush2.msra.mxu1 %v5900_v47  ;;  %v5732_v14 = vld [vmem:[#allocation19 + $0x1a70] sm:$0xff]  ;;  %v5729_v42 = vld [vmem:[#allocation19 + $0x1a58] sm:$0xff] }
 0x8a8   :  { %6964 = vmatprep.subr.mxu0 %v5769_v33  ;;  %7035 = vmatprep.subr.mxu1 %v5897_v48  ;;  %v5860_v21 = vld [vmem:[#allocation19 + $0x1e70] sm:$0xff]  ;;  %v5857_v25 = vld [vmem:[#allocation19 + $0x1e58] sm:$0xff]  ;;  %v6497_v48 = vpop.f32.mrf.mxu1 }
 0x8a9   :  { %6965 = vmatpush2.msra.mxu0 %v5768_v49  ;;  %7036 = vmatpush2.msra.mxu1 %v5896_v53  ;;  %v5728_v51 = vld [vmem:[#allocation19 + $0x1a50] sm:$0xff]  ;;  %v5725_v3 = vld [vmem:[#allocation19 + $0x1a38] sm:$0xff]  ;;  %v10370_v56 = vadd.f32 %v6497_v48, %v6427_v27 }
 0x8aa   :  { %6966 = vmatprep.subr.mxu0 %v5765_v11  ;;  %7037 = vmatprep.subr.mxu1 %v5893_v23  ;;  %v5856_v47 = vld [vmem:[#allocation19 + $0x1e50] sm:$0xff]  ;;  %v5853_v33 = vld [vmem:[#allocation19 + $0x1e38] sm:$0xff] }
 0x8ab   :  { %6967 = vmatpush2.msra.mxu0 %v5764_v5  ;;  %7038 = vmatpush2.msra.mxu1 %v5892_v2  ;;  %v5724_v49 = vld [vmem:[#allocation19 + $0x1a30] sm:$0xff]  ;;  %v5721_v11 = vld [vmem:[#allocation19 + $0x1a18] sm:$0xff] }
 0x8ac   :  { %6968 = vmatprep.subr.mxu0 %v5761_v15  ;;  %7039 = vmatprep.subr.mxu1 %v5889_v7  ;;  %v5852_v53 = vld [vmem:[#allocation19 + $0x1e30] sm:$0xff]  ;;  %v5849_v23 = vld [vmem:[#allocation19 + $0x1e18] sm:$0xff]  ;;  %v7069_v7 = vmax.f32 %v10370_v56, 0.0 }
 0x8ad   :  { %6969 = vmatpush2.msra.mxu0 %v5760_v35  ;;  %7040 = vmatpush2.msra.mxu1 %v5888_v16  ;;  %v5720_v5 = vld [vmem:[#allocation19 + $0x1a10] sm:$0xff]  ;;  %v7132_v35 = vld [vmem:[#allocation22 + $0x1e0] sm:$0xff] }
 0x8ae   :  { %6970 = vmatprep.subr.mxu0 %v5757_v63  ;;  %7041 = vmatprep.subr.mxu1 %v5885_v17  ;;  %v5848_v2 = vld [vmem:[#allocation19 + $0x1e10] sm:$0xff]  ;;  %v7124_v17 = vld [vmem:[#allocation22 + $0x1a0] sm:$0xff] }
 0x8af   :  { %6971 = vmatpush2.msra.mxu0 %v5756_v30  ;;  %7042 = vmatpush2.msra.mxu1 %v5884_v52  ;;  %v7133_v15 = vld [vmem:[#allocation22 + $0x1e8] sm:$0xff]  ;;  %v7260_v52 = vld [vmem:[#allocation22 + $0x5e0] sm:$0xff]  ;;  %v7118_v56 = vld [vmem:[#allocation22 + $0x170] sm:$0xff] }
 0x8b0   :  { %6972 = vmatprep.subr.mxu0 %v5753_v13  ;;  %7043 = vmatprep.subr.mxu1 %v5881_v1  ;;  %v7129_v16 = vld [vmem:[#allocation22 + $0x1c8] sm:$0xff]  ;;  %v7252_v1 = vld [vmem:[#allocation22 + $0x5a0] sm:$0xff] }
 0x8b1   :  { %6973 = vmatpush2.msra.mxu0 %v5752_v29  ;;  %7044 = vmatpush2.msra.mxu1 %v5880_v31  ;;  %v7125_v63 = vld [vmem:[#allocation22 + $0x1a8] sm:$0xff]  ;;  %v7116_v29 = vld [vmem:[#allocation22 + $0x160] sm:$0xff] }
 0x8b2   :  { %6974 = vmatprep.subr.mxu0 %v5749_v59  ;;  %7045 = vmatprep.subr.mxu1 %v5877_v32  ;;  %v7261_v30 = vld [vmem:[#allocation22 + $0x5e8] sm:$0xff]  ;;  %v7248_v32 = vld [vmem:[#allocation22 + $0x580] sm:$0xff] }
 0x8b3   :  { %6975 = vmatpush2.msra.mxu0 %v5748_v62  ;;  %7046 = vmatpush2.msra.mxu1 %v5876_v26  ;;  %v7257_v9 = vld [vmem:[#allocation22 + $0x5c8] sm:$0xff]  ;;  %v7112_v62 = vld [vmem:[#allocation22 + $0x140] sm:$0xff] }
 0x8b4   :  { %6976 = vmatprep.subr.mxu0 %v5745_v24  ;;  %7047 = vmatprep.subr.mxu1 %v5873_v4  ;;  %v7121_v13 = vld [vmem:[#allocation22 + $0x188] sm:$0xff]  ;;  %v7244_v24 = vld [vmem:[#allocation22 + $0x560] sm:$0xff] }
 0x8b5   :  { %6977 = vmatpush2.msra.mxu0 %v5744_v46  ;;  %7048 = vmatpush2.msra.mxu1 %v5872_v22  ;;  %v7249_v31 = vld [vmem:[#allocation22 + $0x588] sm:$0xff]  ;;  %v7108_v4 = vld [vmem:[#allocation22 + $0x120] sm:$0xff] }
 0x8b6   :  { %6978 = vmatprep.subr.mxu0 %v5741_v37  ;;  %7049 = vmatprep.subr.mxu1 %v5869_v12  ;;  %v7113_v59 = vld [vmem:[#allocation22 + $0x148] sm:$0xff]  ;;  %v7104_v37 = vld [vmem:[#allocation22 + $0x100] sm:$0xff] }
 0x8b7   :  { %6979 = vmatpush2.msra.mxu0 %v5740_v19  ;;  %7050 = vmatpush2.msra.mxu1 %v5868_v20  ;;  %v7245_v26 = vld [vmem:[#allocation22 + $0x568] sm:$0xff]  ;;  %v7236_v20 = vld [vmem:[#allocation22 + $0x520] sm:$0xff] }
 0x8b8   :  { %6980 = vmatprep.subr.mxu0 %v5737_v34  ;;  %7051 = vmatprep.subr.mxu1 %v5865_v54  ;;  %v7109_v36 = vld [vmem:[#allocation22 + $0x128] sm:$0xff]  ;;  %v7100_v34 = vld [vmem:[#allocation22 + $0xe0] sm:$0xff] }
 0x8b9   :  { %6981 = vmatpush2.msra.mxu0 %v5736_v60  ;;  %7052 = vmatpush2.msra.mxu1 %v5864_v6  ;;  %v7241_v46 = vld [vmem:[#allocation22 + $0x548] sm:$0xff]  ;;  %v7232_v60 = vld [vmem:[#allocation22 + $0x500] sm:$0xff] }
 0x8ba   :  { %6982 = vmatprep.subr.mxu0 %v5733_v45  ;;  %7053 = vmatprep.subr.mxu1 %v5861_v38  ;;  %v7105_v22 = vld [vmem:[#allocation22 + $0x108] sm:$0xff]  ;;  %v7096_v6 = vld [vmem:[#allocation22 + $0xc0] sm:$0xff] }
 0x8bb   :  { %6983 = vmatpush2.msra.mxu0 %v5732_v14  ;;  %7054 = vmatpush2.msra.mxu1 %v5860_v21  ;;  %v7237_v12 = vld [vmem:[#allocation22 + $0x528] sm:$0xff]  ;;  %v7228_v38 = vld [vmem:[#allocation22 + $0x4e0] sm:$0xff] }
 0x8bc   :  { %6984 = vmatprep.subr.mxu0 %v5729_v42  ;;  %7055 = vmatprep.subr.mxu1 %v5857_v25  ;;  %v7101_v19 = vld [vmem:[#allocation22 + $0xe8] sm:$0xff]  ;;  %v7092_v14 = vld [vmem:[#allocation22 + $0xa0] sm:$0xff] }
 0x8bd   :  { %6985 = vmatpush2.msra.mxu0 %v5728_v51  ;;  %7056 = vmatpush2.msra.mxu1 %v5856_v47  ;;  %v7233_v54 = vld [vmem:[#allocation22 + $0x508] sm:$0xff]  ;;  %v7224_v42 = vld [vmem:[#allocation22 + $0x4c0] sm:$0xff] }
 0x8be   :  { %6986 = vmatprep.subr.mxu0 %v5725_v3  ;;  %7057 = vmatprep.subr.mxu1 %v5853_v33  ;;  %v7097_v61 = vld [vmem:[#allocation22 + $0xc8] sm:$0xff]  ;;  %v7088_v25 = vld [vmem:[#allocation22 + $0x80] sm:$0xff] }
 0x8bf   :  { %6987 = vmatpush2.msra.mxu0 %v5724_v49  ;;  %7058 = vmatpush2.msra.mxu1 %v5852_v53  ;;  %v7229_v10 = vld [vmem:[#allocation22 + $0x4e8] sm:$0xff]  ;;  %v7220_v3 = vld [vmem:[#allocation22 + $0x4a0] sm:$0xff] }
 0x8c0   :  { %6988 = vmatprep.subr.mxu0 %v5721_v11  ;;  %7059 = vmatprep.subr.mxu1 %v5849_v23  ;;  %v7093_v45 = vld [vmem:[#allocation22 + $0xa8] sm:$0xff]  ;;  %v7084_v33 = vld [vmem:[#allocation22 + $0x60] sm:$0xff] }
 0x8c1   :  { %6989 = vmatpush2.msra.mxu0 %v5720_v5  ;;  %7060 = vmatpush2.msra.mxu1 %v5848_v2  ;;  %v7225_v21 = vld [vmem:[#allocation22 + $0x4c8] sm:$0xff]  ;;  %v7216_v53 = vld [vmem:[#allocation22 + $0x480] sm:$0xff] }
 0x8c2   :  { %6991 = vmatmul.mubr.f32.vlgmr.msra.gmra.mxu0 %v4882_v50  ;;  %7062 = vmatmul.mubr.f32.vlgmr.msra.gmra.mxu1 %v4884_v57  ;;  %v7253_v50 = vld [vmem:[#allocation22 + $0x5a8] sm:$0xff]  ;;  %v7080_v11 = vld [vmem:[#allocation22 + $0x40] sm:$0xff] }
 0x8c3   :  { %7350 = vmatprep.subr.mxu0 %v7133_v15  ;;  %7414 = vmatprep.mubr.f32.mxu0 %v7069_v7  ;;  %v7117_v57 = vld [vmem:[#allocation22 + $0x168] sm:$0xff]  ;;  %v7212_v2 = vld [vmem:[#allocation22 + $0x460] sm:$0xff] }
 0x8c4   :  { %7351 = vmatpush1.msra.mxu0 %v7132_v35  ;;  %7421 = vmatprep.subr.mxu1 %v7261_v30  ;;  %v7089_v27 = vld [vmem:[#allocation22 + $0x88] sm:$0xff]  ;;  %v7076_v15 = vld [vmem:[#allocation22 + $0x20] sm:$0xff] }
 0x8c5   :  { %7352 = vmatprep.subr.mxu0 %v7129_v16  ;;  %7422 = vmatpush1.msra.mxu1 %v7260_v52  ;;  %v7221_v51 = vld [vmem:[#allocation22 + $0x4a8] sm:$0xff]  ;;  %v7204_v52 = vld [vmem:[#allocation22 + $0x420] sm:$0xff] }
 0x8c6   :  { %7353 = vmatpush1.msra.mxu0 %v7128_v8  ;;  %7423 = vmatprep.subr.mxu1 %v7257_v9  ;;  %v7085_v47 = vld [vmem:[#allocation22 + $0x68] sm:$0xff]  ;;  %v7208_v8 = vld [vmem:[#allocation22 + $0x440] sm:$0xff] }
 0x8c7   :  { %7354 = vmatprep.subr.mxu0 %v7125_v63  ;;  %7424 = vmatpush1.msra.mxu1 %v7256_v55  ;;  %v7217_v48 = vld [vmem:[#allocation22 + $0x488] sm:$0xff]  ;;  %v7072_v63 = vld [vmem:[#allocation22] sm:$0xff] }
 0x8c8   :  { %7355 = vmatpush1.msra.mxu0 %v7124_v17  ;;  %7425 = vmatprep.subr.mxu1 %v7253_v50  ;;  %v7081_v49 = vld [vmem:[#allocation22 + $0x48] sm:$0xff]  ;;  %v7196_v9 = vld [vmem:[#allocation22 + $0x3e0] sm:$0xff] }
 0x8c9   :  { %7356 = vmatprep.subr.mxu0 %v7121_v13  ;;  %7426 = vmatpush1.msra.mxu1 %v7252_v1  ;;  %v7213_v23 = vld [vmem:[#allocation22 + $0x468] sm:$0xff]  ;;  %v7192_v50 = vld [vmem:[#allocation22 + $0x3c0] sm:$0xff] }
 0x8ca   :  { %7357 = vmatpush1.msra.mxu0 %v7120_v58  ;;  %7427 = vmatprep.subr.mxu1 %v7249_v31  ;;  %v7077_v5 = vld [vmem:[#allocation22 + $0x28] sm:$0xff]  ;;  %v7200_v58 = vld [vmem:[#allocation22 + $0x400] sm:$0xff] }
 0x8cb   :  { %7358 = vmatprep.subr.mxu0 %v7117_v57  ;;  %7428 = vmatpush1.msra.mxu1 %v7248_v32  ;;  %v7209_v35 = vld [vmem:[#allocation22 + $0x448] sm:$0xff]  ;;  %v7188_v31 = vld [vmem:[#allocation22 + $0x3a0] sm:$0xff] }
 0x8cc   :  { %7359 = vmatpush1.msra.mxu0 %v7116_v29  ;;  %7429 = vmatprep.subr.mxu1 %v7245_v26  ;;  %v7073_v16 = vld [vmem:[#allocation22 + $0x8] sm:$0xff]  ;;  %v7324_v29 = vld [vmem:[#allocation22 + $0x7e0] sm:$0xff] }
 0x8cd   :  { %7360 = vmatprep.subr.mxu0 %v7113_v59  ;;  %7430 = vmatpush1.msra.mxu1 %v7244_v24  ;;  %v7205_v17 = vld [vmem:[#allocation22 + $0x428] sm:$0xff]  ;;  %v7184_v26 = vld [vmem:[#allocation22 + $0x380] sm:$0xff] }
 0x8ce   :  { %7361 = vmatpush1.msra.mxu0 %v7112_v62  ;;  %7431 = vmatprep.subr.mxu1 %v7241_v46  ;;  %v7197_v30 = vld [vmem:[#allocation22 + $0x3e8] sm:$0xff]  ;;  %v7320_v62 = vld [vmem:[#allocation22 + $0x7c0] sm:$0xff] }
 0x8cf   :  { %7362 = vmatprep.subr.mxu0 %v7109_v36  ;;  %7432 = vmatpush1.msra.mxu1 %v7240_v28  ;;  %v7201_v13 = vld [vmem:[#allocation22 + $0x408] sm:$0xff]  ;;  %v7180_v46 = vld [vmem:[#allocation22 + $0x360] sm:$0xff] }
 0x8d0   :  { %7363 = vmatpush1.msra.mxu0 %v7108_v4  ;;  %7433 = vmatprep.subr.mxu1 %v7237_v12  ;;  %v7193_v55 = vld [vmem:[#allocation22 + $0x3c8] sm:$0xff]  ;;  %v7316_v4 = vld [vmem:[#allocation22 + $0x7a0] sm:$0xff] }
 0x8d1   :  { %7364 = vmatprep.subr.mxu0 %v7105_v22  ;;  %7434 = vmatpush1.msra.mxu1 %v7236_v20  ;;  %v7325_v57 = vld [vmem:[#allocation22 + $0x7e8] sm:$0xff]  ;;  %v7176_v12 = vld [vmem:[#allocation22 + $0x340] sm:$0xff] }
 0x8d2   :  { %7365 = vmatpush1.msra.mxu0 %v7104_v37  ;;  %7435 = vmatprep.subr.mxu1 %v7233_v54  ;;  %v7189_v1 = vld [vmem:[#allocation22 + $0x3a8] sm:$0xff]  ;;  %v7312_v37 = vld [vmem:[#allocation22 + $0x780] sm:$0xff] }
 0x8d3   :  { %7366 = vmatprep.subr.mxu0 %v7101_v19  ;;  %7436 = vmatpush1.msra.mxu1 %v7232_v60  ;;  %v7321_v59 = vld [vmem:[#allocation22 + $0x7c8] sm:$0xff]  ;;  %v7172_v54 = vld [vmem:[#allocation22 + $0x320] sm:$0xff] }
 0x8d4   :  { %7367 = vmatpush1.msra.mxu0 %v7100_v34  ;;  %7437 = vmatprep.subr.mxu1 %v7229_v10  ;;  %v7185_v32 = vld [vmem:[#allocation22 + $0x388] sm:$0xff]  ;;  %v7308_v34 = vld [vmem:[#allocation22 + $0x760] sm:$0xff] }
 0x8d5   :  { %7368 = vmatprep.subr.mxu0 %v7097_v61  ;;  %7438 = vmatpush1.msra.mxu1 %v7228_v38  ;;  %v7317_v36 = vld [vmem:[#allocation22 + $0x7a8] sm:$0xff]  ;;  %v7168_v10 = vld [vmem:[#allocation22 + $0x300] sm:$0xff] }
 0x8d6   :  { %7369 = vmatpush1.msra.mxu0 %v7096_v6  ;;  %7439 = vmatprep.subr.mxu1 %v7225_v21  ;;  %v7181_v24 = vld [vmem:[#allocation22 + $0x368] sm:$0xff]  ;;  %v7304_v6 = vld [vmem:[#allocation22 + $0x740] sm:$0xff] }
 0x8d7   :  { %7370 = vmatprep.subr.mxu0 %v7093_v45  ;;  %7440 = vmatpush1.msra.mxu1 %v7224_v42  ;;  %v7313_v22 = vld [vmem:[#allocation22 + $0x788] sm:$0xff]  ;;  %v7164_v21 = vld [vmem:[#allocation22 + $0x2e0] sm:$0xff] }
 0x8d8   :  { %7371 = vmatpush1.msra.mxu0 %v7092_v14  ;;  %7441 = vmatprep.subr.mxu1 %v7221_v51  ;;  %v7177_v28 = vld [vmem:[#allocation22 + $0x348] sm:$0xff]  ;;  %v7300_v14 = vld [vmem:[#allocation22 + $0x720] sm:$0xff] }
 0x8d9   :  { %7372 = vmatprep.subr.mxu0 %v7089_v27  ;;  %7442 = vmatpush1.msra.mxu1 %v7220_v3  ;;  %v7309_v19 = vld [vmem:[#allocation22 + $0x768] sm:$0xff]  ;;  %v7160_v51 = vld [vmem:[#allocation22 + $0x2c0] sm:$0xff] }
 0x8da   :  { %7373 = vmatpush1.msra.mxu0 %v7088_v25  ;;  %7443 = vmatprep.subr.mxu1 %v7217_v48  ;;  %v7173_v20 = vld [vmem:[#allocation22 + $0x328] sm:$0xff]  ;;  %v7296_v25 = vld [vmem:[#allocation22 + $0x700] sm:$0xff] }
 0x8db   :  { %7374 = vmatprep.subr.mxu0 %v7085_v47  ;;  %7444 = vmatpush1.msra.mxu1 %v7216_v53  ;;  %v7305_v61 = vld [vmem:[#allocation22 + $0x748] sm:$0xff]  ;;  %v7156_v48 = vld [vmem:[#allocation22 + $0x2a0] sm:$0xff] }
 0x8dc   :  { %7375 = vmatpush1.msra.mxu0 %v7084_v33  ;;  %7445 = vmatprep.subr.mxu1 %v7213_v23  ;;  %v7169_v60 = vld [vmem:[#allocation22 + $0x308] sm:$0xff]  ;;  %v7292_v33 = vld [vmem:[#allocation22 + $0x6e0] sm:$0xff] }
 0x8dd   :  { %7376 = vmatprep.subr.mxu0 %v7081_v49  ;;  %7446 = vmatpush1.msra.mxu1 %v7212_v2  ;;  %v7301_v45 = vld [vmem:[#allocation22 + $0x728] sm:$0xff]  ;;  %v7152_v23 = vld [vmem:[#allocation22 + $0x280] sm:$0xff] }
 0x8de   :  { %7377 = vmatpush1.msra.mxu0 %v7080_v11  ;;  %7447 = vmatprep.subr.mxu1 %v7209_v35  ;;  %v7165_v38 = vld [vmem:[#allocation22 + $0x2e8] sm:$0xff]  ;;  %v7288_v11 = vld [vmem:[#allocation22 + $0x6c0] sm:$0xff] }
 0x8df   :  { %7378 = vmatprep.subr.mxu0 %v7077_v5  ;;  %7448 = vmatpush1.msra.mxu1 %v7208_v8  ;;  %v7297_v27 = vld [vmem:[#allocation22 + $0x708] sm:$0xff]  ;;  %v7148_v35 = vld [vmem:[#allocation22 + $0x260] sm:$0xff] }
 0x8e0   :  { %7379 = vmatpush1.msra.mxu0 %v7076_v15  ;;  %7449 = vmatprep.subr.mxu1 %v7205_v17  ;;  %v7161_v42 = vld [vmem:[#allocation22 + $0x2c8] sm:$0xff]  ;;  %v7284_v15 = vld [vmem:[#allocation22 + $0x6a0] sm:$0xff] }
 0x8e1   :  { %7380 = vmatprep.subr.mxu0 %v7073_v16  ;;  %7450 = vmatpush1.msra.mxu1 %v7204_v52  ;;  %v7293_v47 = vld [vmem:[#allocation22 + $0x6e8] sm:$0xff] }
 0x8e2   :  { %7381 = vmatpush1.msra.mxu0 %v7072_v63  ;;  %7451 = vmatprep.subr.mxu1 %v7201_v13  ;;  %v7157_v3 = vld [vmem:[#allocation22 + $0x2a8] sm:$0xff]  ;;  %v7144_v63 = vld [vmem:[#allocation22 + $0x240] sm:$0xff]  ;;  %v7135_v13 = vld [vmem:[#allocation22 + $0x1f8] sm:$0xff] }
 0x8e3   :  { %7382 = vmatprep.subr.mxu0 %v7197_v30  ;;  %7452 = vmatpush1.msra.mxu1 %v7200_v58  ;;  %v7289_v49 = vld [vmem:[#allocation22 + $0x6c8] sm:$0xff]  ;;  %v7140_v30 = vld [vmem:[#allocation22 + $0x220] sm:$0xff]  ;;  %v7134_v58 = vld [vmem:[#allocation22 + $0x1f0] sm:$0xff] }
 0x8e4   :  { %7383 = vmatpush2.msra.mxu0 %v7196_v9  ;;  %7453 = vmatprep.subr.mxu1 %v7325_v57  ;;  %v7153_v53 = vld [vmem:[#allocation22 + $0x288] sm:$0xff]  ;;  %v7136_v9 = vld [vmem:[#allocation22 + $0x200] sm:$0xff] }
 0x8e5   :  { %7384 = vmatprep.subr.mxu0 %v7193_v55  ;;  %7454 = vmatpush2.msra.mxu1 %v7324_v29  ;;  %v7285_v5 = vld [vmem:[#allocation22 + $0x6a8] sm:$0xff]  ;;  %v7068_v55 = vmax.f32 %v10353_v39, 0.0  ;;  %v7280_v57 = vld [vmem:[#allocation22 + $0x680] sm:$0xff] }
 0x8e6   :  { %7385 = vmatpush2.msra.mxu0 %v7192_v50  ;;  %7455 = vmatprep.subr.mxu1 %v7321_v59  ;;  %v7149_v2 = vld [vmem:[#allocation22 + $0x268] sm:$0xff]  ;;  %v7131_v50 = vld [vmem:[#allocation22 + $0x1d8] sm:$0xff]  ;;  %v7276_v59 = vld [vmem:[#allocation22 + $0x660] sm:$0xff] }
 0x8e7   :  { %7386 = vmatprep.subr.mxu0 %v7189_v1  ;;  %7456 = vmatpush2.msra.mxu1 %v7320_v62  ;;  %v7281_v16 = vld [vmem:[#allocation22 + $0x688] sm:$0xff]  ;;  %v7130_v1 = vld [vmem:[#allocation22 + $0x1d0] sm:$0xff] }
 0x8e8   :  { %7387 = vmatpush2.msra.mxu0 %v7188_v31  ;;  %7457 = vmatprep.subr.mxu1 %v7317_v36  ;;  %v7145_v8 = vld [vmem:[#allocation22 + $0x248] sm:$0xff]  ;;  %v7127_v31 = vld [vmem:[#allocation22 + $0x1b8] sm:$0xff]  ;;  %v7272_v36 = vld [vmem:[#allocation22 + $0x640] sm:$0xff] }
 0x8e9   :  { %7388 = vmatprep.subr.mxu0 %v7185_v32  ;;  %7458 = vmatpush2.msra.mxu1 %v7316_v4  ;;  %v7141_v17 = vld [vmem:[#allocation22 + $0x228] sm:$0xff]  ;;  %v7126_v32 = vld [vmem:[#allocation22 + $0x1b0] sm:$0xff] }
 0x8ea   :  { %7389 = vmatpush2.msra.mxu0 %v7184_v26  ;;  %7459 = vmatprep.subr.mxu1 %v7313_v22  ;;  %v7137_v52 = vld [vmem:[#allocation22 + $0x208] sm:$0xff]  ;;  %v7123_v26 = vld [vmem:[#allocation22 + $0x198] sm:$0xff]  ;;  %v7268_v22 = vld [vmem:[#allocation22 + $0x620] sm:$0xff] }
 0x8eb   :  { %7390 = vmatprep.subr.mxu0 %v7181_v24  ;;  %7460 = vmatpush2.msra.mxu1 %v7312_v37  ;;  %v7277_v29 = vld [vmem:[#allocation22 + $0x668] sm:$0xff]  ;;  %v7122_v24 = vld [vmem:[#allocation22 + $0x190] sm:$0xff]  ;;  %v7264_v37 = vld [vmem:[#allocation22 + $0x600] sm:$0xff] }
 0x8ec   :  { %7391 = vmatpush2.msra.mxu0 %v7180_v46  ;;  %7461 = vmatprep.subr.mxu1 %v7309_v19  ;;  %v7273_v62 = vld [vmem:[#allocation22 + $0x648] sm:$0xff]  ;;  %v7119_v46 = vld [vmem:[#allocation22 + $0x178] sm:$0xff] }
 0x8ed   :  { %7392 = vmatprep.subr.mxu0 %v7177_v28  ;;  %7462 = vmatpush2.msra.mxu1 %v7308_v34  ;;  %v7269_v4 = vld [vmem:[#allocation22 + $0x628] sm:$0xff]  ;;  %v7115_v28 = vld [vmem:[#allocation22 + $0x158] sm:$0xff]  ;;  %v7110_v34 = vld [vmem:[#allocation22 + $0x130] sm:$0xff] }
 0x8ee   :  { %7393 = vmatpush2.msra.mxu0 %v7176_v12  ;;  %7463 = vmatprep.subr.mxu1 %v7305_v61  ;;  %v7114_v12 = vld [vmem:[#allocation22 + $0x150] sm:$0xff]  ;;  %v7263_v19 = vld [vmem:[#allocation22 + $0x5f8] sm:$0xff] }
 0x8ef   :  { %7394 = vmatprep.subr.mxu0 %v7173_v20  ;;  %7464 = vmatpush2.msra.mxu1 %v7304_v6  ;;  %v7111_v20 = vld [vmem:[#allocation22 + $0x138] sm:$0xff]  ;;  %v7106_v61 = vld [vmem:[#allocation22 + $0x110] sm:$0xff] }
 0x8f0   :  { %7395 = vmatpush2.msra.mxu0 %v7172_v54  ;;  %7465 = vmatprep.subr.mxu1 %v7301_v45  ;;  %v7107_v54 = vld [vmem:[#allocation22 + $0x118] sm:$0xff]  ;;  %v7102_v6 = vld [vmem:[#allocation22 + $0xf0] sm:$0xff] }
 0x8f1   :  { %7396 = vmatprep.subr.mxu0 %v7169_v60  ;;  %7466 = vmatpush2.msra.mxu1 %v7300_v14  ;;  %v7103_v60 = vld [vmem:[#allocation22 + $0xf8] sm:$0xff]  ;;  %v7098_v45 = vld [vmem:[#allocation22 + $0xd0] sm:$0xff] }
 0x8f2   :  { %7397 = vmatpush2.msra.mxu0 %v7168_v10  ;;  %7467 = vmatprep.subr.mxu1 %v7297_v27  ;;  %v7099_v10 = vld [vmem:[#allocation22 + $0xd8] sm:$0xff]  ;;  %v7094_v14 = vld [vmem:[#allocation22 + $0xb0] sm:$0xff] }
 0x8f3   :  { %7398 = vmatprep.subr.mxu0 %v7165_v38  ;;  %7468 = vmatpush2.msra.mxu1 %v7296_v25  ;;  %v7095_v38 = vld [vmem:[#allocation22 + $0xb8] sm:$0xff]  ;;  %v7090_v27 = vld [vmem:[#allocation22 + $0x90] sm:$0xff] }
 0x8f4   :  { %7399 = vmatpush2.msra.mxu0 %v7164_v21  ;;  %7469 = vmatprep.subr.mxu1 %v7293_v47  ;;  %v7091_v21 = vld [vmem:[#allocation22 + $0x98] sm:$0xff]  ;;  %v7086_v25 = vld [vmem:[#allocation22 + $0x70] sm:$0xff] }
 0x8f5   :  { %7400 = vmatprep.subr.mxu0 %v7161_v42  ;;  %7470 = vmatpush2.msra.mxu1 %v7292_v33  ;;  %v7087_v42 = vld [vmem:[#allocation22 + $0x78] sm:$0xff]  ;;  %v7082_v47 = vld [vmem:[#allocation22 + $0x50] sm:$0xff] }
 0x8f6   :  { %7401 = vmatpush2.msra.mxu0 %v7160_v51  ;;  %7471 = vmatprep.subr.mxu1 %v7289_v49  ;;  %v7083_v51 = vld [vmem:[#allocation22 + $0x58] sm:$0xff]  ;;  %v7078_v33 = vld [vmem:[#allocation22 + $0x30] sm:$0xff] }
 0x8f7   :  { %7402 = vmatprep.subr.mxu0 %v7157_v3  ;;  %7472 = vmatpush2.msra.mxu1 %v7288_v11  ;;  %v7079_v3 = vld [vmem:[#allocation22 + $0x38] sm:$0xff]  ;;  %v7074_v49 = vld [vmem:[#allocation22 + $0x10] sm:$0xff] }
 0x8f8   :  { %7403 = vmatpush2.msra.mxu0 %v7156_v48  ;;  %7473 = vmatprep.subr.mxu1 %v7285_v5  ;;  %v7075_v48 = vld [vmem:[#allocation22 + $0x18] sm:$0xff]  ;;  %v7198_v11 = vld [vmem:[#allocation22 + $0x3f0] sm:$0xff] }
 0x8f9   :  { %7404 = vmatprep.subr.mxu0 %v7153_v53  ;;  %7474 = vmatpush2.msra.mxu1 %v7284_v15  ;;  %v7199_v53 = vld [vmem:[#allocation22 + $0x3f8] sm:$0xff]  ;;  %v7194_v5 = vld [vmem:[#allocation22 + $0x3d0] sm:$0xff] }
 0x8fa   :  { %7405 = vmatpush2.msra.mxu0 %v7152_v23  ;;  %7475 = vmatprep.subr.mxu1 %v7281_v16  ;;  %v7195_v23 = vld [vmem:[#allocation22 + $0x3d8] sm:$0xff]  ;;  %v7190_v15 = vld [vmem:[#allocation22 + $0x3b0] sm:$0xff] }
 0x8fb   :  { %7406 = vmatprep.subr.mxu0 %v7149_v2  ;;  %7476 = vmatpush2.msra.mxu1 %v7280_v57  ;;  %v7191_v2 = vld [vmem:[#allocation22 + $0x3b8] sm:$0xff]  ;;  %v7186_v16 = vld [vmem:[#allocation22 + $0x390] sm:$0xff] }
 0x8fc   :  { %7407 = vmatpush2.msra.mxu0 %v7148_v35  ;;  %7477 = vmatprep.subr.mxu1 %v7277_v29  ;;  %v7187_v35 = vld [vmem:[#allocation22 + $0x398] sm:$0xff]  ;;  %v7166_v57 = vld [vmem:[#allocation22 + $0x2f0] sm:$0xff] }
 0x8fd   :  { %7408 = vmatprep.subr.mxu0 %v7145_v8  ;;  %7478 = vmatpush2.msra.mxu1 %v7276_v59  ;;  %v7183_v8 = vld [vmem:[#allocation22 + $0x378] sm:$0xff]  ;;  %v7162_v29 = vld [vmem:[#allocation22 + $0x2d0] sm:$0xff] }
 0x8fe   :  { %7409 = vmatpush2.msra.mxu0 %v7144_v63  ;;  %7479 = vmatprep.subr.mxu1 %v7273_v62  ;;  %v7182_v63 = vld [vmem:[#allocation22 + $0x370] sm:$0xff] }
 0x8ff   :  { %7410 = vmatprep.subr.mxu0 %v7141_v17  ;;  %7480 = vmatpush2.msra.mxu1 %v7272_v36  ;;  %v7179_v17 = vld [vmem:[#allocation22 + $0x358] sm:$0xff]  ;;  %v7158_v59 = vld [vmem:[#allocation22 + $0x2b0] sm:$0xff] }
 0x900   :  { %7411 = vmatpush2.msra.mxu0 %v7140_v30  ;;  %7481 = vmatprep.subr.mxu1 %v7269_v4  ;;  %v7178_v30 = vld [vmem:[#allocation22 + $0x350] sm:$0xff] }
 0x901   :  { %7412 = vmatprep.subr.mxu0 %v7137_v52  ;;  %7482 = vmatpush2.msra.mxu1 %v7268_v22  ;;  %v7175_v52 = vld [vmem:[#allocation22 + $0x338] sm:$0xff]  ;;  %v7154_v62 = vld [vmem:[#allocation22 + $0x290] sm:$0xff] }
 0x902   :  { %7413 = vmatpush2.msra.mxu0 %v7136_v9  ;;  %v7174_v9 = vld [vmem:[#allocation22 + $0x330] sm:$0xff] }
 0x903   :  { %7415 = vmatmul.mubr.f32.vlgmr.msra.gmra.mxu0 %v7068_v55  ;;  %7492 = vmatprep.subr.mxu0 %v7135_v13  ;;  %v7171_v13 = vld [vmem:[#allocation22 + $0x318] sm:$0xff]  ;;  %v7150_v36 = vld [vmem:[#allocation22 + $0x270] sm:$0xff] }
 0x904   :  { %7493 = vmatpush1.msra.mxu0 %v7134_v58  ;;  %7556 = vmatprep.mubr.f32.mxu0 %v7069_v7  ;;  %v7265_v7 = vld [vmem:[#allocation22 + $0x608] sm:$0xff]  ;;  %v7170_v58 = vld [vmem:[#allocation22 + $0x310] sm:$0xff] }
 0x905   :  { %7494 = vmatprep.subr.mxu0 %v7131_v50  ;;  %7483 = vmatprep.subr.mxu1 %v7265_v7  ;;  %v7167_v50 = vld [vmem:[#allocation22 + $0x2f8] sm:$0xff]  ;;  %v7146_v4 = vld [vmem:[#allocation22 + $0x250] sm:$0xff] }
 0x906   :  { %7495 = vmatpush1.msra.mxu0 %v7130_v1  ;;  %7484 = vmatpush2.msra.mxu1 %v7264_v37  ;;  %v7163_v1 = vld [vmem:[#allocation22 + $0x2d8] sm:$0xff]  ;;  %v7142_v22 = vld [vmem:[#allocation22 + $0x230] sm:$0xff] }
 0x907   :  { %7496 = vmatprep.subr.mxu0 %v7127_v31  ;;  %7563 = vmatprep.subr.mxu1 %v7263_v19  ;;  %v7159_v31 = vld [vmem:[#allocation22 + $0x2b8] sm:$0xff]  ;;  %v7138_v7 = vld [vmem:[#allocation22 + $0x210] sm:$0xff] }
 0x908   :  { %7497 = vmatpush1.msra.mxu0 %v7126_v32  ;;  %v7155_v32 = vld [vmem:[#allocation22 + $0x298] sm:$0xff] }
 0x909   :  { %7498 = vmatprep.subr.mxu0 %v7123_v26  ;;  %v7151_v26 = vld [vmem:[#allocation22 + $0x278] sm:$0xff] }
 0x90a   :  { %7499 = vmatpush1.msra.mxu0 %v7122_v24  ;;  %v7147_v24 = vld [vmem:[#allocation22 + $0x258] sm:$0xff] }
 0x90b   :  { %7500 = vmatprep.subr.mxu0 %v7119_v46  ;;  %v7143_v46 = vld [vmem:[#allocation22 + $0x238] sm:$0xff] }
 0x90c   :  { %7501 = vmatpush1.msra.mxu0 %v7118_v56  ;;  %v7139_v56 = vld [vmem:[#allocation22 + $0x218] sm:$0xff] }
 0x90d   :  { %7502 = vmatprep.subr.mxu0 %v7115_v28  ;;  %v6566_v28 = vpop.f32.mrf.mxu0  ;;  %v8532_v37 = vld [vmem:[#allocation20] sm:$0xf] }
 0x90e   :  { %7503 = vmatpush1.msra.mxu0 %v7114_v12  ;;  %v5923_v12 = vrot.slane %v8532_v37, %v9208_v40  ;;  %v5927_v19 = vrot.slane %v8532_v37, %v9217_v44  ;;  %v7647_v37 = vld [vmem:[%s10654_s15 + $0x48] sm:$0xff] }
 0x90f   :  { %7504 = vmatprep.subr.mxu0 %v7111_v20  ;;  %v6637_v20 = vpop.f32.mrf.mxu1 }
 0x910   :  { %7505 = vmatpush1.msra.mxu0 %v7110_v34  ;;  %v6568_v34 = vpop.f32.mrf.mxu0 }
 0x911   :  { %7506 = vmatprep.subr.mxu0 %v7107_v54  ;;  %v6567_v54 = vadd.f32 %v6566_v28, %v5923_v12  ;;  %v7246_v28 = vld [vmem:[#allocation22 + $0x570] sm:$0xff]  ;;  %v7243_v12 = vld [vmem:[#allocation22 + $0x558] sm:$0xff] }
 0x912   :  { %7507 = vmatpush1.msra.mxu0 %v7106_v61  ;;  %v6708_v61 = vpop.f32.mrf.mxu0 }
 0x913   :  { %7508 = vmatprep.subr.mxu0 %v7103_v60  ;;  %v6569_v60 = vadd.f32 %v6568_v34, %v5927_v19  ;;  %v7662_v19 = vld [vmem:[%s10654_s15 + $0xc0] sm:$0xff] }
 0x914   :  { %7509 = vmatpush1.msra.mxu0 %v7102_v6  ;;  %v6639_v6 = vpop.f32.mrf.mxu1  ;;  %v7646_v34 = vld [vmem:[%s10654_s15 + $0x40] sm:$0xff] }
 0x915   :  { %7510 = vmatprep.subr.mxu0 %v7099_v10  ;;  %v6638_v10 = vadd.f32 %v6637_v20, %v6567_v54  ;;  %v7242_v20 = vld [vmem:[#allocation22 + $0x550] sm:$0xff]  ;;  %v7239_v54 = vld [vmem:[#allocation22 + $0x538] sm:$0xff] }
 0x916   :  { %7511 = vmatpush1.msra.mxu0 %v7098_v45  ;;  %v6779_v45 = vpop.f32.mrf.mxu1 }
 0x917   :  { %7512 = vmatprep.subr.mxu0 %v7095_v38  ;;  %v6710_v38 = vpop.f32.mrf.mxu0 }
 0x918   :  { %7513 = vmatpush1.msra.mxu0 %v7094_v14  ;;  %v6640_v14 = vadd.f32 %v6639_v6, %v6569_v60  ;;  %v7238_v60 = vld [vmem:[#allocation22 + $0x530] sm:$0xff]  ;;  %v7645_v6 = vld [vmem:[%s10654_s15 + $0x38] sm:$0xff] }
 0x919   :  { %7514 = vmatprep.subr.mxu0 %v7091_v21  ;;  %v6709_v21 = vadd.f32 %v6708_v61, %v6638_v10  ;;  %v7661_v61 = vld [vmem:[%s10654_s15 + $0xb8] sm:$0xff]  ;;  %v7235_v10 = vld [vmem:[#allocation22 + $0x518] sm:$0xff] }
 0x91a   :  { %7515 = vmatpush1.msra.mxu0 %v7090_v27  ;;  %v6711_v39 = vadd.f32 %v6710_v38, %v6640_v14  ;;  %v7234_v38 = vld [vmem:[#allocation22 + $0x510] sm:$0xff]  ;;  %v7644_v14 = vld [vmem:[%s10654_s15 + $0x30] sm:$0xff] }
 0x91b   :  { %7516 = vmatprep.subr.mxu0 %v7087_v42  ;;  %v6780_v42 = vadd.f32 %v6779_v45, %v6709_v21  ;;  %v7660_v45 = vld [vmem:[%s10654_s15 + $0xb0] sm:$0xff] }
 0x91c   :  { %7517 = vmatpush1.msra.mxu0 %v7086_v25  ;;  %v7231_v21 = vld [vmem:[#allocation22 + $0x4f8] sm:$0xff] }
 0x91d   :  { %7518 = vmatprep.subr.mxu0 %v7083_v51 }
 0x91e   :  { %7519 = vmatpush1.msra.mxu0 %v7082_v47 }
 0x91f   :  { %7520 = vmatprep.subr.mxu0 %v7079_v3 }
 0x920   :  { %7521 = vmatpush1.msra.mxu0 %v7078_v33 }
 0x921   :  { %7522 = vmatprep.subr.mxu0 %v7075_v48 }
 0x922   :  { %7523 = vmatpush1.msra.mxu0 %v7074_v49 }
 0x923   :  { %7524 = vmatprep.subr.mxu0 %v7199_v53 }
 0x924   :  { %7525 = vmatpush2.msra.mxu0 %v7198_v11 }
 0x925   :  { %7526 = vmatprep.subr.mxu0 %v7195_v23 }
 0x926   :  { %7527 = vmatpush2.msra.mxu0 %v7194_v5 }
 0x927   :  { %7528 = vmatprep.subr.mxu0 %v7191_v2 }
 0x928   :  { %7529 = vmatpush2.msra.mxu0 %v7190_v15 }
 0x929   :  { %7530 = vmatprep.subr.mxu0 %v7187_v35 }
 0x92a   :  { %7531 = vmatpush2.msra.mxu0 %v7186_v16 }
 0x92b   :  { %7532 = vmatprep.subr.mxu0 %v7183_v8  ;;  %v7669_v8 = vld [vmem:[%s10654_s15 + $0xf8] sm:$0xff] }
 0x92c   :  { %7533 = vmatpush2.msra.mxu0 %v7182_v63  ;;  %v7653_v63 = vld [vmem:[%s10654_s15 + $0x78] sm:$0xff] }
 0x92d   :  { %7534 = vmatprep.subr.mxu0 %v7179_v17  ;;  %v7668_v17 = vld [vmem:[%s10654_s15 + $0xf0] sm:$0xff] }
 0x92e   :  { %7535 = vmatpush2.msra.mxu0 %v7178_v30 }
 0x92f   :  { %7536 = vmatprep.subr.mxu0 %v7175_v52  ;;  %v7652_v52 = vld [vmem:[%s10654_s15 + $0x70] sm:$0xff] }
 0x930   :  { %7537 = vmatpush2.msra.mxu0 %v7174_v9  ;;  %v7667_v9 = vld [vmem:[%s10654_s15 + $0xe8] sm:$0xff] }
 0x931   :  { %7538 = vmatprep.subr.mxu0 %v7171_v13 }
 0x932   :  { %7539 = vmatpush2.msra.mxu0 %v7170_v58  ;;  %v7651_v58 = vld [vmem:[%s10654_s15 + $0x68] sm:$0xff] }
 0x933   :  { %7540 = vmatprep.subr.mxu0 %v7167_v50 }
 0x934   :  { %7541 = vmatpush2.msra.mxu0 %v7166_v57  ;;  %v7262_v57 = vld [vmem:[#allocation22 + $0x5f0] sm:$0xff] }
 0x935   :  { %7542 = vmatprep.subr.mxu0 %v7163_v1  ;;  %v7259_v1 = vld [vmem:[#allocation22 + $0x5d8] sm:$0xff] }
 0x936   :  { %7543 = vmatpush2.msra.mxu0 %v7162_v29  ;;  %v7666_v29 = vld [vmem:[%s10654_s15 + $0xe0] sm:$0xff] }
 0x937   :  { %7544 = vmatprep.subr.mxu0 %v7159_v31  ;;  %v7258_v31 = vld [vmem:[#allocation22 + $0x5d0] sm:$0xff] }
 0x938   :  { %7545 = vmatpush2.msra.mxu0 %v7158_v59  ;;  %v7650_v59 = vld [vmem:[%s10654_s15 + $0x60] sm:$0xff] }
 0x939   :  { %7546 = vmatprep.subr.mxu0 %v7155_v32  ;;  %v7255_v32 = vld [vmem:[#allocation22 + $0x5b8] sm:$0xff] }
 0x93a   :  { %7547 = vmatpush2.msra.mxu0 %v7154_v62  ;;  %v7665_v62 = vld [vmem:[%s10654_s15 + $0xd8] sm:$0xff] }
 0x93b   :  { %7548 = vmatprep.subr.mxu0 %v7151_v26  ;;  %v7254_v26 = vld [vmem:[#allocation22 + $0x5b0] sm:$0xff] }
 0x93c   :  { %7549 = vmatpush2.msra.mxu0 %v7150_v36  ;;  %v7649_v36 = vld [vmem:[%s10654_s15 + $0x58] sm:$0xff] }
 0x93d   :  { %7550 = vmatprep.subr.mxu0 %v7147_v24  ;;  %v7251_v24 = vld [vmem:[#allocation22 + $0x598] sm:$0xff] }
 0x93e   :  { %7551 = vmatpush2.msra.mxu0 %v7146_v4  ;;  %v7664_v4 = vld [vmem:[%s10654_s15 + $0xd0] sm:$0xff] }
 0x93f   :  { %7552 = vmatprep.subr.mxu0 %v7143_v46  ;;  %v7250_v46 = vld [vmem:[#allocation22 + $0x590] sm:$0xff] }
 0x940   :  { %7553 = vmatpush2.msra.mxu0 %v7142_v22  ;;  %v6850_v27 = vpop.f32.mrf.mxu0  ;;  %v7648_v22 = vld [vmem:[%s10654_s15 + $0x50] sm:$0xff] }
 0x941   :  { %7554 = vmatprep.subr.mxu0 %v7139_v56  ;;  %v6851_v3 = vadd.f32 %v6850_v27, %v6780_v42  ;;  %v7247_v56 = vld [vmem:[#allocation22 + $0x578] sm:$0xff] }
 0x942   :  { %7555 = vmatpush2.msra.mxu0 %v7138_v7  ;;  %v6852_v51 = vpop.f32.mrf.mxu0  ;;  %v7663_v7 = vld [vmem:[%s10654_s15 + $0xc8] sm:$0xff] }
 0x943   :  { %7557 = vmatmul.mubr.f32.vlgmr.msra.gmra.mxu0 %v7068_v55  ;;  %v6781_v55 = vpop.f32.mrf.mxu1  ;;  %8401 = vmatprep.subr.mxu0 %v7669_v8  ;;  %v7659_v27 = vld [vmem:[%s10654_s15 + $0xa8] sm:$0xff] }
 0x944   :  { %v6782_v47 = vadd.f32 %v6781_v55, %v6711_v39  ;;  %8402 = vmatpush3.msra.mxu0 %v7653_v63  ;;  %v7230_v39 = vld [vmem:[#allocation22 + $0x4f0] sm:$0xff]  ;;  %v7227_v42 = vld [vmem:[#allocation22 + $0x4d8] sm:$0xff] }
 0x945   :  { %v6921_v25 = vpop.f32.mrf.mxu1  ;;  %8403 = vmatprep.subr.mxu0 %v7668_v17  ;;  %v7643_v55 = vld [vmem:[%s10654_s15 + $0x28] sm:$0xff] }
 0x946   :  { %v6853_v33 = vadd.f32 %v6852_v51, %v6782_v47  ;;  %v6922_v49 = vadd.f32 %v6921_v25, %v6851_v3  ;;  %8404 = vmatpush3.msra.mxu0 %v7652_v52  ;;  %v7658_v25 = vld [vmem:[%s10654_s15 + $0xa0] sm:$0xff]  ;;  %v7223_v3 = vld [vmem:[#allocation22 + $0x4b8] sm:$0xff] }
 0x947   :  { %v6923_v48 = vpop.f32.mrf.mxu1  ;;  %8405 = vmatprep.subr.mxu0 %v7667_v9  ;;  %v7226_v51 = vld [vmem:[#allocation22 + $0x4d0] sm:$0xff]  ;;  %v7203_v8 = vld [vmem:[#allocation22 + $0x418] sm:$0xff] }
 0x948   :  { %v6924_v23 = vadd.f32 %v6923_v48, %v6853_v33  ;;  %8406 = vmatpush3.msra.mxu0 %v7651_v58  ;;  %v7642_v47 = vld [vmem:[%s10654_s15 + $0x20] sm:$0xff]  ;;  %v7657_v33 = vld [vmem:[%s10654_s15 + $0x98] sm:$0xff]  ;;  %v7327_v17 = vld [vmem:[#allocation22 + $0x7f8] sm:$0xff] }
 0x949   :  { %8407 = vmatprep.subr.mxu0 %v7666_v29  ;;  %v7222_v48 = vld [vmem:[#allocation22 + $0x4b0] sm:$0xff]  ;;  %v7323_v52 = vld [vmem:[#allocation22 + $0x7d8] sm:$0xff] }
 0x94a   :  { %8408 = vmatpush3.msra.mxu0 %v7650_v59  ;;  %v7202_v63 = vld [vmem:[#allocation22 + $0x410] sm:$0xff]  ;;  %v7311_v29 = vld [vmem:[#allocation22 + $0x778] sm:$0xff] }
 0x94b   :  { %8409 = vmatprep.subr.mxu0 %v7665_v62  ;;  %v7322_v9 = vld [vmem:[#allocation22 + $0x7d0] sm:$0xff]  ;;  %v7307_v59 = vld [vmem:[#allocation22 + $0x758] sm:$0xff] }
 0x94c   :  { %8410 = vmatpush3.msra.mxu0 %v7649_v36  ;;  %v7318_v58 = vld [vmem:[#allocation22 + $0x7b0] sm:$0xff]  ;;  %v7303_v62 = vld [vmem:[#allocation22 + $0x738] sm:$0xff] }
 0x94d   :  { %8411 = vmatprep.subr.mxu0 %v7664_v4  ;;  %v7299_v36 = vld [vmem:[#allocation22 + $0x718] sm:$0xff] }
 0x94e   :  { %8412 = vmatpush3.msra.mxu0 %v7648_v22  ;;  %v7295_v4 = vld [vmem:[#allocation22 + $0x6f8] sm:$0xff] }
 0x94f   :  { %8413 = vmatprep.subr.mxu0 %v7663_v7  ;;  %v7291_v22 = vld [vmem:[#allocation22 + $0x6d8] sm:$0xff] }
 0x950   :  { %8414 = vmatpush3.msra.mxu0 %v7647_v37  ;;  %v7287_v7 = vld [vmem:[#allocation22 + $0x6b8] sm:$0xff] }
 0x951   :  { %8415 = vmatprep.subr.mxu0 %v7662_v19  ;;  %v7283_v37 = vld [vmem:[#allocation22 + $0x698] sm:$0xff] }
 0x952   :  { %8416 = vmatpush3.msra.mxu0 %v7646_v34  ;;  %v7279_v19 = vld [vmem:[#allocation22 + $0x678] sm:$0xff] }
 0x953   :  { %8417 = vmatprep.subr.mxu0 %v7661_v61  ;;  %v7275_v34 = vld [vmem:[#allocation22 + $0x658] sm:$0xff] }
 0x954   :  { %8418 = vmatpush3.msra.mxu0 %v7645_v6  ;;  %v7271_v61 = vld [vmem:[#allocation22 + $0x638] sm:$0xff] }
 0x955   :  { %8419 = vmatprep.subr.mxu0 %v7660_v45  ;;  %v7267_v6 = vld [vmem:[#allocation22 + $0x618] sm:$0xff]  ;;  %v7641_v45 = vld [vmem:[%s10654_s15 + $0x18] sm:$0xff] }
 0x956   :  { %8420 = vmatpush3.msra.mxu0 %v7644_v14  ;;  %v7640_v14 = vld [vmem:[%s10654_s15 + $0x10] sm:$0xff] }
 0x957   :  { %8421 = vmatprep.subr.mxu0 %v7659_v27  ;;  %v7638_v27 = vld [vmem:[%s10654_s15] sm:$0xff] }
 0x958   :  { %8422 = vmatpush3.msra.mxu0 %v7643_v55  ;;  %v7685_v55 = vld [vmem:[%s10654_s15 + $0x178] sm:$0xff] }
 0x959   :  { %8423 = vmatprep.subr.mxu0 %v7658_v25  ;;  %v7684_v25 = vld [vmem:[%s10654_s15 + $0x170] sm:$0xff] }
 0x95a   :  { %8424 = vmatpush3.msra.mxu0 %v7642_v47  ;;  %v7683_v47 = vld [vmem:[%s10654_s15 + $0x168] sm:$0xff] }
 0x95b   :  { %8425 = vmatprep.subr.mxu0 %v7657_v33  ;;  %v7682_v33 = vld [vmem:[%s10654_s15 + $0x160] sm:$0xff] }
 0x95c   :  { %8426 = vmatpush3.msra.mxu0 %v7641_v45 }
 0x982   :  { %v6992_v53 = vpop.f32.mrf.mxu0  ;;  %v7063_v11 = vpop.f32.mrf.mxu1 }
 0x983   :  { %v6993_v5 = vadd.f32 %v6992_v53, %v6922_v49  ;;  %v7219_v49 = vld [vmem:[#allocation22 + $0x498] sm:$0xff]  ;;  %v7218_v53 = vld [vmem:[#allocation22 + $0x490] sm:$0xff] }
 0x984   :  { %v6994_v2 = vpop.f32.mrf.mxu0  ;;  %v7065_v16 = vpop.f32.mrf.mxu1 }
 0x985   :  { %v6995_v15 = vadd.f32 %v6994_v2, %v6924_v23  ;;  %v10388_v35 = vadd.f32 %v7063_v11, %v6993_v5  ;;  %v7215_v11 = vld [vmem:[#allocation22 + $0x478] sm:$0xff]  ;;  %v7214_v23 = vld [vmem:[#allocation22 + $0x470] sm:$0xff] }
 0x986   :  { %v7211_v5 = vld [vmem:[#allocation22 + $0x458] sm:$0xff]  ;;  %v7210_v2 = vld [vmem:[#allocation22 + $0x450] sm:$0xff] }
 0x987   :  { %v7066_v30 = vadd.f32 %v7065_v16, %v6995_v15  ;;  %v7070_v50 = vmax.f32 %v10388_v35, 0.0  ;;  %v7207_v15 = vld [vmem:[#allocation22 + $0x438] sm:$0xff]  ;;  %v7206_v16 = vld [vmem:[#allocation22 + $0x430] sm:$0xff] }
 0x988   :  { %v7655_v35 = vld [vmem:[%s10654_s15 + $0x88] sm:$0xff] }
 0x989   :  { %v7071_v13 = vmax.f32 %v7066_v30, 0.0  ;;  %v7326_v30 = vld [vmem:[#allocation22 + $0x7f0] sm:$0xff] }
 0x98b   :  { %7485 = vmatprep.mubr.f32.mxu1 %v7071_v13 }
 0x98c   :  { %7486 = vmatmul.mubr.f32.vlgmr.msra.gmra.mxu1 %v7070_v50 }
 0x98d   :  { %7564 = vmatpush1.msra.mxu1 %v7262_v57  ;;  %7627 = vmatprep.mubr.f32.mxu1 %v7071_v13  ;;  %v7319_v13 = vld [vmem:[#allocation22 + $0x7b8] sm:$0xff] }
 0x98e   :  { %7565 = vmatprep.subr.mxu1 %v7259_v1  ;;  %v7315_v57 = vld [vmem:[#allocation22 + $0x798] sm:$0xff]  ;;  %v7314_v1 = vld [vmem:[#allocation22 + $0x790] sm:$0xff] }
 0x98f   :  { %7566 = vmatpush1.msra.mxu1 %v7258_v31  ;;  %v7310_v31 = vld [vmem:[#allocation22 + $0x770] sm:$0xff] }
 0x990   :  { %7567 = vmatprep.subr.mxu1 %v7255_v32  ;;  %v7306_v32 = vld [vmem:[#allocation22 + $0x750] sm:$0xff] }
 0x991   :  { %7568 = vmatpush1.msra.mxu1 %v7254_v26  ;;  %v7302_v26 = vld [vmem:[#allocation22 + $0x730] sm:$0xff] }
 0x992   :  { %7569 = vmatprep.subr.mxu1 %v7251_v24  ;;  %v7298_v24 = vld [vmem:[#allocation22 + $0x710] sm:$0xff] }
 0x993   :  { %7570 = vmatpush1.msra.mxu1 %v7250_v46  ;;  %v7294_v46 = vld [vmem:[#allocation22 + $0x6f0] sm:$0xff] }
 0x994   :  { %7571 = vmatprep.subr.mxu1 %v7247_v56  ;;  %v7290_v56 = vld [vmem:[#allocation22 + $0x6d0] sm:$0xff] }
 0x995   :  { %7572 = vmatpush1.msra.mxu1 %v7246_v28  ;;  %v7286_v28 = vld [vmem:[#allocation22 + $0x6b0] sm:$0xff] }
 0x996   :  { %7573 = vmatprep.subr.mxu1 %v7243_v12  ;;  %v7282_v12 = vld [vmem:[#allocation22 + $0x690] sm:$0xff] }
 0x997   :  { %7574 = vmatpush1.msra.mxu1 %v7242_v20  ;;  %v7278_v20 = vld [vmem:[#allocation22 + $0x670] sm:$0xff] }
 0x998   :  { %7575 = vmatprep.subr.mxu1 %v7239_v54  ;;  %v7274_v54 = vld [vmem:[#allocation22 + $0x650] sm:$0xff] }
 0x999   :  { %7576 = vmatpush1.msra.mxu1 %v7238_v60  ;;  %v7270_v60 = vld [vmem:[#allocation22 + $0x630] sm:$0xff] }
 0x99a   :  { %7577 = vmatprep.subr.mxu1 %v7235_v10  ;;  %v7266_v10 = vld [vmem:[#allocation22 + $0x610] sm:$0xff] }
 0x99b   :  { %7578 = vmatpush1.msra.mxu1 %v7234_v38  ;;  %v7656_v38 = vld [vmem:[%s10654_s15 + $0x90] sm:$0xff] }
 0x99c   :  { %7579 = vmatprep.subr.mxu1 %v7231_v21  ;;  %8427 = vmatprep.subr.mxu0 %v7656_v38  ;;  %v7654_v21 = vld [vmem:[%s10654_s15 + $0x80] sm:$0xff] }
 0x99d   :  { %7580 = vmatpush1.msra.mxu1 %v7230_v39  ;;  %8428 = vmatpush3.msra.mxu0 %v7640_v14  ;;  %v7701_v39 = vld [vmem:[%s10654_s15 + $0x1f8] sm:$0xff] }
 0x99e   :  { %7581 = vmatprep.subr.mxu1 %v7227_v42  ;;  %8429 = vmatprep.subr.mxu0 %v7655_v35  ;;  %v7700_v42 = vld [vmem:[%s10654_s15 + $0x1f0] sm:$0xff] }
 0x99f   :  { %7582 = vmatpush1.msra.mxu1 %v7226_v51  ;;  %v7699_v51 = vld [vmem:[%s10654_s15 + $0x1e8] sm:$0xff] }
 0x9a0   :  { %7583 = vmatprep.subr.mxu1 %v7223_v3  ;;  %v7698_v3 = vld [vmem:[%s10654_s15 + $0x1e0] sm:$0xff] }
 0x9a1   :  { %7584 = vmatpush1.msra.mxu1 %v7222_v48  ;;  %v7697_v48 = vld [vmem:[%s10654_s15 + $0x1d8] sm:$0xff] }
 0x9a2   :  { %7585 = vmatprep.subr.mxu1 %v7219_v49  ;;  %v7681_v49 = vld [vmem:[%s10654_s15 + $0x158] sm:$0xff] }
 0x9a3   :  { %7586 = vmatpush1.msra.mxu1 %v7218_v53  ;;  %v7696_v53 = vld [vmem:[%s10654_s15 + $0x1d0] sm:$0xff] }
 0x9a4   :  { %7587 = vmatprep.subr.mxu1 %v7215_v11  ;;  %v7680_v11 = vld [vmem:[%s10654_s15 + $0x150] sm:$0xff] }
 0x9a5   :  { %7588 = vmatpush1.msra.mxu1 %v7214_v23  ;;  %v7695_v23 = vld [vmem:[%s10654_s15 + $0x1c8] sm:$0xff] }
 0x9a6   :  { %7589 = vmatprep.subr.mxu1 %v7211_v5  ;;  %v7679_v5 = vld [vmem:[%s10654_s15 + $0x148] sm:$0xff] }
 0x9a7   :  { %7590 = vmatpush1.msra.mxu1 %v7210_v2  ;;  %v7694_v2 = vld [vmem:[%s10654_s15 + $0x1c0] sm:$0xff] }
 0x9a8   :  { %7591 = vmatprep.subr.mxu1 %v7207_v15  ;;  %v7678_v15 = vld [vmem:[%s10654_s15 + $0x140] sm:$0xff] }
 0x9a9   :  { %7592 = vmatpush1.msra.mxu1 %v7206_v16  ;;  %v7693_v16 = vld [vmem:[%s10654_s15 + $0x1b8] sm:$0xff] }
 0x9aa   :  { %7593 = vmatprep.subr.mxu1 %v7203_v8  ;;  %v7677_v8 = vld [vmem:[%s10654_s15 + $0x138] sm:$0xff] }
 0x9ab   :  { %7594 = vmatpush1.msra.mxu1 %v7202_v63  ;;  %v7692_v63 = vld [vmem:[%s10654_s15 + $0x1b0] sm:$0xff] }
 0x9ac   :  { %7595 = vmatprep.subr.mxu1 %v7327_v17  ;;  %v7676_v17 = vld [vmem:[%s10654_s15 + $0x130] sm:$0xff] }
 0x9ad   :  { %7596 = vmatpush2.msra.mxu1 %v7326_v30  ;;  %v7691_v30 = vld [vmem:[%s10654_s15 + $0x1a8] sm:$0xff] }
 0x9ae   :  { %7597 = vmatprep.subr.mxu1 %v7323_v52  ;;  %v7675_v52 = vld [vmem:[%s10654_s15 + $0x128] sm:$0xff] }
 0x9af   :  { %7598 = vmatpush2.msra.mxu1 %v7322_v9  ;;  %v7690_v9 = vld [vmem:[%s10654_s15 + $0x1a0] sm:$0xff] }
 0x9b0   :  { %7599 = vmatprep.subr.mxu1 %v7319_v13  ;;  %v7674_v13 = vld [vmem:[%s10654_s15 + $0x120] sm:$0xff] }
 0x9b1   :  { %7600 = vmatpush2.msra.mxu1 %v7318_v58  ;;  %v7689_v58 = vld [vmem:[%s10654_s15 + $0x198] sm:$0xff] }
 0x9b2   :  { %7601 = vmatprep.subr.mxu1 %v7315_v57  ;;  %v7673_v57 = vld [vmem:[%s10654_s15 + $0x118] sm:$0xff] }
 0x9b3   :  { %7602 = vmatpush2.msra.mxu1 %v7314_v1  ;;  %v7688_v1 = vld [vmem:[%s10654_s15 + $0x190] sm:$0xff] }
 0x9b4   :  { %7603 = vmatprep.subr.mxu1 %v7311_v29  ;;  %v7672_v29 = vld [vmem:[%s10654_s15 + $0x110] sm:$0xff] }
 0x9b5   :  { %7604 = vmatpush2.msra.mxu1 %v7310_v31  ;;  %v7687_v31 = vld [vmem:[%s10654_s15 + $0x188] sm:$0xff] }
 0x9b6   :  { %7605 = vmatprep.subr.mxu1 %v7307_v59  ;;  %v7671_v59 = vld [vmem:[%s10654_s15 + $0x108] sm:$0xff] }
 0x9b7   :  { %7606 = vmatpush2.msra.mxu1 %v7306_v32  ;;  %v7686_v32 = vld [vmem:[%s10654_s15 + $0x180] sm:$0xff] }
 0x9b8   :  { %7607 = vmatprep.subr.mxu1 %v7303_v62  ;;  %v7670_v62 = vld [vmem:[%s10654_s15 + $0x100] sm:$0xff] }
 0x9b9   :  { %7608 = vmatpush2.msra.mxu1 %v7302_v26  ;;  %v7328_v26 = vld [vmem:[#allocation23] sm:$0xf] }
 0x9ba   :  { %7609 = vmatprep.subr.mxu1 %v7299_v36 }
 0x9bb   :  { %7610 = vmatpush2.msra.mxu1 %v7298_v24  ;;  %v7333_v24 = vrot.slane %v7328_v26, %v9211_v41  ;;  %v7853_v41 = vld [vmem:[%s10656_s17 + $0x10] sm:$0xff] }
 0x9bc   :  { %7611 = vmatprep.subr.mxu1 %v7295_v4  ;;  %v7337_v4 = vrot.slane %v7328_v26, %v9214_v43  ;;  %v7852_v43 = vld [vmem:[%s10656_s17 + $0x8] sm:$0xff] }
 0x9bd   :  { %7612 = vmatpush2.msra.mxu1 %v7294_v46 }
 0x9be   :  { %7613 = vmatprep.subr.mxu1 %v7291_v22 }
 0x9bf   :  { %7614 = vmatpush2.msra.mxu1 %v7290_v56 }
 0x9c0   :  { %7615 = vmatprep.subr.mxu1 %v7287_v7 }
 0x9c1   :  { %7616 = vmatpush2.msra.mxu1 %v7286_v28 }
 0x9c2   :  { %7617 = vmatprep.subr.mxu1 %v7283_v37 }
 0x9c3   :  { %7618 = vmatpush2.msra.mxu1 %v7282_v12  ;;  %v7416_v36 = vpop.f32.mrf.mxu0 }
 0x9c4   :  { %7619 = vmatprep.subr.mxu1 %v7279_v19  ;;  %v7417_v22 = vadd.f32 %v7416_v36, %v7333_v24 }
 0x9c5   :  { %7620 = vmatpush2.msra.mxu1 %v7278_v20  ;;  %v7418_v46 = vpop.f32.mrf.mxu0 }
 0x9c6   :  { %7621 = vmatprep.subr.mxu1 %v7275_v34  ;;  %v7419_v7 = vadd.f32 %v7418_v46, %v7337_v4  ;;  %v7854_v34 = vld [vmem:[%s10656_s17 + $0x18] sm:$0xff] }
 0x9c7   :  { %7622 = vmatpush2.msra.mxu1 %v7274_v54  ;;  %v7851_v54 = vld [vmem:[%s10656_s17] sm:$0xff]  ;;  %s9001_s17 = smov [#allocation32]  }
 0x9c8   :  { %7623 = vmatprep.subr.mxu1 %v7271_v61  ;;  %s8065_s29 = sshll.u32 %s9001_s17, 4  ;;  %s8066_s29 = int_to_ptr.vmem [resolvable:$true] %s8065_s29 }
 0x9c9   :  { %7624 = vmatpush2.msra.mxu1 %v7270_v60  ;;  %v7341_v60 = vrot.slane %v7328_v26, %v9208_v40  ;;  %s8893_s0 = scalar_lea.vmem %s8066_s29, 128  ;;  %p8898_p7 = scmp.lt.s32.totalorder %s8066_s29, %s8066_s29 }
 0x9ca   :  { %7625 = vmatprep.subr.mxu1 %v7267_v6  ;;  %v7345_v6 = vrot.slane %v7328_v26, %v9217_v44  ;;  %p8894_p6 = scmp.ne.s32.totalorder %s8066_s29, %s8893_s0  ;;  %p8899_p8 = scmp.lt.s32.totalorder %s8893_s0, %s8893_s0 }
 0x9cb   :  { %7626 = vmatpush2.msra.mxu1 %v7266_v10 }
 0x9cc   :  { %7628 = vmatmul.mubr.f32.vlgmr.msra.gmra.mxu1 %v7070_v50  ;;  %v7639_v50 = vld [vmem:[%s10654_s15 + $0x8] sm:$0xff]  ;;  %8436 = vmatprep.subr.mxu1 %v7701_v39  ;;  %p8900_p9 = por %p8899_p8, %p8898_p7 }
 0x9cd   :  { %8430 = vmatpush3.msra.mxu0 %v7639_v50  ;;  %8437 = vmatpush3.msra.mxu1 %v7685_v55  ;;  %v7953_v55 = vld [vmem:[#allocation28] sm:$0xf] }
 0x9ce   :  { %8431 = vmatprep.subr.mxu0 %v7654_v21  ;;  %8438 = vmatprep.subr.mxu1 %v7700_v42  ;;  %v8116_v42 = vld [vmem:[#allocation26] ss:$0 sm:$0xff]  ;;  %p8901_p10 = pnand %p8900_p9, %p8894_p6 }
 0x9cf   :  { %8432 = vmatpush3.msra.mxu0 %v7638_v27  ;;  %8439 = vmatpush3.msra.mxu1 %v7684_v25 }
 0x9d0   :  { %8478 = vmatprep.subr.mxu0 %v8999_v0  ;;  %8440 = vmatprep.subr.mxu1 %v7699_v51 }
 0x9d1   :  { %8441 = vmatpush3.msra.mxu1 %v7683_v47 }
 0x9d2   :  { %8442 = vmatprep.subr.mxu1 %v7698_v3 }
 0x9d3   :  { %8443 = vmatpush3.msra.mxu1 %v7682_v33 }
 0x9d4   :  { %8444 = vmatprep.subr.mxu1 %v7697_v48 }
 0x9d5   :  { %8445 = vmatpush3.msra.mxu1 %v7681_v49  ;;  %v8115_v49 = vld [vmem:[#allocation25] ss:$0 sm:$0xff] }
 0x9d6   :  { %8446 = vmatprep.subr.mxu1 %v7696_v53  ;;  %v8120_v53 = vld [vmem:[#allocation29] ss:$0 sm:$0xff] }
 0x9d7   :  { %8447 = vmatpush3.msra.mxu1 %v7680_v11  ;;  %v7952_v11 = vpop.xlane.xlu0 %7951 }
 0x9d8   :  { %8448 = vmatprep.subr.mxu1 %v7695_v23 }
 0x9d9   :  { %8449 = vmatpush3.msra.mxu1 %v7679_v5 }
 0x9da   :  { %8450 = vmatprep.subr.mxu1 %v7694_v2 }
 0x9db   :  { %8451 = vmatpush3.msra.mxu1 %v7678_v15  ;;  %v8034_v15 = vadd.f32 %v8120_v53, %v7952_v11 }
 0x9dc   :  { %8452 = vmatprep.subr.mxu1 %v7693_v16 }
 0x9dd   :  { %8453 = vmatpush3.msra.mxu1 %v7677_v8 }
 0x9de   :  { %8454 = vmatprep.subr.mxu1 %v7692_v63 }
 0x9df   :  { %8455 = vmatpush3.msra.mxu1 %v7676_v17 }
 0x9e0   :  { %8456 = vmatprep.subr.mxu1 %v7691_v30 }
 0x9e1   :  { %8457 = vmatpush3.msra.mxu1 %v7675_v52 }
 0x9e2   :  { %8458 = vmatprep.subr.mxu1 %v7690_v9 }
 0x9e3   :  { %8459 = vmatpush3.msra.mxu1 %v7674_v13 }
 0x9e4   :  { %8460 = vmatprep.subr.mxu1 %v7689_v58 }
 0x9e5   :  { %8461 = vmatpush3.msra.mxu1 %v7673_v57 }
 0x9e6   :  { %8462 = vmatprep.subr.mxu1 %v7688_v1 }
 0x9e7   :  { %8463 = vmatpush3.msra.mxu1 %v7672_v29 }
 0x9e8   :  { %8464 = vmatprep.subr.mxu1 %v7687_v31 }
 0x9e9   :  { %8465 = vmatpush3.msra.mxu1 %v7671_v59 }
 0x9ea   :  { %8466 = vmatprep.subr.mxu1 %v7686_v32 }
 0x9eb   :  { %8467 = vmatpush3.msra.mxu1 %v7670_v62 }
 0x9ec   :  { %8489 = vmatprep.subr.mxu1 %v8999_v0 }
 0xa03   :  { %v7558_v61 = vpop.f32.mrf.mxu0 }
 0xa04   :  { %v7559_v45 = vadd.f32 %v7558_v61, %v7341_v60 }
 0xa05   :  { %v7560_v10 = vpop.f32.mrf.mxu0 }
 0xa06   :  { %v7561_v14 = vadd.f32 %v7560_v10, %v7345_v6 }
 0xa4c   :  { %v7487_v56 = vpop.f32.mrf.mxu1 }
 0xa4d   :  { %v7488_v28 = vadd.f32 %v7487_v56, %v7417_v22 }
 0xa4e   :  { %v7489_v37 = vpop.f32.mrf.mxu1 }
 0xa4f   :  { %v7490_v12 = vadd.f32 %v7489_v37, %v7419_v7  ;;  %v7634_v20 = vmax.f32 %v7488_v28, 0.0 }
 0xa51   :  { %v7635_v19 = vmax.f32 %v7490_v12, 0.0 }
 0xa53   :  { %7773 = vmatprep.mubr.f32.mxu0 %v7635_v19 }
 0xa54   :  { %7774 = vmatmul.mubr.f32.vlgmr.msra.gmra.mxu0 %v7634_v20 }
 0xa55   :  { %8479 = vmatpush3.msra.mxu0 %v7854_v34  ;;  %8486 = vmatprep.mubr.msk.f32.mxu0 %vm9000_vm2, %v8999_v0 }
 0xa56   :  { %8480 = vmatprep.subr.mxu0 %v8999_v0 }
 0xa57   :  { %8481 = vmatpush3.msra.mxu0 %v7853_v41 }
 0xa58   :  { %8482 = vmatprep.subr.mxu0 %v8999_v0 }
 0xa59   :  { %8483 = vmatpush3.msra.mxu0 %v7852_v43 }
 0xa5a   :  { %8484 = vmatprep.subr.mxu0 %v8999_v0 }
 0xa5b   :  { %8485 = vmatpush3.msra.mxu0 %v7851_v54 }
 0xa5c   :  { %8487 = vmatmul.mubr.msk.f32.vlgmr.msra.gmra.mxu0 %vm4148_vm1, %v10154_v18 }
 0xa8c   :  { %v7629_v38 = vpop.f32.mrf.mxu1 }
 0xa8d   :  { %v7630_v35 = vadd.f32 %v7629_v38, %v7559_v45 }
 0xa8e   :  { %v7631_v50 = vpop.f32.mrf.mxu1 }
 0xa8f   :  { %v7632_v21 = vadd.f32 %v7631_v50, %v7561_v14  ;;  %v7636_v39 = vmax.f32 %v7630_v35, 0.0 }
 0xa91   :  { %v7637_v27 = vmax.f32 %v7632_v21, 0.0 }
 0xa93   :  { %7843 = vmatprep.mubr.f32.mxu1 %v7637_v27 }
 0xa94   :  { %7844 = vmatmul.mubr.f32.vlgmr.msra.gmra.mxu1 %v7636_v39 }
 0xa95   :  { %8490 = vmatpush3.xpose.msk.msra.mxu1 %vm4148_vm1, %v7953_v55  ;;  %8491 = vmatprep.mubr.msk.f32.mxu1 %vm9000_vm2, %v8999_v0 }
 0xa98   :  { %8492 = vmatmul.mubr.msk.f32.vlgmr.msra.gmra.mxu1 %vm4148_vm1, %v10154_v18 }
 0xb14   :  { %v8433_v40 = vpop.f32.mrf.mxu0 }
 0xb16   :  { %v8434_v44 = vpop.f32.mrf.mxu0 }
 0xb17   :  { %v8435_v48 = vadd.f32 %v8434_v44, %v8433_v40 }
 0xb19   :  { %v7776_v23 = vadd.f32 %v8435_v48, %v8115_v49 }
 0xb1c   :  { %v7928_v25 = vpop.f32.mrf.mxu0 }
 0xb1d   :  { %v10617_v51 = vadd.f32 %v8116_v42, %v7928_v25 }
 0xb1e   :  { %v8488_v47 = vpop.f32.mrf.mxu0 }
 0xb1f   :  { %v7932_v3 = vmul.f32 %v10617_v51, %v10617_v51 }
 0xb21   :  { %v7934_v33 = vsel %vm7933_vm3, %v7932_v3, 0.0 }
 0xb22   :  { %7935 = vadd.xlane.f32.xlu0 %v7934_v33 }
 0xb54   :  { %v8468_v0 = vpop.f32.mrf.mxu1 }
 0xb56   :  { %v8469_v18 = vpop.f32.mrf.mxu1 }
 0xb57   :  { %v8470_v5 = vadd.f32 %v8469_v18, %v8468_v0 }
 0xb58   :  { %v8023_v2 = vpop.f32.mrf.mxu1 }
 0xb59   :  { %v7846_v16 = vadd.f32 %v8470_v5, %v7776_v23  ;;  %v8035_v8 = vmul.f32 2.0, %v8023_v2 }
 0xb5a   :  { %v8493_v63 = vpop.f32.mrf.mxu1 }
 0xb5b   :  { %v8036_v17 = vsub.f32 %v8034_v15, %v8035_v8  ;;  %v7849_v30 = vsel %vm349_vm0, %v7846_v16, 0.0 }
 0xb5c   :  { %7850 = vst [vmem:[#allocation32] sm:$0xff] %v7849_v30 }
 0xb5d   :  { %v8037_v52 = vmax.f32 %v8036_v17, 0.0 }
 0xb5f   :  { %v8038_v9 = vadd.f32 1.0, %v8037_v52 }
 0xb61   :  { %8521 = vrcp.f32 %v8038_v9 }
 0xb6e   :  { %v8522_v13 = vpop.eup %8521 }
 0xb6f   :  { %v8042_v58 = vsel %vm8041_vm4, %v8522_v13, 0.0 }
 0xb70   :  { %8043 = vadd.xlane.f32.xlu1 %v8042_v58 }
 0xb71   :  { %8904 = shalt.err (!%p8901_p10)
}
 0xb72   :  { %8068 = dma.vmem_to_hbm [thread:$0]  %s8066_s29, 128, %s10661_s22, [#allocation33]  }
 0xb73   :  { %s8913_s3 = scalar_lea.vmem %s8056_s7, 128  ;;  %p8918_p12 = scmp.lt.s32.totalorder %s8056_s7, %s8056_s7 }
 0xb74   :  { %p8914_p11 = scmp.ne.s32.totalorder %s8056_s7, %s8913_s3  ;;  %p8919_p13 = scmp.lt.s32.totalorder %s8913_s3, %s8913_s3 }
 0xb76   :  { %p8920_p0 = por %p8919_p13, %p8918_p12 }
 0xb78   :  { %p8921_p1 = pnand %p8920_p0, %p8914_p11 }
 0xb7a   :  { %8924 = shalt.err (!%p8921_p1)
}
 0xb7b   :  { %8058 = dma.vmem_to_hbm [thread:$0]  %s8056_s7, 128, %s10660_s21, [#allocation4]  }
 0xb7c   :  { %s9003_s22 = smov [#allocation34]  }
 0xb7d   :  { %s8075_s5 = sshll.u32 %s9003_s22, 4  ;;  %s8076_s5 = int_to_ptr.vmem [resolvable:$true] %s8075_s5 }
 0xb7e   :  { %s8933_s21 = scalar_lea.vmem %s8076_s5, 128  ;;  %p8938_p3 = scmp.lt.s32.totalorder %s8076_s5, %s8076_s5 }
 0xb7f   :  { %p8934_p2 = scmp.ne.s32.totalorder %s8076_s5, %s8933_s21  ;;  %p8939_p4 = scmp.lt.s32.totalorder %s8933_s21, %s8933_s21 }
 0xb81   :  { %p8940_p5 = por %p8939_p4, %p8938_p3 }
 0xb83   :  { %p8941_p6 = pnand %p8940_p5, %p8934_p2 }
 0xbab   :  { %v7936_v57 = vpop.xlane.xlu0 %7935 }
 0xbac   :  { %8523 = vrsqrt.f32 %v7936_v57  ;;  %vm7939_vm5 = vcmp.eq.f32.partialorder %v7936_v57, inf  ;;  %v7942_v31 = vand.u32 2147483648, %v7936_v57  ;;  %vm7941_vm6 = vcmp.eq.f32.partialorder %v7936_v57, 0.0 }
 0xbb9   :  { %v8524_v1 = vpop.eup %8523 }
 0xbba   :  { %v7938_v29 = vmul.f32 %v8524_v1, %v7936_v57 }
 0xbbc   :  { %v7940_v59 = vsel %vm7939_vm5, %v7936_v57, %v7938_v29 }
 0xbbd   :  { %v7943_v32 = vsel %vm7941_vm6, %v7942_v31, %v7940_v59 }
 0xbbe   :  { %v7944_v62 = vmax.f32 %v7943_v32, 1e-12 }
 0xbc0   :  { %8525 = vrcp.f32 %v7944_v62 }
 0xbcd   :  { %v8526_v26 = vpop.eup %8525 }
 0xbce   :  { %v7946_v36 = vmul.f32 %v8526_v26, %v10617_v51 }
 0xbd0   :  { %v7947_v24 = vsel %vm7933_vm3, %v7946_v36, 0.0 }
 0xbd1   :  { %7948 = vst [vmem:[#allocation34] sm:$0xff] %v7947_v24 }
 0xbd2   :  { %8944 = shalt.err (!%p8941_p6)
}
 0xbd3   :  { %8078 = dma.vmem_to_hbm [thread:$0]  %s8076_s5, 128, %s10662_s23, [#allocation33]  }
 0xbf9   :  { %v8044_v4 = vpop.xlane.xlu1 %8043 }
 0xbfa   :  { %8527 = vrcp.f32 %v8044_v4 }
 0xc07   :  { %v8528_v46 = vpop.eup %8527 }
 0xc08   :  { %v8046_v22 = vmul.f32 %v8528_v46, %v8522_v13 }
 0xc0a   :  { %v8047_v56 = vsel %vm8041_vm4, %v8046_v22, 0.0 }
 0xc0b   :  { %8048 = vst [vmem:[%s10663_s24] sm:$0xff] %v8047_v56 }
 0xc0c   :  { %8973 = dma.done.wait [#allocation4], 128  }
 0xc0d   :  { %8974 = vsyncadd [#allocation4], 4294967168 }
 0xc0e   :  { %8975 = dma.done.wait [#allocation33], 256  }
 0xc0f   :  { %8976 = vsyncadd [#allocation33], 4294967040 }
 0xc10   :  { %8092 = vsyncpa [#allocation3], 1 }
 0xc11   :  { %8093 = vsyncpa [#allocation6], 1 }
 0xc12   :  { %8094 = vsyncpa [#allocation9], 1 }
 0xc13   :  { %8095 = vsyncpa [#allocation12], 1 }
 0xc14   :  { %8096 = vsyncpa [#allocation15], 1 }
 0xc15   :  { %8097 = vsyncpa [#allocation18], 1 }
 0xc16   :  { %8098 = vsyncpa [#allocation21], 1 }
 0xc17   :  { %8099 = vsyncpa [#allocation24], 1 }
 0xc18   :  { %8100 = vsyncpa [#allocation27], 1 }
 0xc19   :  { %8101 = vsyncpa [#allocation30], 1 }
 0xc1a   :  { %8102 = vsyncpa [#allocation4], 1 }
 0xc1b   :  { %8103 = vsyncpa [#allocation33], 1 }

</bundles_post_ra>
